<compile_context>
chip_gen: v5e
topology: v5e:2x2
jax: 0.10.0
libtpu: 0.0.40
codegen_flags: <defaults>
</compile_context>

<pallas_src>
import functools

import jax
import jax.numpy as jnp
from jax.experimental import pallas as pl
from jax.experimental.pallas import tpu as pltpu

KH = KW = 5
STRIDE = 2
BN_EPS = 1e-5
LANES = 128  # TPU lane width: pad all output-channel dims to this


def _conv_size_out(size, kernel_size=KH, stride=STRIDE):
    return (size - kernel_size) // stride + 1


# ----------------------------------------------------------------------------
# Pallas kernels
# ----------------------------------------------------------------------------
def conv_bn_relu_kernel(p_ref, w_ref, g_ref, beta_ref, o_ref):
    # p_ref: (R, K) bf16 im2col patches, w_ref: (K, 128) bf16,
    # g_ref/beta_ref: (1, 128) f32, o_ref: (R, 128) bf16.
    y = jnp.dot(p_ref[...], w_ref[...], preferred_element_type=jnp.float32)
    # Conv bias omitted: a per-channel constant cancels exactly in (y - mean)
    # when BatchNorm uses batch statistics (PyTorch training-mode forward).
    mean = jnp.mean(y, axis=0, keepdims=True)
    mean_sq = jnp.mean(y * y, axis=0, keepdims=True)
    var = jnp.maximum(mean_sq - mean * mean, 0.0)       # biased var, single pass
    y_hat = (y - mean) * jax.lax.rsqrt(var + BN_EPS)    # rsqrt -> EUP slot
    out = jnp.maximum(y_hat * g_ref[...] + beta_ref[...], 0.0)
    o_ref[...] = out.astype(o_ref.dtype)


def linear_kernel(x_ref, w_ref, b_ref, o_ref):
    o_ref[...] = (
        jnp.dot(x_ref[...], w_ref[...], preferred_element_type=jnp.float32)
        + b_ref[...]
    )


# ----------------------------------------------------------------------------
# Pallas call wrappers
# ----------------------------------------------------------------------------
def _fused_conv_bn_relu(patches, wmat, gamma, beta):
    # TODO(synk): for training-size batches, tile the R (row) axis with a grid
    # and two-pass BN (per-channel sum/sumsq VMEM accumulator across an
    # "arbitrary" axis, then normalize); on v7x budget against 64 MiB VMEM and
    # mark the row axis "parallel" across the two TensorCores.  At N=2 a single
    # VMEM-resident block is well under all limits.
    R, K = patches.shape
    C = wmat.shape[1]
    return pl.pallas_call(
        conv_bn_relu_kernel,
        out_shape=jax.ShapeDtypeStruct((R, C), jnp.bfloat16),
        grid=(1,),
        in_specs=[
            pl.BlockSpec((R, K), lambda i: (0, 0)),
            pl.BlockSpec((K, C), lambda i: (0, 0)),
            pl.BlockSpec((1, C), lambda i: (0, 0)),
            pl.BlockSpec((1, C), lambda i: (0, 0)),
        ],
        out_specs=pl.BlockSpec((R, C), lambda i: (0, 0)),
        compiler_params=pltpu.CompilerParams(dimension_semantics=("arbitrary",)),
    )(patches, wmat, gamma, beta)


def _linear(x, wmat, bias):
    R, K = x.shape
    O = wmat.shape[1]
    return pl.pallas_call(
        linear_kernel,
        out_shape=jax.ShapeDtypeStruct((R, O), jnp.float32),
        grid=(1,),
        in_specs=[
            pl.BlockSpec((R, K), lambda i: (0, 0)),
            pl.BlockSpec((K, O), lambda i: (0, 0)),
            pl.BlockSpec((1, O), lambda i: (0, 0)),
        ],
        out_specs=pl.BlockSpec((R, O), lambda i: (0, 0)),
        compiler_params=pltpu.CompilerParams(dimension_semantics=("arbitrary",)),
    )(x, wmat, bias)


# ----------------------------------------------------------------------------
# Glue: im2col patch extraction (NHWC, channel dim already lane-padded for
# layers 2/3).  Column order is (ky, kx, cin), matching the weight matrices.
# ----------------------------------------------------------------------------
# TODO(synk): fuse the whole conv tower (and head) into one pallas_call with
# in-kernel patch extraction from a VMEM-resident activation buffer to remove
# the remaining per-layer HBM round-trips and launches.
def _im2col(x_nhwc):
    N, H, W, C = x_nhwc.shape
    OH = _conv_size_out(H)
    OW = _conv_size_out(W)
    slices = []
    for ky in range(KH):
        for kx in range(KW):
            slices.append(
                x_nhwc[:, ky : ky + STRIDE * (OH - 1) + 1 : STRIDE,
                          kx : kx + STRIDE * (OW - 1) + 1 : STRIDE, :]
            )
    patches = jnp.stack(slices, axis=3)               # (N, OH, OW, KH*KW, C)
    patches = patches.reshape(N * OH * OW, KH * KW * C)
    return patches, (N, OH, OW)


def _conv_layer(x_nhwc, wmat, gamma, beta):
    patches, (n, oh, ow) = _im2col(x_nhwc)
    y = _fused_conv_bn_relu(patches, wmat, gamma, beta)
    return y.reshape(n, oh, ow, LANES)


# ----------------------------------------------------------------------------
# Parameters: generated in PyTorch layouts, converted once to kernel-ready
# layouts (lane-padded, bf16 matmul operands) here, not in the forward pass.
# ----------------------------------------------------------------------------
def init_params(key, c, h, w, outputs):
    oh1, ow1 = _conv_size_out(h), _conv_size_out(w)
    oh2, ow2 = _conv_size_out(oh1), _conv_size_out(ow1)
    oh3, ow3 = _conv_size_out(oh2), _conv_size_out(ow2)

    ks = jax.random.split(key, 9)

    def nrm(k, shape, scale):
        return (scale * jax.random.normal(k, shape)).astype(jnp.float32)

    def conv_wmat(w_oihw, cin_pad):
        # (Cout, Cin, KH, KW) -> (KH, KW, Cin, Cout), zero-pad Cin -> cin_pad
        # and Cout -> 128, flatten rows in (ky, kx, cin) order, cast bf16.
        cout, cin = w_oihw.shape[0], w_oihw.shape[1]
        wt = jnp.transpose(w_oihw, (2, 3, 1, 0))
        wt = jnp.pad(wt, ((0, 0), (0, 0), (0, cin_pad - cin), (0, LANES - cout)))
        return wt.reshape(KH * KW * cin_pad, LANES).astype(jnp.bfloat16)

    def bn_pad(v):
        # zero padding: padded channels stay exactly 0 through BN+ReLU
        return jnp.pad(v, (0, LANES - v.shape[0])).reshape(1, LANES).astype(jnp.float32)

    # Conv biases are not generated: they are mathematically inert before
    # training-mode BatchNorm (cancel in y - mean), so the forward matches
    # the PyTorch module for any bias values.
    w1 = nrm(ks[0], (16, c, KH, KW), 0.05)
    g1 = 1.0 + nrm(ks[1], (16,), 0.05)
    be1 = nrm(ks[2], (16,), 0.05)
    w2 = nrm(ks[3], (32, 16, KH, KW), 0.05)
    g2 = 1.0 + nrm(ks[4], (32,), 0.05)
    be2 = nrm(ks[5], (32,), 0.05)
    w3 = nrm(ks[6], (32, 32, KH, KW), 0.05)
    g3 = 1.0 + nrm(ks[7], (32,), 0.05)
    be3 = nrm(ks[8], (32,), 0.05)

    # Head (PyTorch layout: weight rows indexed by NCHW flatten (c, h, w)).
    lin_in = 32 * oh3 * ow3
    wh_torch = nrm(jax.random.fold_in(key, 99), (lin_in, outputs), 0.05)
    bh_torch = nrm(jax.random.fold_in(key, 100), (outputs,), 0.05)
    # Pre-permute rows (c, h, w) -> (h, w, c), zero-pad channels 32 -> 128 and
    # outputs -> 128, so the NHWC lane-padded conv3 output feeds it directly.
    wh = wh_torch.reshape(32, oh3, ow3, outputs)
    wh = jnp.transpose(wh, (1, 2, 0, 3))                                  # (h, w, c, o)
    wh = jnp.pad(wh, ((0, 0), (0, 0), (0, LANES - 32), (0, LANES - outputs)))
    wh = wh.reshape(oh3 * ow3 * LANES, LANES).astype(jnp.bfloat16)
    bh = jnp.pad(bh_torch, (0, LANES - outputs)).reshape(1, LANES).astype(jnp.float32)

    return {
        "w1": conv_wmat(w1, c),      # (75, 128) bf16
        "g1": bn_pad(g1), "be1": bn_pad(be1),
        "w2": conv_wmat(w2, LANES),  # (3200, 128) bf16 (zero rows for padded cin)
        "g2": bn_pad(g2), "be2": bn_pad(be2),
        "w3": conv_wmat(w3, LANES),  # (3200, 128) bf16
        "g3": bn_pad(g3), "be3": bn_pad(be3),
        "wh": wh,                    # (oh3*ow3*128, 128) bf16
        "bh": bh,                    # (1, 128) f32
    }


# ----------------------------------------------------------------------------
# Forward
# ----------------------------------------------------------------------------
@functools.partial(jax.jit, static_argnames=("outputs",))
def dqn_forward(x_nchw, params, *, outputs):
    x = jnp.transpose(x_nchw, (0, 2, 3, 1)).astype(jnp.bfloat16)   # NCHW -> NHWC
    x = _conv_layer(x, params["w1"], params["g1"], params["be1"])
    x = _conv_layer(x, params["w2"], params["g2"], params["be2"])
    x = _conv_layer(x, params["w3"], params["g3"], params["be3"])
    # NHWC lane-padded flatten matches the pre-permuted, zero-row-padded head
    # weight (equivalent to PyTorch's x.view(N, -1) on the NCHW output).
    n = x.shape[0]
    q = _linear(x.reshape(n, -1), params["wh"], params["bh"])
    return q[:, :outputs]


if __name__ == "__main__":
    # Small shapes consistent with the module: c=3, h=w=40 -> conv tower 2x2x32
    N, C, H, W = 2, 3, 40, 40
    OUTPUTS = 4

    key = jax.random.PRNGKey(0)
    k_x, k_p = jax.random.split(key)
    x = jax.random.normal(k_x, (N, C, H, W), dtype=jnp.float32)
    params = init_params(k_p, C, H, W, OUTPUTS)

    out = dqn_forward(x, params, outputs=OUTPUTS)
    out = jax.block_until_ready(out)
    assert out.shape == (N, OUTPUTS), out.shape
    assert bool(jnp.all(jnp.isfinite(out)))
    print("KERNEL_OK")
</pallas_src>

<mosaic_0001>
module attributes {stable_mosaic.version = 11 : i64} {
  func.func @conv_bn_relu_kernel(%arg0: i32, %arg1: memref<648x75xbf16, #tpu.memory_space<vmem>>, %arg2: memref<75x128xbf16, #tpu.memory_space<vmem>>, %arg3: memref<1x128xf32, #tpu.memory_space<vmem>>, %arg4: memref<1x128xf32, #tpu.memory_space<vmem>>, %arg5: memref<648x128xbf16, #tpu.memory_space<vmem>>) attributes {dimension_semantics = [#tpu.dimension_semantics<arbitrary>], iteration_bounds = array<i64: 1>, scalar_prefetch = 0 : i64, scratch_operands = 0 : i64, tpu.core_type = #tpu.core_type<tc>, window_params = [{pipeline_mode = #tpu.pipeline_mode<synchronous>, transform_indices = @transform_0, window_bounds = array<i64: 648, 75>}, {pipeline_mode = #tpu.pipeline_mode<synchronous>, transform_indices = @transform_1, window_bounds = array<i64: 75, 128>}, {pipeline_mode = #tpu.pipeline_mode<synchronous>, transform_indices = @transform_2, window_bounds = array<i64: 1, 128>}, {pipeline_mode = #tpu.pipeline_mode<synchronous>, transform_indices = @transform_3, window_bounds = array<i64: 1, 128>}, {pipeline_mode = #tpu.pipeline_mode<synchronous>, transform_indices = @transform_4, window_bounds = array<i64: 648, 128>}]} {
    %c0 = arith.constant 0 : index
    %c0_0 = arith.constant 0 : index
    %0 = vector.load %arg1[%c0, %c0_0] : memref<648x75xbf16, #tpu.memory_space<vmem>>, vector<648x75xbf16>
    %c0_1 = arith.constant 0 : index
    %c0_2 = arith.constant 0 : index
    %1 = vector.load %arg2[%c0_1, %c0_2] : memref<75x128xbf16, #tpu.memory_space<vmem>>, vector<75x128xbf16>
    %cst = arith.constant dense<0.000000e+00> : vector<648x128xf32>
    %2 = tpu.matmul %0, %1, %cst {dimension_numbers = #tpu.dot_dimension_numbers<[1], [0], [0], [1], [0, 0, 1, 1], [], []>} : vector<648x75xbf16>, vector<75x128xbf16>, vector<648x128xf32> -> vector<648x128xf32>
    %cst_3 = arith.constant dense<0.000000e+00> : vector<128xf32>
    %3 = vector.multi_reduction <add>, %2, %cst_3 [0] : vector<648x128xf32> to vector<128xf32>
    %4 = vector.shape_cast %3 : vector<128xf32> to vector<1x128xf32>
    %cst_4 = arith.constant 6.480000e+02 : f32
    %5 = vector.broadcast %cst_4 : f32 to vector<1x128xf32>
    %6 = arith.divf %4, %5 : vector<1x128xf32>
    %7 = arith.mulf %2, %2 : vector<648x128xf32>
    %cst_5 = arith.constant dense<0.000000e+00> : vector<128xf32>
    %8 = vector.multi_reduction <add>, %7, %cst_5 [0] : vector<648x128xf32> to vector<128xf32>
    %9 = vector.shape_cast %8 : vector<128xf32> to vector<1x128xf32>
    %cst_6 = arith.constant 6.480000e+02 : f32
    %10 = vector.broadcast %cst_6 : f32 to vector<1x128xf32>
    %11 = arith.divf %9, %10 : vector<1x128xf32>
    %12 = arith.mulf %6, %6 : vector<1x128xf32>
    %13 = arith.subf %11, %12 : vector<1x128xf32>
    %cst_7 = arith.constant 0.000000e+00 : f32
    %14 = vector.broadcast %cst_7 : f32 to vector<1x128xf32>
    %15 = arith.maximumf %13, %14 : vector<1x128xf32>
    %16 = vector.broadcast %6 : vector<1x128xf32> to vector<648x128xf32>
    %17 = arith.subf %2, %16 : vector<648x128xf32>
    %cst_8 = arith.constant 9.99999974E-6 : f32
    %18 = vector.broadcast %cst_8 : f32 to vector<1x128xf32>
    %19 = arith.addf %15, %18 : vector<1x128xf32>
    %20 = math.rsqrt %19 : vector<1x128xf32>
    %21 = vector.broadcast %20 : vector<1x128xf32> to vector<648x128xf32>
    %22 = arith.mulf %17, %21 : vector<648x128xf32>
    %c0_9 = arith.constant 0 : index
    %c0_10 = arith.constant 0 : index
    %23 = vector.load %arg3[%c0_9, %c0_10] : memref<1x128xf32, #tpu.memory_space<vmem>>, vector<1x128xf32>
    %24 = vector.broadcast %23 : vector<1x128xf32> to vector<648x128xf32>
    %25 = arith.mulf %22, %24 : vector<648x128xf32>
    %c0_11 = arith.constant 0 : index
    %c0_12 = arith.constant 0 : index
    %26 = vector.load %arg4[%c0_11, %c0_12] : memref<1x128xf32, #tpu.memory_space<vmem>>, vector<1x128xf32>
    %27 = vector.broadcast %26 : vector<1x128xf32> to vector<648x128xf32>
    %28 = arith.addf %25, %27 : vector<648x128xf32>
    %cst_13 = arith.constant 0.000000e+00 : f32
    %29 = vector.broadcast %cst_13 : f32 to vector<648x128xf32>
    %30 = arith.maximumf %28, %29 : vector<648x128xf32>
    %31 = arith.truncf %30 : vector<648x128xf32> to vector<648x128xbf16>
    %c0_14 = arith.constant 0 : index
    %c0_15 = arith.constant 0 : index
    %32 = vector.load %arg5[%c0_14, %c0_15] : memref<648x128xbf16, #tpu.memory_space<vmem>>, vector<648x128xbf16>
    tpu.vector_store %arg5[%c0_14, %c0_15], %31 {strides = array<i32>} : memref<648x128xbf16, #tpu.memory_space<vmem>>, vector<648x128xbf16>,
    return
  }
  func.func @transform_0(%arg0: i32) -> (i32, i32) {
    %c0_i32 = arith.constant 0 : i32
    %c0_i32_0 = arith.constant 0 : i32
    %c0_i32_1 = arith.constant 0 : i32
    return %c0_i32, %c0_i32_0 : i32, i32
  }
  func.func @transform_1(%arg0: i32) -> (i32, i32) {
    %c0_i32 = arith.constant 0 : i32
    %c0_i32_0 = arith.constant 0 : i32
    %c0_i32_1 = arith.constant 0 : i32
    return %c0_i32, %c0_i32_0 : i32, i32
  }
  func.func @transform_2(%arg0: i32) -> (i32, i32) {
    %c0_i32 = arith.constant 0 : i32
    %c0_i32_0 = arith.constant 0 : i32
    %c0_i32_1 = arith.constant 0 : i32
    return %c0_i32, %c0_i32_0 : i32, i32
  }
  func.func @transform_3(%arg0: i32) -> (i32, i32) {
    %c0_i32 = arith.constant 0 : i32
    %c0_i32_0 = arith.constant 0 : i32
    %c0_i32_1 = arith.constant 0 : i32
    return %c0_i32, %c0_i32_0 : i32, i32
  }
  func.func @transform_4(%arg0: i32) -> (i32, i32) {
    %c0_i32 = arith.constant 0 : i32
    %c0_i32_0 = arith.constant 0 : i32
    %c0_i32_1 = arith.constant 0 : i32
    return %c0_i32, %c0_i32_0 : i32, i32
  }
}

module attributes {stable_mosaic.version = 11 : i64} {
  func.func @conv_bn_relu_kernel(%arg0: i32, %arg1: memref<98x3200xbf16, #tpu.memory_space<vmem>>, %arg2: memref<3200x128xbf16, #tpu.memory_space<vmem>>, %arg3: memref<1x128xf32, #tpu.memory_space<vmem>>, %arg4: memref<1x128xf32, #tpu.memory_space<vmem>>, %arg5: memref<98x128xbf16, #tpu.memory_space<vmem>>) attributes {dimension_semantics = [#tpu.dimension_semantics<arbitrary>], iteration_bounds = array<i64: 1>, scalar_prefetch = 0 : i64, scratch_operands = 0 : i64, tpu.core_type = #tpu.core_type<tc>, window_params = [{pipeline_mode = #tpu.pipeline_mode<synchronous>, transform_indices = @transform_0, window_bounds = array<i64: 98, 3200>}, {pipeline_mode = #tpu.pipeline_mode<synchronous>, transform_indices = @transform_1, window_bounds = array<i64: 3200, 128>}, {pipeline_mode = #tpu.pipeline_mode<synchronous>, transform_indices = @transform_2, window_bounds = array<i64: 1, 128>}, {pipeline_mode = #tpu.pipeline_mode<synchronous>, transform_indices = @transform_3, window_bounds = array<i64: 1, 128>}, {pipeline_mode = #tpu.pipeline_mode<synchronous>, transform_indices = @transform_4, window_bounds = array<i64: 98, 128>}]} {
    %c0 = arith.constant 0 : index
    %c0_0 = arith.constant 0 : index
    %0 = vector.load %arg1[%c0, %c0_0] : memref<98x3200xbf16, #tpu.memory_space<vmem>>, vector<98x3200xbf16>
    %c0_1 = arith.constant 0 : index
    %c0_2 = arith.constant 0 : index
    %1 = vector.load %arg2[%c0_1, %c0_2] : memref<3200x128xbf16, #tpu.memory_space<vmem>>, vector<3200x128xbf16>
    %cst = arith.constant dense<0.000000e+00> : vector<98x128xf32>
    %2 = tpu.matmul %0, %1, %cst {dimension_numbers = #tpu.dot_dimension_numbers<[1], [0], [0], [1], [0, 0, 1, 1], [], []>} : vector<98x3200xbf16>, vector<3200x128xbf16>, vector<98x128xf32> -> vector<98x128xf32>
    %cst_3 = arith.constant dense<0.000000e+00> : vector<128xf32>
    %3 = vector.multi_reduction <add>, %2, %cst_3 [0] : vector<98x128xf32> to vector<128xf32>
    %4 = vector.shape_cast %3 : vector<128xf32> to vector<1x128xf32>
    %cst_4 = arith.constant 9.800000e+01 : f32
    %5 = vector.broadcast %cst_4 : f32 to vector<1x128xf32>
    %6 = arith.divf %4, %5 : vector<1x128xf32>
    %7 = arith.mulf %2, %2 : vector<98x128xf32>
    %cst_5 = arith.constant dense<0.000000e+00> : vector<128xf32>
    %8 = vector.multi_reduction <add>, %7, %cst_5 [0] : vector<98x128xf32> to vector<128xf32>
    %9 = vector.shape_cast %8 : vector<128xf32> to vector<1x128xf32>
    %cst_6 = arith.constant 9.800000e+01 : f32
    %10 = vector.broadcast %cst_6 : f32 to vector<1x128xf32>
    %11 = arith.divf %9, %10 : vector<1x128xf32>
    %12 = arith.mulf %6, %6 : vector<1x128xf32>
    %13 = arith.subf %11, %12 : vector<1x128xf32>
    %cst_7 = arith.constant 0.000000e+00 : f32
    %14 = vector.broadcast %cst_7 : f32 to vector<1x128xf32>
    %15 = arith.maximumf %13, %14 : vector<1x128xf32>
    %16 = vector.broadcast %6 : vector<1x128xf32> to vector<98x128xf32>
    %17 = arith.subf %2, %16 : vector<98x128xf32>
    %cst_8 = arith.constant 9.99999974E-6 : f32
    %18 = vector.broadcast %cst_8 : f32 to vector<1x128xf32>
    %19 = arith.addf %15, %18 : vector<1x128xf32>
    %20 = math.rsqrt %19 : vector<1x128xf32>
    %21 = vector.broadcast %20 : vector<1x128xf32> to vector<98x128xf32>
    %22 = arith.mulf %17, %21 : vector<98x128xf32>
    %c0_9 = arith.constant 0 : index
    %c0_10 = arith.constant 0 : index
    %23 = vector.load %arg3[%c0_9, %c0_10] : memref<1x128xf32, #tpu.memory_space<vmem>>, vector<1x128xf32>
    %24 = vector.broadcast %23 : vector<1x128xf32> to vector<98x128xf32>
    %25 = arith.mulf %22, %24 : vector<98x128xf32>
    %c0_11 = arith.constant 0 : index
    %c0_12 = arith.constant 0 : index
    %26 = vector.load %arg4[%c0_11, %c0_12] : memref<1x128xf32, #tpu.memory_space<vmem>>, vector<1x128xf32>
    %27 = vector.broadcast %26 : vector<1x128xf32> to vector<98x128xf32>
    %28 = arith.addf %25, %27 : vector<98x128xf32>
    %cst_13 = arith.constant 0.000000e+00 : f32
    %29 = vector.broadcast %cst_13 : f32 to vector<98x128xf32>
    %30 = arith.maximumf %28, %29 : vector<98x128xf32>
    %31 = arith.truncf %30 : vector<98x128xf32> to vector<98x128xbf16>
    %c0_14 = arith.constant 0 : index
    %c0_15 = arith.constant 0 : index
    %32 = vector.load %arg5[%c0_14, %c0_15] : memref<98x128xbf16, #tpu.memory_space<vmem>>, vector<98x128xbf16>
    tpu.vector_store %arg5[%c0_14, %c0_15], %31 {strides = array<i32>} : memref<98x128xbf16, #tpu.memory_space<vmem>>, vector<98x128xbf16>,
    return
  }
  func.func @transform_0(%arg0: i32) -> (i32, i32) {
    %c0_i32 = arith.constant 0 : i32
    %c0_i32_0 = arith.constant 0 : i32
    %c0_i32_1 = arith.constant 0 : i32
    return %c0_i32, %c0_i32_0 : i32, i32
  }
  func.func @transform_1(%arg0: i32) -> (i32, i32) {
    %c0_i32 = arith.constant 0 : i32
    %c0_i32_0 = arith.constant 0 : i32
    %c0_i32_1 = arith.constant 0 : i32
    return %c0_i32, %c0_i32_0 : i32, i32
  }
  func.func @transform_2(%arg0: i32) -> (i32, i32) {
    %c0_i32 = arith.constant 0 : i32
    %c0_i32_0 = arith.constant 0 : i32
    %c0_i32_1 = arith.constant 0 : i32
    return %c0_i32, %c0_i32_0 : i32, i32
  }
  func.func @transform_3(%arg0: i32) -> (i32, i32) {
    %c0_i32 = arith.constant 0 : i32
    %c0_i32_0 = arith.constant 0 : i32
    %c0_i32_1 = arith.constant 0 : i32
    return %c0_i32, %c0_i32_0 : i32, i32
  }
  func.func @transform_4(%arg0: i32) -> (i32, i32) {
    %c0_i32 = arith.constant 0 : i32
    %c0_i32_0 = arith.constant 0 : i32
    %c0_i32_1 = arith.constant 0 : i32
    return %c0_i32, %c0_i32_0 : i32, i32
  }
}

module attributes {stable_mosaic.version = 11 : i64} {
  func.func @linear_kernel(%arg0: i32, %arg1: memref<2x512xbf16, #tpu.memory_space<vmem>>, %arg2: memref<512x128xbf16, #tpu.memory_space<vmem>>, %arg3: memref<1x128xf32, #tpu.memory_space<vmem>>, %arg4: memref<2x128xf32, #tpu.memory_space<vmem>>) attributes {dimension_semantics = [#tpu.dimension_semantics<arbitrary>], iteration_bounds = array<i64: 1>, scalar_prefetch = 0 : i64, scratch_operands = 0 : i64, tpu.core_type = #tpu.core_type<tc>, window_params = [{pipeline_mode = #tpu.pipeline_mode<synchronous>, transform_indices = @transform_0, window_bounds = array<i64: 2, 512>}, {pipeline_mode = #tpu.pipeline_mode<synchronous>, transform_indices = @transform_1, window_bounds = array<i64: 512, 128>}, {pipeline_mode = #tpu.pipeline_mode<synchronous>, transform_indices = @transform_2, window_bounds = array<i64: 1, 128>}, {pipeline_mode = #tpu.pipeline_mode<synchronous>, transform_indices = @transform_3, window_bounds = array<i64: 2, 128>}]} {
    %c0 = arith.constant 0 : index
    %c0_0 = arith.constant 0 : index
    %0 = vector.load %arg1[%c0, %c0_0] : memref<2x512xbf16, #tpu.memory_space<vmem>>, vector<2x512xbf16>
    %c0_1 = arith.constant 0 : index
    %c0_2 = arith.constant 0 : index
    %1 = vector.load %arg2[%c0_1, %c0_2] : memref<512x128xbf16, #tpu.memory_space<vmem>>, vector<512x128xbf16>
    %cst = arith.constant dense<0.000000e+00> : vector<2x128xf32>
    %2 = tpu.matmul %0, %1, %cst {dimension_numbers = #tpu.dot_dimension_numbers<[1], [0], [0], [1], [0, 0, 1, 1], [], []>} : vector<2x512xbf16>, vector<512x128xbf16>, vector<2x128xf32> -> vector<2x128xf32>
    %c0_3 = arith.constant 0 : index
    %c0_4 = arith.constant 0 : index
    %3 = vector.load %arg3[%c0_3, %c0_4] : memref<1x128xf32, #tpu.memory_space<vmem>>, vector<1x128xf32>
    %4 = vector.broadcast %3 : vector<1x128xf32> to vector<2x128xf32>
    %5 = arith.addf %2, %4 : vector<2x128xf32>
    %c0_5 = arith.constant 0 : index
    %c0_6 = arith.constant 0 : index
    %6 = vector.load %arg4[%c0_5, %c0_6] : memref<2x128xf32, #tpu.memory_space<vmem>>, vector<2x128xf32>
    tpu.vector_store %arg4[%c0_5, %c0_6], %5 {strides = array<i32>} : memref<2x128xf32, #tpu.memory_space<vmem>>, vector<2x128xf32>,
    return
  }
  func.func @transform_0(%arg0: i32) -> (i32, i32) {
    %c0_i32 = arith.constant 0 : i32
    %c0_i32_0 = arith.constant 0 : i32
    %c0_i32_1 = arith.constant 0 : i32
    return %c0_i32, %c0_i32_0 : i32, i32
  }
  func.func @transform_1(%arg0: i32) -> (i32, i32) {
    %c0_i32 = arith.constant 0 : i32
    %c0_i32_0 = arith.constant 0 : i32
    %c0_i32_1 = arith.constant 0 : i32
    return %c0_i32, %c0_i32_0 : i32, i32
  }
  func.func @transform_2(%arg0: i32) -> (i32, i32) {
    %c0_i32 = arith.constant 0 : i32
    %c0_i32_0 = arith.constant 0 : i32
    %c0_i32_1 = arith.constant 0 : i32
    return %c0_i32, %c0_i32_0 : i32, i32
  }
  func.func @transform_3(%arg0: i32) -> (i32, i32) {
    %c0_i32 = arith.constant 0 : i32
    %c0_i32_0 = arith.constant 0 : i32
    %c0_i32_1 = arith.constant 0 : i32
    return %c0_i32, %c0_i32_0 : i32, i32
  }
}

module attributes {stable_mosaic.version = 11 : i64} {
  func.func @conv_bn_relu_kernel(%arg0: i32, %arg1: memref<8x3200xbf16, #tpu.memory_space<vmem>>, %arg2: memref<3200x128xbf16, #tpu.memory_space<vmem>>, %arg3: memref<1x128xf32, #tpu.memory_space<vmem>>, %arg4: memref<1x128xf32, #tpu.memory_space<vmem>>, %arg5: memref<8x128xbf16, #tpu.memory_space<vmem>>) attributes {dimension_semantics = [#tpu.dimension_semantics<arbitrary>], iteration_bounds = array<i64: 1>, scalar_prefetch = 0 : i64, scratch_operands = 0 : i64, tpu.core_type = #tpu.core_type<tc>, window_params = [{pipeline_mode = #tpu.pipeline_mode<synchronous>, transform_indices = @transform_0, window_bounds = array<i64: 8, 3200>}, {pipeline_mode = #tpu.pipeline_mode<synchronous>, transform_indices = @transform_1, window_bounds = array<i64: 3200, 128>}, {pipeline_mode = #tpu.pipeline_mode<synchronous>, transform_indices = @transform_2, window_bounds = array<i64: 1, 128>}, {pipeline_mode = #tpu.pipeline_mode<synchronous>, transform_indices = @transform_3, window_bounds = array<i64: 1, 128>}, {pipeline_mode = #tpu.pipeline_mode<synchronous>, transform_indices = @transform_4, window_bounds = array<i64: 8, 128>}]} {
    %c0 = arith.constant 0 : index
    %c0_0 = arith.constant 0 : index
    %0 = vector.load %arg1[%c0, %c0_0] : memref<8x3200xbf16, #tpu.memory_space<vmem>>, vector<8x3200xbf16>
    %c0_1 = arith.constant 0 : index
    %c0_2 = arith.constant 0 : index
    %1 = vector.load %arg2[%c0_1, %c0_2] : memref<3200x128xbf16, #tpu.memory_space<vmem>>, vector<3200x128xbf16>
    %cst = arith.constant dense<0.000000e+00> : vector<8x128xf32>
    %2 = tpu.matmul %0, %1, %cst {dimension_numbers = #tpu.dot_dimension_numbers<[1], [0], [0], [1], [0, 0, 1, 1], [], []>} : vector<8x3200xbf16>, vector<3200x128xbf16>, vector<8x128xf32> -> vector<8x128xf32>
    %cst_3 = arith.constant dense<0.000000e+00> : vector<128xf32>
    %3 = vector.multi_reduction <add>, %2, %cst_3 [0] : vector<8x128xf32> to vector<128xf32>
    %4 = vector.shape_cast %3 : vector<128xf32> to vector<1x128xf32>
    %cst_4 = arith.constant 8.000000e+00 : f32
    %5 = vector.broadcast %cst_4 : f32 to vector<1x128xf32>
    %6 = arith.divf %4, %5 : vector<1x128xf32>
    %7 = arith.mulf %2, %2 : vector<8x128xf32>
    %cst_5 = arith.constant dense<0.000000e+00> : vector<128xf32>
    %8 = vector.multi_reduction <add>, %7, %cst_5 [0] : vector<8x128xf32> to vector<128xf32>
    %9 = vector.shape_cast %8 : vector<128xf32> to vector<1x128xf32>
    %cst_6 = arith.constant 8.000000e+00 : f32
    %10 = vector.broadcast %cst_6 : f32 to vector<1x128xf32>
    %11 = arith.divf %9, %10 : vector<1x128xf32>
    %12 = arith.mulf %6, %6 : vector<1x128xf32>
    %13 = arith.subf %11, %12 : vector<1x128xf32>
    %cst_7 = arith.constant 0.000000e+00 : f32
    %14 = vector.broadcast %cst_7 : f32 to vector<1x128xf32>
    %15 = arith.maximumf %13, %14 : vector<1x128xf32>
    %16 = vector.broadcast %6 : vector<1x128xf32> to vector<8x128xf32>
    %17 = arith.subf %2, %16 : vector<8x128xf32>
    %cst_8 = arith.constant 9.99999974E-6 : f32
    %18 = vector.broadcast %cst_8 : f32 to vector<1x128xf32>
    %19 = arith.addf %15, %18 : vector<1x128xf32>
    %20 = math.rsqrt %19 : vector<1x128xf32>
    %21 = vector.broadcast %20 : vector<1x128xf32> to vector<8x128xf32>
    %22 = arith.mulf %17, %21 : vector<8x128xf32>
    %c0_9 = arith.constant 0 : index
    %c0_10 = arith.constant 0 : index
    %23 = vector.load %arg3[%c0_9, %c0_10] : memref<1x128xf32, #tpu.memory_space<vmem>>, vector<1x128xf32>
    %24 = vector.broadcast %23 : vector<1x128xf32> to vector<8x128xf32>
    %25 = arith.mulf %22, %24 : vector<8x128xf32>
    %c0_11 = arith.constant 0 : index
    %c0_12 = arith.constant 0 : index
    %26 = vector.load %arg4[%c0_11, %c0_12] : memref<1x128xf32, #tpu.memory_space<vmem>>, vector<1x128xf32>
    %27 = vector.broadcast %26 : vector<1x128xf32> to vector<8x128xf32>
    %28 = arith.addf %25, %27 : vector<8x128xf32>
    %cst_13 = arith.constant 0.000000e+00 : f32
    %29 = vector.broadcast %cst_13 : f32 to vector<8x128xf32>
    %30 = arith.maximumf %28, %29 : vector<8x128xf32>
    %31 = arith.truncf %30 : vector<8x128xf32> to vector<8x128xbf16>
    %c0_14 = arith.constant 0 : index
    %c0_15 = arith.constant 0 : index
    %32 = vector.load %arg5[%c0_14, %c0_15] : memref<8x128xbf16, #tpu.memory_space<vmem>>, vector<8x128xbf16>
    tpu.vector_store %arg5[%c0_14, %c0_15], %31 {strides = array<i32>} : memref<8x128xbf16, #tpu.memory_space<vmem>>, vector<8x128xbf16>,
    return
  }
  func.func @transform_0(%arg0: i32) -> (i32, i32) {
    %c0_i32 = arith.constant 0 : i32
    %c0_i32_0 = arith.constant 0 : i32
    %c0_i32_1 = arith.constant 0 : i32
    return %c0_i32, %c0_i32_0 : i32, i32
  }
  func.func @transform_1(%arg0: i32) -> (i32, i32) {
    %c0_i32 = arith.constant 0 : i32
    %c0_i32_0 = arith.constant 0 : i32
    %c0_i32_1 = arith.constant 0 : i32
    return %c0_i32, %c0_i32_0 : i32, i32
  }
  func.func @transform_2(%arg0: i32) -> (i32, i32) {
    %c0_i32 = arith.constant 0 : i32
    %c0_i32_0 = arith.constant 0 : i32
    %c0_i32_1 = arith.constant 0 : i32
    return %c0_i32, %c0_i32_0 : i32, i32
  }
  func.func @transform_3(%arg0: i32) -> (i32, i32) {
    %c0_i32 = arith.constant 0 : i32
    %c0_i32_0 = arith.constant 0 : i32
    %c0_i32_1 = arith.constant 0 : i32
    return %c0_i32, %c0_i32_0 : i32, i32
  }
  func.func @transform_4(%arg0: i32) -> (i32, i32) {
    %c0_i32 = arith.constant 0 : i32
    %c0_i32_0 = arith.constant 0 : i32
    %c0_i32_1 = arith.constant 0 : i32
    return %c0_i32, %c0_i32_0 : i32, i32
  }
}

</mosaic_0001>

<bundles_post_ra>
// kernel: dqn_forward.4
= control target key start
LH: loop header
LB: loop body
LE: loop exit
PB: predicated region body
PF: predicated region fallthrough
CT: control target
= control target key end

     0   :  { %vm465_vm0 = vcmask 1044480   ;;  %vm466_vm1 = vcmask 1045504   ;;  %v2068_v2 = vmov 65535   ;;  %vm341_vm2 = vcmask 613376   ;;  %s4180_s1 = inlined_call_operand.vmem [shape: bf16[75,128], index: 1, kind: input, shape index: {}]   ;;  %s4181_s0 = inlined_call_operand.vmem [shape: bf16[648,75], index: 0, kind: input, shape index: {}]   ;;  %s4182_s2 = inlined_call_operand.vmem [shape: f32[1,128], index: 2, kind: input, shape index: {}]   ;;  %s4183_s3 = inlined_call_operand.vmem [shape: f32[1,128], index: 3, kind: input, shape index: {}]   ;;  %s4184_s4 = inlined_call_operand.vmem [shape: bf16[648,128], index: 4, kind: output, shape index: {}]  }
   0x1   :  { %v1718_v0 = vld [vmem:[%s4180_s1 + $0x20] sm:$0xf]  ;;  %v1805_v1 = vld [vmem:[%s4180_s1 + $0x20] sm:$0x30]  ;;  %v467_v3 = vsel %vm465_vm0, 4294967295, %v2068_v2  ;;  %v1804_v7 = vld [vmem:[%s4180_s1 + $0x18] sm:$0xff] }
   0x2   :  { %v1719_v4 = vor.u32 %v1805_v1, %v1718_v0  ;;  %v468_v5 = vsel %vm466_vm1, %v467_v3, 0  ;;  %v1803_v8 = vld [vmem:[%s4180_s1 + $0x10] sm:$0xff]  ;;  %v1802_v9 = vld [vmem:[%s4180_s1 + $0x8] sm:$0xff]  ;;  %v1801_v10 = vld [vmem:[%s4180_s1] sm:$0xff] }
   0x3   :  { %v1761_v11 = vld [vmem:[%s4181_s0] sm:$0xff]  ;;  %v1771_v12 = vld [vmem:[%s4181_s0 + $0x50] sm:$0xff]  ;;  %v1762_v13 = vld [vmem:[%s4181_s0 + $0x8] sm:$0xff] }
   0x4   :  { %v470_v6 = vand.u32 %v1719_v4, %v468_v5  ;;  %v1772_v14 = vld [vmem:[%s4181_s0 + $0x58] sm:$0xff]  ;;  %v1781_v15 = vld [vmem:[%s4181_s0 + $0xa0] sm:$0xff]  ;;  %v1763_v16 = vld [vmem:[%s4181_s0 + $0x10] sm:$0xff] }
   0x5   :  { %v1773_v17 = vld [vmem:[%s4181_s0 + $0x60] sm:$0xff]  ;;  %v1782_v18 = vld [vmem:[%s4181_s0 + $0xa8] sm:$0xff]  ;;  %v1764_v19 = vld [vmem:[%s4181_s0 + $0x18] sm:$0xff] }
   0x6   :  { %475 = vmatpush.bf16.msra.mxu0 %v470_v6  ;;  %2045 = vmatpush.bf16.msra.mxu1 %v470_v6  ;;  %v1774_v20 = vld [vmem:[%s4181_s0 + $0x68] sm:$0xff]  ;;  %v1783_v21 = vld [vmem:[%s4181_s0 + $0xb0] sm:$0xff]  ;;  %v1765_v22 = vld [vmem:[%s4181_s0 + $0x20] sm:$0xff] }
   0x7   :  { %2046 = vmatpush.bf16.msra.mxu2 %v470_v6  ;;  %2047 = vmatpush.bf16.msra.mxu3 %v470_v6  ;;  %v1775_v23 = vld [vmem:[%s4181_s0 + $0x70] sm:$0xff]  ;;  %v1784_v24 = vld [vmem:[%s4181_s0 + $0xb8] sm:$0xff]  ;;  %v1766_v25 = vld [vmem:[%s4181_s0 + $0x28] sm:$0xff] }
   0x8   :  { %v1776_v26 = vld [vmem:[%s4181_s0 + $0x78] sm:$0xff]  ;;  %v1785_v28 = vld [vmem:[%s4181_s0 + $0xc0] sm:$0xff]  ;;  %v1767_v29 = vld [vmem:[%s4181_s0 + $0x30] sm:$0xff] }
   0x9   :  { %v1792_v27 = vld [vmem:[%s4181_s0 + $0xf8] sm:$0xff]  ;;  %v1777_v30 = vld [vmem:[%s4181_s0 + $0x80] sm:$0xff]  ;;  %v1786_v32 = vld [vmem:[%s4181_s0 + $0xc8] sm:$0xff] }
   0xa   :  { %476 = vmatpush.bf16.msra.mxu0 %v1804_v7  ;;  %2048 = vmatpush.bf16.msra.mxu1 %v1804_v7  ;;  %v1793_v31 = vld [vmem:[%s4181_s0 + $0x100] sm:$0xff]  ;;  %v1768_v33 = vld [vmem:[%s4181_s0 + $0x38] sm:$0xff]  ;;  %v1778_v34 = vld [vmem:[%s4181_s0 + $0x88] sm:$0xff] }
   0xb   :  { %2049 = vmatpush.bf16.msra.mxu2 %v1804_v7  ;;  %2050 = vmatpush.bf16.msra.mxu3 %v1804_v7  ;;  %v1794_v35 = vld [vmem:[%s4181_s0 + $0x108] sm:$0xff]  ;;  %v1787_v36 = vld [vmem:[%s4181_s0 + $0xd0] sm:$0xff]  ;;  %v1769_v37 = vld [vmem:[%s4181_s0 + $0x40] sm:$0xff] }
   0xc   :  { %v1779_v40 = vld [vmem:[%s4181_s0 + $0x90] sm:$0xff]  ;;  %v1788_v42 = vld [vmem:[%s4181_s0 + $0xd8] sm:$0xff]  ;;  %v1770_v45 = vld [vmem:[%s4181_s0 + $0x48] sm:$0xff] }
   0xd   :  { %v1795_v41 = vld [vmem:[%s4181_s0 + $0x110] sm:$0xff]  ;;  %v1780_v47 = vld [vmem:[%s4181_s0 + $0x98] sm:$0xff]  ;;  %v1789_v50 = vld [vmem:[%s4181_s0 + $0xe0] sm:$0xff] }
   0xe   :  { %477 = vmatpush.bf16.msra.mxu0 %v1803_v8  ;;  %2051 = vmatpush.bf16.msra.mxu1 %v1803_v8  ;;  %v1796_v48 = vld [vmem:[%s4181_s0 + $0x118] sm:$0xff]  ;;  %v1797_v56 = vld [vmem:[%s4181_s0 + $0x120] sm:$0xff]  ;;  %v1790_v57 = vld [vmem:[%s4181_s0 + $0xe8] sm:$0xff] }
   0xf   :  { %2052 = vmatpush.bf16.msra.mxu2 %v1803_v8  ;;  %2053 = vmatpush.bf16.msra.mxu3 %v1803_v8  ;;  %v1798_v63 = vld [vmem:[%s4181_s0 + $0x128] sm:$0xff]  ;;  %v1791_v1 = vld [vmem:[%s4181_s0 + $0xf0] sm:$0xff] }
  0x10   :  { %v1799_v6 = vld [vmem:[%s4181_s0 + $0x130] sm:$0xff] }
  0x12   :  { %478 = vmatpush.bf16.msra.mxu0 %v1802_v9  ;;  %2054 = vmatpush.bf16.msra.mxu1 %v1802_v9 }
  0x13   :  { %2055 = vmatpush.bf16.msra.mxu2 %v1802_v9  ;;  %2056 = vmatpush.bf16.msra.mxu3 %v1802_v9 }
  0x16   :  { %479 = vmatpush.bf16.msra.mxu0 %v1801_v10  ;;  %2057 = vmatpush.bf16.msra.mxu1 %v1801_v10 }
  0x17   :  { %2058 = vmatpush.bf16.msra.mxu2 %v1801_v10  ;;  %2059 = vmatpush.bf16.msra.mxu3 %v1801_v10 }
  0x19   :  { %1720 = vmatmul.msk.bf16.vlgmr.msra.gmra.mxu0 %vm341_vm2, %v1761_v11  ;;  %1730 = vmatmul.msk.bf16.vlgmr.msra.gmra.mxu1 %vm341_vm2, %v1771_v12  ;;  %v1800_v12 = vld [vmem:[%s4181_s0 + $0x138] sm:$0xff] }
  0x1a   :  { %1740 = vmatmul.msk.bf16.vlgmr.msra.gmra.mxu2 %vm341_vm2, %v1781_v15  ;;  %1751 = vmatmul.msk.bf16.vlgmr.msra.gmra.mxu3 %vm341_vm2, %v1792_v27 }
  0x29   :  { %1721 = vmatmul.msk.bf16.gmra.mxu0 %vm341_vm2, %v1762_v13  ;;  %1731 = vmatmul.msk.bf16.gmra.mxu1 %vm341_vm2, %v1772_v14 }
  0x2a   :  { %1741 = vmatmul.msk.bf16.gmra.mxu2 %vm341_vm2, %v1782_v18  ;;  %1752 = vmatmul.msk.bf16.gmra.mxu3 %vm341_vm2, %v1793_v31 }
  0x39   :  { %1722 = vmatmul.msk.bf16.gmra.mxu0 %vm341_vm2, %v1763_v16  ;;  %1732 = vmatmul.msk.bf16.gmra.mxu1 %vm341_vm2, %v1773_v17 }
  0x3a   :  { %1742 = vmatmul.msk.bf16.gmra.mxu2 %vm341_vm2, %v1783_v21  ;;  %1753 = vmatmul.msk.bf16.gmra.mxu3 %vm341_vm2, %v1794_v35 }
  0x49   :  { %1723 = vmatmul.msk.bf16.gmra.mxu0 %vm341_vm2, %v1764_v19  ;;  %1733 = vmatmul.msk.bf16.gmra.mxu1 %vm341_vm2, %v1774_v20  ;;  %v98_v20 = vld [vmem:[%s4181_s0 + $0x140] sm:$0xf] }
  0x4a   :  { %1743 = vmatmul.msk.bf16.gmra.mxu2 %vm341_vm2, %v1784_v24  ;;  %1754 = vmatmul.msk.bf16.gmra.mxu3 %vm341_vm2, %v1795_v41  ;;  %v270_v21 = vunpack.c.l.b16 %v98_v20 }
  0x59   :  { %1724 = vmatmul.msk.bf16.gmra.mxu0 %vm341_vm2, %v1765_v22  ;;  %1734 = vmatmul.msk.bf16.gmra.mxu1 %vm341_vm2, %v1775_v23  ;;  %v311_v23 = vpack.c.b16 %v270_v21, %v270_v21 }
  0x5a   :  { %1744 = vmatmul.msk.bf16.gmra.mxu2 %vm341_vm2, %v1785_v28  ;;  %1755 = vmatmul.msk.bf16.gmra.mxu3 %vm341_vm2, %v1796_v48 }
  0x69   :  { %1725 = vmatmul.msk.bf16.gmra.mxu0 %vm341_vm2, %v1766_v25  ;;  %1735 = vmatmul.msk.bf16.gmra.mxu1 %vm341_vm2, %v1776_v26 }
  0x6a   :  { %1745 = vmatmul.msk.bf16.gmra.mxu2 %vm341_vm2, %v1786_v32  ;;  %1756 = vmatmul.msk.bf16.gmra.mxu3 %vm341_vm2, %v1797_v56 }
  0x79   :  { %1726 = vmatmul.msk.bf16.gmra.mxu0 %vm341_vm2, %v1767_v29  ;;  %1736 = vmatmul.msk.bf16.gmra.mxu1 %vm341_vm2, %v1777_v30 }
  0x7a   :  { %1746 = vmatmul.msk.bf16.gmra.mxu2 %vm341_vm2, %v1787_v36  ;;  %1757 = vmatmul.msk.bf16.gmra.mxu3 %vm341_vm2, %v1798_v63 }
  0x89   :  { %1727 = vmatmul.msk.bf16.gmra.mxu0 %vm341_vm2, %v1768_v33  ;;  %1737 = vmatmul.msk.bf16.gmra.mxu1 %vm341_vm2, %v1778_v34 }
  0x8a   :  { %1747 = vmatmul.msk.bf16.gmra.mxu2 %vm341_vm2, %v1788_v42  ;;  %1758 = vmatmul.msk.bf16.gmra.mxu3 %vm341_vm2, %v1799_v6 }
  0x96   :  { %v2220_v38 = vpop.f32.mrf.mxu0  ;;  %v2222_v39 = vpop.f32.mrf.mxu1 }
  0x97   :  { %4274 = vst [vmem:[#allocation2_spill] sm:$0xff] %v2222_v39  ;;  %v779_v32 = vmul.f32 %v2220_v38, %v2220_v38 }
  0x99   :  { %1728 = vmatmul.msk.bf16.gmra.mxu0 %vm341_vm2, %v1769_v37  ;;  %1738 = vmatmul.msk.bf16.gmra.mxu1 %vm341_vm2, %v1779_v40 }
  0x9a   :  { %1748 = vmatmul.msk.bf16.gmra.mxu2 %vm341_vm2, %v1789_v50  ;;  %1759 = vmatmul.msk.bf16.gmra.mxu3 %vm341_vm2, %v1800_v12 }
  0x9d   :  { %v2263_v52 = vpop.f32.mrf.mxu2  ;;  %v2331_v16 = vpop.f32.mrf.mxu3 }
  0x9e   :  { %v2236_v43 = vpop.f32.mrf.mxu0  ;;  %v2239_v44 = vpop.f32.mrf.mxu1 }
  0x9f   :  { %4275 = vst [vmem:[#allocation3_spill] sm:$0xff] %v2239_v44  ;;  %v780_v31 = vmul.f32 %v2236_v43, %v2236_v43  ;;  %v685_v33 = vadd.f32 %v2236_v43, %v2220_v38 }
  0xa1   :  { %v860_v35 = vadd.f32 %v780_v31, %v779_v32 }
  0xa5   :  { %v2269_v55 = vpop.f32.mrf.mxu2  ;;  %v2337_v19 = vpop.f32.mrf.mxu3 }
  0xa6   :  { %v2244_v46 = vpop.f32.mrf.mxu0  ;;  %v2254_v49 = vpop.f32.mrf.mxu1 }
  0xa7   :  { %4276 = vst [vmem:[#allocation4_spill] sm:$0xff] %v2254_v49  ;;  %v781_v34 = vmul.f32 %v2244_v46, %v2244_v46  ;;  %v686_v36 = vadd.f32 %v685_v33, %v2244_v46 }
  0xa9   :  { %1729 = vmatmul.msk.bf16.gmra.mxu0 %vm341_vm2, %v1770_v45  ;;  %1739 = vmatmul.msk.bf16.gmra.mxu1 %vm341_vm2, %v1780_v47  ;;  %v861_v42 = vadd.f32 %v860_v35, %v781_v34 }
  0xaa   :  { %1749 = vmatmul.msk.bf16.gmra.mxu2 %vm341_vm2, %v1790_v57  ;;  %1760 = vmatmul.msk.bf16.gmra.mxu3 %vm341_vm2, %v311_v23 }
  0xad   :  { %v2283_v60 = vpop.f32.mrf.mxu2  ;;  %v2349_v26 = vpop.f32.mrf.mxu3 }
  0xae   :  { %v2260_v51 = vpop.f32.mrf.mxu0  ;;  %v2265_v53 = vpop.f32.mrf.mxu1 }
  0xaf   :  { %4277 = vst [vmem:[#allocation5_spill] sm:$0xff] %v2265_v53  ;;  %v782_v37 = vmul.f32 %v2260_v51, %v2260_v51  ;;  %v687_v45 = vadd.f32 %v686_v36, %v2260_v51 }
  0xb1   :  { %v862_v50 = vadd.f32 %v861_v42, %v782_v37 }
  0xb5   :  { %v2293_v0 = vpop.f32.mrf.mxu2  ;;  %v2357_v30 = vpop.f32.mrf.mxu3 }
  0xb6   :  { %v2267_v54 = vpop.f32.mrf.mxu0  ;;  %v2280_v59 = vpop.f32.mrf.mxu1  ;;  %4280 = vst [vmem:[#allocation8_spill] sm:$0xff] %v2293_v0 }
  0xb7   :  { %4278 = vst [vmem:[#allocation6_spill] sm:$0xff] %v2280_v59  ;;  %v783_v47 = vmul.f32 %v2267_v54, %v2267_v54  ;;  %v688_v56 = vadd.f32 %v687_v45, %v2267_v54 }
  0xba   :  { %1750 = vmatmul.msk.bf16.gmra.mxu2 %vm341_vm2, %v1791_v1  ;;  %v863_v1 = vadd.f32 %v862_v50, %v783_v47 }
  0xbd   :  { %v2305_v5 = vpop.f32.mrf.mxu2  ;;  %v2377_v48 = vpop.f32.mrf.mxu3 }
  0xbe   :  { %v2278_v58 = vpop.f32.mrf.mxu0  ;;  %v2287_v62 = vpop.f32.mrf.mxu1  ;;  %4282 = vst [vmem:[#allocation10_spill] sm:$0xff] %v2305_v5 }
  0xbf   :  { %4279 = vst [vmem:[#allocation7_spill] sm:$0xff] %v2287_v62  ;;  %v784_v57 = vmul.f32 %v2278_v58, %v2278_v58  ;;  %v689_v6 = vadd.f32 %v688_v56, %v2278_v58 }
  0xc1   :  { %v864_v20 = vadd.f32 %v863_v1, %v784_v57 }
  0xc5   :  { %v2315_v9 = vpop.f32.mrf.mxu2  ;;  %v2397_v36 = vpop.f32.mrf.mxu3 }
  0xc6   :  { %v2285_v61 = vpop.f32.mrf.mxu0  ;;  %v2301_v3 = vpop.f32.mrf.mxu1  ;;  %4284 = vst [vmem:[#allocation12_spill] sm:$0xff] %v2315_v9 }
  0xc7   :  { %4281 = vst [vmem:[#allocation9_spill] sm:$0xff] %v2301_v3  ;;  %v785_v12 = vmul.f32 %v2285_v61, %v2285_v61  ;;  %v690_v21 = vadd.f32 %v689_v6, %v2285_v61 }
  0xc9   :  { %v865_v32 = vadd.f32 %v864_v20, %v785_v12 }
  0xcd   :  { %v2324_v13 = vpop.f32.mrf.mxu2 }
  0xce   :  { %v2298_v2 = vpop.f32.mrf.mxu0  ;;  %v2311_v7 = vpop.f32.mrf.mxu1 }
  0xcf   :  { %4283 = vst [vmem:[#allocation11_spill] sm:$0xff] %v2311_v7  ;;  %v786_v23 = vmul.f32 %v2298_v2, %v2298_v2  ;;  %v691_v33 = vadd.f32 %v690_v21, %v2298_v2 }
  0xd1   :  { %v866_v37 = vadd.f32 %v865_v32, %v786_v23 }
  0xd5   :  { %v2333_v17 = vpop.f32.mrf.mxu2 }
  0xd6   :  { %v2303_v4 = vpop.f32.mrf.mxu0  ;;  %v2319_v11 = vpop.f32.mrf.mxu1  ;;  %4288 = vst [vmem:[#allocation16_spill] sm:$0xff] %v2333_v17 }
  0xd7   :  { %v787_v34 = vmul.f32 %v2303_v4, %v2303_v4  ;;  %v692_v42 = vadd.f32 %v691_v33, %v2303_v4  ;;  %v2415_v33 = vpop.f32.mrf.mxu3 }
  0xd9   :  { %v867_v47 = vadd.f32 %v866_v37, %v787_v34 }
  0xdd   :  { %v2347_v25 = vpop.f32.mrf.mxu2 }
  0xde   :  { %v2313_v8 = vpop.f32.mrf.mxu0  ;;  %v2329_v15 = vpop.f32.mrf.mxu1 }
  0xdf   :  { %4287 = vst [vmem:[#allocation15_spill] sm:$0xff] %v2329_v15  ;;  %v788_v45 = vmul.f32 %v2313_v8, %v2313_v8  ;;  %v693_v50 = vadd.f32 %v692_v42, %v2313_v8 }
  0xe1   :  { %v868_v1 = vadd.f32 %v867_v47, %v788_v45 }
  0xe5   :  { %v2355_v29 = vpop.f32.mrf.mxu2 }
  0xe6   :  { %v2317_v10 = vpop.f32.mrf.mxu0  ;;  %v2342_v22 = vpop.f32.mrf.mxu1  ;;  %4294 = vst [vmem:[#allocation22_spill] sm:$0xff] %v2355_v29 }
  0xe7   :  { %4285 = vst [vmem:[#allocation13_spill] sm:$0xff] %v2317_v10  ;;  %v789_v56 = vmul.f32 %v2317_v10, %v2317_v10  ;;  %v694_v6 = vadd.f32 %v693_v50, %v2317_v10 }
  0xe8   :  { %4290 = vst [vmem:[#allocation18_spill] sm:$0xff] %v2342_v22 }
  0xe9   :  { %v869_v21 = vadd.f32 %v868_v1, %v789_v56 }
  0xed   :  { %v2382_v63 = vpop.f32.mrf.mxu2 }
  0xee   :  { %v2327_v14 = vpop.f32.mrf.mxu0  ;;  %v2351_v27 = vpop.f32.mrf.mxu1 }
  0xef   :  { %4286 = vst [vmem:[#allocation14_spill] sm:$0xff] %v2327_v14  ;;  %v790_v12 = vmul.f32 %v2327_v14, %v2327_v14  ;;  %v695_v23 = vadd.f32 %v694_v6, %v2327_v14 }
  0xf0   :  { %4292 = vst [vmem:[#allocation20_spill] sm:$0xff] %v2351_v27 }
  0xf1   :  { %v870_v34 = vadd.f32 %v869_v21, %v790_v12 }
  0xf5   :  { %v2405_v57 = vpop.f32.mrf.mxu2 }
  0xf6   :  { %v2335_v18 = vpop.f32.mrf.mxu0  ;;  %v2372_v41 = vpop.f32.mrf.mxu1  ;;  %4297 = vst [vmem:[#allocation25_spill] sm:$0xff] %v2405_v57 }
  0xf7   :  { %4289 = vst [vmem:[#allocation17_spill] sm:$0xff] %v2335_v18  ;;  %v791_v32 = vmul.f32 %v2335_v18, %v2335_v18  ;;  %v696_v37 = vadd.f32 %v695_v23, %v2335_v18 }
  0xf8   :  { %4296 = vst [vmem:[#allocation24_spill] sm:$0xff] %v2372_v41 }
  0xf9   :  { %v871_v47 = vadd.f32 %v870_v34, %v791_v32  ;;  %v2435_v34 = vpop.f32.mrf.mxu3 }
  0xfa   :  { %4301 = vst [vmem:[#allocation29_spill] sm:$0xff] %v2435_v34 }
  0xfd   :  { %v2430_v21 = vpop.f32.mrf.mxu2 }
  0xfe   :  { %v2345_v24 = vpop.f32.mrf.mxu0  ;;  %v2395_v35 = vpop.f32.mrf.mxu1  ;;  %4300 = vst [vmem:[#allocation28_spill] sm:$0xff] %v2430_v21 }
  0xff   :  { %4291 = vst [vmem:[#allocation19_spill] sm:$0xff] %v2345_v24  ;;  %v792_v42 = vmul.f32 %v2345_v24, %v2345_v24  ;;  %v697_v50 = vadd.f32 %v696_v37, %v2345_v24 }
 0x101   :  { %v872_v1 = vadd.f32 %v871_v47, %v792_v42 }
 0x106   :  { %v2353_v28 = vpop.f32.mrf.mxu0  ;;  %v2420_v45 = vpop.f32.mrf.mxu1 }
 0x107   :  { %4293 = vst [vmem:[#allocation21_spill] sm:$0xff] %v2353_v28  ;;  %v793_v56 = vmul.f32 %v2353_v28, %v2353_v28  ;;  %v698_v6 = vadd.f32 %v697_v50, %v2353_v28 }
 0x109   :  { %v873_v23 = vadd.f32 %v872_v1, %v793_v56 }
 0x10e   :  { %v2370_v40 = vpop.f32.mrf.mxu0  ;;  %v2443_v56 = vpop.f32.mrf.mxu1 }
 0x10f   :  { %4295 = vst [vmem:[#allocation23_spill] sm:$0xff] %v2370_v40  ;;  %v794_v14 = vmul.f32 %v2370_v40, %v2370_v40  ;;  %v699_v18 = vadd.f32 %v698_v6, %v2370_v40 }
 0x110   :  { %4302 = vst [vmem:[#allocation30_spill] sm:$0xff] %v2443_v56 }
 0x111   :  { %v874_v37 = vadd.f32 %v873_v23, %v794_v14  ;;  %v2451_v23 = vpop.f32.mrf.mxu2 }
 0x116   :  { %v2390_v31 = vpop.f32.mrf.mxu0 }
 0x117   :  { %v795_v32 = vmul.f32 %v2390_v31, %v2390_v31  ;;  %v700_v42 = vadd.f32 %v699_v18, %v2390_v31 }
 0x119   :  { %v875_v50 = vadd.f32 %v874_v37, %v795_v32  ;;  %v2453_v32 = vpop.f32.mrf.mxu3  ;;  %v799_v37 = vmul.f32 %v2222_v39, %v2222_v39 }
 0x11a   :  { %4304 = vst [vmem:[#allocation32_spill] sm:$0xff] %v2453_v32 }
 0x11e   :  { %v2410_v20 = vpop.f32.mrf.mxu0 }
 0x11f   :  { %4298 = vst [vmem:[#allocation26_spill] sm:$0xff] %v2410_v20  ;;  %v796_v47 = vmul.f32 %v2410_v20, %v2410_v20  ;;  %v701_v28 = vadd.f32 %v700_v42, %v2410_v20  ;;  %v802_v20 = vmul.f32 %v2265_v53, %v2265_v53 }
 0x121   :  { %v876_v1 = vadd.f32 %v875_v50, %v796_v47 }
 0x126   :  { %v2428_v12 = vpop.f32.mrf.mxu0 }
 0x127   :  { %4299 = vst [vmem:[#allocation27_spill] sm:$0xff] %v2428_v12  ;;  %v797_v24 = vmul.f32 %v2428_v12, %v2428_v12  ;;  %v702_v6 = vadd.f32 %v701_v28, %v2428_v12  ;;  %v800_v28 = vmul.f32 %v2239_v44, %v2239_v44  ;;  %v2464_v12 = vpop.f32.mrf.mxu1 }
 0x128   :  { %4305 = vst [vmem:[#allocation33_spill] sm:$0xff] %v2464_v12 }
 0x129   :  { %v877_v10 = vadd.f32 %v876_v1, %v797_v24  ;;  %v801_v1 = vmul.f32 %v2254_v49, %v2254_v49 }
 0x12e   :  { %v2446_v40 = vpop.f32.mrf.mxu0 }
 0x12f   :  { %4303 = vst [vmem:[#allocation31_spill] sm:$0xff] %v2446_v40  ;;  %v703_v14 = vadd.f32 %v702_v6, %v2446_v40  ;;  %v798_v18 = vmul.f32 %v2446_v40, %v2446_v40 }
 0x131   :  { %v704_v42 = vadd.f32 %v703_v14, %v2222_v39  ;;  %v878_v47 = vadd.f32 %v877_v10, %v798_v18  ;;  %v2469_v18 = vpop.f32.mrf.mxu3 }
 0x132   :  { %4306 = vst [vmem:[#allocation34_spill] sm:$0xff] %v2469_v18 }
 0x133   :  { %v705_v24 = vadd.f32 %v704_v42, %v2239_v44  ;;  %v879_v50 = vadd.f32 %v878_v47, %v799_v37  ;;  %v803_v42 = vmul.f32 %v2280_v59, %v2280_v59  ;;  %v2474_v44 = vpop.f32.mrf.mxu2 }
 0x134   :  { %4307 = vst [vmem:[#allocation35_spill] sm:$0xff] %v2474_v44 }
 0x135   :  { %v706_v6 = vadd.f32 %v705_v24, %v2254_v49  ;;  %v880_v40 = vadd.f32 %v879_v50, %v800_v28  ;;  %v804_v28 = vmul.f32 %v2287_v62, %v2287_v62 }
 0x137   :  { %v707_v14 = vadd.f32 %v706_v6, %v2265_v53  ;;  %v881_v10 = vadd.f32 %v880_v40, %v801_v1  ;;  %v805_v6 = vmul.f32 %v2301_v3, %v2301_v3  ;;  %v806_v53 = vmul.f32 %v2311_v7, %v2311_v7 }
 0x139   :  { %v708_v37 = vadd.f32 %v707_v14, %v2280_v59  ;;  %v882_v47 = vadd.f32 %v881_v10, %v802_v20  ;;  %v2485_v10 = vpop.f32.mrf.mxu1  ;;  %v2487_v59 = vpop.f32.mrf.mxu3 }
 0x13a   :  { %4308 = vst [vmem:[#allocation36_spill] sm:$0xff] %v2485_v10 }
 0x13b   :  { %v709_v24 = vadd.f32 %v708_v37, %v2287_v62  ;;  %v883_v50 = vadd.f32 %v882_v47, %v803_v42  ;;  %4309 = vst [vmem:[#allocation37_spill] sm:$0xff] %v2487_v59  ;;  %v807_v37 = vmul.f32 %v2319_v11, %v2319_v11 }
 0x13d   :  { %v710_v40 = vadd.f32 %v709_v24, %v2301_v3  ;;  %v884_v1 = vadd.f32 %v883_v50, %v804_v28  ;;  %v808_v24 = vmul.f32 %v2329_v15, %v2329_v15  ;;  %v2495_v3 = vpop.f32.mrf.mxu2 }
 0x13e   :  { %4310 = vst [vmem:[#allocation38_spill] sm:$0xff] %v2495_v3 }
 0x13f   :  { %v711_v14 = vadd.f32 %v710_v40, %v2311_v7  ;;  %v885_v20 = vadd.f32 %v884_v1, %v805_v6  ;;  %v809_v6 = vmul.f32 %v2342_v22, %v2342_v22  ;;  %v810_v7 = vmul.f32 %v2351_v27, %v2351_v27 }
 0x141   :  { %v886_v42 = vadd.f32 %v885_v20, %v806_v53  ;;  %v712_v47 = vadd.f32 %v711_v14, %v2319_v11  ;;  %v2503_v20 = vpop.f32.mrf.mxu3 }
 0x142   :  { %4311 = vst [vmem:[#allocation39_spill] sm:$0xff] %v2503_v20 }
 0x143   :  { %v713_v28 = vadd.f32 %v712_v47, %v2329_v15  ;;  %v887_v50 = vadd.f32 %v886_v42, %v807_v37  ;;  %v811_v47 = vmul.f32 %v2372_v41, %v2372_v41  ;;  %v2508_v15 = vpop.f32.mrf.mxu1 }
 0x144   :  { %4312 = vst [vmem:[#allocation40_spill] sm:$0xff] %v2508_v15 }
 0x145   :  { %v714_v40 = vadd.f32 %v713_v28, %v2342_v22  ;;  %v888_v1 = vadd.f32 %v887_v50, %v808_v24  ;;  %v812_v28 = vmul.f32 %v2395_v35, %v2395_v35 }
 0x147   :  { %v715_v53 = vadd.f32 %v714_v40, %v2351_v27  ;;  %v889_v14 = vadd.f32 %v888_v1, %v809_v6  ;;  %v813_v40 = vmul.f32 %v2420_v45, %v2420_v45  ;;  %v2516_v27 = vpop.f32.mrf.mxu2 }
 0x148   :  { %4313 = vst [vmem:[#allocation41_spill] sm:$0xff] %v2516_v27 }
 0x149   :  { %v716_v37 = vadd.f32 %v715_v53, %v2372_v41  ;;  %v890_v42 = vadd.f32 %v889_v14, %v810_v7  ;;  %v814_v7 = vmul.f32 %v2443_v56, %v2443_v56  ;;  %v2521_v14 = vpop.f32.mrf.mxu3 }
 0x14a   :  { %4314 = vst [vmem:[#allocation42_spill] sm:$0xff] %v2521_v14 }
 0x14b   :  { %v717_v24 = vadd.f32 %v716_v37, %v2395_v35  ;;  %v891_v50 = vadd.f32 %v890_v42, %v811_v47  ;;  %v815_v47 = vmul.f32 %v2464_v12, %v2464_v12 }
 0x14d   :  { %v718_v6 = vadd.f32 %v717_v24, %v2420_v45  ;;  %v892_v1 = vadd.f32 %v891_v50, %v812_v28  ;;  %v816_v28 = vmul.f32 %v2485_v10, %v2485_v10  ;;  %v2529_v50 = vpop.f32.mrf.mxu1 }
 0x14e   :  { %4315 = vst [vmem:[#allocation43_spill] sm:$0xff] %v2529_v50 }
 0x14f   :  { %v719_v22 = vadd.f32 %v718_v6, %v2443_v56  ;;  %v893_v53 = vadd.f32 %v892_v1, %v813_v40  ;;  %v817_v40 = vmul.f32 %v2508_v15, %v2508_v15  ;;  %v4353_v39 = vld [vmem:[#allocation41_spill] sm:$0xff] }
 0x151   :  { %v894_v41 = vadd.f32 %v893_v53, %v814_v7  ;;  %v720_v37 = vadd.f32 %v719_v22, %v2464_v12  ;;  %v818_v7 = vmul.f32 %v2529_v50, %v2529_v50  ;;  %v2539_v53 = vpop.f32.mrf.mxu3 }
 0x152   :  { %4316 = vst [vmem:[#allocation44_spill] sm:$0xff] %v2539_v53 }
 0x153   :  { %v895_v42 = vadd.f32 %v894_v41, %v815_v47  ;;  %v721_v24 = vadd.f32 %v720_v37, %v2485_v10  ;;  %v2537_v41 = vpop.f32.mrf.mxu2  ;;  %v819_v37 = vmul.f32 %v2263_v52, %v2263_v52 }
 0x155   :  { %v896_v6 = vadd.f32 %v895_v42, %v816_v28  ;;  %v722_v56 = vadd.f32 %v721_v24, %v2508_v15  ;;  %v820_v24 = vmul.f32 %v2269_v55, %v2269_v55  ;;  %v822_v15 = vmul.f32 %v2293_v0, %v2293_v0  ;;  %v4346_v62 = vld [vmem:[#allocation43_spill] sm:$0xff] }
 0x157   :  { %v897_v1 = vadd.f32 %v896_v6, %v817_v40  ;;  %v723_v22 = vadd.f32 %v722_v56, %v2529_v50  ;;  %v821_v56 = vmul.f32 %v2283_v60, %v2283_v60 }
 0x159   :  { %v724_v47 = vadd.f32 %v723_v22, %v2263_v52  ;;  %v898_v42 = vadd.f32 %v897_v1, %v818_v7  ;;  %v2553_v22 = vpop.f32.mrf.mxu3  ;;  %v823_v1 = vmul.f32 %v2305_v5, %v2305_v5 }
 0x15a   :  { %4317 = vst [vmem:[#allocation45_spill] sm:$0xff] %v2553_v22 }
 0x15b   :  { %v725_v28 = vadd.f32 %v724_v47, %v2269_v55  ;;  %v899_v6 = vadd.f32 %v898_v42, %v819_v37  ;;  %v2558_v47 = vpop.f32.mrf.mxu2  ;;  %v824_v42 = vmul.f32 %v2315_v9, %v2315_v9 }
 0x15d   :  { %v726_v40 = vadd.f32 %v725_v28, %v2283_v60  ;;  %v900_v50 = vadd.f32 %v899_v6, %v820_v24  ;;  %v825_v6 = vmul.f32 %v2324_v13, %v2324_v13 }
 0x15f   :  { %v727_v10 = vadd.f32 %v726_v40, %v2293_v0  ;;  %v901_v12 = vadd.f32 %v900_v50, %v821_v56  ;;  %v826_v40 = vmul.f32 %v2333_v17, %v2333_v17 }
 0x161   :  { %v728_v7 = vadd.f32 %v727_v10, %v2305_v5  ;;  %v902_v37 = vadd.f32 %v901_v12, %v822_v15  ;;  %v2569_v12 = vpop.f32.mrf.mxu3  ;;  %v827_v5 = vmul.f32 %v2347_v25, %v2347_v25 }
 0x162   :  { %4318 = vst [vmem:[#allocation46_spill] sm:$0xff] %v2569_v12 }
 0x163   :  { %v729_v24 = vadd.f32 %v728_v7, %v2315_v9  ;;  %v903_v28 = vadd.f32 %v902_v37, %v823_v1  ;;  %v828_v7 = vmul.f32 %v2355_v29, %v2355_v29 }
 0x165   :  { %v730_v50 = vadd.f32 %v729_v24, %v2324_v13  ;;  %v904_v56 = vadd.f32 %v903_v28, %v824_v42  ;;  %v2577_v24 = vpop.f32.mrf.mxu2  ;;  %v829_v28 = vmul.f32 %v2382_v63, %v2382_v63 }
 0x167   :  { %v731_v10 = vadd.f32 %v730_v50, %v2333_v17  ;;  %v905_v15 = vadd.f32 %v904_v56, %v825_v6  ;;  %v830_v56 = vmul.f32 %v2405_v57, %v2405_v57 }
 0x169   :  { %v906_v0 = vadd.f32 %v905_v15, %v826_v40  ;;  %v732_v1 = vadd.f32 %v731_v10, %v2347_v25  ;;  %v2585_v15 = vpop.f32.mrf.mxu3 }
 0x16a   :  { %4319 = vst [vmem:[#allocation47_spill] sm:$0xff] %v2585_v15 }
 0x16b   :  { %v733_v37 = vadd.f32 %v732_v1, %v2355_v29  ;;  %v907_v42 = vadd.f32 %v906_v0, %v827_v5  ;;  %v831_v1 = vmul.f32 %v2430_v21, %v2430_v21  ;;  %v832_v29 = vmul.f32 %v2451_v23, %v2451_v23 }
 0x16d   :  { %v734_v6 = vadd.f32 %v733_v37, %v2382_v63  ;;  %v908_v50 = vadd.f32 %v907_v42, %v828_v7  ;;  %v833_v42 = vmul.f32 %v2474_v44, %v2474_v44 }
 0x16f   :  { %v735_v40 = vadd.f32 %v734_v6, %v2405_v57  ;;  %v909_v10 = vadd.f32 %v908_v50, %v829_v28  ;;  %v2596_v50 = vpop.f32.mrf.mxu2  ;;  %v834_v57 = vmul.f32 %v2495_v3, %v2495_v3 }
 0x170   :  { %4320 = vst [vmem:[#allocation48_spill] sm:$0xff] %v2596_v50 }
 0x171   :  { %v736_v0 = vadd.f32 %v735_v40, %v2430_v21  ;;  %v910_v5 = vadd.f32 %v909_v10, %v830_v56  ;;  %v2601_v10 = vpop.f32.mrf.mxu3 }
 0x172   :  { %4321 = vst [vmem:[#allocation49_spill] sm:$0xff] %v2601_v10 }
 0x173   :  { %v737_v37 = vadd.f32 %v736_v0, %v2451_v23  ;;  %v911_v7 = vadd.f32 %v910_v5, %v831_v1  ;;  %v835_v1 = vmul.f32 %v2516_v27, %v2516_v27 }
 0x175   :  { %v738_v6 = vadd.f32 %v737_v37, %v2474_v44  ;;  %v912_v28 = vadd.f32 %v911_v7, %v832_v29  ;;  %v836_v29 = vmul.f32 %v2537_v41, %v2537_v41 }
 0x177   :  { %v739_v40 = vadd.f32 %v738_v6, %v2495_v3  ;;  %v913_v56 = vadd.f32 %v912_v28, %v833_v42  ;;  %v837_v42 = vmul.f32 %v2558_v47, %v2558_v47  ;;  %v4354_v17 = vld [vmem:[#allocation48_spill] sm:$0xff] }
 0x179   :  { %v740_v21 = vadd.f32 %v739_v40, %v2516_v27  ;;  %v914_v0 = vadd.f32 %v913_v56, %v834_v57  ;;  %v838_v40 = vmul.f32 %v2577_v24, %v2577_v24  ;;  %v2615_v27 = vpop.f32.mrf.mxu2  ;;  %v2617_v57 = vpop.f32.mrf.mxu3 }
 0x17a   :  { %4322 = vst [vmem:[#allocation50_spill] sm:$0xff] %v2615_v27 }
 0x17b   :  { %v915_v5 = vadd.f32 %v914_v0, %v835_v1  ;;  %v741_v37 = vadd.f32 %v740_v21, %v2537_v41  ;;  %4323 = vst [vmem:[#allocation51_spill] sm:$0xff] %v2617_v57  ;;  %v839_v1 = vmul.f32 %v2596_v50, %v2596_v50 }
 0x17d   :  { %v916_v7 = vadd.f32 %v915_v5, %v836_v29  ;;  %v742_v44 = vadd.f32 %v741_v37, %v2558_v47  ;;  %v840_v37 = vmul.f32 %v2615_v27, %v2615_v27 }
 0x17f   :  { %v917_v6 = vadd.f32 %v916_v7, %v837_v42  ;;  %v743_v28 = vadd.f32 %v742_v44, %v2577_v24  ;;  %v841_v44 = vmul.f32 %v2331_v16, %v2331_v16  ;;  %v842_v42 = vmul.f32 %v2337_v19, %v2337_v19 }
 0x181   :  { %v918_v21 = vadd.f32 %v917_v6, %v838_v40  ;;  %v744_v56 = vadd.f32 %v743_v28, %v2596_v50  ;;  %v683_v40 = vpop.f32.mrf.mxu3 }
 0x182   :  { %v4362_v3 = vld [vmem:[#allocation51_spill] sm:$0xff] }
 0x183   :  { %v919_v0 = vadd.f32 %v918_v21, %v839_v1  ;;  %v745_v5 = vadd.f32 %v744_v56, %v2615_v27  ;;  %v843_v21 = vmul.f32 %v2349_v26, %v2349_v26  ;;  %v844_v27 = vmul.f32 %v2357_v30, %v2357_v30 }
 0x185   :  { %v746_v29 = vadd.f32 %v745_v5, %v2331_v16  ;;  %v920_v7 = vadd.f32 %v919_v0, %v840_v37  ;;  %v845_v0 = vmul.f32 %v2377_v48, %v2377_v48 }
 0x187   :  { %v747_v6 = vadd.f32 %v746_v29, %v2337_v19  ;;  %v921_v28 = vadd.f32 %v920_v7, %v841_v44  ;;  %v846_v44 = vmul.f32 %v2397_v36, %v2397_v36 }
 0x189   :  { %v748_v56 = vadd.f32 %v747_v6, %v2349_v26  ;;  %v922_v1 = vadd.f32 %v921_v28, %v842_v42  ;;  %v847_v42 = vmul.f32 %v2415_v33, %v2415_v33 }
 0x18b   :  { %v749_v50 = vadd.f32 %v748_v56, %v2357_v30  ;;  %v923_v5 = vadd.f32 %v922_v1, %v843_v21  ;;  %v848_v21 = vmul.f32 %v2435_v34, %v2435_v34 }
 0x18d   :  { %v750_v37 = vadd.f32 %v749_v50, %v2377_v48  ;;  %v924_v29 = vadd.f32 %v923_v5, %v844_v27  ;;  %v849_v27 = vmul.f32 %v2453_v32, %v2453_v32 }
 0x18f   :  { %v751_v7 = vadd.f32 %v750_v37, %v2397_v36  ;;  %v925_v40 = vadd.f32 %v924_v29, %v845_v0  ;;  %v850_v0 = vmul.f32 %v2469_v18, %v2469_v18 }
 0x191   :  { %v752_v6 = vadd.f32 %v751_v7, %v2415_v33  ;;  %v926_v28 = vadd.f32 %v925_v40, %v846_v44  ;;  %v851_v44 = vmul.f32 %v2487_v59, %v2487_v59 }
 0x193   :  { %v927_v56 = vadd.f32 %v926_v28, %v847_v42  ;;  %v753_v1 = vadd.f32 %v752_v6, %v2435_v34  ;;  %v852_v42 = vmul.f32 %v2503_v20, %v2503_v20 }
 0x195   :  { %v754_v50 = vadd.f32 %v753_v1, %v2453_v32  ;;  %v928_v5 = vadd.f32 %v927_v56, %v848_v21  ;;  %v853_v21 = vmul.f32 %v2521_v14, %v2521_v14 }
 0x197   :  { %v755_v37 = vadd.f32 %v754_v50, %v2469_v18  ;;  %v929_v29 = vadd.f32 %v928_v5, %v849_v27  ;;  %v854_v27 = vmul.f32 %v2539_v53, %v2539_v53 }
 0x199   :  { %v756_v7 = vadd.f32 %v755_v37, %v2487_v59  ;;  %v930_v40 = vadd.f32 %v929_v29, %v850_v0  ;;  %v855_v37 = vmul.f32 %v2553_v22, %v2553_v22 }
 0x19b   :  { %v757_v6 = vadd.f32 %v756_v7, %v2503_v20  ;;  %v931_v28 = vadd.f32 %v930_v40, %v851_v44  ;;  %v856_v40 = vmul.f32 %v2569_v12, %v2569_v12 }
 0x19d   :  { %v758_v56 = vadd.f32 %v757_v6, %v2521_v14  ;;  %v932_v1 = vadd.f32 %v931_v28, %v852_v42  ;;  %v857_v28 = vmul.f32 %v2585_v15, %v2585_v15 }
 0x19f   :  { %v759_v50 = vadd.f32 %v758_v56, %v2539_v53  ;;  %v933_v5 = vadd.f32 %v932_v1, %v853_v21  ;;  %v858_v1 = vmul.f32 %v2601_v10, %v2601_v10 }
 0x1a1   :  { %v760_v0 = vadd.f32 %v759_v50, %v2553_v22  ;;  %v934_v29 = vadd.f32 %v933_v5, %v854_v27  ;;  %v2069_v5 = vmov 648.0  }
 0x1a2   :  { %2064 = vrcp.f32 %v2069_v5 }
 0x1a3   :  { %v935_v7 = vadd.f32 %v934_v29, %v855_v37  ;;  %v761_v44 = vadd.f32 %v760_v0, %v2569_v12  ;;  %v859_v0 = vmul.f32 %v2617_v57, %v2617_v57 }
 0x1a5   :  { %v936_v6 = vadd.f32 %v935_v7, %v856_v40  ;;  %v762_v42 = vadd.f32 %v761_v44, %v2585_v15 }
 0x1a7   :  { %v937_v56 = vadd.f32 %v936_v6, %v857_v28  ;;  %v763_v21 = vadd.f32 %v762_v42, %v2601_v10 }
 0x1a8   :  { %v2065_v7 = vpop.eup %2064 }
 0x1a9   :  { %v938_v50 = vadd.f32 %v937_v56, %v858_v1  ;;  %v764_v27 = vadd.f32 %v763_v21, %v2617_v57  ;;  %v772_v15 = vmul.f32 648.0, %v2065_v7  ;;  %vm776_vm3 = vweird.f32 %v2065_v7 }
 0x1ab   :  { %v765_v37 = vrot.slane %v764_v27, 4  ;;  %v939_v29 = vadd.f32 %v938_v50, %v859_v0  ;;  %v773_v42 = vsub.f32 1.0, %v772_v15 }
 0x1ad   :  { %v766_v44 = vadd.f32 %v765_v37, %v764_v27  ;;  %v940_v40 = vrot.slane %v939_v29, 4  ;;  %v774_v10 = vmul.f32 %v2065_v7, %v773_v42  ;;  %v4333_v42 = vld [vmem:[#allocation3_spill] sm:$0xff] }
 0x1af   :  { %v767_v6 = vrot.slane %v766_v44, 2  ;;  %v941_v28 = vadd.f32 %v940_v40, %v939_v29  ;;  %v775_v21 = vadd.f32 %v2065_v7, %v774_v10  ;;  %v4329_v40 = vld [vmem:[#allocation23_spill] sm:$0xff] }
 0x1b1   :  { %v768_v12 = vadd.f32 %v767_v6, %v766_v44  ;;  %v942_v22 = vrot.slane %v941_v28, 2  ;;  %v777_v14 = vsel %vm776_vm3, %v2065_v7, %v775_v21  ;;  %v4328_v6 = vld [vmem:[#allocation21_spill] sm:$0xff]  ;;  %v4351_v7 = vld [vmem:[#allocation28_spill] sm:$0xff] }
 0x1b2   :  { %v4350_v21 = vld [vmem:[#allocation25_spill] sm:$0xff] }
 0x1b3   :  { %v769_v56 = vrot.slane %v768_v12, 1  ;;  %v943_v1 = vadd.f32 %v942_v22, %v941_v28  ;;  %v4337_v28 = vld [vmem:[#allocation11_spill] sm:$0xff] }
 0x1b5   :  { %v770_v5 = vadd.f32 %v769_v56, %v768_v12  ;;  %v944_v53 = vrot.slane %v943_v1, 1  ;;  %v4347_v56 = vld [vmem:[#allocation8_spill] sm:$0xff] }
 0x1b7   :  { %v2682_v57 = vmul.f32 %v777_v14, %v770_v5  ;;  %v945_v50 = vadd.f32 %v944_v53, %v943_v1  ;;  %v4324_v1 = vld [vmem:[#allocation13_spill] sm:$0xff]  ;;  %v4325_v5 = vld [vmem:[#allocation14_spill] sm:$0xff] }
 0x1b8   :  { %v4336_v53 = vld [vmem:[#allocation9_spill] sm:$0xff] }
 0x1b9   :  { %v946_v0 = vmul.f32 %v945_v50, %v777_v14  ;;  %v947_v27 = vmul.f32 %v2682_v57, %v2682_v57  ;;  %v4345_v50 = vld [vmem:[#allocation40_spill] sm:$0xff]  ;;  %v4363_v12 = vsub.f32 %v2220_v38, %v2682_v57  ;;  %v4364_v32 = vsub.f32 %v2236_v43, %v2682_v57 }
 0x1ba   :  { %v4365_v18 = vsub.f32 %v2244_v46, %v2682_v57  ;;  %v4366_v20 = vsub.f32 %v2260_v51, %v2682_v57 }
 0x1bb   :  { %v948_v37 = vsub.f32 %v946_v0, %v947_v27  ;;  %v4326_v0 = vld [vmem:[#allocation17_spill] sm:$0xff]  ;;  %v4360_v27 = vld [vmem:[#allocation47_spill] sm:$0xff] }
 0x1bd   :  { %v949_v29 = vmax.f32 %v948_v37, 0.0 }
 0x1bf   :  { %v2686_v15 = vadd.f32 1e-05, %v949_v29  ;;  %v4327_v29 = vld [vmem:[#allocation19_spill] sm:$0xff] }
 0x1c1   :  { %2066 = vrsqrt.f32 %v2686_v15  ;;  %vm1038_vm5 = vweird.f32 %v2686_v15 }
 0x1c7   :  { %v2689_v44 = vpop.eup %2066 }
 0x1c8   :  { %v1033_v22 = vmul.f32 %v2689_v44, %v2686_v15  ;;  %vm1039_vm4 = vweird.f32 %v2689_v44  ;;  %v4358_v15 = vld [vmem:[#allocation45_spill] sm:$0xff] }
 0x1c9   :  { %vm1040_vm6 = vmor %vm1038_vm5, %vm1039_vm4 }
 0x1ca   :  { %v1034_v37 = vmul.f32 %v2689_v44, %v1033_v22  ;;  %v4361_v22 = vld [vmem:[#allocation49_spill] sm:$0xff] }
 0x1cc   :  { %v1035_v10 = vmul.f32 0.5, %v1034_v37  ;;  %v4355_v37 = vld [vmem:[#allocation50_spill] sm:$0xff] }
 0x1ce   :  { %v1036_v14 = vsub.f32 1.5, %v1035_v10  ;;  %v4357_v10 = vld [vmem:[#allocation44_spill] sm:$0xff] }
 0x1d0   :  { %v1037_v49 = vmul.f32 %v2689_v44, %v1036_v14  ;;  %v4356_v14 = vld [vmem:[#allocation42_spill] sm:$0xff] }
 0x1d2   :  { %v2840_v9 = vsel %vm1040_vm6, %v2689_v44, %v1037_v49  ;;  %v4359_v49 = vld [vmem:[#allocation46_spill] sm:$0xff] }
 0x1d3   :  { %v2866_v34 = vmul.f32 %v2840_v9, %v4363_v12  ;;  %v2872_v44 = vmul.f32 %v2840_v9, %v4364_v32  ;;  %v2878_v59 = vmul.f32 %v2840_v9, %v4365_v18  ;;  %v2884_v38 = vmul.f32 %v2840_v9, %v4366_v20 }
 0x1d4   :  { %v4367_v12 = vsub.f32 %v2267_v54, %v2682_v57  ;;  %v4368_v32 = vsub.f32 %v2278_v58, %v2682_v57  ;;  %v4369_v18 = vsub.f32 %v2285_v61, %v2682_v57  ;;  %v4370_v20 = vsub.f32 %v2298_v2, %v2682_v57 }
 0x1d6   :  { %v2890_v43 = vmul.f32 %v2840_v9, %v4367_v12  ;;  %v2896_v46 = vmul.f32 %v2840_v9, %v4368_v32  ;;  %v2902_v51 = vmul.f32 %v2840_v9, %v4369_v18  ;;  %v2908_v54 = vmul.f32 %v2840_v9, %v4370_v20 }
 0x1d7   :  { %v4371_v12 = vsub.f32 %v2303_v4, %v2682_v57  ;;  %v4372_v32 = vsub.f32 %v2313_v8, %v2682_v57  ;;  %v4373_v18 = vsub.f32 %v4324_v1, %v2682_v57  ;;  %v4374_v20 = vsub.f32 %v4325_v5, %v2682_v57 }
 0x1d9   :  { %v2914_v58 = vmul.f32 %v2840_v9, %v4371_v12  ;;  %v2920_v61 = vmul.f32 %v2840_v9, %v4372_v32  ;;  %v2926_v2 = vmul.f32 %v2840_v9, %v4373_v18  ;;  %v2932_v4 = vmul.f32 %v2840_v9, %v4374_v20 }
 0x1da   :  { %v4375_v12 = vsub.f32 %v4326_v0, %v2682_v57  ;;  %v4376_v32 = vsub.f32 %v4327_v29, %v2682_v57  ;;  %v4378_v18 = vsub.f32 %v4328_v6, %v2682_v57  ;;  %v4380_v20 = vsub.f32 %v4329_v40, %v2682_v57 }
 0x1dc   :  { %v2938_v8 = vmul.f32 %v2840_v9, %v4375_v12  ;;  %v2944_v1 = vmul.f32 %v2840_v9, %v4376_v32  ;;  %v2950_v5 = vmul.f32 %v2840_v9, %v4378_v18  ;;  %v2956_v0 = vmul.f32 %v2840_v9, %v4380_v20  ;;  %v4384_v32 = vld [vmem:[#allocation26_spill] sm:$0xff]  ;;  %v4386_v18 = vld [vmem:[#allocation27_spill] sm:$0xff] }
 0x1dd   :  { %v4382_v12 = vsub.f32 %v2390_v31, %v2682_v57  ;;  %v4389_v20 = vld [vmem:[#allocation31_spill] sm:$0xff] }
 0x1de   :  { %4377 = vst [vmem:[#allocation13_spill] sm:$0xff] %v2944_v1  ;;  %v4385_v1 = vsub.f32 %v4384_v32, %v2682_v57 }
 0x1df   :  { %4379 = vst [vmem:[#allocation14_spill] sm:$0xff] %v2950_v5  ;;  %v2962_v29 = vmul.f32 %v2840_v9, %v4382_v12  ;;  %v4387_v5 = vsub.f32 %v4386_v18, %v2682_v57  ;;  %v4392_v12 = vld [vmem:[#allocation2_spill] sm:$0xff] }
 0x1e0   :  { %4381 = vst [vmem:[#allocation17_spill] sm:$0xff] %v2956_v0  ;;  %v2968_v6 = vmul.f32 %v2840_v9, %v4385_v1  ;;  %v4390_v0 = vsub.f32 %v4389_v20, %v2682_v57  ;;  %v4395_v1 = vsub.f32 %v4333_v42, %v2682_v57 }
 0x1e1   :  { %4383 = vst [vmem:[#allocation19_spill] sm:$0xff] %v2962_v29  ;;  %v2974_v40 = vmul.f32 %v2840_v9, %v4387_v5  ;;  %v4393_v29 = vsub.f32 %v4392_v12, %v2682_v57  ;;  %v4397_v5 = vld [vmem:[#allocation4_spill] sm:$0xff] }
 0x1e2   :  { %v2980_v31 = vmul.f32 %v2840_v9, %v4390_v0  ;;  %v2992_v18 = vmul.f32 %v2840_v9, %v4395_v1  ;;  %v4399_v0 = vld [vmem:[#allocation5_spill] sm:$0xff]  ;;  %v4403_v1 = vld [vmem:[#allocation7_spill] sm:$0xff] }
 0x1e3   :  { %4388 = vst [vmem:[#allocation21_spill] sm:$0xff] %v2974_v40  ;;  %v2986_v32 = vmul.f32 %v2840_v9, %v4393_v29  ;;  %v4398_v40 = vsub.f32 %v4397_v5, %v2682_v57  ;;  %v4401_v29 = vld [vmem:[#allocation6_spill] sm:$0xff] }
 0x1e4   :  { %4391 = vst [vmem:[#allocation23_spill] sm:$0xff] %v2980_v31  ;;  %v4400_v31 = vsub.f32 %v4399_v0, %v2682_v57 }
 0x1e5   :  { %4394 = vst [vmem:[#allocation3_spill] sm:$0xff] %v2986_v32  ;;  %v2998_v20 = vmul.f32 %v2840_v9, %v4398_v40  ;;  %v4402_v32 = vsub.f32 %v4401_v29, %v2682_v57  ;;  %v4406_v40 = vsub.f32 %v4336_v53, %v2682_v57 }
 0x1e6   :  { %4396 = vst [vmem:[#allocation9_spill] sm:$0xff] %v2992_v18  ;;  %v3004_v12 = vmul.f32 %v2840_v9, %v4400_v31  ;;  %v4404_v18 = vsub.f32 %v4403_v1, %v2682_v57  ;;  %v4408_v31 = vsub.f32 %v4337_v28, %v2682_v57 }
 0x1e7   :  { %v3010_v42 = vmul.f32 %v2840_v9, %v4402_v32  ;;  %v3022_v0 = vmul.f32 %v2840_v9, %v4406_v40  ;;  %v4410_v32 = vsub.f32 %v2319_v11, %v2682_v57  ;;  %v4414_v40 = vld [vmem:[#allocation18_spill] sm:$0xff] }
 0x1e8   :  { %v3016_v5 = vmul.f32 %v2840_v9, %v4404_v18  ;;  %v3028_v29 = vmul.f32 %v2840_v9, %v4408_v31  ;;  %v4412_v18 = vld [vmem:[#allocation15_spill] sm:$0xff]  ;;  %v4416_v31 = vld [vmem:[#allocation20_spill] sm:$0xff] }
 0x1e9   :  { %4407 = vst [vmem:[#allocation40_spill] sm:$0xff] %v3022_v0  ;;  %v3034_v1 = vmul.f32 %v2840_v9, %v4410_v32  ;;  %v4415_v0 = vsub.f32 %v4414_v40, %v2682_v57  ;;  %v4419_v32 = vld [vmem:[#allocation24_spill] sm:$0xff] }
 0x1ea   :  { %4405 = vst [vmem:[#allocation11_spill] sm:$0xff] %v3016_v5  ;;  %v4413_v5 = vsub.f32 %v4412_v18, %v2682_v57 }
 0x1eb   :  { %4409 = vst [vmem:[#allocation43_spill] sm:$0xff] %v3028_v29  ;;  %v3046_v28 = vmul.f32 %v2840_v9, %v4415_v0  ;;  %v4417_v29 = vsub.f32 %v4416_v31, %v2682_v57  ;;  %v4424_v0 = vsub.f32 %v2420_v45, %v2682_v57 }
 0x1ec   :  { %4411 = vst [vmem:[#allocation8_spill] sm:$0xff] %v3034_v1  ;;  %v3040_v53 = vmul.f32 %v2840_v9, %v4413_v5  ;;  %v4420_v1 = vsub.f32 %v4419_v32, %v2682_v57  ;;  %v4422_v5 = vsub.f32 %v2395_v35, %v2682_v57 }
 0x1ed   :  { %v3052_v11 = vmul.f32 %v2840_v9, %v4417_v29  ;;  %v3070_v31 = vmul.f32 %v2840_v9, %v4424_v0  ;;  %v4425_v29 = vld [vmem:[#allocation30_spill] sm:$0xff]  ;;  %v4431_v0 = vsub.f32 %v4345_v50, %v2682_v57 }
 0x1ee   :  { %v3058_v18 = vmul.f32 %v2840_v9, %v4420_v1  ;;  %v3064_v40 = vmul.f32 %v2840_v9, %v4422_v5  ;;  %v4427_v1 = vld [vmem:[#allocation33_spill] sm:$0xff]  ;;  %v4429_v5 = vld [vmem:[#allocation36_spill] sm:$0xff] }
 0x1ef   :  { %4418 = vst [vmem:[#allocation25_spill] sm:$0xff] %v3052_v11  ;;  %v4426_v11 = vsub.f32 %v4425_v29, %v2682_v57  ;;  %v3094_v29 = vmul.f32 %v2840_v9, %v4431_v0  ;;  %v4437_v0 = vsub.f32 %v2283_v60, %v2682_v57 }
 0x1f0   :  { %4421 = vst [vmem:[#allocation28_spill] sm:$0xff] %v3058_v18  ;;  %v4428_v18 = vsub.f32 %v4427_v1, %v2682_v57 }
 0x1f1   :  { %4423 = vst [vmem:[#allocation41_spill] sm:$0xff] %v3064_v40  ;;  %v3076_v32 = vmul.f32 %v2840_v9, %v4426_v11  ;;  %v4430_v40 = vsub.f32 %v4429_v5, %v2682_v57  ;;  %v4432_v11 = vsub.f32 %v4346_v62, %v2682_v57  ;;  %v3118_v62 = vmul.f32 %v2840_v9, %v4437_v0 }
 0x1f2   :  { %v3082_v35 = vmul.f32 %v2840_v9, %v4428_v18  ;;  %v4433_v18 = vsub.f32 %v2263_v52, %v2682_v57  ;;  %v4445_v0 = vsub.f32 %v2324_v13, %v2682_v57 }
 0x1f3   :  { %v3088_v45 = vmul.f32 %v2840_v9, %v4430_v40  ;;  %v3100_v1 = vmul.f32 %v2840_v9, %v4432_v11  ;;  %v4435_v40 = vsub.f32 %v2269_v55, %v2682_v57  ;;  %v4438_v11 = vsub.f32 %v4347_v56, %v2682_v57 }
 0x1f4   :  { %v3106_v5 = vmul.f32 %v2840_v9, %v4433_v18  ;;  %v4440_v18 = vld [vmem:[#allocation10_spill] sm:$0xff]  ;;  %v3142_v56 = vmul.f32 %v2840_v9, %v4445_v0  ;;  %v4451_v0 = vsub.f32 %v2382_v63, %v2682_v57 }
 0x1f5   :  { %v3112_v50 = vmul.f32 %v2840_v9, %v4435_v40  ;;  %v3124_v52 = vmul.f32 %v2840_v9, %v4438_v11  ;;  %v4442_v40 = vld [vmem:[#allocation12_spill] sm:$0xff] }
 0x1f6   :  { %4434 = vst [vmem:[#allocation48_spill] sm:$0xff] %v3106_v5  ;;  %v4441_v5 = vsub.f32 %v4440_v18, %v2682_v57  ;;  %v4446_v11 = vld [vmem:[#allocation16_spill] sm:$0xff] }
 0x1f7   :  { %4436 = vst [vmem:[#allocation50_spill] sm:$0xff] %v3112_v50  ;;  %v4443_v50 = vsub.f32 %v4442_v40, %v2682_v57 }
 0x1f8   :  { %4439 = vst [vmem:[#allocation42_spill] sm:$0xff] %v3124_v52  ;;  %v3130_v55 = vmul.f32 %v2840_v9, %v4441_v5  ;;  %v4447_v52 = vsub.f32 %v4446_v11, %v2682_v57  ;;  %v4448_v5 = vsub.f32 %v2347_v25, %v2682_v57  ;;  %v3166_v11 = vmul.f32 %v2840_v9, %v4451_v0  ;;  %v4457_v0 = vld [vmem:[#allocation35_spill] sm:$0xff] }
 0x1f9   :  { %v3136_v60 = vmul.f32 %v2840_v9, %v4443_v50  ;;  %v4449_v50 = vld [vmem:[#allocation22_spill] sm:$0xff] }
 0x1fa   :  { %v3148_v18 = vmul.f32 %v2840_v9, %v4447_v52  ;;  %v3154_v40 = vmul.f32 %v2840_v9, %v4448_v5  ;;  %4452 = vst [vmem:[#allocation45_spill] sm:$0xff] %v3166_v11  ;;  %v4453_v52 = vsub.f32 %v4350_v21, %v2682_v57  ;;  %v4455_v5 = vsub.f32 %v4351_v7, %v2682_v57 }
 0x1fb   :  { %4444 = vst [vmem:[#allocation44_spill] sm:$0xff] %v3136_v60  ;;  %v4450_v60 = vsub.f32 %v4449_v50, %v2682_v57  ;;  %v4458_v11 = vsub.f32 %v4457_v0, %v2682_v57 }
 0x1fc   :  { %v3172_v25 = vmul.f32 %v2840_v9, %v4453_v52  ;;  %v3178_v50 = vmul.f32 %v2840_v9, %v4455_v5  ;;  %v4459_v52 = vld [vmem:[#allocation38_spill] sm:$0xff]  ;;  %v4461_v5 = vsub.f32 %v4353_v39, %v2682_v57 }
 0x1fd   :  { %v3160_v13 = vmul.f32 %v2840_v9, %v4450_v60  ;;  %v4456_v60 = vsub.f32 %v2451_v23, %v2682_v57  ;;  %v3190_v21 = vmul.f32 %v2840_v9, %v4458_v11  ;;  %v4463_v11 = vsub.f32 %v2558_v47, %v2682_v57 }
 0x1fe   :  { %4454 = vst [vmem:[#allocation46_spill] sm:$0xff] %v3172_v25  ;;  %v4460_v25 = vsub.f32 %v4459_v52, %v2682_v57  ;;  %v3202_v23 = vmul.f32 %v2840_v9, %v4461_v5  ;;  %v4465_v5 = vsub.f32 %v4354_v17, %v2682_v57 }
 0x1ff   :  { %v3184_v63 = vmul.f32 %v2840_v9, %v4456_v60  ;;  %v4462_v60 = vsub.f32 %v2537_v41, %v2682_v57  ;;  %v3214_v52 = vmul.f32 %v2840_v9, %v4463_v11  ;;  %v4467_v11 = vsub.f32 %v2331_v16, %v2682_v57 }
 0x200   :  { %v3196_v7 = vmul.f32 %v2840_v9, %v4460_v25  ;;  %v4464_v25 = vsub.f32 %v2577_v24, %v2682_v57  ;;  %v3226_v41 = vmul.f32 %v2840_v9, %v4465_v5  ;;  %v4469_v5 = vsub.f32 %v2349_v26, %v2682_v57 }
 0x201   :  { %v3208_v0 = vmul.f32 %v2840_v9, %v4462_v60  ;;  %v4466_v60 = vsub.f32 %v4355_v37, %v2682_v57  ;;  %v3238_v24 = vmul.f32 %v2840_v9, %v4467_v11  ;;  %v3261_v11 = vld [vmem:[%s4182_s2] ss:$0 sm:$0xff]  ;;  %v4475_v26 = vsub.f32 %v2397_v36, %v2682_v57 }
 0x202   :  { %v3220_v39 = vmul.f32 %v2840_v9, %v4464_v25  ;;  %v4468_v25 = vsub.f32 %v2337_v19, %v2682_v57  ;;  %v3250_v37 = vmul.f32 %v2840_v9, %v4469_v5  ;;  %v4473_v19 = vsub.f32 %v2377_v48, %v2682_v57 }
 0x203   :  { %v3232_v47 = vmul.f32 %v2840_v9, %v4466_v60  ;;  %v4471_v60 = vsub.f32 %v2357_v30, %v2682_v57  ;;  %v3273_v5 = vmul.f32 %v2840_v9, %v4475_v26  ;;  %v4477_v30 = vsub.f32 %v2415_v33, %v2682_v57  ;;  %v4484_v26 = vld [vmem:[#allocation34_spill] sm:$0xff] }
 0x204   :  { %v3244_v17 = vmul.f32 %v2840_v9, %v4468_v25  ;;  %4470 = vst [vmem:[#allocation47_spill] sm:$0xff] %v3250_v37  ;;  %v3267_v25 = vmul.f32 %v2840_v9, %v4473_v19  ;;  %v4482_v19 = vld [vmem:[#allocation32_spill] sm:$0xff] }
 0x205   :  { %v3256_v16 = vmul.f32 %v2840_v9, %v4471_v60  ;;  %4476 = vst [vmem:[#allocation26_spill] sm:$0xff] %v3273_v5  ;;  %v3279_v60 = vmul.f32 %v2840_v9, %v4477_v30  ;;  %v4485_v5 = vsub.f32 %v4484_v26, %v2682_v57  ;;  %v4486_v30 = vld [vmem:[#allocation37_spill] sm:$0xff] }
 0x206   :  { %4474 = vst [vmem:[#allocation51_spill] sm:$0xff] %v3267_v25  ;;  %v4483_v25 = vsub.f32 %v4482_v19, %v2682_v57 }
 0x207   :  { %4472 = vst [vmem:[#allocation49_spill] sm:$0xff] %v3256_v16  ;;  %v4479_v16 = vld [vmem:[#allocation29_spill] sm:$0xff]  ;;  %v3297_v33 = vmul.f32 %v2840_v9, %v4485_v5  ;;  %v4491_v5 = vsub.f32 %v4357_v10, %v2682_v57 }
 0x208   :  { %4478 = vst [vmem:[#allocation27_spill] sm:$0xff] %v3279_v60  ;;  %v4480_v37 = vsub.f32 %v4479_v16, %v2682_v57  ;;  %v3291_v36 = vmul.f32 %v2840_v9, %v4483_v25  ;;  %v4487_v60 = vsub.f32 %v4486_v30, %v2682_v57  ;;  %v4490_v25 = vsub.f32 %v4356_v14, %v2682_v57 }
 0x209   :  { %v3321_v30 = vmul.f32 %v2840_v9, %v4491_v5  ;;  %v4495_v5 = vsub.f32 %v4361_v22, %v2682_v57  ;;  %v3363_v22 = vmul.f32 %v3261_v11, %v2878_v59  ;;  %v3383_v59 = vmul.f32 %v3261_v11, %v2908_v54 }
 0x20a   :  { %v3285_v48 = vmul.f32 %v2840_v9, %v4480_v37  ;;  %v3303_v16 = vmul.f32 %v2840_v9, %v4487_v60  ;;  %v4488_v37 = vld [vmem:[#allocation39_spill] sm:$0xff]  ;;  %v3315_v26 = vmul.f32 %v2840_v9, %v4490_v25  ;;  %v4492_v60 = vsub.f32 %v4358_v15, %v2682_v57 }
 0x20b   :  { %v4494_v25 = vsub.f32 %v4360_v27, %v2682_v57  ;;  %v3345_v15 = vmul.f32 %v2840_v9, %v4495_v5  ;;  %v3359_v27 = vmul.f32 %v3261_v11, %v2872_v44  ;;  %v3391_v44 = vmul.f32 %v3261_v11, %v2920_v61  ;;  %v4502_v5 = vld [vmem:[#allocation17_spill] sm:$0xff] }
 0x20c   :  { %4481 = vst [vmem:[#allocation31_spill] sm:$0xff] %v3285_v48  ;;  %v4489_v48 = vsub.f32 %v4488_v37, %v2682_v57  ;;  %v3327_v37 = vmul.f32 %v2840_v9, %v4492_v60  ;;  %v4496_v60 = vsub.f32 %v4362_v3, %v2682_v57  ;;  %v3371_v3 = vmul.f32 %v3261_v11, %v2890_v43 }
 0x20d   :  { %v3339_v10 = vmul.f32 %v2840_v9, %v4494_v25  ;;  %v3367_v25 = vmul.f32 %v3261_v11, %v2884_v38  ;;  %v3395_v38 = vmul.f32 %v3261_v11, %v2926_v2  ;;  %v3399_v43 = vmul.f32 %v3261_v11, %v2932_v4 }
 0x20e   :  { %v3309_v19 = vmul.f32 %v2840_v9, %v4489_v48  ;;  %v4493_v48 = vsub.f32 %v4359_v49, %v2682_v57  ;;  %v3351_v49 = vmul.f32 %v2840_v9, %v4496_v60  ;;  %v3387_v57 = vmul.f32 %v3261_v11, %v2914_v58  ;;  %v4500_v58 = vld [vmem:[#allocation14_spill] sm:$0xff]  ;;  %v4504_v60 = vld [vmem:[#allocation19_spill] sm:$0xff] }
 0x20f   :  { %v3411_v61 = vmul.f32 %v3261_v11, %v4500_v58  ;;  %v3415_v2 = vmul.f32 %v3261_v11, %v4502_v5  ;;  %v3419_v4 = vmul.f32 %v3261_v11, %v4504_v60 }
 0x210   :  { %v3333_v14 = vmul.f32 %v2840_v9, %v4493_v48  ;;  %v3355_v48 = vmul.f32 %v3261_v11, %v2866_v34  ;;  %v3375_v9 = vmul.f32 %v3261_v11, %v2896_v46  ;;  %v3379_v34 = vmul.f32 %v3261_v11, %v2902_v51  ;;  %v4498_v51 = vld [vmem:[#allocation13_spill] sm:$0xff] }
 0x211   :  { %v3403_v46 = vmul.f32 %v3261_v11, %v2938_v8  ;;  %v3407_v54 = vmul.f32 %v3261_v11, %v4498_v51  ;;  %4501 = vst [vmem:[#allocation5_spill] sm:$0xff] %v3411_v61  ;;  %v3423_v8 = vmul.f32 %v3261_v11, %v2968_v6  ;;  %v4508_v61 = vld [vmem:[#allocation3_spill] sm:$0xff]  ;;  %v3443_v6 = vmul.f32 %v3261_v11, %v2998_v20 }
 0x212   :  { %4503 = vst [vmem:[#allocation6_spill] sm:$0xff] %v3415_v2  ;;  %v3435_v5 = vmul.f32 %v3261_v11, %v4508_v61  ;;  %v4510_v2 = vld [vmem:[#allocation9_spill] sm:$0xff] }
 0x213   :  { %4497 = vst [vmem:[#allocation2_spill] sm:$0xff] %v3403_v46  ;;  %v4505_v46 = vld [vmem:[#allocation21_spill] sm:$0xff]  ;;  %v3439_v60 = vmul.f32 %v3261_v11, %v4510_v2 }
 0x214   :  { %4499 = vst [vmem:[#allocation4_spill] sm:$0xff] %v3407_v54  ;;  %v3427_v51 = vmul.f32 %v3261_v11, %v4505_v46  ;;  %v4506_v54 = vld [vmem:[#allocation23_spill] sm:$0xff]  ;;  %v3447_v46 = vmul.f32 %v3261_v11, %v3004_v12 }
 0x215   :  { %v3431_v58 = vmul.f32 %v3261_v11, %v4506_v54  ;;  %4509 = vst [vmem:[#allocation15_spill] sm:$0xff] %v3435_v5  ;;  %v3451_v54 = vmul.f32 %v3261_v11, %v3010_v42  ;;  %v4515_v5 = vld [vmem:[#allocation40_spill] sm:$0xff]  ;;  %v3471_v42 = vmul.f32 %v3261_v11, %v3040_v53  ;;  %v3491_v53 = vmul.f32 %v3261_v11, %v3070_v31 }
 0x216   :  { %4511 = vst [vmem:[#allocation18_spill] sm:$0xff] %v3439_v60  ;;  %v3459_v2 = vmul.f32 %v3261_v11, %v4515_v5  ;;  %v4517_v60 = vld [vmem:[#allocation43_spill] sm:$0xff]  ;;  %v3511_v31 = vmul.f32 %v3261_v11, %v3100_v1  ;;  %v3531_v1 = vmul.f32 %v3261_v11, %v3130_v55  ;;  %v3551_v55 = vmul.f32 %v3261_v11, %v3160_v13 }
 0x217   :  { %4507 = vst [vmem:[#allocation7_spill] sm:$0xff] %v3431_v58  ;;  %v4513_v58 = vld [vmem:[#allocation11_spill] sm:$0xff]  ;;  %v3463_v20 = vmul.f32 %v3261_v11, %v4517_v60  ;;  %v3571_v13 = vmul.f32 %v3261_v11, %v3190_v21  ;;  %v3591_v21 = vmul.f32 %v3261_v11, %v3220_v39 }
 0x218   :  { %4512 = vst [vmem:[#allocation20_spill] sm:$0xff] %v3443_v6  ;;  %v3455_v61 = vmul.f32 %v3261_v11, %v4513_v58  ;;  %v4519_v6 = vld [vmem:[#allocation8_spill] sm:$0xff]  ;;  %v3475_v58 = vmul.f32 %v3261_v11, %v3046_v28  ;;  %v3495_v28 = vmul.f32 %v3261_v11, %v3076_v32 }
 0x219   :  { %4516 = vst [vmem:[#allocation30_spill] sm:$0xff] %v3459_v2  ;;  %v3467_v12 = vmul.f32 %v3261_v11, %v4519_v6  ;;  %v4521_v2 = vld [vmem:[#allocation28_spill] sm:$0xff] }
 0x21a   :  { %4514 = vst [vmem:[#allocation24_spill] sm:$0xff] %v3455_v61  ;;  %v4520_v61 = vld [vmem:[#allocation25_spill] sm:$0xff]  ;;  %v3483_v60 = vmul.f32 %v3261_v11, %v4521_v2  ;;  %v3503_v2 = vmul.f32 %v3261_v11, %v3088_v45  ;;  %v3523_v45 = vmul.f32 %v3261_v11, %v3118_v62  ;;  %v3543_v62 = vmul.f32 %v3261_v11, %v3148_v18 }
 0x21b   :  { %4518 = vst [vmem:[#allocation33_spill] sm:$0xff] %v3463_v20  ;;  %v3479_v5 = vmul.f32 %v3261_v11, %v4520_v61  ;;  %v4522_v20 = vld [vmem:[#allocation41_spill] sm:$0xff]  ;;  %v3499_v61 = vmul.f32 %v3261_v11, %v3082_v35  ;;  %v3563_v18 = vmul.f32 %v3261_v11, %v3178_v50  ;;  %v3583_v50 = vmul.f32 %v3261_v11, %v3208_v0 }
 0x21c   :  { %v3487_v6 = vmul.f32 %v3261_v11, %v4522_v20  ;;  %4523 = vst [vmem:[#allocation36_spill] sm:$0xff] %v3491_v53  ;;  %v3507_v20 = vmul.f32 %v3261_v11, %v3094_v29  ;;  %v4527_v53 = vld [vmem:[#allocation48_spill] sm:$0xff]  ;;  %v3603_v0 = vmul.f32 %v3261_v11, %v3238_v24 }
 0x21d   :  { %4524 = vst [vmem:[#allocation10_spill] sm:$0xff] %v3495_v28  ;;  %v3515_v32 = vmul.f32 %v3261_v11, %v4527_v53  ;;  %v4528_v28 = vld [vmem:[#allocation50_spill] sm:$0xff] }
 0x21e   :  { %4525 = vst [vmem:[#allocation12_spill] sm:$0xff] %v3503_v2  ;;  %v3519_v35 = vmul.f32 %v3261_v11, %v4528_v28  ;;  %v4529_v2 = vld [vmem:[#allocation42_spill] sm:$0xff]  ;;  %v3539_v28 = vmul.f32 %v3261_v11, %v3142_v56 }
 0x21f   :  { %4526 = vst [vmem:[#allocation16_spill] sm:$0xff] %v3511_v31  ;;  %v3527_v29 = vmul.f32 %v3261_v11, %v4529_v2  ;;  %v4531_v31 = vld [vmem:[#allocation44_spill] sm:$0xff]  ;;  %v3547_v2 = vmul.f32 %v3261_v11, %v3154_v40  ;;  %v3567_v40 = vmul.f32 %v3261_v11, %v3184_v63  ;;  %v3587_v63 = vmul.f32 %v3261_v11, %v3214_v52 }
 0x220   :  { %4530 = vst [vmem:[#allocation22_spill] sm:$0xff] %v3531_v1  ;;  %v3535_v53 = vmul.f32 %v3261_v11, %v4531_v31  ;;  %v4533_v1 = vld [vmem:[#allocation45_spill] sm:$0xff]  ;;  %v3607_v52 = vmul.f32 %v3261_v11, %v3244_v17 }
 0x221   :  { %v3555_v31 = vmul.f32 %v3261_v11, %v4533_v1  ;;  %v3575_v1 = vmul.f32 %v3261_v11, %v3196_v7  ;;  %4535 = vst [vmem:[#allocation38_spill] sm:$0xff] %v3587_v63  ;;  %v3595_v7 = vmul.f32 %v3261_v11, %v3226_v41  ;;  %v4540_v63 = vld [vmem:[#allocation47_spill] sm:$0xff] }
 0x222   :  { %4532 = vst [vmem:[#allocation35_spill] sm:$0xff] %v3535_v53  ;;  %v4534_v53 = vld [vmem:[#allocation46_spill] sm:$0xff]  ;;  %v3611_v39 = vmul.f32 %v3261_v11, %v4540_v63 }
 0x223   :  { %v3559_v56 = vmul.f32 %v3261_v11, %v4534_v53  ;;  %v3579_v53 = vmul.f32 %v3261_v11, %v3202_v23  ;;  %4536 = vst [vmem:[#allocation29_spill] sm:$0xff] %v3591_v21  ;;  %v3599_v23 = vmul.f32 %v3261_v11, %v3232_v47  ;;  %v4542_v21 = vld [vmem:[#allocation49_spill] sm:$0xff]  ;;  %v3632_v63 = vld [vmem:[%s4183_s3] ss:$0 sm:$0xff] }
 0x224   :  { %4537 = vst [vmem:[#allocation32_spill] sm:$0xff] %v3595_v7  ;;  %v3615_v41 = vmul.f32 %v3261_v11, %v4542_v21  ;;  %v4544_v7 = vld [vmem:[#allocation51_spill] sm:$0xff] }
 0x225   :  { %4538 = vst [vmem:[#allocation34_spill] sm:$0xff] %v3599_v23  ;;  %v3619_v47 = vmul.f32 %v3261_v11, %v4544_v7  ;;  %v4546_v23 = vld [vmem:[#allocation26_spill] sm:$0xff]  ;;  %v3640_v7 = vmul.f32 %v3261_v11, %v3291_v36  ;;  %v3660_v36 = vmul.f32 %v3261_v11, %v3321_v30  ;;  %v3680_v30 = vmul.f32 %v3261_v11, %v3351_v49 }
 0x226   :  { %4539 = vst [vmem:[#allocation37_spill] sm:$0xff] %v3603_v0  ;;  %v3623_v24 = vmul.f32 %v3261_v11, %v4546_v23  ;;  %v4548_v0 = vld [vmem:[#allocation27_spill] sm:$0xff]  ;;  %v3644_v23 = vmul.f32 %v3261_v11, %v3297_v33  ;;  %v3664_v33 = vmul.f32 %v3261_v11, %v3327_v37  ;;  %v3684_v37 = vadd.f32 %v3632_v63, %v3355_v48 }
 0x227   :  { %4541 = vst [vmem:[#allocation39_spill] sm:$0xff] %v3611_v39  ;;  %v3627_v17 = vmul.f32 %v3261_v11, %v4548_v0  ;;  %v4550_v39 = vld [vmem:[#allocation31_spill] sm:$0xff]  ;;  %v3648_v0 = vmul.f32 %v3261_v11, %v3303_v16  ;;  %v3668_v16 = vmul.f32 %v3261_v11, %v3333_v14  ;;  %v3688_v14 = vadd.f32 %v3632_v63, %v3359_v27 }
 0x228   :  { %4543 = vst [vmem:[#allocation13_spill] sm:$0xff] %v3615_v41  ;;  %v3636_v21 = vmul.f32 %v3261_v11, %v4550_v39  ;;  %v3656_v39 = vmul.f32 %v3261_v11, %v3315_v26  ;;  %v3676_v26 = vmul.f32 %v3261_v11, %v3345_v15  ;;  %v3696_v15 = vadd.f32 %v3632_v63, %v3367_v25  ;;  %v4582_v41 = vld [vmem:[#allocation22_spill] sm:$0xff] }
 0x229   :  { %4545 = vst [vmem:[#allocation14_spill] sm:$0xff] %v3619_v47  ;;  %v3704_v49 = vadd.f32 %v3632_v63, %v3375_v9  ;;  %v3708_v48 = vadd.f32 %v3632_v63, %v3379_v34  ;;  %v3712_v27 = vadd.f32 %v3632_v63, %v3383_v59  ;;  %v3720_v25 = vadd.f32 %v3632_v63, %v3391_v44  ;;  %v4563_v34 = vld [vmem:[#allocation2_spill] sm:$0xff]  ;;  %v4577_v47 = vld [vmem:[#allocation16_spill] sm:$0xff] }
 0x22a   :  { %4547 = vst [vmem:[#allocation17_spill] sm:$0xff] %v3623_v24  ;;  %v3728_v9 = vadd.f32 %v3632_v63, %v3399_v43  ;;  %v3732_v59 = vadd.f32 %v3632_v63, %v4563_v34  ;;  %v3748_v43 = vadd.f32 %v3632_v63, %v3419_v4  ;;  %v3752_v34 = vadd.f32 %v3632_v63, %v3423_v8  ;;  %v4576_v24 = vld [vmem:[#allocation12_spill] sm:$0xff] }
 0x22b   :  { %4549 = vst [vmem:[#allocation19_spill] sm:$0xff] %v3627_v17  ;;  %v3652_v17 = vmul.f32 %v3261_v11, %v3309_v19  ;;  %v3672_v19 = vmul.f32 %v3261_v11, %v3339_v10  ;;  %v3692_v10 = vadd.f32 %v3632_v63, %v3363_v22  ;;  %v3700_v11 = vadd.f32 %v3632_v63, %v3371_v3 }
 0x22c   :  { %4551 = vst [vmem:[#allocation21_spill] sm:$0xff] %v3636_v21  ;;  %v3716_v22 = vadd.f32 %v3632_v63, %v3387_v57  ;;  %v3724_v3 = vadd.f32 %v3632_v63, %v3395_v38  ;;  %v4575_v21 = vld [vmem:[#allocation10_spill] sm:$0xff] }
 0x22d   :  { %4552 = vst [vmem:[#allocation23_spill] sm:$0xff] %v3640_v7  ;;  %v4574_v7 = vld [vmem:[#allocation36_spill] sm:$0xff] }
 0x22e   :  { %4553 = vst [vmem:[#allocation3_spill] sm:$0xff] %v3644_v23  ;;  %v4573_v23 = vld [vmem:[#allocation33_spill] sm:$0xff] }
 0x22f   :  { %4554 = vst [vmem:[#allocation9_spill] sm:$0xff] %v3648_v0  ;;  %v4572_v0 = vld [vmem:[#allocation30_spill] sm:$0xff] }
 0x230   :  { %4555 = vst [vmem:[#allocation11_spill] sm:$0xff] %v3652_v17  ;;  %v4571_v17 = vld [vmem:[#allocation24_spill] sm:$0xff] }
 0x231   :  { %4556 = vst [vmem:[#allocation40_spill] sm:$0xff] %v3656_v39  ;;  %v4570_v39 = vld [vmem:[#allocation20_spill] sm:$0xff] }
 0x232   :  { %4557 = vst [vmem:[#allocation43_spill] sm:$0xff] %v3660_v36  ;;  %v4569_v36 = vld [vmem:[#allocation18_spill] sm:$0xff]  ;;  %v3772_v8 = vadd.f32 %v3632_v63, %v4570_v39  ;;  %v3792_v39 = vadd.f32 %v3632_v63, %v4573_v23  ;;  %v3812_v23 = vadd.f32 %v3632_v63, %v3483_v60  ;;  %v3832_v60 = vadd.f32 %v3632_v63, %v4576_v24 }
 0x233   :  { %4558 = vst [vmem:[#allocation8_spill] sm:$0xff] %v3664_v33  ;;  %v4568_v33 = vld [vmem:[#allocation15_spill] sm:$0xff]  ;;  %v3768_v4 = vadd.f32 %v3632_v63, %v4569_v36  ;;  %v3788_v36 = vadd.f32 %v3632_v63, %v4572_v0  ;;  %v3808_v0 = vadd.f32 %v3632_v63, %v3479_v5  ;;  %v3828_v5 = vadd.f32 %v3632_v63, %v3499_v61 }
 0x234   :  { %4559 = vst [vmem:[#allocation25_spill] sm:$0xff] %v3668_v16  ;;  %v4567_v16 = vld [vmem:[#allocation7_spill] sm:$0xff]  ;;  %v3848_v61 = vadd.f32 %v3632_v63, %v3519_v35  ;;  %v3852_v24 = vadd.f32 %v3632_v63, %v3523_v45  ;;  %v1294_v35 = vmax.f32 %v3688_v14, 0.0  ;;  %v1296_v45 = vmax.f32 %v3696_v15, 0.0 }
 0x235   :  { %4560 = vst [vmem:[#allocation28_spill] sm:$0xff] %v3672_v19  ;;  %v4566_v19 = vld [vmem:[#allocation6_spill] sm:$0xff]  ;;  %v1300_v14 = vmax.f32 %v3712_v27, 0.0  ;;  %v3888_v15 = vadd.f32 %v3632_v63, %v3551_v55  ;;  %v1305_v27 = vmax.f32 %v3732_v59, 0.0  ;;  %v1310_v59 = vmax.f32 %v3752_v34, 0.0 }
 0x236   :  { %4561 = vst [vmem:[#allocation41_spill] sm:$0xff] %v3676_v26  ;;  %v4565_v26 = vld [vmem:[#allocation5_spill] sm:$0xff]  ;;  %v3744_v38 = vadd.f32 %v3632_v63, %v4566_v19  ;;  %v3764_v19 = vadd.f32 %v3632_v63, %v4568_v33  ;;  %v3784_v33 = vadd.f32 %v3632_v63, %v4571_v17  ;;  %v3804_v17 = vadd.f32 %v3632_v63, %v3475_v58 }
 0x237   :  { %4562 = vst [vmem:[#allocation48_spill] sm:$0xff] %v3680_v30  ;;  %v4564_v30 = vld [vmem:[#allocation4_spill] sm:$0xff]  ;;  %v3740_v44 = vadd.f32 %v3632_v63, %v4565_v26  ;;  %v3760_v26 = vadd.f32 %v3632_v63, %v4567_v16  ;;  %v3780_v16 = vadd.f32 %v3632_v63, %v3451_v54  ;;  %v3800_v54 = vadd.f32 %v3632_v63, %v3471_v42 }
 0x238   :  { %v3736_v57 = vadd.f32 %v3632_v63, %v4564_v30  ;;  %v3756_v30 = vadd.f32 %v3632_v63, %v3427_v51  ;;  %v3776_v51 = vadd.f32 %v3632_v63, %v3447_v46  ;;  %v3796_v46 = vadd.f32 %v3632_v63, %v3467_v12  ;;  %4580 = vst [vmem:[#allocation44_spill] sm:$0xff] %v3848_v61 }
 0x239   :  { %v3816_v12 = vadd.f32 %v3632_v63, %v3487_v6  ;;  %v3820_v42 = vadd.f32 %v3632_v63, %v4574_v7  ;;  %v3824_v58 = vadd.f32 %v3632_v63, %v4575_v21  ;;  %v3836_v6 = vadd.f32 %v3632_v63, %v3507_v20  ;;  %4581 = vst [vmem:[#allocation45_spill] sm:$0xff] %v3852_v24 }
 0x23a   :  { %v3840_v7 = vadd.f32 %v3632_v63, %v4577_v47  ;;  %v3844_v21 = vadd.f32 %v3632_v63, %v3515_v32  ;;  %v3856_v20 = vadd.f32 %v3632_v63, %v3527_v29  ;;  %v3860_v47 = vadd.f32 %v3632_v63, %v4582_v41 }
 0x23b   :  { %v1295_v61 = vmax.f32 %v3692_v10, 0.0  ;;  %v1297_v24 = vmax.f32 %v3700_v11, 0.0  ;;  %v1298_v29 = vmax.f32 %v3704_v49, 0.0  ;;  %v3874_v41 = vadd.f32 %v3632_v63, %v3539_v28 }
 0x23c   :  { %4578 = vst [vmem:[#allocation50_spill] sm:$0xff] %v3840_v7  ;;  %v4583_v7 = vld [vmem:[#allocation35_spill] sm:$0xff]  ;;  %v3884_v10 = vadd.f32 %v3632_v63, %v3547_v2  ;;  %v1301_v11 = vmax.f32 %v3716_v22, 0.0  ;;  %v1302_v28 = vmax.f32 %v3720_v25, 0.0  ;;  %v1303_v49 = vmax.f32 %v3724_v3, 0.0 }
 0x23d   :  { %4579 = vst [vmem:[#allocation42_spill] sm:$0xff] %v3844_v21  ;;  %v3864_v32 = vadd.f32 %v3632_v63, %v4583_v7  ;;  %v1293_v21 = vmax.f32 %v3684_v37, 0.0  ;;  %v3878_v7 = vadd.f32 %v3632_v63, %v3543_v62  ;;  %v1299_v37 = vmax.f32 %v3708_v48, 0.0 }
 0x23e   :  { %4585 = vst [vmem:[#allocation47_spill] sm:$0xff] %v3884_v10  ;;  %v3894_v62 = vadd.f32 %v3632_v63, %v3555_v31  ;;  %v1304_v48 = vmax.f32 %v3728_v9, 0.0  ;;  %v1306_v2 = vmax.f32 %v3736_v57, 0.0  ;;  %v1819_v55 = vpack.c.bf16 %v1298_v29, %v1297_v24 }
 0x23f   :  { %4584 = vst [vmem:[#allocation46_spill] sm:$0xff] %v3878_v7  ;;  %v1809_v10 = vpack.c.bf16 %v1294_v35, %v1293_v21  ;;  %v1814_v7 = vpack.c.bf16 %v1296_v45, %v1295_v61  ;;  %v3902_v22 = vadd.f32 %v3632_v63, %v3559_v56  ;;  %v1307_v25 = vmax.f32 %v3740_v44, 0.0 }
 0x240   :  { %4586 = vst [vmem:[#allocation49_spill] sm:$0xff] %v3894_v62  ;;  %v1308_v31 = vmax.f32 %v3744_v38, 0.0  ;;  %v1824_v62 = vpack.c.bf16 %v1300_v14, %v1299_v37  ;;  %v3908_v3 = vadd.f32 %v3632_v63, %v3563_v18  ;;  %v1309_v9 = vmax.f32 %v3748_v43, 0.0  ;;  %v4589_v14 = vld [vmem:[#allocation32_spill] sm:$0xff] }
 0x241   :  { %1810 = vst [vmem:[%s4184_s4] sm:$0xff] %v1809_v10   ;;  %v1829_v57 = vpack.c.bf16 %v1302_v28, %v1301_v11  ;;  %v3917_v56 = vadd.f32 %v3632_v63, %v3567_v40  ;;  %v1311_v44 = vmax.f32 %v3756_v30, 0.0  ;;  %v1312_v38 = vmax.f32 %v3760_v26, 0.0  ;;  %v4590_v28 = vld [vmem:[#allocation34_spill] sm:$0xff] }
 0x242   :  { %2006 = vst [vmem:[%s4184_s4 + $0x8] sm:$0xff] %v1814_v7   ;;  %v1834_v18 = vpack.c.bf16 %v1304_v48, %v1303_v49  ;;  %v3926_v43 = vadd.f32 %v3632_v63, %v3571_v13  ;;  %v1313_v34 = vmax.f32 %v3764_v19, 0.0  ;;  %v1314_v21 = vmax.f32 %v3768_v4, 0.0  ;;  %v4591_v48 = vld [vmem:[#allocation37_spill] sm:$0xff] }
 0x243   :  { %2007 = vst [vmem:[%s4184_s4 + $0x10] sm:$0xff] %v1819_v55   ;;  %v1839_v40 = vpack.c.bf16 %v1306_v2, %v1305_v27  ;;  %v3935_v30 = vadd.f32 %v3632_v63, %v3575_v1  ;;  %v1315_v26 = vmax.f32 %v3772_v8, 0.0  ;;  %v1316_v61 = vmax.f32 %v3776_v51, 0.0 }
 0x244   :  { %2008 = vst [vmem:[%s4184_s4 + $0x18] sm:$0xff] %v1824_v62   ;;  %v1844_v13 = vpack.c.bf16 %v1308_v31, %v1307_v25  ;;  %v3944_v19 = vadd.f32 %v3632_v63, %v3579_v53  ;;  %v1317_v4 = vmax.f32 %v3780_v16, 0.0  ;;  %v1318_v24 = vmax.f32 %v3784_v33, 0.0  ;;  %v4587_v16 = vld [vmem:[#allocation38_spill] sm:$0xff] }
 0x245   :  { %2009 = vst [vmem:[%s4184_s4 + $0x20] sm:$0xff] %v1829_v57   ;;  %v1849_v1 = vpack.c.bf16 %v1310_v59, %v1309_v9  ;;  %v3953_v8 = vadd.f32 %v3632_v63, %v3583_v50  ;;  %v1319_v51 = vmax.f32 %v3788_v36, 0.0  ;;  %v1320_v35 = vmax.f32 %v3792_v39, 0.0  ;;  %v4588_v36 = vld [vmem:[#allocation29_spill] sm:$0xff]  ;;  %v4592_v25 = vld [vmem:[#allocation50_spill] sm:$0xff]  ;;  %v4593_v9 = vld [vmem:[#allocation39_spill] sm:$0xff] }
 0x246   :  { %2010 = vst [vmem:[%s4184_s4 + $0x28] sm:$0xff] %v1834_v18   ;;  %v1854_v53 = vpack.c.bf16 %v1312_v38, %v1311_v44  ;;  %v3962_v33 = vadd.f32 %v3632_v63, %v4587_v16  ;;  %v1321_v45 = vmax.f32 %v3796_v46, 0.0  ;;  %v1322_v29 = vmax.f32 %v3800_v54, 0.0  ;;  %v4594_v59 = vld [vmem:[#allocation42_spill] sm:$0xff]  ;;  %v4595_v44 = vld [vmem:[#allocation44_spill] sm:$0xff] }
 0x247   :  { %2011 = vst [vmem:[%s4184_s4 + $0x30] sm:$0xff] %v1839_v40   ;;  %v1859_v50 = vpack.c.bf16 %v1314_v21, %v1313_v34  ;;  %v3971_v39 = vadd.f32 %v3632_v63, %v4588_v36  ;;  %v1323_v7 = vmax.f32 %v3804_v17, 0.0  ;;  %v1324_v37 = vmax.f32 %v3808_v0, 0.0  ;;  %v4597_v34 = vld [vmem:[#allocation45_spill] sm:$0xff] }
 0x248   :  { %2012 = vst [vmem:[%s4184_s4 + $0x38] sm:$0xff] %v1844_v13   ;;  %v1864_v46 = vpack.c.bf16 %v1316_v61, %v1315_v26  ;;  %v3980_v54 = vadd.f32 %v3632_v63, %v4589_v14  ;;  %v1325_v10 = vmax.f32 %v3812_v23, 0.0  ;;  %v1326_v11 = vmax.f32 %v3816_v12, 0.0  ;;  %v4598_v61 = vld [vmem:[#allocation14_spill] sm:$0xff] }
 0x249   :  { %2013 = vst [vmem:[%s4184_s4 + $0x40] sm:$0xff] %v1849_v1   ;;  %v1869_v17 = vpack.c.bf16 %v1318_v24, %v1317_v4  ;;  %v3989_v0 = vadd.f32 %v3632_v63, %v4590_v28  ;;  %v1327_v62 = vmax.f32 %v3820_v42, 0.0  ;;  %v1328_v49 = vmax.f32 %v3824_v58, 0.0 }
 0x24a   :  { %2014 = vst [vmem:[%s4184_s4 + $0x48] sm:$0xff] %v1854_v53   ;;  %v1874_v23 = vpack.c.bf16 %v1320_v35, %v1319_v51  ;;  %v3998_v12 = vadd.f32 %v3632_v63, %v4591_v48  ;;  %v1329_v27 = vmax.f32 %v3828_v5, 0.0  ;;  %v1330_v2 = vmax.f32 %v3832_v60, 0.0  ;;  %v4599_v51 = vld [vmem:[#allocation17_spill] sm:$0xff]  ;;  %v4600_v53 = vld [vmem:[#allocation46_spill] sm:$0xff] }
 0x24b   :  { %2015 = vst [vmem:[%s4184_s4 + $0x50] sm:$0xff] %v1859_v50   ;;  %v1879_v42 = vpack.c.bf16 %v1322_v29, %v1321_v45  ;;  %v4007_v58 = vadd.f32 %v3632_v63, %v3607_v52  ;;  %v1331_v55 = vmax.f32 %v3836_v6, 0.0  ;;  %v1332_v31 = vmax.f32 %v4592_v25, 0.0  ;;  %v4596_v6 = vld [vmem:[#allocation13_spill] sm:$0xff]  ;;  %v4601_v45 = vld [vmem:[#allocation19_spill] sm:$0xff] }
 0x24c   :  { %2016 = vst [vmem:[%s4184_s4 + $0x58] sm:$0xff] %v1864_v46   ;;  %v1884_v5 = vpack.c.bf16 %v1324_v37, %v1323_v7  ;;  %v4016_v60 = vadd.f32 %v3632_v63, %v4593_v9  ;;  %v1333_v57 = vmax.f32 %v4594_v59, 0.0  ;;  %v1334_v38 = vmax.f32 %v4595_v44, 0.0  ;;  %v4602_v29 = vld [vmem:[#allocation47_spill] sm:$0xff]  ;;  %v4603_v7 = vld [vmem:[#allocation21_spill] sm:$0xff] }
 0x24d   :  { %2017 = vst [vmem:[%s4184_s4 + $0x60] sm:$0xff] %v1869_v17   ;;  %v1889_v52 = vpack.c.bf16 %v1326_v11, %v1325_v10  ;;  %v4025_v18 = vadd.f32 %v3632_v63, %v4596_v6  ;;  %v1335_v21 = vmax.f32 %v4597_v34, 0.0  ;;  %v1336_v40 = vmax.f32 %v3856_v20, 0.0  ;;  %v4604_v46 = vld [vmem:[#allocation49_spill] sm:$0xff]  ;;  %v4605_v17 = vld [vmem:[#allocation23_spill] sm:$0xff] }
 0x24e   :  { %2018 = vst [vmem:[%s4184_s4 + $0x68] sm:$0xff] %v1874_v23   ;;  %v1894_v26 = vpack.c.bf16 %v1328_v49, %v1327_v62  ;;  %v4034_v13 = vadd.f32 %v3632_v63, %v4598_v61  ;;  %v1337_v4 = vmax.f32 %v3860_v47, 0.0  ;;  %v1338_v24 = vmax.f32 %v3864_v32, 0.0  ;;  %v4606_v23 = vld [vmem:[#allocation3_spill] sm:$0xff] }
 0x24f   :  { %2019 = vst [vmem:[%s4184_s4 + $0x70] sm:$0xff] %v1879_v42   ;;  %v1899_v1 = vpack.c.bf16 %v1330_v2, %v1329_v27  ;;  %v4043_v20 = vadd.f32 %v3632_v63, %v4599_v51  ;;  %v1339_v35 = vmax.f32 %v3874_v41, 0.0  ;;  %v1340_v16 = vmax.f32 %v4600_v53, 0.0 }
 0x250   :  { %2020 = vst [vmem:[%s4184_s4 + $0x78] sm:$0xff] %v1884_v5   ;;  %v1904_v47 = vpack.c.bf16 %v1332_v31, %v1331_v55  ;;  %v4052_v32 = vadd.f32 %v3632_v63, %v4601_v45  ;;  %v1341_v50 = vmax.f32 %v4602_v29, 0.0  ;;  %v1342_v36 = vmax.f32 %v3888_v15, 0.0 }
 0x251   :  { %2021 = vst [vmem:[%s4184_s4 + $0x80] sm:$0xff] %v1889_v52   ;;  %v1909_v41 = vpack.c.bf16 %v1334_v38, %v1333_v57  ;;  %v4061_v37 = vadd.f32 %v3632_v63, %v4603_v7  ;;  %v1343_v14 = vmax.f32 %v4604_v46, 0.0  ;;  %v1344_v10 = vmax.f32 %v3902_v22, 0.0 }
 0x252   :  { %2022 = vst [vmem:[%s4184_s4 + $0x88] sm:$0xff] %v1894_v26   ;;  %v1914_v11 = vpack.c.bf16 %v1336_v40, %v1335_v21  ;;  %v4070_v15 = vadd.f32 %v3632_v63, %v4605_v17  ;;  %v1345_v28 = vmax.f32 %v3908_v3, 0.0  ;;  %v1346_v62 = vmax.f32 %v3917_v56, 0.0  ;;  %v4607_v3 = vld [vmem:[#allocation9_spill] sm:$0xff] }
 0x253   :  { %2023 = vst [vmem:[%s4184_s4 + $0x90] sm:$0xff] %v1899_v1   ;;  %v1919_v49 = vpack.c.bf16 %v1338_v24, %v1337_v4  ;;  %v1283_v22 = vadd.f32 %v3632_v63, %v4606_v23  ;;  %v1347_v48 = vmax.f32 %v3926_v43, 0.0  ;;  %v1348_v27 = vmax.f32 %v3935_v30, 0.0  ;;  %v4608_v43 = vld [vmem:[#allocation11_spill] sm:$0xff] }
 0x254   :  { %2024 = vst [vmem:[%s4184_s4 + $0x98] sm:$0xff] %v1904_v47   ;;  %v1924_v2 = vpack.c.bf16 %v1340_v16, %v1339_v35  ;;  %v1284_v56 = vadd.f32 %v3632_v63, %v4607_v3  ;;  %v1349_v42 = vmax.f32 %v3944_v19, 0.0  ;;  %v1350_v55 = vmax.f32 %v3953_v8, 0.0  ;;  %v4609_v19 = vld [vmem:[#allocation40_spill] sm:$0xff] }
 0x255   :  { %2025 = vst [vmem:[%s4184_s4 + $0xa0] sm:$0xff] %v1909_v41   ;;  %v1929_v25 = vpack.c.bf16 %v1342_v36, %v1341_v50  ;;  %v1285_v30 = vadd.f32 %v3632_v63, %v4608_v43  ;;  %v1351_v31 = vmax.f32 %v3962_v33, 0.0  ;;  %v1352_v5 = vmax.f32 %v3971_v39, 0.0  ;;  %v4610_v33 = vld [vmem:[#allocation43_spill] sm:$0xff]  ;;  %v4615_v47 = vld [vmem:[#allocation48_spill] sm:$0xff] }
 0x256   :  { %2026 = vst [vmem:[%s4184_s4 + $0xa8] sm:$0xff] %v1914_v11   ;;  %v1934_v9 = vpack.c.bf16 %v1344_v10, %v1343_v14  ;;  %v1286_v8 = vadd.f32 %v3632_v63, %v4609_v19  ;;  %v1353_v59 = vmax.f32 %v3980_v54, 0.0  ;;  %v1354_v57 = vmax.f32 %v3989_v0, 0.0  ;;  %v4611_v54 = vld [vmem:[#allocation8_spill] sm:$0xff] }
 0x257   :  { %2027 = vst [vmem:[%s4184_s4 + $0xb0] sm:$0xff] %v1919_v49   ;;  %v1939_v44 = vpack.c.bf16 %v1346_v62, %v1345_v28  ;;  %v1287_v39 = vadd.f32 %v3632_v63, %v4610_v33  ;;  %v1355_v38 = vmax.f32 %v3998_v12, 0.0  ;;  %v1356_v52 = vmax.f32 %v4007_v58, 0.0  ;;  %v4612_v12 = vld [vmem:[#allocation25_spill] sm:$0xff] }
 0x258   :  { %2028 = vst [vmem:[%s4184_s4 + $0xb8] sm:$0xff] %v1924_v2   ;;  %v1944_v6 = vpack.c.bf16 %v1348_v27, %v1347_v48  ;;  %v1288_v0 = vadd.f32 %v3632_v63, %v4611_v54  ;;  %v1357_v34 = vmax.f32 %v4016_v60, 0.0  ;;  %v1358_v21 = vmax.f32 %v4025_v18, 0.0  ;;  %v4613_v60 = vld [vmem:[#allocation28_spill] sm:$0xff] }
 0x259   :  { %2029 = vst [vmem:[%s4184_s4 + $0xc0] sm:$0xff] %v1929_v25   ;;  %v1949_v40 = vpack.c.bf16 %v1350_v55, %v1349_v42  ;;  %v1289_v58 = vadd.f32 %v3632_v63, %v4612_v12  ;;  %v1359_v26 = vmax.f32 %v4034_v13, 0.0  ;;  %v1360_v61 = vmax.f32 %v4043_v20, 0.0  ;;  %v4614_v13 = vld [vmem:[#allocation41_spill] sm:$0xff] }
 0x25a   :  { %2030 = vst [vmem:[%s4184_s4 + $0xc8] sm:$0xff] %v1934_v9   ;;  %v1954_v4 = vpack.c.bf16 %v1352_v5, %v1351_v31  ;;  %v1290_v18 = vadd.f32 %v3632_v63, %v4613_v60  ;;  %v1361_v24 = vmax.f32 %v4052_v32, 0.0  ;;  %v1362_v1 = vmax.f32 %v4061_v37, 0.0 }
 0x25b   :  { %2031 = vst [vmem:[%s4184_s4 + $0xd0] sm:$0xff] %v1939_v44   ;;  %v1959_v51 = vpack.c.bf16 %v1354_v57, %v1353_v59  ;;  %v1291_v20 = vadd.f32 %v3632_v63, %v4614_v13  ;;  %v1363_v35 = vmax.f32 %v4070_v15, 0.0  ;;  %v1364_v53 = vmax.f32 %v1283_v22, 0.0 }
 0x25c   :  { %2032 = vst [vmem:[%s4184_s4 + $0xd8] sm:$0xff] %v1944_v6   ;;  %v1964_v16 = vpack.c.bf16 %v1356_v52, %v1355_v38  ;;  %v1292_v45 = vadd.f32 %v3632_v63, %v4615_v47  ;;  %v1365_v32 = vmax.f32 %v1284_v56, 0.0  ;;  %v1366_v29 = vmax.f32 %v1285_v30, 0.0 }
 0x25d   :  { %2033 = vst [vmem:[%s4184_s4 + $0xe0] sm:$0xff] %v1949_v40   ;;  %v1969_v50 = vpack.c.bf16 %v1358_v21, %v1357_v34  ;;  %v1367_v36 = vmax.f32 %v1286_v8, 0.0  ;;  %v1368_v41 = vmax.f32 %v1287_v39, 0.0  ;;  %v1974_v7 = vpack.c.bf16 %v1360_v61, %v1359_v26 }
 0x25e   :  { %2034 = vst [vmem:[%s4184_s4 + $0xe8] sm:$0xff] %v1954_v4   ;;  %v1369_v37 = vmax.f32 %v1288_v0, 0.0  ;;  %v1370_v46 = vmax.f32 %v1289_v58, 0.0  ;;  %v1979_v63 = vpack.c.bf16 %v1362_v1, %v1361_v24  ;;  %v1371_v14 = vmax.f32 %v1290_v18, 0.0 }
 0x25f   :  { %2035 = vst [vmem:[%s4184_s4 + $0xf0] sm:$0xff] %v1959_v51   ;;  %v1372_v10 = vmax.f32 %v1291_v20, 0.0  ;;  %v1984_v11 = vpack.c.bf16 %v1364_v53, %v1363_v35  ;;  %v1373_v17 = vmax.f32 %v1292_v45, 0.0  ;;  %v1989_v15 = vpack.c.bf16 %v1366_v29, %v1365_v32 }
 0x260   :  { %2036 = vst [vmem:[%s4184_s4 + $0xf8] sm:$0xff] %v1964_v16   ;;  %v1994_v28 = vpack.c.bf16 %v1368_v41, %v1367_v36  ;;  %v1999_v62 = vpack.c.bf16 %v1370_v46, %v1369_v37 }
 0x261   :  { %2037 = vst [vmem:[%s4184_s4 + $0x100] sm:$0xff] %v1969_v50   ;;  %v2004_v49 = vpack.c.bf16 %v1372_v10, %v1371_v14  ;;  %v1454_v23 = vpack.c.bf16 %v1373_v17, %v1373_v17 }
 0x262   :  { %2038 = vst [vmem:[%s4184_s4 + $0x108] sm:$0xff] %v1974_v7  }
 0x263   :  { %2039 = vst [vmem:[%s4184_s4 + $0x110] sm:$0xff] %v1979_v63  }
 0x264   :  { %2040 = vst [vmem:[%s4184_s4 + $0x118] sm:$0xff] %v1984_v11  }
 0x265   :  { %2041 = vst [vmem:[%s4184_s4 + $0x120] sm:$0xff] %v1989_v15  }
 0x266   :  { %2042 = vst [vmem:[%s4184_s4 + $0x128] sm:$0xff] %v1994_v28  }
 0x267   :  { %2043 = vst [vmem:[%s4184_s4 + $0x130] sm:$0xff] %v1999_v62  }
 0x268   :  { %2044 = vst [vmem:[%s4184_s4 + $0x138] sm:$0xff] %v2004_v49  }
 0x269   :  { %1535 = vst [vmem:[%s4184_s4 + $0x140] sm:$0xf] %v1454_v23 }

// kernel: dqn_forward.5
= control target key start
LH: loop header
LB: loop body
LE: loop exit
PB: predicated region body
PF: predicated region fallthrough
CT: control target
= control target key end

     0   :  { %vm3716_vm0 = vcmask 1041408   ;;  %s7627_s1 = inlined_call_operand.vmem [shape: bf16[3200,128], index: 1, kind: input, shape index: {}]   ;;  %s7628_s0 = inlined_call_operand.vmem [shape: bf16[98,3200], index: 0, kind: input, shape index: {}]   ;;  %s7629_s2 = inlined_call_operand.vmem [shape: f32[1,128], index: 2, kind: input, shape index: {}]   ;;  %s7630_s3 = inlined_call_operand.vmem [shape: f32[1,128], index: 3, kind: input, shape index: {}]   ;;  %s7631_s4 = inlined_call_operand.vmem [shape: bf16[98,128], index: 4, kind: output, shape index: {}]  }
   0x1   :  { %v5440_v0 = vld [vmem:[%s7627_s1 + $0x38] sm:$0xff]  ;;  %v5439_v1 = vld [vmem:[%s7627_s1 + $0x30] sm:$0xff]  ;;  %v5438_v2 = vld [vmem:[%s7627_s1 + $0x28] sm:$0xff] }
   0x2   :  { %5668 = vmatpush.bf16.msra.mxu1 %v5440_v0  ;;  %5669 = vmatpush.bf16.msra.mxu2 %v5440_v0  ;;  %v5437_v3 = vld [vmem:[%s7627_s1 + $0x20] sm:$0xff]  ;;  %v5436_v4 = vld [vmem:[%s7627_s1 + $0x18] sm:$0xff]  ;;  %v5435_v5 = vld [vmem:[%s7627_s1 + $0x10] sm:$0xff] }
   0x3   :  { %5670 = vmatpush.bf16.msra.mxu3 %v5440_v0  ;;  %2630 = vmatpush.bf16.msra.mxu0 %v5440_v0  ;;  %v5434_v6 = vld [vmem:[%s7627_s1 + $0x8] sm:$0xff]  ;;  %v5749_v7 = vld [vmem:[%s7628_s0 + $0x4b0] sm:$0x11]  ;;  %v5433_v8 = vld [vmem:[%s7627_s1] sm:$0xff] }
   0x4   :  { %v4085_v9 = vld [vmem:[%s7628_s0 + $0x190] sm:$0xf]  ;;  %v5345_v10 = vld [vmem:[%s7628_s0 + $0x1f0] sm:$0xf0]  ;;  %v4285_v11 = vld [vmem:[%s7628_s0 + $0x320] sm:$0xf]  ;;  %v1055_v15 = vunpack.c.l.b16 %v5749_v7 }
   0x5   :  { %v5395_v12 = vld [vmem:[%s7628_s0 + $0x380] sm:$0xf0]  ;;  %v3885_v13 = vld [vmem:[%s7628_s0] sm:$0xf]  ;;  %v5464_v16 = vld [vmem:[%s7627_s1 + $0xf8] sm:$0xff]  ;;  %v4086_v18 = vor.u32 %v5345_v10, %v4085_v9 }
   0x6   :  { %5671 = vmatpush.bf16.msra.mxu1 %v5439_v1  ;;  %5672 = vmatpush.bf16.msra.mxu2 %v5439_v1  ;;  %v5295_v14 = vld [vmem:[%s7628_s0 + $0x60] sm:$0xf0]  ;;  %v5456_v17 = vld [vmem:[%s7627_s1 + $0xb8] sm:$0xff]  ;;  %v4286_v19 = vor.u32 %v5395_v12, %v4285_v11  ;;  %v1230_v23 = vpack.c.b16 %v1055_v15, %v1055_v15  ;;  %v5463_v24 = vld [vmem:[%s7627_s1 + $0xf0] sm:$0xff] }
   0x7   :  { %5673 = vmatpush.bf16.msra.mxu3 %v5439_v1  ;;  %2631 = vmatpush.bf16.msra.mxu0 %v5439_v1  ;;  %v5448_v20 = vld [vmem:[%s7627_s1 + $0x78] sm:$0xff]  ;;  %v3886_v21 = vor.u32 %v5295_v14, %v3885_v13  ;;  %v5455_v25 = vld [vmem:[%s7627_s1 + $0xb0] sm:$0xff]  ;;  %v5462_v28 = vld [vmem:[%s7627_s1 + $0xe8] sm:$0xff] }
   0x8   :  { %v5472_v22 = vld [vmem:[%s7627_s1 + $0x138] sm:$0xff]  ;;  %v5447_v26 = vld [vmem:[%s7627_s1 + $0x70] sm:$0xff]  ;;  %v5454_v29 = vld [vmem:[%s7627_s1 + $0xa8] sm:$0xff] }
   0x9   :  { %v5471_v27 = vld [vmem:[%s7627_s1 + $0x130] sm:$0xff]  ;;  %v5446_v30 = vld [vmem:[%s7627_s1 + $0x68] sm:$0xff]  ;;  %v5461_v32 = vld [vmem:[%s7627_s1 + $0xe0] sm:$0xff] }
   0xa   :  { %5674 = vmatpush.bf16.msra.mxu1 %v5438_v2  ;;  %5675 = vmatpush.bf16.msra.mxu2 %v5438_v2  ;;  %v5470_v31 = vld [vmem:[%s7627_s1 + $0x128] sm:$0xff]  ;;  %v5453_v33 = vld [vmem:[%s7627_s1 + $0xa0] sm:$0xff]  ;;  %v4185_v35 = vld [vmem:[%s7628_s0 + $0x258] sm:$0xf] }
   0xb   :  { %5676 = vmatpush.bf16.msra.mxu3 %v5438_v2  ;;  %2632 = vmatpush.bf16.msra.mxu0 %v5438_v2  ;;  %v5445_v34 = vld [vmem:[%s7627_s1 + $0x60] sm:$0xff]  ;;  %v5370_v36 = vld [vmem:[%s7628_s0 + $0x2b8] sm:$0xf0]  ;;  %v4385_v37 = vld [vmem:[%s7628_s0 + $0x3e8] sm:$0xf] }
   0xc   :  { %v5420_v38 = vld [vmem:[%s7628_s0 + $0x448] sm:$0xf0]  ;;  %v5469_v39 = vld [vmem:[%s7627_s1 + $0x120] sm:$0xff]  ;;  %v3985_v40 = vld [vmem:[%s7628_s0 + $0xc8] sm:$0xf]  ;;  %v4186_v44 = vor.u32 %v5370_v36, %v4185_v35 }
   0xd   :  { %v5320_v41 = vld [vmem:[%s7628_s0 + $0x128] sm:$0xf0]  ;;  %v5460_v42 = vld [vmem:[%s7627_s1 + $0xd8] sm:$0xff]  ;;  %v4386_v45 = vor.u32 %v5420_v38, %v4385_v37  ;;  %v5459_v49 = vld [vmem:[%s7627_s1 + $0xd0] sm:$0xff] }
   0xe   :  { %5677 = vmatpush.bf16.msra.mxu1 %v5437_v3  ;;  %5678 = vmatpush.bf16.msra.mxu2 %v5437_v3  ;;  %v5452_v43 = vld [vmem:[%s7627_s1 + $0x98] sm:$0xff]  ;;  %v3986_v47 = vor.u32 %v5320_v41, %v3985_v40  ;;  %v5451_v50 = vld [vmem:[%s7627_s1 + $0x90] sm:$0xff]  ;;  %v5458_v53 = vld [vmem:[%s7627_s1 + $0xc8] sm:$0xff] }
   0xf   :  { %5679 = vmatpush.bf16.msra.mxu3 %v5437_v3  ;;  %2633 = vmatpush.bf16.msra.mxu0 %v5437_v3  ;;  %v5444_v46 = vld [vmem:[%s7627_s1 + $0x58] sm:$0xff]  ;;  %v5443_v51 = vld [vmem:[%s7627_s1 + $0x50] sm:$0xff]  ;;  %v5450_v54 = vld [vmem:[%s7627_s1 + $0x88] sm:$0xff] }
  0x10   :  { %v5468_v48 = vld [vmem:[%s7627_s1 + $0x118] sm:$0xff]  ;;  %v5467_v52 = vld [vmem:[%s7627_s1 + $0x110] sm:$0xff]  ;;  %v5442_v55 = vld [vmem:[%s7627_s1 + $0x48] sm:$0xff] }
  0x11   :  { %v5457_v56 = vld [vmem:[%s7627_s1 + $0xc0] sm:$0xff]  ;;  %v5466_v57 = vld [vmem:[%s7627_s1 + $0x108] sm:$0xff]  ;;  %v3895_v61 = vld [vmem:[%s7628_s0 + $0x6c] sm:$0xf0] }
  0x12   :  { %5680 = vmatpush.bf16.msra.mxu1 %v5436_v4  ;;  %5681 = vmatpush.bf16.msra.mxu2 %v5436_v4  ;;  %v5449_v58 = vld [vmem:[%s7627_s1 + $0x80] sm:$0xff]  ;;  %v5284_v60 = vld [vmem:[%s7628_s0 + $0xc] sm:$0xf]  ;;  %v5488_v63 = vld [vmem:[%s7627_s1 + $0x1b8] sm:$0xff] }
  0x13   :  { %5682 = vmatpush.bf16.msra.mxu3 %v5436_v4  ;;  %2634 = vmatpush.bf16.msra.mxu0 %v5436_v4  ;;  %v5441_v59 = vld [vmem:[%s7627_s1 + $0x40] sm:$0xff]  ;;  %v5496_v0 = vld [vmem:[%s7627_s1 + $0x1f8] sm:$0xff]  ;;  %v3887_v1 = vld [vmem:[%s7628_s0 + $0x64] sm:$0xf0]  ;;  %v3898_v4 = vor.u32 %v5284_v60, %v3895_v61 }
  0x14   :  { %v5283_v62 = vld [vmem:[%s7628_s0 + $0x4] sm:$0xf]  ;;  %v3893_v2 = vld [vmem:[%s7628_s0 + $0x8] sm:$0xf]  ;;  %v5296_v3 = vld [vmem:[%s7628_s0 + $0x68] sm:$0xf0] }
  0x15   :  { %v5480_v9 = vld [vmem:[%s7627_s1 + $0x178] sm:$0xff]  ;;  %v3890_v11 = vor.u32 %v5283_v62, %v3887_v1  ;;  %v3894_v12 = vor.u32 %v5296_v3, %v3893_v2  ;;  %v5487_v14 = vld [vmem:[%s7627_s1 + $0x1b0] sm:$0xff]  ;;  %v5477_v36 = vld [vmem:[%s7627_s1 + $0x160] sm:$0xff] }
  0x16   :  { %5683 = vmatpush.bf16.msra.mxu1 %v5435_v5  ;;  %5684 = vmatpush.bf16.msra.mxu2 %v5435_v5  ;;  %v5504_v10 = vld [vmem:[%s7627_s1 + $0x238] sm:$0xff]  ;;  %v5495_v15 = vld [vmem:[%s7627_s1 + $0x1f0] sm:$0xff]  ;;  %v5501_v37 = vld [vmem:[%s7627_s1 + $0x220] sm:$0xff] }
  0x17   :  { %5685 = vmatpush.bf16.msra.mxu3 %v5435_v5  ;;  %2635 = vmatpush.bf16.msra.mxu0 %v5435_v5  ;;  %v5465_v5 = vld [vmem:[%s7627_s1 + $0x100] sm:$0xff]  ;;  %v5484_v38 = vld [vmem:[%s7627_s1 + $0x198] sm:$0xff]  ;;  %v5372_v1 = vld [vmem:[%s7628_s0 + $0x2c8] sm:$0xf0] }
  0x18   :  { %v5476_v40 = vld [vmem:[%s7627_s1 + $0x158] sm:$0xff]  ;;  %v4187_v60 = vld [vmem:[%s7628_s0 + $0x2bc] sm:$0xf0]  ;;  %v5371_v62 = vld [vmem:[%s7628_s0 + $0x2c0] sm:$0xf0] }
  0x19   :  { %v5334_v41 = vld [vmem:[%s7628_s0 + $0x19c] sm:$0xf]  ;;  %v4193_v61 = vld [vmem:[%s7628_s0 + $0x260] sm:$0xf] }
  0x1a   :  { %5686 = vmatpush.bf16.msra.mxu1 %v5434_v6  ;;  %5687 = vmatpush.bf16.msra.mxu2 %v5434_v6  ;;  %v4194_v3 = vor.u32 %v5371_v62, %v4193_v61  ;;  %v5286_v61 = vld [vmem:[%s7628_s0 + $0x1c] sm:$0xf]  ;;  %v3911_v62 = vld [vmem:[%s7628_s0 + $0x7c] sm:$0xf0] }
  0x1b   :  { %5688 = vmatpush.bf16.msra.mxu3 %v5434_v6  ;;  %2636 = vmatpush.bf16.msra.mxu0 %v5434_v6  ;;  %v3901_v6 = vld [vmem:[%s7628_s0 + $0x10] sm:$0xf] }
  0x1e   :  { %5689 = vmatpush.bf16.msra.mxu1 %v5433_v8  ;;  %5690 = vmatpush.bf16.msra.mxu2 %v5433_v8 }
  0x1f   :  { %5691 = vmatpush.bf16.msra.mxu3 %v5433_v8  ;;  %2637 = vmatpush.bf16.msra.mxu0 %v5433_v8  ;;  %v5297_v8 = vld [vmem:[%s7628_s0 + $0x70] sm:$0xf0] }
  0x20   :  { %v3902_v13 = vor.u32 %v5297_v8, %v3901_v6  ;;  %v5482_v6 = vld [vmem:[%s7627_s1 + $0x188] sm:$0xff] }
  0x21   :  { %2648 = vmatmul.bf16.vlgmr.msra.gmra.mxu1 %v4086_v18  ;;  %2658 = vmatmul.bf16.vlgmr.msra.gmra.mxu2 %v4286_v19  ;;  %v5486_v18 = vld [vmem:[%s7627_s1 + $0x1a8] sm:$0xff] }
  0x22   :  { %2716 = vmatpush.bf16.msrb.mxu2 %v5456_v17  ;;  %2673 = vmatpush.bf16.msrb.mxu1 %v5448_v20  ;;  %v5503_v17 = vld [vmem:[%s7627_s1 + $0x230] sm:$0xff]  ;;  %v5494_v19 = vld [vmem:[%s7627_s1 + $0x1e8] sm:$0xff] }
  0x23   :  { %2759 = vmatpush.bf16.msrb.mxu3 %v5464_v16  ;;  %2638 = vmatmul.bf16.vlgmr.msra.gmra.mxu0 %v3886_v21  ;;  %v5479_v16 = vld [vmem:[%s7627_s1 + $0x170] sm:$0xff]  ;;  %v5478_v20 = vld [vmem:[%s7627_s1 + $0x168] sm:$0xff] }
  0x24   :  { %2802 = vmatpush.bf16.msrb.mxu0 %v5472_v22  ;;  %2668 = vmatmul.bf16.vlgmr.msra.gmra.mxu3 %v1230_v23  ;;  %v5502_v21 = vld [vmem:[%s7627_s1 + $0x228] sm:$0xff]  ;;  %v5485_v22 = vld [vmem:[%s7627_s1 + $0x1a0] sm:$0xff] }
  0x25   :  { %v5493_v23 = vld [vmem:[%s7627_s1 + $0x1e0] sm:$0xff]  ;;  %v5490_v8 = vld [vmem:[%s7627_s1 + $0x1c8] sm:$0xff] }
  0x26   :  { %2717 = vmatpush.bf16.msrb.mxu2 %v5455_v25  ;;  %2674 = vmatpush.bf16.msrb.mxu1 %v5447_v26  ;;  %v3995_v25 = vld [vmem:[%s7628_s0 + $0x134] sm:$0xf0]  ;;  %v5308_v26 = vld [vmem:[%s7628_s0 + $0xcc] sm:$0xf] }
  0x27   :  { %2760 = vmatpush.bf16.msrb.mxu3 %v5463_v24  ;;  %v5309_v24 = vld [vmem:[%s7628_s0 + $0xd4] sm:$0xf] }
  0x28   :  { %2803 = vmatpush.bf16.msrb.mxu0 %v5471_v27  ;;  %v3987_v27 = vld [vmem:[%s7628_s0 + $0x12c] sm:$0xf0] }
  0x2a   :  { %2718 = vmatpush.bf16.msrb.mxu2 %v5454_v29  ;;  %2675 = vmatpush.bf16.msrb.mxu1 %v5446_v30  ;;  %v5321_v29 = vld [vmem:[%s7628_s0 + $0x130] sm:$0xf0]  ;;  %v3998_v30 = vor.u32 %v5309_v24, %v3995_v25  ;;  %v5489_v24 = vld [vmem:[%s7627_s1 + $0x1c0] sm:$0xff] }
  0x2b   :  { %2761 = vmatpush.bf16.msrb.mxu3 %v5462_v28  ;;  %v3993_v28 = vld [vmem:[%s7628_s0 + $0xd0] sm:$0xf]  ;;  %v5473_v25 = vld [vmem:[%s7627_s1 + $0x140] sm:$0xff] }
  0x2c   :  { %2804 = vmatpush.bf16.msrb.mxu0 %v5470_v31  ;;  %v4001_v31 = vld [vmem:[%s7628_s0 + $0xd8] sm:$0xf] }
  0x2e   :  { %2719 = vmatpush.bf16.msrb.mxu2 %v5453_v33  ;;  %2676 = vmatpush.bf16.msrb.mxu1 %v5445_v34  ;;  %v3990_v33 = vor.u32 %v5308_v26, %v3987_v27  ;;  %v3994_v34 = vor.u32 %v5321_v29, %v3993_v28  ;;  %v5409_v26 = vld [vmem:[%s7628_s0 + $0x3f4] sm:$0xf]  ;;  %v4395_v27 = vld [vmem:[%s7628_s0 + $0x454] sm:$0xf0]  ;;  %v5408_v28 = vld [vmem:[%s7628_s0 + $0x3ec] sm:$0xf] }
  0x2f   :  { %2762 = vmatpush.bf16.msrb.mxu3 %v5461_v32  ;;  %v5322_v32 = vld [vmem:[%s7628_s0 + $0x138] sm:$0xf0]  ;;  %v4387_v29 = vld [vmem:[%s7628_s0 + $0x44c] sm:$0xf0] }
  0x30   :  { %2805 = vmatpush.bf16.msrb.mxu0 %v5469_v39  ;;  %v4002_v35 = vor.u32 %v5322_v32, %v4001_v31  ;;  %v5492_v39 = vld [vmem:[%s7627_s1 + $0x1d8] sm:$0xff]  ;;  %v5421_v31 = vld [vmem:[%s7628_s0 + $0x450] sm:$0xf0]  ;;  %v4398_v32 = vor.u32 %v5409_v26, %v4395_v27  ;;  %v4009_v26 = vld [vmem:[%s7628_s0 + $0xe0] sm:$0xf] }
  0x31   :  { %2653 = vmatmul.bf16.gmra.mxu1 %v4186_v44  ;;  %2663 = vmatmul.bf16.gmra.mxu2 %v4386_v45  ;;  %v4087_v44 = vld [vmem:[%s7628_s0 + $0x1f4] sm:$0xf0]  ;;  %v5323_v27 = vld [vmem:[%s7628_s0 + $0x140] sm:$0xf0] }
  0x32   :  { %2720 = vmatpush.bf16.msrb.mxu2 %v5452_v43  ;;  %2677 = vmatpush.bf16.msrb.mxu1 %v5444_v46  ;;  %v5333_v43 = vld [vmem:[%s7628_s0 + $0x194] sm:$0xf]  ;;  %v4093_v45 = vld [vmem:[%s7628_s0 + $0x198] sm:$0xf]  ;;  %v5346_v46 = vld [vmem:[%s7628_s0 + $0x1f8] sm:$0xf0] }
  0x33   :  { %2763 = vmatpush.bf16.msrb.mxu3 %v5460_v42  ;;  %2643 = vmatmul.bf16.gmra.mxu0 %v3986_v47  ;;  %v4095_v42 = vld [vmem:[%s7628_s0 + $0x1fc] sm:$0xf0] }
  0x34   :  { %2806 = vmatpush.bf16.msrb.mxu0 %v5468_v48  ;;  %v4098_v47 = vor.u32 %v5334_v41, %v4095_v42  ;;  %v4101_v48 = vld [vmem:[%s7628_s0 + $0x1a0] sm:$0xf]  ;;  %v174_v41 = vld [vmem:[%s7628_s0 + $0x4b8] sm:$0x11] }
  0x35   :  { %v5512_v42 = vld [vmem:[%s7627_s1 + $0x278] sm:$0xff] }
  0x36   :  { %2721 = vmatpush.bf16.msrb.mxu2 %v5451_v50  ;;  %2678 = vmatpush.bf16.msrb.mxu1 %v5443_v51  ;;  %v4090_v50 = vor.u32 %v5333_v43, %v4087_v44  ;;  %v4094_v51 = vor.u32 %v5346_v46, %v4093_v45  ;;  %v1058_v43 = vunpack.c.h.b16 %v174_v41  ;;  %v6142_v44 = vld [vmem:[%s7628_s0 + $0x4c0] sm:$0x11]  ;;  %v5536_v45 = vld [vmem:[%s7627_s1 + $0x338] sm:$0xff]  ;;  %v1056_v46 = vunpack.c.h.b16 %v5749_v7  ;;  %v5527_v7 = vld [vmem:[%s7627_s1 + $0x2f0] sm:$0xff] }
  0x37   :  { %2764 = vmatpush.bf16.msrb.mxu3 %v5459_v49  ;;  %v5347_v49 = vld [vmem:[%s7628_s0 + $0x200] sm:$0xf0] }
  0x38   :  { %2807 = vmatpush.bf16.msrb.mxu0 %v5467_v52  ;;  %v4102_v52 = vor.u32 %v5347_v49, %v4101_v48  ;;  %v1059_v48 = vunpack.c.l.b16 %v6142_v44  ;;  %v1233_v49 = vpack.c.b16 %v1058_v43, %v1058_v43 }
  0x3a   :  { %2722 = vmatpush.bf16.msrb.mxu2 %v5450_v54  ;;  %2679 = vmatpush.bf16.msrb.mxu1 %v5442_v55  ;;  %v5483_v54 = vld [vmem:[%s7627_s1 + $0x190] sm:$0xff] }
  0x3b   :  { %2765 = vmatpush.bf16.msrb.mxu3 %v5458_v53  ;;  %v5500_v53 = vld [vmem:[%s7627_s1 + $0x218] sm:$0xff]  ;;  %v5491_v55 = vld [vmem:[%s7627_s1 + $0x1d0] sm:$0xff] }
  0x3c   :  { %2808 = vmatpush.bf16.msrb.mxu0 %v5466_v57  ;;  %v5359_v57 = vld [vmem:[%s7628_s0 + $0x264] sm:$0xf] }
  0x3e   :  { %2723 = vmatpush.bf16.msrb.mxu2 %v5449_v58  ;;  %2680 = vmatpush.bf16.msrb.mxu1 %v5441_v59  ;;  %v4195_v58 = vld [vmem:[%s7628_s0 + $0x2c4] sm:$0xf0]  ;;  %v5358_v59 = vld [vmem:[%s7628_s0 + $0x25c] sm:$0xf] }
  0x3f   :  { %2766 = vmatpush.bf16.msrb.mxu3 %v5457_v56  ;;  %v5475_v56 = vld [vmem:[%s7627_s1 + $0x150] sm:$0xff]  ;;  %v4190_v2 = vor.u32 %v5358_v59, %v4187_v60 }
  0x40   :  { %2809 = vmatpush.bf16.msrb.mxu0 %v5465_v5  ;;  %v5499_v5 = vld [vmem:[%s7627_s1 + $0x210] sm:$0xff] }
  0x41   :  { %2681 = vmatmul.bf16.vlgmr.msrb.gmra.mxu1 %v3890_v11  ;;  %2724 = vmatmul.bf16.vlgmr.msrb.gmra.mxu2 %v3894_v12  ;;  %v4295_v11 = vld [vmem:[%s7628_s0 + $0x38c] sm:$0xf0]  ;;  %v5383_v12 = vld [vmem:[%s7628_s0 + $0x324] sm:$0xf] }
  0x42   :  { %2888 = vmatpush.bf16.msra.mxu2 %v5488_v63  ;;  %2767 = vmatmul.bf16.vlgmr.msrb.gmra.mxu3 %v3898_v4  ;;  %v4198_v63 = vor.u32 %v5359_v57, %v4195_v58 }
  0x43   :  { %2931 = vmatpush.bf16.msra.mxu3 %v5496_v0  ;;  %2845 = vmatpush.bf16.msra.mxu1 %v5480_v9  ;;  %v4201_v0 = vld [vmem:[%s7628_s0 + $0x268] sm:$0xf] }
  0x44   :  { %2974 = vmatpush.bf16.msra.mxu0 %v5504_v10  ;;  %v4202_v4 = vor.u32 %v5372_v1, %v4201_v0  ;;  %v5474_v9 = vld [vmem:[%s7627_s1 + $0x148] sm:$0xff]  ;;  %v3903_v0 = vld [vmem:[%s7628_s0 + $0x74] sm:$0xf0] }
  0x45   :  { %2810 = vmatmul.bf16.vlgmr.msrb.gmra.mxu0 %v3902_v13  ;;  %v5384_v10 = vld [vmem:[%s7628_s0 + $0x32c] sm:$0xf]  ;;  %v4287_v13 = vld [vmem:[%s7628_s0 + $0x384] sm:$0xf0]  ;;  %v3909_v1 = vld [vmem:[%s7628_s0 + $0x18] sm:$0xf] }
  0x46   :  { %2889 = vmatpush.bf16.msra.mxu2 %v5487_v14  ;;  %v4293_v14 = vld [vmem:[%s7628_s0 + $0x328] sm:$0xf] }
  0x47   :  { %2932 = vmatpush.bf16.msra.mxu3 %v5495_v15  ;;  %2846 = vmatpush.bf16.msra.mxu1 %v5479_v16  ;;  %v5396_v15 = vld [vmem:[%s7628_s0 + $0x388] sm:$0xf0]  ;;  %v4298_v16 = vor.u32 %v5384_v10, %v4295_v11 }
  0x48   :  { %2975 = vmatpush.bf16.msra.mxu0 %v5503_v17  ;;  %v4301_v17 = vld [vmem:[%s7628_s0 + $0x330] sm:$0xf] }
  0x4a   :  { %2890 = vmatpush.bf16.msra.mxu2 %v5486_v18  ;;  %v5397_v18 = vld [vmem:[%s7628_s0 + $0x390] sm:$0xf0] }
  0x4b   :  { %2933 = vmatpush.bf16.msra.mxu3 %v5494_v19  ;;  %2847 = vmatpush.bf16.msra.mxu1 %v5478_v20  ;;  %v4290_v19 = vor.u32 %v5383_v12, %v4287_v13  ;;  %v4294_v20 = vor.u32 %v5396_v15, %v4293_v14  ;;  %v5518_v15 = vld [vmem:[%s7627_s1 + $0x2a8] sm:$0xff] }
  0x4c   :  { %2976 = vmatpush.bf16.msra.mxu0 %v5502_v21  ;;  %v4302_v21 = vor.u32 %v5397_v18, %v4301_v17  ;;  %v5510_v17 = vld [vmem:[%s7627_s1 + $0x268] sm:$0xff] }
  0x4e   :  { %2891 = vmatpush.bf16.msra.mxu2 %v5485_v22  ;;  %v5498_v22 = vld [vmem:[%s7627_s1 + $0x208] sm:$0xff] }
  0x4f   :  { %2934 = vmatpush.bf16.msra.mxu3 %v5493_v23  ;;  %2848 = vmatpush.bf16.msra.mxu1 %v5477_v36  ;;  %v5481_v23 = vld [vmem:[%s7627_s1 + $0x180] sm:$0xff]  ;;  %v4390_v36 = vor.u32 %v5408_v28, %v4387_v29 }
  0x50   :  { %2977 = vmatpush.bf16.msra.mxu0 %v5501_v37  ;;  %v5517_v28 = vld [vmem:[%s7627_s1 + $0x2a0] sm:$0xff] }
  0x51   :  { %2686 = vmatmul.bf16.gmra.mxu1 %v3990_v33  ;;  %2729 = vmatmul.bf16.gmra.mxu2 %v3994_v34  ;;  %v4401_v33 = vld [vmem:[%s7628_s0 + $0x3f8] sm:$0xf]  ;;  %v5422_v34 = vld [vmem:[%s7628_s0 + $0x458] sm:$0xf0] }
  0x52   :  { %2772 = vmatmul.bf16.gmra.mxu3 %v3998_v30  ;;  %2892 = vmatpush.bf16.msra.mxu2 %v5484_v38  ;;  %v4393_v30 = vld [vmem:[%s7628_s0 + $0x3f0] sm:$0xf]  ;;  %v4402_v38 = vor.u32 %v5422_v34, %v4401_v33  ;;  %v4010_v34 = vor.u32 %v5323_v27, %v4009_v26 }
  0x53   :  { %2935 = vmatpush.bf16.msra.mxu3 %v5492_v39  ;;  %2849 = vmatpush.bf16.msra.mxu1 %v5476_v40  ;;  %v4394_v37 = vor.u32 %v5421_v31, %v4393_v30  ;;  %v5520_v39 = vld [vmem:[%s7627_s1 + $0x2b8] sm:$0xff]  ;;  %v4017_v30 = vld [vmem:[%s7628_s0 + $0xe8] sm:$0xf]  ;;  %v5324_v31 = vld [vmem:[%s7628_s0 + $0x148] sm:$0xf0] }
  0x54   :  { %2978 = vmatpush.bf16.msra.mxu0 %v5500_v53  ;;  %v5528_v40 = vld [vmem:[%s7627_s1 + $0x2f8] sm:$0xff]  ;;  %v1234_v53 = vpack.c.b16 %v1059_v48, %v1059_v48  ;;  %v5515_v27 = vld [vmem:[%s7627_s1 + $0x290] sm:$0xff] }
  0x55   :  { %2815 = vmatmul.bf16.gmra.mxu0 %v4002_v35  ;;  %v5497_v35 = vld [vmem:[%s7627_s1 + $0x200] sm:$0xff] }
  0x56   :  { %2893 = vmatpush.bf16.msra.mxu2 %v5483_v54 }
  0x57   :  { %2936 = vmatpush.bf16.msra.mxu3 %v5491_v55  ;;  %2850 = vmatpush.bf16.msra.mxu1 %v5475_v56  ;;  %v5519_v55 = vld [vmem:[%s7627_s1 + $0x2b0] sm:$0xff] }
  0x58   :  { %2979 = vmatpush.bf16.msra.mxu0 %v5499_v5  ;;  %v5511_v56 = vld [vmem:[%s7627_s1 + $0x270] sm:$0xff]  ;;  %v3917_v5 = vld [vmem:[%s7628_s0 + $0x20] sm:$0xf] }
  0x5a   :  { %2894 = vmatpush.bf16.msra.mxu2 %v5482_v6  ;;  %v5299_v6 = vld [vmem:[%s7628_s0 + $0x80] sm:$0xf0] }
  0x5b   :  { %2937 = vmatpush.bf16.msra.mxu3 %v5490_v8  ;;  %2851 = vmatpush.bf16.msra.mxu1 %v5474_v9  ;;  %v3918_v12 = vor.u32 %v5299_v6, %v3917_v5 }
  0x5c   :  { %2980 = vmatpush.bf16.msra.mxu0 %v5498_v22  ;;  %v5311_v22 = vld [vmem:[%s7628_s0 + $0xe4] sm:$0xf] }
  0x5e   :  { %2895 = vmatpush.bf16.msra.mxu2 %v5481_v23  ;;  %v4011_v23 = vld [vmem:[%s7628_s0 + $0x144] sm:$0xf0] }
  0x5f   :  { %2938 = vmatpush.bf16.msra.mxu3 %v5489_v24  ;;  %2852 = vmatpush.bf16.msra.mxu1 %v5473_v25  ;;  %v5310_v24 = vld [vmem:[%s7628_s0 + $0xdc] sm:$0xf]  ;;  %v4003_v25 = vld [vmem:[%s7628_s0 + $0x13c] sm:$0xf0]  ;;  %v4014_v29 = vor.u32 %v5311_v22, %v4011_v23 }
  0x60   :  { %2981 = vmatpush.bf16.msra.mxu0 %v5497_v35  ;;  %v4006_v33 = vor.u32 %v5310_v24, %v4003_v25 }
  0x61   :  { %2691 = vmatmul.bf16.gmra.mxu1 %v4090_v50  ;;  %2734 = vmatmul.bf16.gmra.mxu2 %v4094_v51  ;;  %v1231_v50 = vpack.c.b16 %v1056_v46, %v1056_v46 }
  0x62   :  { %2777 = vmatmul.bf16.gmra.mxu3 %v4098_v47  ;;  %3060 = vmatpush.bf16.msrb.mxu2 %v5520_v39  ;;  %v1057_v47 = vunpack.c.l.b16 %v174_v41  ;;  %v5525_v39 = vld [vmem:[%s7627_s1 + $0x2e0] sm:$0xff] }
  0x63   :  { %3103 = vmatpush.bf16.msrb.mxu3 %v5528_v40  ;;  %3017 = vmatpush.bf16.msrb.mxu1 %v5512_v42  ;;  %v5509_v40 = vld [vmem:[%s7627_s1 + $0x260] sm:$0xff] }
  0x64   :  { %3146 = vmatpush.bf16.msrb.mxu0 %v5536_v45  ;;  %v1232_v51 = vpack.c.b16 %v1057_v47, %v1057_v47 }
  0x65   :  { %2820 = vmatmul.bf16.gmra.mxu0 %v4102_v52 }
  0x66   :  { %3061 = vmatpush.bf16.msrb.mxu2 %v5519_v55  ;;  %v4109_v55 = vld [vmem:[%s7628_s0 + $0x1a8] sm:$0xf] }
  0x67   :  { %3104 = vmatpush.bf16.msrb.mxu3 %v5527_v7  ;;  %3018 = vmatpush.bf16.msrb.mxu1 %v5511_v56 }
  0x6a   :  { %3062 = vmatpush.bf16.msrb.mxu2 %v5518_v15  ;;  %v5508_v15 = vld [vmem:[%s7627_s1 + $0x258] sm:$0xff] }
  0x6b   :  { %3019 = vmatpush.bf16.msrb.mxu1 %v5510_v17 }
  0x6e   :  { %3063 = vmatpush.bf16.msrb.mxu2 %v5517_v28  ;;  %v5361_v28 = vld [vmem:[%s7628_s0 + $0x274] sm:$0xf] }
  0x6f   :  { %3020 = vmatpush.bf16.msrb.mxu1 %v5509_v40  ;;  %v5374_v40 = vld [vmem:[%s7628_s0 + $0x2d8] sm:$0xf0] }
  0x71   :  { %2696 = vmatmul.bf16.gmra.mxu1 %v4190_v2  ;;  %2739 = vmatmul.bf16.gmra.mxu2 %v4194_v3  ;;  %v5298_v2 = vld [vmem:[%s7628_s0 + $0x78] sm:$0xf0]  ;;  %v5535_v3 = vld [vmem:[%s7627_s1 + $0x330] sm:$0xff] }
  0x72   :  { %2782 = vmatmul.bf16.gmra.mxu3 %v4198_v63  ;;  %v5285_v63 = vld [vmem:[%s7628_s0 + $0x14] sm:$0xf]  ;;  %3147 = vmatpush.bf16.msrb.mxu0 %v5535_v3  ;;  %v3910_v10 = vor.u32 %v5298_v2, %v3909_v1 }
  0x73   :  { %v3906_v9 = vor.u32 %v5285_v63, %v3903_v0  ;;  %v4117_v0 = vld [vmem:[%s7628_s0 + $0x1b0] sm:$0xf]  ;;  %v5349_v1 = vld [vmem:[%s7628_s0 + $0x210] sm:$0xf0]  ;;  %3021 = vmatpush.bf16.msrb.mxu1 %v5508_v15  ;;  %v5399_v15 = vld [vmem:[%s7628_s0 + $0x3a0] sm:$0xf0] }
  0x75   :  { %2825 = vmatmul.bf16.gmra.mxu0 %v4202_v4  ;;  %v3914_v4 = vor.u32 %v5286_v61, %v3911_v62  ;;  %v5516_v61 = vld [vmem:[%s7627_s1 + $0x298] sm:$0xff] }
  0x76   :  { %v5524_v62 = vld [vmem:[%s7627_s1 + $0x2d8] sm:$0xff]  ;;  %3064 = vmatpush.bf16.msrb.mxu2 %v5516_v61 }
  0x7a   :  { %3065 = vmatpush.bf16.msrb.mxu2 %v5515_v27 }
  0x81   :  { %2701 = vmatmul.bf16.gmra.mxu1 %v4290_v19  ;;  %2744 = vmatmul.bf16.gmra.mxu2 %v4294_v20 }
  0x82   :  { %2787 = vmatmul.bf16.gmra.mxu3 %v4298_v16  ;;  %v5526_v16 = vld [vmem:[%s7627_s1 + $0x2e8] sm:$0xff] }
  0x83   :  { %3105 = vmatpush.bf16.msrb.mxu3 %v5526_v16 }
  0x85   :  { %2830 = vmatmul.bf16.gmra.mxu0 %v4302_v21  ;;  %v5534_v21 = vld [vmem:[%s7627_s1 + $0x328] sm:$0xff] }
  0x86   :  { %3148 = vmatpush.bf16.msrb.mxu0 %v5534_v21  ;;  %v5532_v21 = vld [vmem:[%s7627_s1 + $0x318] sm:$0xff] }
  0x87   :  { %3106 = vmatpush.bf16.msrb.mxu3 %v5525_v39  ;;  %v4217_v39 = vld [vmem:[%s7628_s0 + $0x278] sm:$0xf] }
  0x8b   :  { %3107 = vmatpush.bf16.msrb.mxu3 %v5524_v62 }
  0x91   :  { %2706 = vmatmul.bf16.gmra.mxu1 %v4390_v36  ;;  %2749 = vmatmul.bf16.gmra.mxu2 %v4394_v37  ;;  %v4018_v36 = vor.u32 %v5324_v31, %v4017_v30  ;;  %v5360_v30 = vld [vmem:[%s7628_s0 + $0x26c] sm:$0xf]  ;;  %v4209_v31 = vld [vmem:[%s7628_s0 + $0x270] sm:$0xf] }
  0x92   :  { %2792 = vmatmul.bf16.gmra.mxu3 %v4398_v32 }
  0x95   :  { %2835 = vmatmul.bf16.gmra.mxu0 %v4402_v38 }
  0x9e   :  { %v6149_v52 = vpop.f32.mrf.mxu1 }
  0xa0   :  { %v6151_v54 = vpop.f32.mrf.mxu0 }
  0xa1   :  { %2711 = vmatmul.bf16.gmra.mxu1 %v1231_v50  ;;  %2754 = vmatmul.bf16.gmra.mxu2 %v1232_v51  ;;  %v5336_v50 = vld [vmem:[%s7628_s0 + $0x1ac] sm:$0xf]  ;;  %v4111_v51 = vld [vmem:[%s7628_s0 + $0x20c] sm:$0xf0] }
  0xa2   :  { %2797 = vmatmul.bf16.gmra.mxu3 %v1233_v49  ;;  %v5533_v49 = vld [vmem:[%s7627_s1 + $0x320] sm:$0xff]  ;;  %v4114_v63 = vor.u32 %v5336_v50, %v4111_v51 }
  0xa3   :  { %3149 = vmatpush.bf16.msrb.mxu0 %v5533_v49 }
  0xa4   :  { %v6162_v57 = vpop.f32.mrf.mxu2 }
  0xa5   :  { %2840 = vmatmul.bf16.gmra.mxu0 %v1234_v53  ;;  %v5335_v53 = vld [vmem:[%s7628_s0 + $0x1a4] sm:$0xf] }
  0xa6   :  { %v6164_v58 = vpop.f32.mrf.mxu1 }
  0xa7   :  { %v6166_v59 = vpop.f32.mrf.mxu3  ;;  %3150 = vmatpush.bf16.msrb.mxu0 %v5532_v21 }
  0xa8   :  { %v6168_v60 = vpop.f32.mrf.mxu0 }
  0xac   :  { %v6197_v8 = vpop.f32.mrf.mxu2 }
  0xae   :  { %v6199_v11 = vpop.f32.mrf.mxu1 }
  0xaf   :  { %v2671_v13 = vpop.f32.mrf.mxu3 }
  0xb0   :  { %v6201_v14 = vpop.f32.mrf.mxu0 }
  0xb1   :  { %2853 = vmatmul.bf16.vlgmr.msra.gmra.mxu1 %v3906_v9  ;;  %2896 = vmatmul.bf16.vlgmr.msra.gmra.mxu2 %v3910_v10  ;;  %v4118_v9 = vor.u32 %v5349_v1, %v4117_v0  ;;  %v5522_v0 = vld [vmem:[%s7627_s1 + $0x2c8] sm:$0xff]  ;;  %v5386_v1 = vld [vmem:[%s7628_s0 + $0x33c] sm:$0xf] }
  0xb2   :  { %2939 = vmatmul.bf16.vlgmr.msra.gmra.mxu3 %v3914_v4 }
  0xb4   :  { %v6212_v18 = vpop.f32.mrf.mxu2 }
  0xb5   :  { %2982 = vmatmul.bf16.vlgmr.msra.gmra.mxu0 %v3918_v12 }
  0xb6   :  { %v6214_v19 = vpop.f32.mrf.mxu1 }
  0xb8   :  { %v6216_v20 = vpop.f32.mrf.mxu0 }
  0xbc   :  { %v6248_v32 = vpop.f32.mrf.mxu2 }
  0xbe   :  { %v2682_v35 = vpop.f32.mrf.mxu1 }
  0xbf   :  { %v2683_v37 = vadd.f32 %v2682_v35, %v6151_v54  ;;  %v4103_v54 = vld [vmem:[%s7628_s0 + $0x204] sm:$0xf0]  ;;  %v5373_v35 = vld [vmem:[%s7628_s0 + $0x2d0] sm:$0xf0] }
  0xc0   :  { %v4106_v4 = vor.u32 %v5335_v53, %v4103_v54  ;;  %v5531_v54 = vld [vmem:[%s7627_s1 + $0x310] sm:$0xff] }
  0xc1   :  { %2858 = vmatmul.bf16.gmra.mxu1 %v4006_v33  ;;  %2901 = vmatmul.bf16.gmra.mxu2 %v4010_v34 }
  0xc2   :  { %2944 = vmatmul.bf16.gmra.mxu3 %v4014_v29  ;;  %v2811_v38 = vpop.f32.mrf.mxu0  ;;  %v4211_v29 = vld [vmem:[%s7628_s0 + $0x2d4] sm:$0xf0]  ;;  %3151 = vmatpush.bf16.msrb.mxu0 %v5531_v54 }
  0xc4   :  { %v2725_v42 = vpop.f32.mrf.mxu2 }
  0xc5   :  { %v2768_v41 = vpop.f32.mrf.mxu3  ;;  %2987 = vmatmul.bf16.gmra.mxu0 %v4018_v36  ;;  %v2726_v43 = vadd.f32 %v2725_v42, %v2683_v37  ;;  %v5523_v36 = vld [vmem:[%s7627_s1 + $0x2d0] sm:$0xff] }
  0xc6   :  { %v2684_v45 = vpop.f32.mrf.mxu1  ;;  %v5507_v37 = vld [vmem:[%s7627_s1 + $0x250] sm:$0xff]  ;;  %3108 = vmatpush.bf16.msrb.mxu3 %v5523_v36 }
  0xc7   :  { %v2769_v46 = vadd.f32 %v2768_v41, %v2726_v43  ;;  %v2685_v47 = vadd.f32 %v2684_v45, %v6168_v60  ;;  %v5348_v60 = vld [vmem:[%s7628_s0 + $0x208] sm:$0xf0]  ;;  %3022 = vmatpush.bf16.msrb.mxu1 %v5507_v37  ;;  %v4210_v45 = vor.u32 %v5373_v35, %v4209_v31 }
  0xc8   :  { %v4110_v5 = vor.u32 %v5348_v60, %v4109_v55 }
  0xc9   :  { %v6276_v7 = vadd.f32 %v2811_v38, %v2769_v46  ;;  %v4214_v38 = vor.u32 %v5361_v28, %v4211_v29  ;;  %v5530_v28 = vld [vmem:[%s7627_s1 + $0x308] sm:$0xff] }
  0xca   :  { %v2813_v48 = vpop.f32.mrf.mxu0  ;;  %3109 = vmatpush.bf16.msrb.mxu3 %v5522_v0  ;;  %3152 = vmatpush.bf16.msrb.mxu0 %v5530_v28 }
  0xcc   :  { %v2727_v2 = vpop.f32.mrf.mxu2 }
  0xcd   :  { %v2770_v56 = vpop.f32.mrf.mxu3  ;;  %v2728_v3 = vadd.f32 %v2727_v2, %v2685_v47  ;;  %v4218_v47 = vor.u32 %v5374_v40, %v4217_v39  ;;  %v4311_v2 = vld [vmem:[%s7628_s0 + $0x39c] sm:$0xf0]  ;;  %v5411_v40 = vld [vmem:[%s7628_s0 + $0x404] sm:$0xf] }
  0xce   :  { %v2687_v6 = vpop.f32.mrf.mxu1  ;;  %v5505_v39 = vld [vmem:[%s7627_s1 + $0x240] sm:$0xff] }
  0xcf   :  { %v2771_v10 = vadd.f32 %v2770_v56, %v2728_v3  ;;  %v2688_v12 = vadd.f32 %v2687_v6, %v6201_v14  ;;  %v4303_v3 = vld [vmem:[%s7628_s0 + $0x394] sm:$0xf0] }
  0xd0   :  { %v4309_v6 = vld [vmem:[%s7628_s0 + $0x338] sm:$0xf] }
  0xd1   :  { %2863 = vmatmul.bf16.gmra.mxu1 %v4106_v4  ;;  %2906 = vmatmul.bf16.gmra.mxu2 %v4110_v5  ;;  %v6297_v16 = vadd.f32 %v2813_v48, %v2771_v10  ;;  %v5506_v10 = vld [vmem:[%s7627_s1 + $0x248] sm:$0xff] }
  0xd2   :  { %2949 = vmatmul.bf16.gmra.mxu3 %v4114_v63  ;;  %v2816_v13 = vpop.f32.mrf.mxu0  ;;  %v5514_v63 = vld [vmem:[%s7627_s1 + $0x288] sm:$0xff]  ;;  %3023 = vmatpush.bf16.msrb.mxu1 %v5506_v10 }
  0xd3   :  { %3066 = vmatpush.bf16.msrb.mxu2 %v5514_v63  ;;  %v5529_v63 = vld [vmem:[%s7627_s1 + $0x300] sm:$0xff] }
  0xd4   :  { %v2730_v22 = vpop.f32.mrf.mxu2  ;;  %3153 = vmatpush.bf16.msrb.mxu0 %v5529_v63 }
  0xd5   :  { %v2773_v17 = vpop.f32.mrf.mxu3  ;;  %2992 = vmatmul.bf16.gmra.mxu0 %v4118_v9  ;;  %v2731_v14 = vadd.f32 %v2730_v22, %v2688_v12  ;;  %v5398_v9 = vld [vmem:[%s7628_s0 + $0x398] sm:$0xf0]  ;;  %v4314_v12 = vor.u32 %v5386_v1, %v4311_v2 }
  0xd6   :  { %v2689_v23 = vpop.f32.mrf.mxu1  ;;  %3024 = vmatpush.bf16.msrb.mxu1 %v5505_v39  ;;  %v5552_v2 = vld [vmem:[%s7627_s1 + $0x3b8] sm:$0xff]  ;;  %v5543_v39 = vld [vmem:[%s7627_s1 + $0x370] sm:$0xff] }
  0xd7   :  { %v2774_v24 = vadd.f32 %v2773_v17, %v2731_v14  ;;  %v2690_v25 = vadd.f32 %v2689_v23, %v6216_v20  ;;  %v4203_v20 = vld [vmem:[%s7628_s0 + $0x2cc] sm:$0xf0]  ;;  %v4310_v14 = vor.u32 %v5398_v9, %v4309_v6  ;;  %v176_v6 = vld [vmem:[%s7628_s0 + $0x4c8] sm:$0x11] }
  0xd8   :  { %v4206_v43 = vor.u32 %v5360_v30, %v4203_v20  ;;  %v5513_v20 = vld [vmem:[%s7627_s1 + $0x280] sm:$0xff] }
  0xd9   :  { %v6321_v33 = vadd.f32 %v2816_v13, %v2774_v24  ;;  %v4317_v13 = vld [vmem:[%s7628_s0 + $0x340] sm:$0xf]  ;;  %3067 = vmatpush.bf16.msrb.mxu2 %v5513_v20 }
  0xda   :  { %v2818_v26 = vpop.f32.mrf.mxu0  ;;  %v4318_v24 = vor.u32 %v5399_v15, %v4317_v13  ;;  %v1062_v15 = vunpack.c.h.b16 %v176_v6 }
  0xdc   :  { %v2732_v41 = vpop.f32.mrf.mxu2 }
  0xdd   :  { %v2775_v34 = vpop.f32.mrf.mxu3  ;;  %v2733_v42 = vadd.f32 %v2732_v41, %v2690_v25  ;;  %v4411_v41 = vld [vmem:[%s7628_s0 + $0x464] sm:$0xf0]  ;;  %3232 = vmatpush.bf16.msra.mxu2 %v5552_v2 }
  0xde   :  { %v2692_v46 = vpop.f32.mrf.mxu1 }
  0xdf   :  { %v2776_v48 = vadd.f32 %v2775_v34, %v2733_v42  ;;  %v2693_v49 = vadd.f32 %v2692_v46, %v6149_v52  ;;  %v4409_v46 = vld [vmem:[%s7628_s0 + $0x400] sm:$0xf] }
  0xe1   :  { %2868 = vmatmul.bf16.gmra.mxu1 %v4206_v43  ;;  %2911 = vmatmul.bf16.gmra.mxu2 %v4210_v45  ;;  %v6339_v51 = vadd.f32 %v2818_v26, %v2776_v48  ;;  %v4403_v45 = vld [vmem:[%s7628_s0 + $0x45c] sm:$0xf0]  ;;  %v4414_v48 = vor.u32 %v5411_v40, %v4411_v41 }
  0xe2   :  { %2954 = vmatmul.bf16.gmra.mxu3 %v4214_v38  ;;  %v2821_v50 = vpop.f32.mrf.mxu0  ;;  %v5521_v38 = vld [vmem:[%s7627_s1 + $0x2c0] sm:$0xff] }
  0xe3   :  { %3110 = vmatpush.bf16.msrb.mxu3 %v5521_v38  ;;  %v5559_v38 = vld [vmem:[%s7627_s1 + $0x3f0] sm:$0xff] }
  0xe4   :  { %v2735_v55 = vpop.f32.mrf.mxu2 }
  0xe5   :  { %v2778_v53 = vpop.f32.mrf.mxu3  ;;  %2997 = vmatmul.bf16.gmra.mxu0 %v4218_v47  ;;  %v2736_v56 = vadd.f32 %v2735_v55, %v2693_v49  ;;  %v5423_v47 = vld [vmem:[%s7628_s0 + $0x460] sm:$0xf0]  ;;  %v4417_v49 = vld [vmem:[%s7628_s0 + $0x408] sm:$0xf] }
  0xe6   :  { %v2694_v60 = vpop.f32.mrf.mxu1 }
  0xe7   :  { %v2779_v61 = vadd.f32 %v2778_v53, %v2736_v56  ;;  %v2695_v62 = vadd.f32 %v2694_v60, %v6164_v58  ;;  %v5385_v58 = vld [vmem:[%s7628_s0 + $0x334] sm:$0xf]  ;;  %v4410_v56 = vor.u32 %v5423_v47, %v4409_v46  ;;  %v5288_v47 = vld [vmem:[%s7628_s0 + $0x2c] sm:$0xf] }
  0xe8   :  { %v4306_v22 = vor.u32 %v5385_v58, %v4303_v3  ;;  %v5560_v58 = vld [vmem:[%s7627_s1 + $0x3f8] sm:$0xff] }
  0xe9   :  { %v6363_v4 = vadd.f32 %v2821_v50, %v2779_v61  ;;  %v5424_v50 = vld [vmem:[%s7628_s0 + $0x468] sm:$0xf0]  ;;  %3275 = vmatpush.bf16.msra.mxu3 %v5560_v58 }
  0xea   :  { %v2823_v52 = vpop.f32.mrf.mxu0  ;;  %v4418_v61 = vor.u32 %v5424_v50, %v4417_v49  ;;  %v5287_v49 = vld [vmem:[%s7628_s0 + $0x24] sm:$0xf] }
  0xec   :  { %v2737_v17 = vpop.f32.mrf.mxu2 }
  0xed   :  { %v2780_v5 = vpop.f32.mrf.mxu3  ;;  %v2738_v21 = vadd.f32 %v2737_v17, %v2695_v62  ;;  %v6440_v17 = vld [vmem:[%s7628_s0 + $0x4d0] sm:$0x11]  ;;  %3276 = vmatpush.bf16.msra.mxu3 %v5559_v38 }
  0xee   :  { %v2697_v23 = vpop.f32.mrf.mxu1 }
  0xef   :  { %v2781_v25 = vadd.f32 %v2780_v5, %v2738_v21  ;;  %v2698_v26 = vadd.f32 %v2697_v23, %v6199_v11  ;;  %v1060_v21 = vunpack.c.h.b16 %v6142_v44 }
  0xf1   :  { %2873 = vmatmul.bf16.gmra.mxu1 %v4306_v22  ;;  %2916 = vmatmul.bf16.gmra.mxu2 %v4310_v14  ;;  %v6384_v29 = vadd.f32 %v2823_v52, %v2781_v25  ;;  %v1061_v22 = vunpack.c.l.b16 %v176_v6  ;;  %v5568_v25 = vld [vmem:[%s7627_s1 + $0x438] sm:$0xff]  ;;  %v1235_v20 = vpack.c.b16 %v1060_v21, %v1060_v21 }
  0xf2   :  { %2959 = vmatmul.bf16.gmra.mxu3 %v4314_v12  ;;  %v2826_v27 = vpop.f32.mrf.mxu0  ;;  %3318 = vmatpush.bf16.msra.mxu0 %v5568_v25 }
  0xf4   :  { %v2740_v31 = vpop.f32.mrf.mxu2 }
  0xf5   :  { %v2783_v30 = vpop.f32.mrf.mxu3  ;;  %3002 = vmatmul.bf16.gmra.mxu0 %v4318_v24  ;;  %v2741_v11 = vadd.f32 %v2740_v31, %v2698_v26  ;;  %v1063_v24 = vunpack.c.l.b16 %v6440_v17  ;;  %v1236_v31 = vpack.c.b16 %v1061_v22, %v1061_v22 }
  0xf6   :  { %v2699_v34 = vpop.f32.mrf.mxu1 }
  0xf7   :  { %v2784_v35 = vadd.f32 %v2783_v30, %v2741_v11  ;;  %v2700_v36 = vadd.f32 %v2699_v34, %v6214_v19  ;;  %v5410_v19 = vld [vmem:[%s7628_s0 + $0x3fc] sm:$0xf]  ;;  %v1238_v11 = vpack.c.b16 %v1063_v24, %v1063_v24 }
  0xf8   :  { %v4406_v55 = vor.u32 %v5410_v19, %v4403_v45 }
  0xf9   :  { %v6405_v42 = vadd.f32 %v2826_v27, %v2784_v35  ;;  %v1237_v27 = vpack.c.b16 %v1062_v15, %v1062_v15  ;;  %v5542_v15 = vld [vmem:[%s7627_s1 + $0x368] sm:$0xff] }
  0xfa   :  { %v2828_v37 = vpop.f32.mrf.mxu0 }
  0xfc   :  { %v2742_v53 = vpop.f32.mrf.mxu2 }
  0xfd   :  { %v2785_v43 = vpop.f32.mrf.mxu3  ;;  %v2743_v54 = vadd.f32 %v2742_v53, %v2700_v36  ;;  %v5551_v36 = vld [vmem:[%s7627_s1 + $0x3b0] sm:$0xff] }
  0xfe   :  { %v2702_v60 = vpop.f32.mrf.mxu1  ;;  %3233 = vmatpush.bf16.msra.mxu2 %v5551_v36  ;;  %v4033_v36 = vld [vmem:[%s7628_s0 + $0xf8] sm:$0xf] }
  0xff   :  { %v2786_v62 = vadd.f32 %v2785_v43, %v2743_v54  ;;  %v2703_v3 = vadd.f32 %v2702_v60, %v6162_v57  ;;  %v5544_v57 = vld [vmem:[%s7627_s1 + $0x378] sm:$0xff]  ;;  %v3925_v54 = vld [vmem:[%s7628_s0 + $0x28] sm:$0xf] }
 0x100   :  { %3189 = vmatpush.bf16.msra.mxu1 %v5544_v57 }
 0x101   :  { %2878 = vmatmul.bf16.gmra.mxu1 %v4406_v55  ;;  %2921 = vmatmul.bf16.gmra.mxu2 %v4410_v56  ;;  %v6425_v0 = vadd.f32 %v2828_v37, %v2786_v62  ;;  %v5300_v55 = vld [vmem:[%s7628_s0 + $0x88] sm:$0xf0]  ;;  %v5567_v56 = vld [vmem:[%s7627_s1 + $0x430] sm:$0xff] }
 0x102   :  { %2964 = vmatmul.bf16.gmra.mxu3 %v4414_v48  ;;  %v2831_v52 = vpop.f32.mrf.mxu0  ;;  %v3927_v48 = vld [vmem:[%s7628_s0 + $0x8c] sm:$0xf0]  ;;  %3319 = vmatpush.bf16.msra.mxu0 %v5567_v56  ;;  %v3926_v58 = vor.u32 %v5300_v55, %v3925_v54  ;;  %v5565_v56 = vld [vmem:[%s7627_s1 + $0x420] sm:$0xff] }
 0x103   :  { %v3933_v62 = vld [vmem:[%s7628_s0 + $0x30] sm:$0xf] }
 0x104   :  { %v2745_v5 = vpop.f32.mrf.mxu2  ;;  %3190 = vmatpush.bf16.msra.mxu1 %v5543_v39 }
 0x105   :  { %v2788_v1 = vpop.f32.mrf.mxu3  ;;  %3007 = vmatmul.bf16.gmra.mxu0 %v4418_v61  ;;  %v2746_v9 = vadd.f32 %v2745_v5, %v2703_v3  ;;  %v3930_v61 = vor.u32 %v5288_v47, %v3927_v48  ;;  %v5541_v47 = vld [vmem:[%s7627_s1 + $0x360] sm:$0xff] }
 0x106   :  { %v2704_v10 = vpop.f32.mrf.mxu1 }
 0x107   :  { %v2789_v12 = vadd.f32 %v2788_v1, %v2746_v9  ;;  %v2705_v26 = vadd.f32 %v2704_v10, %v6197_v8  ;;  %v5558_v10 = vld [vmem:[%s7627_s1 + $0x3e8] sm:$0xff] }
 0x108   :  { %3277 = vmatpush.bf16.msra.mxu3 %v5558_v10  ;;  %3191 = vmatpush.bf16.msra.mxu1 %v5542_v15 }
 0x109   :  { %v6446_v14 = vadd.f32 %v2831_v52, %v2789_v12  ;;  %v5301_v52 = vld [vmem:[%s7628_s0 + $0x90] sm:$0xf0] }
 0x10a   :  { %v2833_v13 = vpop.f32.mrf.mxu0  ;;  %v3934_v5 = vor.u32 %v5301_v52, %v3933_v62  ;;  %v5337_v62 = vld [vmem:[%s7628_s0 + $0x1b4] sm:$0xf]  ;;  %v4125_v52 = vld [vmem:[%s7628_s0 + $0x1b8] sm:$0xf] }
 0x10c   :  { %v2747_v28 = vpop.f32.mrf.mxu2  ;;  %3192 = vmatpush.bf16.msra.mxu1 %v5541_v47  ;;  %v5376_v47 = vld [vmem:[%s7628_s0 + $0x2e8] sm:$0xf0] }
 0x10d   :  { %v2790_v23 = vpop.f32.mrf.mxu3  ;;  %v2748_v30 = vadd.f32 %v2747_v28, %v2705_v26  ;;  %v5566_v26 = vld [vmem:[%s7627_s1 + $0x428] sm:$0xff]  ;;  %v4027_v28 = vld [vmem:[%s7628_s0 + $0x154] sm:$0xf0] }
 0x10e   :  { %v2707_v44 = vpop.f32.mrf.mxu1  ;;  %3320 = vmatpush.bf16.msra.mxu0 %v5566_v26 }
 0x10f   :  { %v2791_v34 = vadd.f32 %v2790_v23, %v2748_v30  ;;  %v2708_v40 = vadd.f32 %v2707_v44, %v6212_v18  ;;  %v3919_v18 = vld [vmem:[%s7628_s0 + $0x84] sm:$0xf0]  ;;  %v4019_v30 = vld [vmem:[%s7628_s0 + $0x14c] sm:$0xf0] }
 0x110   :  { %v3922_v2 = vor.u32 %v5287_v49, %v3919_v18  ;;  %v4025_v44 = vld [vmem:[%s7628_s0 + $0xf0] sm:$0xf] }
 0x111   :  { %2883 = vmatmul.bf16.gmra.mxu1 %v1235_v20  ;;  %2926 = vmatmul.bf16.gmra.mxu2 %v1236_v31  ;;  %v6456_v37 = vadd.f32 %v2833_v13, %v2791_v34  ;;  %v5549_v34 = vld [vmem:[%s7627_s1 + $0x3a0] sm:$0xff] }
 0x112   :  { %2969 = vmatmul.bf16.gmra.mxu3 %v1237_v27  ;;  %v2836_v35 = vpop.f32.mrf.mxu0  ;;  %v5313_v27 = vld [vmem:[%s7628_s0 + $0xf4] sm:$0xf]  ;;  %3321 = vmatpush.bf16.msra.mxu0 %v5565_v56 }
 0x114   :  { %v2750_v41 = vpop.f32.mrf.mxu2 }
 0x115   :  { %v2793_v8 = vpop.f32.mrf.mxu3  ;;  %3012 = vmatmul.bf16.gmra.mxu0 %v1238_v11  ;;  %v2751_v19 = vadd.f32 %v2750_v41, %v2708_v40  ;;  %v5325_v11 = vld [vmem:[%s7628_s0 + $0x150] sm:$0xf0] }
 0x116   :  { %v2709_v43 = vpop.f32.mrf.mxu1  ;;  %v4026_v40 = vor.u32 %v5325_v11, %v4025_v44 }
 0x117   :  { %v2794_v45 = vadd.f32 %v2793_v8, %v2751_v19  ;;  %v2710_v60 = vadd.f32 %v2709_v43, %v6248_v32  ;;  %v5550_v32 = vld [vmem:[%s7627_s1 + $0x3a8] sm:$0xff]  ;;  %v5326_v8 = vld [vmem:[%s7628_s0 + $0x158] sm:$0xf0] }
 0x118   :  { %3234 = vmatpush.bf16.msra.mxu2 %v5550_v32  ;;  %v4034_v19 = vor.u32 %v5326_v8, %v4033_v36  ;;  %v4227_v36 = vld [vmem:[%s7628_s0 + $0x2e4] sm:$0xf0]  ;;  %v5362_v8 = vld [vmem:[%s7628_s0 + $0x27c] sm:$0xf] }
 0x119   :  { %v6477_v50 = vadd.f32 %v2836_v35, %v2794_v45  ;;  %v4030_v35 = vor.u32 %v5313_v27, %v4027_v28  ;;  %v5564_v28 = vld [vmem:[%s7627_s1 + $0x418] sm:$0xff] }
 0x11a   :  { %v2838_v46 = vpop.f32.mrf.mxu0  ;;  %3322 = vmatpush.bf16.msra.mxu0 %v5564_v28 }
 0x11c   :  { %v2752_v63 = vpop.f32.mrf.mxu2  ;;  %3235 = vmatpush.bf16.msra.mxu2 %v5549_v34  ;;  %v5547_v34 = vld [vmem:[%s7627_s1 + $0x390] sm:$0xff] }
 0x11d   :  { %v2795_v53 = vpop.f32.mrf.mxu3  ;;  %v2753_v1 = vadd.f32 %v2752_v63, %v2710_v60  ;;  %v5338_v60 = vld [vmem:[%s7628_s0 + $0x1bc] sm:$0xf] }
 0x11e   :  { %v2712_v3 = vpop.f32.mrf.mxu1 }
 0x11f   :  { %v2796_v6 = vadd.f32 %v2795_v53, %v2753_v1  ;;  %v2713_v57 = vadd.f32 %v2712_v3, %v6166_v59  ;;  %v5312_v59 = vld [vmem:[%s7628_s0 + $0xec] sm:$0xf]  ;;  %v5556_v3 = vld [vmem:[%s7627_s1 + $0x3d8] sm:$0xff] }
 0x120   :  { %v4022_v39 = vor.u32 %v5312_v59, %v4019_v30 }
 0x121   :  { %3025 = vmatmul.bf16.vlgmr.msrb.gmra.mxu1 %v3922_v2  ;;  %3068 = vmatmul.bf16.vlgmr.msrb.gmra.mxu2 %v3926_v58  ;;  %v6501_v12 = vadd.f32 %v2838_v46, %v2796_v6  ;;  %v5557_v46 = vld [vmem:[%s7627_s1 + $0x3e0] sm:$0xff]  ;;  %v5350_v2 = vld [vmem:[%s7628_s0 + $0x218] sm:$0xf0] }
 0x122   :  { %3111 = vmatmul.bf16.vlgmr.msrb.gmra.mxu3 %v3930_v61  ;;  %v2841_v9 = vpop.f32.mrf.mxu0  ;;  %v4127_v61 = vld [vmem:[%s7628_s0 + $0x21c] sm:$0xf0]  ;;  %v5548_v58 = vld [vmem:[%s7627_s1 + $0x398] sm:$0xff]  ;;  %v4126_v15 = vor.u32 %v5350_v2, %v4125_v52 }
 0x123   :  { %3278 = vmatpush.bf16.msra.mxu3 %v5557_v46  ;;  %v4133_v6 = vld [vmem:[%s7628_s0 + $0x1c0] sm:$0xf]  ;;  %3236 = vmatpush.bf16.msra.mxu2 %v5548_v58  ;;  %v4233_v46 = vld [vmem:[%s7628_s0 + $0x288] sm:$0xf] }
 0x124   :  { %v2755_v21 = vpop.f32.mrf.mxu2 }
 0x125   :  { %v2798_v13 = vpop.f32.mrf.mxu3  ;;  %3154 = vmatmul.bf16.vlgmr.msrb.gmra.mxu0 %v3934_v5  ;;  %v2756_v22 = vadd.f32 %v2755_v21, %v2713_v57  ;;  %v4130_v5 = vor.u32 %v5338_v60, %v4127_v61 }
 0x126   :  { %v2714_v23 = vpop.f32.mrf.mxu1 }
 0x127   :  { %v2799_v24 = vadd.f32 %v2798_v13, %v2756_v22  ;;  %3279 = vmatpush.bf16.msra.mxu3 %v5556_v3  ;;  %3237 = vmatpush.bf16.msra.mxu2 %v5547_v34 }
 0x129   :  { %v6522_v20 = vadd.f32 %v2841_v9, %v2799_v24  ;;  %v5351_v9 = vld [vmem:[%s7628_s0 + $0x220] sm:$0xf0] }
 0x12a   :  { %v2843_v25 = vpop.f32.mrf.mxu0  ;;  %v4134_v21 = vor.u32 %v5351_v9, %v4133_v6  ;;  %v5554_v6 = vld [vmem:[%s7627_s1 + $0x3c8] sm:$0xff] }
 0x12b   :  { %v5540_v25 = vld [vmem:[%s7627_s1 + $0x358] sm:$0xff]  ;;  %v5388_v9 = vld [vmem:[%s7628_s0 + $0x34c] sm:$0xf] }
 0x12c   :  { %v2757_v38 = vpop.f32.mrf.mxu2  ;;  %3193 = vmatpush.bf16.msra.mxu1 %v5540_v25  ;;  %v5401_v25 = vld [vmem:[%s7628_s0 + $0x3b0] sm:$0xf0] }
 0x12d   :  { %v2800_v31 = vpop.f32.mrf.mxu3  ;;  %v4225_v38 = vld [vmem:[%s7628_s0 + $0x280] sm:$0xf] }
 0x12e   :  { %v2854_v41 = vpop.f32.mrf.mxu1 }
 0x12f   :  { %v2855_v43 = vadd.f32 %v2854_v41, %v6276_v7  ;;  %v5375_v41 = vld [vmem:[%s7628_s0 + $0x2e0] sm:$0xf0] }
 0x131   :  { %3030 = vmatmul.bf16.gmra.mxu1 %v4022_v39  ;;  %3073 = vmatmul.bf16.gmra.mxu2 %v4026_v40 }
 0x132   :  { %3116 = vmatmul.bf16.gmra.mxu3 %v4030_v35  ;;  %v2983_v45 = vpop.f32.mrf.mxu0  ;;  %v5363_v35 = vld [vmem:[%s7628_s0 + $0x284] sm:$0xf] }
 0x134   :  { %v2897_v49 = vpop.f32.mrf.mxu2 }
 0x135   :  { %v2940_v48 = vpop.f32.mrf.mxu3  ;;  %3159 = vmatmul.bf16.gmra.mxu0 %v4034_v19  ;;  %v2898_v18 = vadd.f32 %v2897_v49, %v2855_v43  ;;  %v5555_v19 = vld [vmem:[%s7627_s1 + $0x3d0] sm:$0xff] }
 0x136   :  { %v2856_v53 = vpop.f32.mrf.mxu1  ;;  %v5539_v43 = vld [vmem:[%s7627_s1 + $0x350] sm:$0xff]  ;;  %3280 = vmatpush.bf16.msra.mxu3 %v5555_v19 }
 0x137   :  { %v2941_v7 = vadd.f32 %v2940_v48, %v2898_v18  ;;  %v2857_v54 = vadd.f32 %v2856_v53, %v6297_v16  ;;  %v4119_v16 = vld [vmem:[%s7628_s0 + $0x214] sm:$0xf0]  ;;  %3194 = vmatpush.bf16.msra.mxu1 %v5539_v43  ;;  %v4226_v53 = vor.u32 %v5375_v41, %v4225_v38 }
 0x138   :  { %v4122_v13 = vor.u32 %v5337_v62, %v4119_v16  ;;  %v5563_v16 = vld [vmem:[%s7627_s1 + $0x410] sm:$0xff] }
 0x139   :  { %v6565_v63 = vadd.f32 %v2983_v45, %v2941_v7  ;;  %v4230_v45 = vor.u32 %v5363_v35, %v4227_v36  ;;  %3323 = vmatpush.bf16.msra.mxu0 %v5563_v16  ;;  %v5562_v35 = vld [vmem:[%s7627_s1 + $0x408] sm:$0xff] }
 0x13a   :  { %v2985_v55 = vpop.f32.mrf.mxu0  ;;  %3281 = vmatpush.bf16.msra.mxu3 %v5554_v6  ;;  %v5561_v6 = vld [vmem:[%s7627_s1 + $0x400] sm:$0xff] }
 0x13c   :  { %v2899_v32 = vpop.f32.mrf.mxu2 }
 0x13d   :  { %v2942_v1 = vpop.f32.mrf.mxu3  ;;  %v2900_v10 = vadd.f32 %v2899_v32, %v2857_v54  ;;  %v4234_v54 = vor.u32 %v5376_v47, %v4233_v46  ;;  %v4327_v32 = vld [vmem:[%s7628_s0 + $0x3ac] sm:$0xf0]  ;;  %3324 = vmatpush.bf16.msra.mxu0 %v5562_v35  ;;  %v5537_v46 = vld [vmem:[%s7627_s1 + $0x340] sm:$0xff]  ;;  %v5413_v47 = vld [vmem:[%s7628_s0 + $0x414] sm:$0xf] }
 0x13e   :  { %v2859_v57 = vpop.f32.mrf.mxu1 }
 0x13f   :  { %v2943_v22 = vadd.f32 %v2942_v1, %v2900_v10  ;;  %v2860_v23 = vadd.f32 %v2859_v57, %v6321_v33  ;;  %v4319_v10 = vld [vmem:[%s7628_s0 + $0x3a4] sm:$0xf0] }
 0x140   :  { %v4325_v57 = vld [vmem:[%s7628_s0 + $0x348] sm:$0xf] }
 0x141   :  { %3035 = vmatmul.bf16.gmra.mxu1 %v4122_v13  ;;  %3078 = vmatmul.bf16.gmra.mxu2 %v4126_v15  ;;  %v6586_v26 = vadd.f32 %v2985_v55, %v2943_v22  ;;  %v5538_v22 = vld [vmem:[%s7627_s1 + $0x348] sm:$0xff] }
 0x142   :  { %3121 = vmatmul.bf16.gmra.mxu3 %v4130_v5  ;;  %v2988_v24 = vpop.f32.mrf.mxu0  ;;  %v5546_v5 = vld [vmem:[%s7627_s1 + $0x388] sm:$0xff]  ;;  %3195 = vmatpush.bf16.msra.mxu1 %v5538_v22 }
 0x143   :  { %3238 = vmatpush.bf16.msra.mxu2 %v5546_v5  ;;  %3325 = vmatpush.bf16.msra.mxu0 %v5561_v6 }
 0x144   :  { %v2902_v59 = vpop.f32.mrf.mxu2 }
 0x145   :  { %v2945_v27 = vpop.f32.mrf.mxu3  ;;  %3164 = vmatmul.bf16.gmra.mxu0 %v4134_v21  ;;  %v2903_v33 = vadd.f32 %v2902_v59, %v2860_v23  ;;  %v5400_v21 = vld [vmem:[%s7628_s0 + $0x3a8] sm:$0xf0]  ;;  %v4330_v23 = vor.u32 %v5388_v9, %v4327_v32 }
 0x146   :  { %v2861_v30 = vpop.f32.mrf.mxu1  ;;  %3196 = vmatpush.bf16.msra.mxu1 %v5537_v46  ;;  %v5591_v46 = vld [vmem:[%s7627_s1 + $0x4f0] sm:$0xff] }
 0x147   :  { %v2946_v31 = vadd.f32 %v2945_v27, %v2903_v33  ;;  %v2862_v44 = vadd.f32 %v2861_v30, %v6339_v51  ;;  %v4219_v51 = vld [vmem:[%s7628_s0 + $0x2dc] sm:$0xf0]  ;;  %v4326_v33 = vor.u32 %v5400_v21, %v4325_v57 }
 0x148   :  { %v4222_v18 = vor.u32 %v5362_v8, %v4219_v51  ;;  %v5545_v51 = vld [vmem:[%s7627_s1 + $0x380] sm:$0xff] }
 0x149   :  { %v6610_v39 = vadd.f32 %v2988_v24, %v2946_v31  ;;  %v4333_v24 = vld [vmem:[%s7628_s0 + $0x350] sm:$0xf]  ;;  %3239 = vmatpush.bf16.msra.mxu2 %v5545_v51 }
 0x14a   :  { %v2990_v11 = vpop.f32.mrf.mxu0  ;;  %v4334_v31 = vor.u32 %v5401_v25, %v4333_v24 }
 0x14c   :  { %v2904_v48 = vpop.f32.mrf.mxu2 }
 0x14d   :  { %v2947_v40 = vpop.f32.mrf.mxu3  ;;  %v2905_v49 = vadd.f32 %v2904_v48, %v2862_v44  ;;  %v4427_v48 = vld [vmem:[%s7628_s0 + $0x474] sm:$0xf0] }
 0x14e   :  { %v2864_v7 = vpop.f32.mrf.mxu1 }
 0x14f   :  { %v2948_v55 = vadd.f32 %v2947_v40, %v2905_v49  ;;  %v2865_v56 = vadd.f32 %v2864_v7, %v6363_v4  ;;  %v4425_v7 = vld [vmem:[%s7628_s0 + $0x410] sm:$0xf] }
 0x151   :  { %3040 = vmatmul.bf16.gmra.mxu1 %v4222_v18  ;;  %3083 = vmatmul.bf16.gmra.mxu2 %v4226_v53  ;;  %v6628_v61 = vadd.f32 %v2990_v11, %v2948_v55  ;;  %v4419_v53 = vld [vmem:[%s7628_s0 + $0x46c] sm:$0xf0]  ;;  %v4430_v55 = vor.u32 %v5413_v47, %v4427_v48 }
 0x152   :  { %3126 = vmatmul.bf16.gmra.mxu3 %v4230_v45  ;;  %v2993_v60 = vpop.f32.mrf.mxu0  ;;  %v5553_v45 = vld [vmem:[%s7627_s1 + $0x3c0] sm:$0xff] }
 0x153   :  { %3282 = vmatpush.bf16.msra.mxu3 %v5553_v45 }
 0x154   :  { %v2907_v52 = vpop.f32.mrf.mxu2 }
 0x155   :  { %v2950_v62 = vpop.f32.mrf.mxu3  ;;  %3169 = vmatmul.bf16.gmra.mxu0 %v4234_v54  ;;  %v2908_v1 = vadd.f32 %v2907_v52, %v2865_v56  ;;  %v5425_v54 = vld [vmem:[%s7628_s0 + $0x470] sm:$0xf0]  ;;  %v4433_v56 = vld [vmem:[%s7628_s0 + $0x418] sm:$0xf] }
 0x156   :  { %v2866_v2 = vpop.f32.mrf.mxu1 }
 0x157   :  { %v2951_v58 = vadd.f32 %v2950_v62, %v2908_v1  ;;  %v2867_v3 = vadd.f32 %v2866_v2, %v6384_v29  ;;  %v5387_v29 = vld [vmem:[%s7628_s0 + $0x344] sm:$0xf]  ;;  %v4426_v1 = vor.u32 %v5425_v54, %v4425_v7  ;;  %v5290_v54 = vld [vmem:[%s7628_s0 + $0x3c] sm:$0xf] }
 0x158   :  { %v4322_v59 = vor.u32 %v5387_v29, %v4319_v10  ;;  %v5584_v29 = vld [vmem:[%s7627_s1 + $0x4b8] sm:$0xff] }
 0x159   :  { %v6652_v13 = vadd.f32 %v2993_v60, %v2951_v58  ;;  %v5426_v60 = vld [vmem:[%s7628_s0 + $0x478] sm:$0xf0]  ;;  %3404 = vmatpush.bf16.msrb.mxu2 %v5584_v29 }
 0x15a   :  { %v2995_v4 = vpop.f32.mrf.mxu0  ;;  %v4434_v58 = vor.u32 %v5426_v60, %v4433_v56  ;;  %v5289_v56 = vld [vmem:[%s7628_s0 + $0x34] sm:$0xf]  ;;  %v3935_v60 = vld [vmem:[%s7628_s0 + $0x94] sm:$0xf0] }
 0x15b   :  { %v3938_v6 = vor.u32 %v5289_v56, %v3935_v60 }
 0x15c   :  { %v2909_v27 = vpop.f32.mrf.mxu2 }
 0x15d   :  { %v2952_v15 = vpop.f32.mrf.mxu3  ;;  %v2910_v28 = vadd.f32 %v2909_v27, %v2867_v3  ;;  %v6730_v27 = vld [vmem:[%s7628_s0 + $0x4e0] sm:$0x11] }
 0x15e   :  { %v2869_v30 = vpop.f32.mrf.mxu1 }
 0x15f   :  { %v2953_v44 = vadd.f32 %v2952_v15, %v2910_v28  ;;  %v2870_v11 = vadd.f32 %v2869_v30, %v6405_v42  ;;  %v178_v15 = vld [vmem:[%s7628_s0 + $0x4d8] sm:$0x11] }
 0x160   :  { %v1066_v25 = vunpack.c.h.b16 %v178_v15  ;;  %v5576_v28 = vld [vmem:[%s7627_s1 + $0x478] sm:$0xff] }
 0x161   :  { %3045 = vmatmul.bf16.gmra.mxu1 %v4322_v59  ;;  %3088 = vmatmul.bf16.gmra.mxu2 %v4326_v33  ;;  %v6673_v36 = vadd.f32 %v2995_v4, %v2953_v44  ;;  %v1064_v59 = vunpack.c.h.b16 %v6440_v17  ;;  %v1065_v33 = vunpack.c.l.b16 %v178_v15  ;;  %v5600_v44 = vld [vmem:[%s7627_s1 + $0x538] sm:$0xff] }
 0x162   :  { %3131 = vmatmul.bf16.gmra.mxu3 %v4330_v23  ;;  %v2998_v34 = vpop.f32.mrf.mxu0  ;;  %3361 = vmatpush.bf16.msrb.mxu1 %v5576_v28 }
 0x163   :  { %3490 = vmatpush.bf16.msrb.mxu0 %v5600_v44  ;;  %v1240_v51 = vpack.c.b16 %v1065_v33, %v1065_v33  ;;  %v5315_v44 = vld [vmem:[%s7628_s0 + $0x104] sm:$0xf] }
 0x164   :  { %v2912_v38 = vpop.f32.mrf.mxu2 }
 0x165   :  { %v2955_v8 = vpop.f32.mrf.mxu3  ;;  %3174 = vmatmul.bf16.gmra.mxu0 %v4334_v31  ;;  %v2913_v42 = vadd.f32 %v2912_v38, %v2870_v11  ;;  %v1241_v11 = vpack.c.b16 %v1066_v25, %v1066_v25 }
 0x166   :  { %v2871_v40 = vpop.f32.mrf.mxu1 }
 0x167   :  { %v2956_v41 = vadd.f32 %v2955_v8, %v2913_v42  ;;  %v2872_v19 = vadd.f32 %v2871_v40, %v6425_v0  ;;  %v5412_v0 = vld [vmem:[%s7628_s0 + $0x40c] sm:$0xf]  ;;  %v1239_v8 = vpack.c.b16 %v1064_v59, %v1064_v59 }
 0x168   :  { %v4422_v52 = vor.u32 %v5412_v0, %v4419_v53 }
 0x169   :  { %v6694_v49 = vadd.f32 %v2998_v34, %v2956_v41 }
 0x16a   :  { %v3000_v43 = vpop.f32.mrf.mxu0 }
 0x16c   :  { %v2914_v62 = vpop.f32.mrf.mxu2 }
 0x16d   :  { %v2957_v18 = vpop.f32.mrf.mxu3  ;;  %v2915_v16 = vadd.f32 %v2914_v62, %v2872_v19  ;;  %v5583_v19 = vld [vmem:[%s7627_s1 + $0x4b0] sm:$0xff] }
 0x16e   :  { %v2874_v2 = vpop.f32.mrf.mxu1  ;;  %3405 = vmatpush.bf16.msrb.mxu2 %v5583_v19  ;;  %v5328_v19 = vld [vmem:[%s7628_s0 + $0x168] sm:$0xf0] }
 0x16f   :  { %v2958_v3 = vadd.f32 %v2957_v18, %v2915_v16  ;;  %v2875_v4 = vadd.f32 %v2874_v2, %v6446_v14  ;;  %v5592_v14 = vld [vmem:[%s7627_s1 + $0x4f8] sm:$0xff] }
 0x170   :  { %3447 = vmatpush.bf16.msrb.mxu3 %v5592_v14  ;;  %v3941_v16 = vld [vmem:[%s7628_s0 + $0x38] sm:$0xf] }
 0x171   :  { %3050 = vmatmul.bf16.gmra.mxu1 %v4422_v52  ;;  %3093 = vmatmul.bf16.gmra.mxu2 %v4426_v1  ;;  %v6715_v9 = vadd.f32 %v3000_v43, %v2958_v3  ;;  %v5302_v52 = vld [vmem:[%s7628_s0 + $0x98] sm:$0xf0]  ;;  %v5599_v1 = vld [vmem:[%s7627_s1 + $0x530] sm:$0xff]  ;;  %v5303_v3 = vld [vmem:[%s7628_s0 + $0xa0] sm:$0xf0] }
 0x172   :  { %3136 = vmatmul.bf16.gmra.mxu3 %v4430_v55  ;;  %v3003_v5 = vpop.f32.mrf.mxu0  ;;  %v3943_v55 = vld [vmem:[%s7628_s0 + $0x9c] sm:$0xf0]  ;;  %3491 = vmatpush.bf16.msrb.mxu0 %v5599_v1  ;;  %v5340_v1 = vld [vmem:[%s7628_s0 + $0x1cc] sm:$0xf] }
 0x173   :  { %v3946_v2 = vor.u32 %v5290_v54, %v3943_v55 }
 0x174   :  { %v2917_v10 = vpop.f32.mrf.mxu2  ;;  %3448 = vmatpush.bf16.msrb.mxu3 %v5591_v46 }
 0x175   :  { %v2960_v32 = vpop.f32.mrf.mxu3  ;;  %3179 = vmatmul.bf16.gmra.mxu0 %v4434_v58  ;;  %v2918_v57 = vadd.f32 %v2917_v10, %v2875_v4  ;;  %v3949_v58 = vld [vmem:[%s7628_s0 + $0x40] sm:$0xf] }
 0x176   :  { %v2876_v21 = vpop.f32.mrf.mxu1  ;;  %v3950_v14 = vor.u32 %v5303_v3, %v3949_v58  ;;  %v5339_v58 = vld [vmem:[%s7628_s0 + $0x1c4] sm:$0xf]  ;;  %v4141_v3 = vld [vmem:[%s7628_s0 + $0x1c8] sm:$0xf] }
 0x177   :  { %v2961_v22 = vadd.f32 %v2960_v32, %v2918_v57  ;;  %v2877_v23 = vadd.f32 %v2876_v21, %v6456_v37  ;;  %v1067_v37 = vunpack.c.l.b16 %v6730_v27  ;;  %v3942_v32 = vor.u32 %v5302_v52, %v3941_v16  ;;  %v5582_v21 = vld [vmem:[%s7627_s1 + $0x4a8] sm:$0xff]  ;;  %v5597_v52 = vld [vmem:[%s7627_s1 + $0x520] sm:$0xff] }
 0x178   :  { %3406 = vmatpush.bf16.msrb.mxu2 %v5582_v21 }
 0x179   :  { %v6736_v30 = vadd.f32 %v3003_v5, %v2961_v22  ;;  %v1242_v42 = vpack.c.b16 %v1067_v37, %v1067_v37  ;;  %v5590_v22 = vld [vmem:[%s7627_s1 + $0x4e8] sm:$0xff] }
 0x17a   :  { %v3005_v24 = vpop.f32.mrf.mxu0  ;;  %3449 = vmatpush.bf16.msrb.mxu3 %v5590_v22  ;;  %v5598_v37 = vld [vmem:[%s7627_s1 + $0x528] sm:$0xff] }
 0x17b   :  { %3492 = vmatpush.bf16.msrb.mxu0 %v5598_v37 }
 0x17c   :  { %v2919_v34 = vpop.f32.mrf.mxu2 }
 0x17d   :  { %v2962_v31 = vpop.f32.mrf.mxu3  ;;  %v2920_v35 = vadd.f32 %v2919_v34, %v2877_v23  ;;  %v5314_v34 = vld [vmem:[%s7628_s0 + $0xfc] sm:$0xf] }
 0x17e   :  { %v2879_v38 = vpop.f32.mrf.mxu1 }
 0x17f   :  { %v2963_v17 = vadd.f32 %v2962_v31, %v2920_v35  ;;  %v2880_v40 = vadd.f32 %v2879_v38, %v6477_v50  ;;  %v5575_v50 = vld [vmem:[%s7627_s1 + $0x470] sm:$0xff]  ;;  %v4035_v35 = vld [vmem:[%s7628_s0 + $0x15c] sm:$0xf0]  ;;  %3493 = vmatpush.bf16.msrb.mxu0 %v5597_v52 }
 0x180   :  { %3362 = vmatpush.bf16.msrb.mxu1 %v5575_v50  ;;  %v4041_v38 = vld [vmem:[%s7628_s0 + $0x100] sm:$0xf]  ;;  %v4038_v46 = vor.u32 %v5314_v34, %v4035_v35 }
 0x181   :  { %3055 = vmatmul.bf16.gmra.mxu1 %v1239_v8  ;;  %3098 = vmatmul.bf16.gmra.mxu2 %v1240_v51  ;;  %v6746_v43 = vadd.f32 %v3005_v24, %v2963_v17  ;;  %v5581_v17 = vld [vmem:[%s7627_s1 + $0x4a0] sm:$0xff] }
 0x182   :  { %3141 = vmatmul.bf16.gmra.mxu3 %v1241_v11  ;;  %v3008_v41 = vpop.f32.mrf.mxu0  ;;  %v4043_v11 = vld [vmem:[%s7628_s0 + $0x164] sm:$0xf0]  ;;  %3407 = vmatpush.bf16.msrb.mxu2 %v5581_v17  ;;  %v5579_v17 = vld [vmem:[%s7627_s1 + $0x490] sm:$0xff] }
 0x184   :  { %v2922_v47 = vpop.f32.mrf.mxu2 }
 0x185   :  { %v2965_v45 = vpop.f32.mrf.mxu3  ;;  %3184 = vmatmul.bf16.gmra.mxu0 %v1242_v42  ;;  %v2923_v48 = vadd.f32 %v2922_v47, %v2880_v40  ;;  %v5327_v42 = vld [vmem:[%s7628_s0 + $0x160] sm:$0xf0]  ;;  %v4046_v40 = vor.u32 %v5315_v44, %v4043_v11  ;;  %v5596_v11 = vld [vmem:[%s7627_s1 + $0x518] sm:$0xff] }
 0x186   :  { %v2881_v0 = vpop.f32.mrf.mxu1  ;;  %v4042_v50 = vor.u32 %v5327_v42, %v4041_v38  ;;  %3494 = vmatpush.bf16.msrb.mxu0 %v5596_v11 }
 0x187   :  { %v2966_v18 = vadd.f32 %v2965_v45, %v2923_v48  ;;  %v2882_v53 = vadd.f32 %v2881_v0, %v6501_v12 }
 0x189   :  { %v6767_v62 = vadd.f32 %v3008_v41, %v2966_v18  ;;  %v4049_v41 = vld [vmem:[%s7628_s0 + $0x108] sm:$0xf] }
 0x18a   :  { %v3010_v7 = vpop.f32.mrf.mxu0  ;;  %v4050_v48 = vor.u32 %v5328_v19, %v4049_v41  ;;  %v4243_v41 = vld [vmem:[%s7628_s0 + $0x2f4] sm:$0xf0]  ;;  %v5364_v19 = vld [vmem:[%s7628_s0 + $0x28c] sm:$0xf] }
 0x18c   :  { %v2924_v4 = vpop.f32.mrf.mxu2 }
 0x18d   :  { %v2967_v12 = vpop.f32.mrf.mxu3  ;;  %v2925_v5 = vadd.f32 %v2924_v4, %v2882_v53  ;;  %v5589_v53 = vld [vmem:[%s7627_s1 + $0x4e0] sm:$0xff] }
 0x18e   :  { %v2884_v29 = vpop.f32.mrf.mxu1  ;;  %3450 = vmatpush.bf16.msrb.mxu3 %v5589_v53  ;;  %v4249_v53 = vld [vmem:[%s7628_s0 + $0x298] sm:$0xf] }
 0x18f   :  { %v2968_v10 = vadd.f32 %v2967_v12, %v2925_v5  ;;  %v2885_v15 = vadd.f32 %v2884_v29, %v6522_v20  ;;  %v5574_v20 = vld [vmem:[%s7627_s1 + $0x468] sm:$0xff]  ;;  %v5588_v29 = vld [vmem:[%s7627_s1 + $0x4d8] sm:$0xff] }
 0x190   :  { %3363 = vmatpush.bf16.msrb.mxu1 %v5574_v20 }
 0x191   :  { %3197 = vmatmul.bf16.vlgmr.msra.gmra.mxu1 %v3938_v6  ;;  %3240 = vmatmul.bf16.vlgmr.msra.gmra.mxu2 %v3942_v32  ;;  %v6791_v23 = vadd.f32 %v3010_v7, %v2968_v10  ;;  %v5573_v7 = vld [vmem:[%s7627_s1 + $0x460] sm:$0xff]  ;;  %v5352_v6 = vld [vmem:[%s7628_s0 + $0x228] sm:$0xf0]  ;;  %v5580_v32 = vld [vmem:[%s7627_s1 + $0x498] sm:$0xff] }
 0x192   :  { %3283 = vmatmul.bf16.vlgmr.msra.gmra.mxu3 %v3946_v2  ;;  %v3013_v57 = vpop.f32.mrf.mxu0  ;;  %v4143_v2 = vld [vmem:[%s7628_s0 + $0x22c] sm:$0xf0]  ;;  %3408 = vmatpush.bf16.msrb.mxu2 %v5580_v32 }
 0x193   :  { %v4149_v10 = vld [vmem:[%s7628_s0 + $0x1d0] sm:$0xf]  ;;  %3451 = vmatpush.bf16.msrb.mxu3 %v5588_v29 }
 0x194   :  { %v2927_v25 = vpop.f32.mrf.mxu2  ;;  %3364 = vmatpush.bf16.msrb.mxu1 %v5573_v7  ;;  %v5378_v7 = vld [vmem:[%s7628_s0 + $0x2f8] sm:$0xf0] }
 0x195   :  { %v2970_v24 = vpop.f32.mrf.mxu3  ;;  %3326 = vmatmul.bf16.vlgmr.msra.gmra.mxu0 %v3950_v14  ;;  %v2928_v28 = vadd.f32 %v2927_v25, %v2885_v15  ;;  %v4146_v14 = vor.u32 %v5340_v1, %v4143_v2  ;;  %v5353_v15 = vld [vmem:[%s7628_s0 + $0x230] sm:$0xf0] }
 0x196   :  { %v2886_v59 = vpop.f32.mrf.mxu1  ;;  %v4150_v25 = vor.u32 %v5353_v15, %v4149_v10  ;;  %3409 = vmatpush.bf16.msrb.mxu2 %v5579_v17  ;;  %v5586_v10 = vld [vmem:[%s7627_s1 + $0x4c8] sm:$0xff]  ;;  %v5390_v15 = vld [vmem:[%s7628_s0 + $0x35c] sm:$0xf] }
 0x197   :  { %v2971_v33 = vadd.f32 %v2970_v24, %v2928_v28  ;;  %v4142_v24 = vor.u32 %v5352_v6, %v4141_v3 }
 0x199   :  { %v6811_v8 = vadd.f32 %v3013_v57, %v2971_v33 }
 0x19a   :  { %v3015_v31 = vpop.f32.mrf.mxu0 }
 0x19b   :  { %v5572_v31 = vld [vmem:[%s7627_s1 + $0x458] sm:$0xff] }
 0x19c   :  { %v2929_v45 = vpop.f32.mrf.mxu2  ;;  %3365 = vmatpush.bf16.msrb.mxu1 %v5572_v31  ;;  %v5403_v31 = vld [vmem:[%s7628_s0 + $0x3c0] sm:$0xf0] }
 0x19d   :  { %v2972_v51 = vpop.f32.mrf.mxu3  ;;  %v4241_v45 = vld [vmem:[%s7628_s0 + $0x290] sm:$0xf] }
 0x19e   :  { %v3026_v47 = vpop.f32.mrf.mxu1 }
 0x19f   :  { %v3027_v0 = vadd.f32 %v3026_v47, %v6565_v63  ;;  %v5377_v47 = vld [vmem:[%s7628_s0 + $0x2f0] sm:$0xf0] }
 0x1a1   :  { %3202 = vmatmul.bf16.gmra.mxu1 %v4038_v46  ;;  %3245 = vmatmul.bf16.gmra.mxu2 %v4042_v50 }
 0x1a2   :  { %3288 = vmatmul.bf16.gmra.mxu3 %v4046_v40  ;;  %v3155_v18 = vpop.f32.mrf.mxu0  ;;  %v5365_v40 = vld [vmem:[%s7628_s0 + $0x294] sm:$0xf] }
 0x1a4   :  { %v3069_v55 = vpop.f32.mrf.mxu2 }
 0x1a5   :  { %v3112_v54 = vpop.f32.mrf.mxu3  ;;  %3331 = vmatmul.bf16.gmra.mxu0 %v4050_v48  ;;  %v3070_v56 = vadd.f32 %v3069_v55, %v3027_v0  ;;  %v5587_v48 = vld [vmem:[%s7627_s1 + $0x4d0] sm:$0xff] }
 0x1a6   :  { %v3028_v60 = vpop.f32.mrf.mxu1  ;;  %v5571_v0 = vld [vmem:[%s7627_s1 + $0x450] sm:$0xff]  ;;  %3452 = vmatpush.bf16.msrb.mxu3 %v5587_v48 }
 0x1a7   :  { %v3113_v63 = vadd.f32 %v3112_v54, %v3070_v56  ;;  %v3029_v12 = vadd.f32 %v3028_v60, %v6586_v26  ;;  %v4135_v26 = vld [vmem:[%s7628_s0 + $0x224] sm:$0xf0]  ;;  %3366 = vmatpush.bf16.msrb.mxu1 %v5571_v0  ;;  %v4242_v60 = vor.u32 %v5377_v47, %v4241_v45 }
 0x1a8   :  { %v4138_v22 = vor.u32 %v5339_v58, %v4135_v26  ;;  %v5595_v26 = vld [vmem:[%s7627_s1 + $0x510] sm:$0xff] }
 0x1a9   :  { %v6854_v4 = vadd.f32 %v3155_v18, %v3113_v63  ;;  %v4246_v18 = vor.u32 %v5365_v40, %v4243_v41  ;;  %3495 = vmatpush.bf16.msrb.mxu0 %v5595_v26  ;;  %v5594_v40 = vld [vmem:[%s7627_s1 + $0x508] sm:$0xff] }
 0x1aa   :  { %v3157_v16 = vpop.f32.mrf.mxu0  ;;  %3453 = vmatpush.bf16.msrb.mxu3 %v5586_v10  ;;  %v5593_v10 = vld [vmem:[%s7627_s1 + $0x500] sm:$0xff] }
 0x1ac   :  { %v3071_v57 = vpop.f32.mrf.mxu2 }
 0x1ad   :  { %v3114_v5 = vpop.f32.mrf.mxu3  ;;  %v3072_v21 = vadd.f32 %v3071_v57, %v3029_v12  ;;  %v4250_v12 = vor.u32 %v5378_v7, %v4249_v53  ;;  %v4343_v57 = vld [vmem:[%s7628_s0 + $0x3bc] sm:$0xf0]  ;;  %3496 = vmatpush.bf16.msrb.mxu0 %v5594_v40  ;;  %v5415_v7 = vld [vmem:[%s7628_s0 + $0x424] sm:$0xf] }
 0x1ae   :  { %v3031_v20 = vpop.f32.mrf.mxu1  ;;  %v5569_v53 = vld [vmem:[%s7627_s1 + $0x440] sm:$0xff] }
 0x1af   :  { %v3115_v28 = vadd.f32 %v3114_v5, %v3072_v21  ;;  %v3032_v59 = vadd.f32 %v3031_v20, %v6610_v39  ;;  %v4335_v21 = vld [vmem:[%s7628_s0 + $0x3b4] sm:$0xf0] }
 0x1b0   :  { %v4341_v20 = vld [vmem:[%s7628_s0 + $0x358] sm:$0xf] }
 0x1b1   :  { %3207 = vmatmul.bf16.gmra.mxu1 %v4138_v22  ;;  %3250 = vmatmul.bf16.gmra.mxu2 %v4142_v24  ;;  %v6875_v37 = vadd.f32 %v3157_v16, %v3115_v28  ;;  %v5570_v28 = vld [vmem:[%s7627_s1 + $0x448] sm:$0xff] }
 0x1b2   :  { %3293 = vmatmul.bf16.gmra.mxu3 %v4146_v14  ;;  %v3160_v33 = vpop.f32.mrf.mxu0  ;;  %v5578_v14 = vld [vmem:[%s7627_s1 + $0x488] sm:$0xff]  ;;  %3367 = vmatpush.bf16.msrb.mxu1 %v5570_v28 }
 0x1b3   :  { %3410 = vmatpush.bf16.msrb.mxu2 %v5578_v14  ;;  %3497 = vmatpush.bf16.msrb.mxu0 %v5593_v10 }
 0x1b4   :  { %v3074_v34 = vpop.f32.mrf.mxu2 }
 0x1b5   :  { %v3117_v44 = vpop.f32.mrf.mxu3  ;;  %3336 = vmatmul.bf16.gmra.mxu0 %v4150_v25  ;;  %v3075_v39 = vadd.f32 %v3074_v34, %v3032_v59  ;;  %v5402_v25 = vld [vmem:[%s7628_s0 + $0x3b8] sm:$0xf0]  ;;  %v4346_v59 = vor.u32 %v5390_v15, %v4343_v57 }
 0x1b6   :  { %v3033_v35 = vpop.f32.mrf.mxu1  ;;  %3368 = vmatpush.bf16.msrb.mxu1 %v5569_v53  ;;  %v5623_v53 = vld [vmem:[%s7627_s1 + $0x5f0] sm:$0xff] }
 0x1b7   :  { %v3118_v51 = vadd.f32 %v3117_v44, %v3075_v39  ;;  %v3034_v38 = vadd.f32 %v3033_v35, %v6628_v61  ;;  %v4235_v61 = vld [vmem:[%s7628_s0 + $0x2ec] sm:$0xf0]  ;;  %v4342_v39 = vor.u32 %v5402_v25, %v4341_v20 }
 0x1b8   :  { %v4238_v56 = vor.u32 %v5364_v19, %v4235_v61  ;;  %v5577_v61 = vld [vmem:[%s7627_s1 + $0x480] sm:$0xff] }
 0x1b9   :  { %v6899_v46 = vadd.f32 %v3160_v33, %v3118_v51  ;;  %v4349_v33 = vld [vmem:[%s7628_s0 + $0x360] sm:$0xf]  ;;  %3411 = vmatpush.bf16.msrb.mxu2 %v5577_v61 }
 0x1ba   :  { %v3162_v42 = vpop.f32.mrf.mxu0  ;;  %v4350_v51 = vor.u32 %v5403_v31, %v4349_v33 }
 0x1bc   :  { %v3076_v54 = vpop.f32.mrf.mxu2 }
 0x1bd   :  { %v3119_v50 = vpop.f32.mrf.mxu3  ;;  %v3077_v55 = vadd.f32 %v3076_v54, %v3034_v38  ;;  %v4443_v54 = vld [vmem:[%s7628_s0 + $0x484] sm:$0xf0] }
 0x1be   :  { %v3036_v63 = vpop.f32.mrf.mxu1 }
 0x1bf   :  { %v3120_v16 = vadd.f32 %v3119_v50, %v3077_v55  ;;  %v3037_v52 = vadd.f32 %v3036_v63, %v6652_v13  ;;  %v4441_v63 = vld [vmem:[%s7628_s0 + $0x420] sm:$0xf] }
 0x1c1   :  { %3212 = vmatmul.bf16.gmra.mxu1 %v4238_v56  ;;  %3255 = vmatmul.bf16.gmra.mxu2 %v4242_v60  ;;  %v6917_v2 = vadd.f32 %v3162_v42, %v3120_v16  ;;  %v4435_v60 = vld [vmem:[%s7628_s0 + $0x47c] sm:$0xf0]  ;;  %v4446_v16 = vor.u32 %v5415_v7, %v4443_v54 }
 0x1c2   :  { %3298 = vmatmul.bf16.gmra.mxu3 %v4246_v18  ;;  %v3165_v1 = vpop.f32.mrf.mxu0  ;;  %v5585_v18 = vld [vmem:[%s7627_s1 + $0x4c0] sm:$0xff] }
 0x1c3   :  { %3454 = vmatpush.bf16.msrb.mxu3 %v5585_v18 }
 0x1c4   :  { %v3079_v3 = vpop.f32.mrf.mxu2 }
 0x1c5   :  { %v3122_v58 = vpop.f32.mrf.mxu3  ;;  %3341 = vmatmul.bf16.gmra.mxu0 %v4250_v12  ;;  %v3080_v5 = vadd.f32 %v3079_v3, %v3037_v52  ;;  %v5427_v12 = vld [vmem:[%s7628_s0 + $0x480] sm:$0xf0]  ;;  %v4449_v52 = vld [vmem:[%s7628_s0 + $0x428] sm:$0xf] }
 0x1c6   :  { %v3038_v6 = vpop.f32.mrf.mxu1 }
 0x1c7   :  { %v3123_v32 = vadd.f32 %v3122_v58, %v3080_v5  ;;  %v3039_v29 = vadd.f32 %v3038_v6, %v6673_v36  ;;  %v5389_v36 = vld [vmem:[%s7628_s0 + $0x354] sm:$0xf]  ;;  %v4442_v5 = vor.u32 %v5427_v12, %v4441_v63  ;;  %v5292_v12 = vld [vmem:[%s7628_s0 + $0x4c] sm:$0xf] }
 0x1c8   :  { %v4338_v34 = vor.u32 %v5389_v36, %v4335_v21  ;;  %v5616_v36 = vld [vmem:[%s7627_s1 + $0x5b8] sm:$0xff] }
 0x1c9   :  { %v6941_v22 = vadd.f32 %v3165_v1, %v3123_v32  ;;  %v5428_v1 = vld [vmem:[%s7628_s0 + $0x488] sm:$0xf0]  ;;  %3576 = vmatpush.bf16.msra.mxu2 %v5616_v36 }
 0x1ca   :  { %v3167_v13 = vpop.f32.mrf.mxu0  ;;  %v4450_v32 = vor.u32 %v5428_v1, %v4449_v52  ;;  %v5291_v52 = vld [vmem:[%s7628_s0 + $0x44] sm:$0xf]  ;;  %v3951_v1 = vld [vmem:[%s7628_s0 + $0xa4] sm:$0xf0] }
 0x1cb   :  { %v3954_v10 = vor.u32 %v5291_v52, %v3951_v1 }
 0x1cc   :  { %v3081_v44 = vpop.f32.mrf.mxu2 }
 0x1cd   :  { %v3124_v24 = vpop.f32.mrf.mxu3  ;;  %v3082_v11 = vadd.f32 %v3081_v44, %v3039_v29  ;;  %v7019_v44 = vld [vmem:[%s7628_s0 + $0x4f0] sm:$0x11] }
 0x1ce   :  { %v3041_v35 = vpop.f32.mrf.mxu1 }
 0x1cf   :  { %v3125_v38 = vadd.f32 %v3124_v24, %v3082_v11  ;;  %v3042_v42 = vadd.f32 %v3041_v35, %v6694_v49  ;;  %v180_v24 = vld [vmem:[%s7628_s0 + $0x4e8] sm:$0x11]  ;;  %v5608_v11 = vld [vmem:[%s7627_s1 + $0x578] sm:$0xff] }
 0x1d0   :  { %v1070_v31 = vunpack.c.h.b16 %v180_v24  ;;  %3533 = vmatpush.bf16.msra.mxu1 %v5608_v11 }
 0x1d1   :  { %3217 = vmatmul.bf16.gmra.mxu1 %v4338_v34  ;;  %3260 = vmatmul.bf16.gmra.mxu2 %v4342_v39  ;;  %v6962_v41 = vadd.f32 %v3167_v13, %v3125_v38  ;;  %v1068_v34 = vunpack.c.h.b16 %v6730_v27  ;;  %v1069_v39 = vunpack.c.l.b16 %v180_v24  ;;  %v5632_v38 = vld [vmem:[%s7627_s1 + $0x638] sm:$0xff] }
 0x1d2   :  { %3303 = vmatmul.bf16.gmra.mxu3 %v4346_v59  ;;  %v3170_v17 = vpop.f32.mrf.mxu0  ;;  %3662 = vmatpush.bf16.msra.mxu0 %v5632_v38  ;;  %v5317_v38 = vld [vmem:[%s7628_s0 + $0x114] sm:$0xf] }
 0x1d3   :  { %v1244_v61 = vpack.c.b16 %v1069_v39, %v1069_v39 }
 0x1d4   :  { %v3084_v45 = vpop.f32.mrf.mxu2 }
 0x1d5   :  { %v3127_v19 = vpop.f32.mrf.mxu3  ;;  %3346 = vmatmul.bf16.gmra.mxu0 %v4350_v51  ;;  %v3085_v49 = vadd.f32 %v3084_v45, %v3042_v42  ;;  %v1245_v42 = vpack.c.b16 %v1070_v31, %v1070_v31 }
 0x1d6   :  { %v3043_v50 = vpop.f32.mrf.mxu1 }
 0x1d7   :  { %v3128_v47 = vadd.f32 %v3127_v19, %v3085_v49  ;;  %v3044_v48 = vadd.f32 %v3043_v50, %v6715_v9  ;;  %v5414_v9 = vld [vmem:[%s7628_s0 + $0x41c] sm:$0xf]  ;;  %v1243_v19 = vpack.c.b16 %v1068_v34, %v1068_v34 }
 0x1d8   :  { %v4438_v3 = vor.u32 %v5414_v9, %v4435_v60 }
 0x1d9   :  { %v6983_v55 = vadd.f32 %v3170_v17, %v3128_v47 }
 0x1da   :  { %v3172_v0 = vpop.f32.mrf.mxu0 }
 0x1dc   :  { %v3086_v58 = vpop.f32.mrf.mxu2 }
 0x1dd   :  { %v3129_v56 = vpop.f32.mrf.mxu3  ;;  %v3087_v26 = vadd.f32 %v3086_v58, %v3044_v48  ;;  %v5615_v48 = vld [vmem:[%s7627_s1 + $0x5b0] sm:$0xff] }
 0x1de   :  { %v3046_v6 = vpop.f32.mrf.mxu1  ;;  %3577 = vmatpush.bf16.msra.mxu2 %v5615_v48  ;;  %v5330_v48 = vld [vmem:[%s7628_s0 + $0x178] sm:$0xf0] }
 0x1df   :  { %v3130_v29 = vadd.f32 %v3129_v56, %v3087_v26  ;;  %v3047_v13 = vadd.f32 %v3046_v6, %v6736_v30  ;;  %v5624_v30 = vld [vmem:[%s7627_s1 + $0x5f8] sm:$0xff]  ;;  %v3957_v26 = vld [vmem:[%s7628_s0 + $0x48] sm:$0xf] }
 0x1e0   :  { %3619 = vmatpush.bf16.msra.mxu3 %v5624_v30 }
 0x1e1   :  { %3222 = vmatmul.bf16.gmra.mxu1 %v4438_v3  ;;  %3265 = vmatmul.bf16.gmra.mxu2 %v4442_v5  ;;  %v7004_v15 = vadd.f32 %v3172_v0, %v3130_v29  ;;  %v5304_v3 = vld [vmem:[%s7628_s0 + $0xa8] sm:$0xf0]  ;;  %v5631_v5 = vld [vmem:[%s7627_s1 + $0x630] sm:$0xff] }
 0x1e2   :  { %3308 = vmatmul.bf16.gmra.mxu3 %v4446_v16  ;;  %v3175_v14 = vpop.f32.mrf.mxu0  ;;  %v3959_v16 = vld [vmem:[%s7628_s0 + $0xac] sm:$0xf0]  ;;  %v5305_v29 = vld [vmem:[%s7628_s0 + $0xb0] sm:$0xf0]  ;;  %3663 = vmatpush.bf16.msra.mxu0 %v5631_v5  ;;  %v5342_v5 = vld [vmem:[%s7628_s0 + $0x1dc] sm:$0xf] }
 0x1e3   :  { %v3962_v6 = vor.u32 %v5292_v12, %v3959_v16 }
 0x1e4   :  { %v3089_v21 = vpop.f32.mrf.mxu2  ;;  %3620 = vmatpush.bf16.msra.mxu3 %v5623_v53 }
 0x1e5   :  { %v3132_v57 = vpop.f32.mrf.mxu3  ;;  %3351 = vmatmul.bf16.gmra.mxu0 %v4450_v32  ;;  %v3090_v20 = vadd.f32 %v3089_v21, %v3047_v13  ;;  %v3965_v32 = vld [vmem:[%s7628_s0 + $0x50] sm:$0xf] }
 0x1e6   :  { %v3048_v25 = vpop.f32.mrf.mxu1  ;;  %v3966_v30 = vor.u32 %v5305_v29, %v3965_v32  ;;  %v5341_v32 = vld [vmem:[%s7628_s0 + $0x1d4] sm:$0xf]  ;;  %v4157_v29 = vld [vmem:[%s7628_s0 + $0x1d8] sm:$0xf] }
 0x1e7   :  { %v3133_v28 = vadd.f32 %v3132_v57, %v3090_v20  ;;  %v3049_v59 = vadd.f32 %v3048_v25, %v6746_v43  ;;  %v1071_v43 = vunpack.c.l.b16 %v7019_v44  ;;  %v3958_v57 = vor.u32 %v5304_v3, %v3957_v26  ;;  %v5614_v25 = vld [vmem:[%s7627_s1 + $0x5a8] sm:$0xff]  ;;  %v5629_v3 = vld [vmem:[%s7627_s1 + $0x620] sm:$0xff] }
 0x1e8   :  { %3578 = vmatpush.bf16.msra.mxu2 %v5614_v25 }
 0x1e9   :  { %v7025_v35 = vadd.f32 %v3175_v14, %v3133_v28  ;;  %v1246_v49 = vpack.c.b16 %v1071_v43, %v1071_v43  ;;  %v5622_v28 = vld [vmem:[%s7627_s1 + $0x5e8] sm:$0xff] }
 0x1ea   :  { %v3177_v33 = vpop.f32.mrf.mxu0  ;;  %3621 = vmatpush.bf16.msra.mxu3 %v5622_v28  ;;  %v5630_v43 = vld [vmem:[%s7627_s1 + $0x628] sm:$0xff] }
 0x1eb   :  { %3664 = vmatpush.bf16.msra.mxu0 %v5630_v43 }
 0x1ec   :  { %v3091_v17 = vpop.f32.mrf.mxu2 }
 0x1ed   :  { %v3134_v51 = vpop.f32.mrf.mxu3  ;;  %v3092_v40 = vadd.f32 %v3091_v17, %v3049_v59  ;;  %v5316_v17 = vld [vmem:[%s7628_s0 + $0x10c] sm:$0xf] }
 0x1ee   :  { %v3051_v45 = vpop.f32.mrf.mxu1 }
 0x1ef   :  { %v3135_v27 = vadd.f32 %v3134_v51, %v3092_v40  ;;  %v3052_v50 = vadd.f32 %v3051_v45, %v6767_v62  ;;  %v5607_v62 = vld [vmem:[%s7627_s1 + $0x570] sm:$0xff]  ;;  %3665 = vmatpush.bf16.msra.mxu0 %v5629_v3 }
 0x1f0   :  { %3534 = vmatpush.bf16.msra.mxu1 %v5607_v62  ;;  %v4051_v40 = vld [vmem:[%s7628_s0 + $0x16c] sm:$0xf0] }
 0x1f1   :  { %3227 = vmatmul.bf16.gmra.mxu1 %v1243_v19  ;;  %3270 = vmatmul.bf16.gmra.mxu2 %v1244_v61  ;;  %v7035_v0 = vadd.f32 %v3177_v33, %v3135_v27  ;;  %v4057_v45 = vld [vmem:[%s7628_s0 + $0x110] sm:$0xf]  ;;  %v5613_v27 = vld [vmem:[%s7627_s1 + $0x5a0] sm:$0xff]  ;;  %v4054_v53 = vor.u32 %v5316_v17, %v4051_v40 }
 0x1f2   :  { %3313 = vmatmul.bf16.gmra.mxu3 %v1245_v42  ;;  %v3180_v47 = vpop.f32.mrf.mxu0  ;;  %v4059_v42 = vld [vmem:[%s7628_s0 + $0x174] sm:$0xf0]  ;;  %3579 = vmatpush.bf16.msra.mxu2 %v5613_v27  ;;  %v5611_v27 = vld [vmem:[%s7627_s1 + $0x590] sm:$0xff] }
 0x1f4   :  { %v3094_v7 = vpop.f32.mrf.mxu2 }
 0x1f5   :  { %v3137_v18 = vpop.f32.mrf.mxu3  ;;  %3356 = vmatmul.bf16.gmra.mxu0 %v1246_v49  ;;  %v3095_v54 = vadd.f32 %v3094_v7, %v3052_v50  ;;  %v5329_v49 = vld [vmem:[%s7628_s0 + $0x170] sm:$0xf0]  ;;  %v4062_v50 = vor.u32 %v5317_v38, %v4059_v42  ;;  %v5628_v42 = vld [vmem:[%s7627_s1 + $0x618] sm:$0xff] }
 0x1f6   :  { %v3053_v9 = vpop.f32.mrf.mxu1  ;;  %v4058_v62 = vor.u32 %v5329_v49, %v4057_v45  ;;  %3666 = vmatpush.bf16.msra.mxu0 %v5628_v42 }
 0x1f7   :  { %v3138_v56 = vadd.f32 %v3137_v18, %v3095_v54  ;;  %v3054_v60 = vadd.f32 %v3053_v9, %v6791_v23 }
 0x1f9   :  { %v7056_v58 = vadd.f32 %v3180_v47, %v3138_v56  ;;  %v4065_v47 = vld [vmem:[%s7628_s0 + $0x118] sm:$0xf] }
 0x1fa   :  { %v3182_v63 = vpop.f32.mrf.mxu0  ;;  %v4066_v54 = vor.u32 %v5330_v48, %v4065_v47  ;;  %v4259_v47 = vld [vmem:[%s7628_s0 + $0x304] sm:$0xf0]  ;;  %v5366_v48 = vld [vmem:[%s7628_s0 + $0x29c] sm:$0xf] }
 0x1fc   :  { %v3096_v13 = vpop.f32.mrf.mxu2 }
 0x1fd   :  { %v3139_v23 = vpop.f32.mrf.mxu3  ;;  %v3097_v14 = vadd.f32 %v3096_v13, %v3054_v60  ;;  %v5621_v60 = vld [vmem:[%s7627_s1 + $0x5e0] sm:$0xff] }
 0x1fe   :  { %v3056_v36 = vpop.f32.mrf.mxu1  ;;  %3622 = vmatpush.bf16.msra.mxu3 %v5621_v60  ;;  %v4265_v60 = vld [vmem:[%s7628_s0 + $0x2a8] sm:$0xf] }
 0x1ff   :  { %v3140_v21 = vadd.f32 %v3139_v23, %v3097_v14  ;;  %v3057_v24 = vadd.f32 %v3056_v36, %v6811_v8  ;;  %v5606_v8 = vld [vmem:[%s7627_s1 + $0x568] sm:$0xff]  ;;  %v5620_v36 = vld [vmem:[%s7627_s1 + $0x5d8] sm:$0xff] }
 0x200   :  { %3535 = vmatpush.bf16.msra.mxu1 %v5606_v8 }
 0x201   :  { %3369 = vmatmul.bf16.vlgmr.msrb.gmra.mxu1 %v3954_v10  ;;  %3412 = vmatmul.bf16.vlgmr.msrb.gmra.mxu2 %v3958_v57  ;;  %v7080_v59 = vadd.f32 %v3182_v63, %v3140_v21  ;;  %v5605_v63 = vld [vmem:[%s7627_s1 + $0x560] sm:$0xff]  ;;  %v5354_v10 = vld [vmem:[%s7628_s0 + $0x238] sm:$0xf0] }
 0x202   :  { %3455 = vmatmul.bf16.vlgmr.msrb.gmra.mxu3 %v3962_v6  ;;  %v3185_v20 = vpop.f32.mrf.mxu0  ;;  %v4159_v6 = vld [vmem:[%s7628_s0 + $0x23c] sm:$0xf0]  ;;  %v5612_v57 = vld [vmem:[%s7627_s1 + $0x598] sm:$0xff] }
 0x203   :  { %v4165_v21 = vld [vmem:[%s7628_s0 + $0x1e0] sm:$0xf]  ;;  %3580 = vmatpush.bf16.msra.mxu2 %v5612_v57  ;;  %3623 = vmatpush.bf16.msra.mxu3 %v5620_v36 }
 0x204   :  { %v3099_v31 = vpop.f32.mrf.mxu2  ;;  %3536 = vmatpush.bf16.msra.mxu1 %v5605_v63  ;;  %v5380_v63 = vld [vmem:[%s7628_s0 + $0x308] sm:$0xf0] }
 0x205   :  { %v3142_v33 = vpop.f32.mrf.mxu3  ;;  %3498 = vmatmul.bf16.vlgmr.msrb.gmra.mxu0 %v3966_v30  ;;  %v3100_v11 = vadd.f32 %v3099_v31, %v3057_v24  ;;  %v4162_v30 = vor.u32 %v5342_v5, %v4159_v6  ;;  %v5355_v24 = vld [vmem:[%s7628_s0 + $0x240] sm:$0xf0] }
 0x206   :  { %v3058_v34 = vpop.f32.mrf.mxu1  ;;  %v4166_v31 = vor.u32 %v5355_v24, %v4165_v21  ;;  %v5618_v21 = vld [vmem:[%s7627_s1 + $0x5c8] sm:$0xff] }
 0x207   :  { %v3143_v39 = vadd.f32 %v3142_v33, %v3100_v11  ;;  %v4158_v33 = vor.u32 %v5354_v10, %v4157_v29  ;;  %3581 = vmatpush.bf16.msra.mxu2 %v5611_v27  ;;  %v5392_v24 = vld [vmem:[%s7628_s0 + $0x36c] sm:$0xf] }
 0x209   :  { %v7100_v19 = vadd.f32 %v3185_v20, %v3143_v39 }
 0x20a   :  { %v3187_v51 = vpop.f32.mrf.mxu0 }
 0x20b   :  { %v5604_v51 = vld [vmem:[%s7627_s1 + $0x558] sm:$0xff] }
 0x20c   :  { %v3101_v18 = vpop.f32.mrf.mxu2  ;;  %3537 = vmatpush.bf16.msra.mxu1 %v5604_v51  ;;  %v5405_v51 = vld [vmem:[%s7628_s0 + $0x3d0] sm:$0xf0] }
 0x20d   :  { %v3144_v61 = vpop.f32.mrf.mxu3  ;;  %v4257_v18 = vld [vmem:[%s7628_s0 + $0x2a0] sm:$0xf] }
 0x20e   :  { %v3198_v7 = vpop.f32.mrf.mxu1 }
 0x20f   :  { %v3199_v9 = vadd.f32 %v3198_v7, %v6854_v4  ;;  %v5379_v7 = vld [vmem:[%s7628_s0 + $0x300] sm:$0xf0] }
 0x211   :  { %3374 = vmatmul.bf16.gmra.mxu1 %v4054_v53  ;;  %3417 = vmatmul.bf16.gmra.mxu2 %v4058_v62 }
 0x212   :  { %3460 = vmatmul.bf16.gmra.mxu3 %v4062_v50  ;;  %v3327_v56 = vpop.f32.mrf.mxu0  ;;  %v5367_v50 = vld [vmem:[%s7628_s0 + $0x2a4] sm:$0xf] }
 0x214   :  { %v3241_v16 = vpop.f32.mrf.mxu2 }
 0x215   :  { %v3284_v12 = vpop.f32.mrf.mxu3  ;;  %3503 = vmatmul.bf16.gmra.mxu0 %v4066_v54  ;;  %v3242_v52 = vadd.f32 %v3241_v16, %v3199_v9  ;;  %v5619_v54 = vld [vmem:[%s7627_s1 + $0x5d0] sm:$0xff] }
 0x216   :  { %v3200_v1 = vpop.f32.mrf.mxu1  ;;  %v5603_v9 = vld [vmem:[%s7627_s1 + $0x550] sm:$0xff]  ;;  %3624 = vmatpush.bf16.msra.mxu3 %v5619_v54 }
 0x217   :  { %v3285_v4 = vadd.f32 %v3284_v12, %v3242_v52  ;;  %v3201_v23 = vadd.f32 %v3200_v1, %v6875_v37  ;;  %v4151_v37 = vld [vmem:[%s7628_s0 + $0x234] sm:$0xf0]  ;;  %3538 = vmatpush.bf16.msra.mxu1 %v5603_v9  ;;  %v4258_v1 = vor.u32 %v5379_v7, %v4257_v18 }
 0x218   :  { %v4154_v28 = vor.u32 %v5341_v32, %v4151_v37  ;;  %v5627_v37 = vld [vmem:[%s7627_s1 + $0x610] sm:$0xff] }
 0x219   :  { %v7143_v13 = vadd.f32 %v3327_v56, %v3285_v4  ;;  %v4262_v56 = vor.u32 %v5367_v50, %v4259_v47  ;;  %3667 = vmatpush.bf16.msra.mxu0 %v5627_v37  ;;  %v5626_v50 = vld [vmem:[%s7627_s1 + $0x608] sm:$0xff] }
 0x21a   :  { %v3329_v26 = vpop.f32.mrf.mxu0  ;;  %3625 = vmatpush.bf16.msra.mxu3 %v5618_v21  ;;  %v5625_v21 = vld [vmem:[%s7627_s1 + $0x600] sm:$0xff] }
 0x21c   :  { %v3243_v20 = vpop.f32.mrf.mxu2 }
 0x21d   :  { %v3286_v14 = vpop.f32.mrf.mxu3  ;;  %v3244_v25 = vadd.f32 %v3243_v20, %v3201_v23  ;;  %v4266_v23 = vor.u32 %v5380_v63, %v4265_v60  ;;  %v4359_v20 = vld [vmem:[%s7628_s0 + $0x3cc] sm:$0xf0]  ;;  %3668 = vmatpush.bf16.msra.mxu0 %v5626_v50  ;;  %v5601_v60 = vld [vmem:[%s7627_s1 + $0x540] sm:$0xff]  ;;  %v5417_v63 = vld [vmem:[%s7628_s0 + $0x434] sm:$0xf] }
 0x21e   :  { %v3203_v8 = vpop.f32.mrf.mxu1 }
 0x21f   :  { %v3287_v11 = vadd.f32 %v3286_v14, %v3244_v25  ;;  %v3204_v34 = vadd.f32 %v3203_v8, %v6899_v46  ;;  %v4351_v25 = vld [vmem:[%s7628_s0 + $0x3c4] sm:$0xf0] }
 0x220   :  { %v4357_v8 = vld [vmem:[%s7628_s0 + $0x368] sm:$0xf] }
 0x221   :  { %3379 = vmatmul.bf16.gmra.mxu1 %v4154_v28  ;;  %3422 = vmatmul.bf16.gmra.mxu2 %v4158_v33  ;;  %v7164_v43 = vadd.f32 %v3329_v26, %v3287_v11  ;;  %v5602_v11 = vld [vmem:[%s7627_s1 + $0x548] sm:$0xff] }
 0x222   :  { %3465 = vmatmul.bf16.gmra.mxu3 %v4162_v30  ;;  %v3332_v39 = vpop.f32.mrf.mxu0  ;;  %v5610_v30 = vld [vmem:[%s7627_s1 + $0x588] sm:$0xff]  ;;  %3539 = vmatpush.bf16.msra.mxu1 %v5602_v11 }
 0x223   :  { %3582 = vmatpush.bf16.msra.mxu2 %v5610_v30  ;;  %3669 = vmatpush.bf16.msra.mxu0 %v5625_v21 }
 0x224   :  { %v3246_v17 = vpop.f32.mrf.mxu2 }
 0x225   :  { %v3289_v38 = vpop.f32.mrf.mxu3  ;;  %3508 = vmatmul.bf16.gmra.mxu0 %v4166_v31  ;;  %v3247_v46 = vadd.f32 %v3246_v17, %v3204_v34  ;;  %v5404_v31 = vld [vmem:[%s7628_s0 + $0x3c8] sm:$0xf0]  ;;  %v4362_v34 = vor.u32 %v5392_v24, %v4359_v20 }
 0x226   :  { %v3205_v40 = vpop.f32.mrf.mxu1  ;;  %3540 = vmatpush.bf16.msra.mxu1 %v5601_v60 }
 0x227   :  { %v3290_v61 = vadd.f32 %v3289_v38, %v3247_v46  ;;  %v3206_v45 = vadd.f32 %v3205_v40, %v6917_v2  ;;  %v4251_v2 = vld [vmem:[%s7628_s0 + $0x2fc] sm:$0xf0]  ;;  %v4358_v46 = vor.u32 %v5404_v31, %v4357_v8 }
 0x228   :  { %v4254_v52 = vor.u32 %v5366_v48, %v4251_v2  ;;  %v5609_v2 = vld [vmem:[%s7627_s1 + $0x580] sm:$0xff] }
 0x229   :  { %v7188_v53 = vadd.f32 %v3332_v39, %v3290_v61  ;;  %v4365_v39 = vld [vmem:[%s7628_s0 + $0x370] sm:$0xf]  ;;  %3583 = vmatpush.bf16.msra.mxu2 %v5609_v2 }
 0x22a   :  { %v3334_v49 = vpop.f32.mrf.mxu0  ;;  %v4366_v61 = vor.u32 %v5405_v51, %v4365_v39  ;;  %v7302_v39 = vld [vmem:[%s7628_s0 + $0x500] sm:$0x11]  ;;  %v1072_v51 = vunpack.c.h.b16 %v7019_v44 }
 0x22c   :  { %v3248_v12 = vpop.f32.mrf.mxu2 }
 0x22d   :  { %v3291_v62 = vpop.f32.mrf.mxu3  ;;  %v3249_v16 = vadd.f32 %v3248_v12, %v3206_v45  ;;  %v4459_v12 = vld [vmem:[%s7628_s0 + $0x494] sm:$0xf0] }
 0x22e   :  { %v3208_v4 = vpop.f32.mrf.mxu1 }
 0x22f   :  { %v3292_v26 = vadd.f32 %v3291_v62, %v3249_v16  ;;  %v3209_v3 = vadd.f32 %v3208_v4, %v6941_v22  ;;  %v4457_v4 = vld [vmem:[%s7628_s0 + $0x430] sm:$0xf] }
 0x231   :  { %3384 = vmatmul.bf16.gmra.mxu1 %v4254_v52  ;;  %3427 = vmatmul.bf16.gmra.mxu2 %v4258_v1  ;;  %v7206_v6 = vadd.f32 %v3334_v49, %v3292_v26  ;;  %v4451_v1 = vld [vmem:[%s7628_s0 + $0x48c] sm:$0xf0]  ;;  %v4462_v26 = vor.u32 %v5417_v63, %v4459_v12  ;;  %v5294_v63 = vld [vmem:[%s7628_s0 + $0x5c] sm:$0xf]  ;;  %v5293_v12 = vld [vmem:[%s7628_s0 + $0x54] sm:$0xf] }
 0x232   :  { %3470 = vmatmul.bf16.gmra.mxu3 %v4262_v56  ;;  %v3337_v5 = vpop.f32.mrf.mxu0  ;;  %v5617_v56 = vld [vmem:[%s7627_s1 + $0x5c0] sm:$0xff] }
 0x233   :  { %3626 = vmatpush.bf16.msra.mxu3 %v5617_v56 }
 0x234   :  { %v3251_v29 = vpop.f32.mrf.mxu2 }
 0x235   :  { %v3294_v32 = vpop.f32.mrf.mxu3  ;;  %3513 = vmatmul.bf16.gmra.mxu0 %v4266_v23  ;;  %v3252_v14 = vadd.f32 %v3251_v29, %v3209_v3  ;;  %v5429_v23 = vld [vmem:[%s7628_s0 + $0x490] sm:$0xf0]  ;;  %v4465_v3 = vld [vmem:[%s7628_s0 + $0x438] sm:$0xf] }
 0x236   :  { %v3210_v10 = vpop.f32.mrf.mxu1 }
 0x237   :  { %v3295_v57 = vadd.f32 %v3294_v32, %v3252_v14  ;;  %v3211_v36 = vadd.f32 %v3210_v10, %v6962_v41  ;;  %v5391_v41 = vld [vmem:[%s7628_s0 + $0x364] sm:$0xf]  ;;  %v4458_v14 = vor.u32 %v5429_v23, %v4457_v4  ;;  %v5306_v4 = vld [vmem:[%s7628_s0 + $0xb8] sm:$0xf0] }
 0x238   :  { %v4354_v17 = vor.u32 %v5391_v41, %v4351_v25  ;;  %v182_v25 = vld [vmem:[%s7628_s0 + $0x4f8] sm:$0x11] }
 0x239   :  { %v7230_v28 = vadd.f32 %v3337_v5, %v3295_v57  ;;  %v5430_v5 = vld [vmem:[%s7628_s0 + $0x498] sm:$0xf0] }
 0x23a   :  { %v3339_v22 = vpop.f32.mrf.mxu0  ;;  %v4466_v57 = vor.u32 %v5430_v5, %v4465_v3  ;;  %v5307_v3 = vld [vmem:[%s7628_s0 + $0xc0] sm:$0xf0] }
 0x23c   :  { %v3253_v38 = vpop.f32.mrf.mxu2 }
 0x23d   :  { %v3296_v33 = vpop.f32.mrf.mxu3  ;;  %v3254_v42 = vadd.f32 %v3253_v38, %v3211_v36  ;;  %v1073_v38 = vunpack.c.l.b16 %v182_v25 }
 0x23e   :  { %v3213_v40 = vpop.f32.mrf.mxu1 }
 0x23f   :  { %v3297_v45 = vadd.f32 %v3296_v33, %v3254_v42  ;;  %v3214_v49 = vadd.f32 %v3213_v40, %v6983_v55 }
 0x241   :  { %3389 = vmatmul.bf16.gmra.mxu1 %v4354_v17  ;;  %3432 = vmatmul.bf16.gmra.mxu2 %v4358_v46  ;;  %v7251_v47 = vadd.f32 %v3339_v22, %v3297_v45  ;;  %v1075_v46 = vunpack.c.l.b16 %v7302_v39 }
 0x242   :  { %3475 = vmatmul.bf16.gmra.mxu3 %v4362_v34  ;;  %v3342_v27 = vpop.f32.mrf.mxu0  ;;  %v1074_v34 = vunpack.c.h.b16 %v182_v25 }
 0x243   :  { %v1250_v50 = vpack.c.b16 %v1075_v46, %v1075_v46 }
 0x244   :  { %v3256_v18 = vpop.f32.mrf.mxu2  ;;  %v1249_v40 = vpack.c.b16 %v1074_v34, %v1074_v34 }
 0x245   :  { %v3299_v48 = vpop.f32.mrf.mxu3  ;;  %3518 = vmatmul.bf16.gmra.mxu0 %v4366_v61  ;;  %v3257_v55 = vadd.f32 %v3256_v18, %v3214_v49  ;;  %v1247_v49 = vpack.c.b16 %v1072_v51, %v1072_v51  ;;  %v4067_v51 = vld [vmem:[%s7628_s0 + $0x17c] sm:$0xf0] }
 0x246   :  { %v3215_v62 = vpop.f32.mrf.mxu1 }
 0x247   :  { %v3300_v7 = vadd.f32 %v3299_v48, %v3257_v55  ;;  %v3216_v54 = vadd.f32 %v3215_v62, %v7004_v15  ;;  %v5416_v15 = vld [vmem:[%s7628_s0 + $0x42c] sm:$0xf] }
 0x248   :  { %v4454_v29 = vor.u32 %v5416_v15, %v4451_v1  ;;  %v3973_v1 = vld [vmem:[%s7628_s0 + $0x58] sm:$0xf] }
 0x249   :  { %v7272_v16 = vadd.f32 %v3342_v27, %v3300_v7 }
 0x24a   :  { %v3344_v9 = vpop.f32.mrf.mxu0 }
 0x24c   :  { %v3258_v32 = vpop.f32.mrf.mxu2 }
 0x24d   :  { %v3301_v52 = vpop.f32.mrf.mxu3  ;;  %v3259_v37 = vadd.f32 %v3258_v32, %v3216_v54 }
 0x24e   :  { %v3218_v10 = vpop.f32.mrf.mxu1 }
 0x24f   :  { %v3302_v36 = vadd.f32 %v3301_v52, %v3259_v37  ;;  %v3219_v22 = vadd.f32 %v3218_v10, %v7025_v35 }
 0x251   :  { %3394 = vmatmul.bf16.gmra.mxu1 %v4454_v29  ;;  %3437 = vmatmul.bf16.gmra.mxu2 %v4458_v14  ;;  %v7293_v24 = vadd.f32 %v3344_v9, %v3302_v36  ;;  %v3974_v29 = vor.u32 %v5306_v4, %v3973_v1  ;;  %v4181_v4 = vld [vmem:[%s7628_s0 + $0x1f0] sm:$0xf] }
 0x252   :  { %3480 = vmatmul.bf16.gmra.mxu3 %v4462_v26  ;;  %v3347_v30 = vpop.f32.mrf.mxu0  ;;  %v3981_v26 = vld [vmem:[%s7628_s0 + $0x60] sm:$0xf] }
 0x253   :  { %v3982_v10 = vor.u32 %v5307_v3, %v3981_v26 }
 0x254   :  { %v3261_v41 = vpop.f32.mrf.mxu2 }
 0x255   :  { %v3304_v20 = vpop.f32.mrf.mxu3  ;;  %3523 = vmatmul.bf16.gmra.mxu0 %v4466_v57  ;;  %v3262_v33 = vadd.f32 %v3261_v41, %v3219_v22 }
 0x256   :  { %v3220_v35 = vpop.f32.mrf.mxu1 }
 0x257   :  { %v3305_v8 = vadd.f32 %v3304_v20, %v3262_v33  ;;  %v3221_v31 = vadd.f32 %v3220_v35, %v7035_v0  ;;  %v1248_v0 = vpack.c.b16 %v1073_v38, %v1073_v38  ;;  %v4073_v38 = vld [vmem:[%s7628_s0 + $0x120] sm:$0xf] }
 0x259   :  { %v7305_v42 = vadd.f32 %v3347_v30, %v3305_v8  ;;  %v5319_v8 = vld [vmem:[%s7628_s0 + $0x124] sm:$0xf] }
 0x25a   :  { %v3349_v11 = vpop.f32.mrf.mxu0 }
 0x25c   :  { %v3263_v61 = vpop.f32.mrf.mxu2 }
 0x25d   :  { %v3306_v17 = vpop.f32.mrf.mxu3  ;;  %v3264_v45 = vadd.f32 %v3263_v61, %v3221_v31  ;;  %v5318_v31 = vld [vmem:[%s7628_s0 + $0x11c] sm:$0xf]  ;;  %v5332_v61 = vld [vmem:[%s7628_s0 + $0x188] sm:$0xf0] }
 0x25e   :  { %v3223_v27 = vpop.f32.mrf.mxu1 }
 0x25f   :  { %v3307_v48 = vadd.f32 %v3306_v17, %v3264_v45  ;;  %v3224_v2 = vadd.f32 %v3223_v27, %v7056_v58  ;;  %v3975_v58 = vld [vmem:[%s7628_s0 + $0xbc] sm:$0xf0]  ;;  %v5331_v17 = vld [vmem:[%s7628_s0 + $0x180] sm:$0xf0] }
 0x260   :  { %v3978_v23 = vor.u32 %v5294_v63, %v3975_v58  ;;  %v5343_v63 = vld [vmem:[%s7628_s0 + $0x1e4] sm:$0xf] }
 0x261   :  { %3399 = vmatmul.bf16.gmra.mxu1 %v1247_v49  ;;  %3442 = vmatmul.bf16.gmra.mxu2 %v1248_v0  ;;  %v7309_v44 = vadd.f32 %v3349_v11, %v3307_v48  ;;  %v4070_v49 = vor.u32 %v5318_v31, %v4067_v51  ;;  %v4074_v0 = vor.u32 %v5331_v17, %v4073_v38  ;;  %v4273_v51 = vld [vmem:[%s7628_s0 + $0x2b0] sm:$0xf]  ;;  %v5381_v38 = vld [vmem:[%s7628_s0 + $0x310] sm:$0xf0] }
 0x262   :  { %3485 = vmatmul.bf16.gmra.mxu3 %v1249_v40  ;;  %v3352_v18 = vpop.f32.mrf.mxu0  ;;  %v4081_v40 = vld [vmem:[%s7628_s0 + $0x128] sm:$0xf] }
 0x264   :  { %v3266_v62 = vpop.f32.mrf.mxu2 }
 0x265   :  { %v3309_v55 = vpop.f32.mrf.mxu3  ;;  %3528 = vmatmul.bf16.gmra.mxu0 %v1250_v50  ;;  %v3267_v7 = vadd.f32 %v3266_v62, %v3224_v2  ;;  %v4082_v50 = vor.u32 %v5332_v61, %v4081_v40  ;;  %v5382_v40 = vld [vmem:[%s7628_s0 + $0x318] sm:$0xf0] }
 0x266   :  { %v3225_v54 = vpop.f32.mrf.mxu1 }
 0x267   :  { %v3310_v9 = vadd.f32 %v3309_v55, %v3267_v7  ;;  %v3226_v56 = vadd.f32 %v3225_v54, %v7080_v59  ;;  %v3967_v59 = vld [vmem:[%s7628_s0 + $0xb4] sm:$0xf0] }
 0x268   :  { %v3970_v37 = vor.u32 %v5293_v12, %v3967_v59  ;;  %v5356_v59 = vld [vmem:[%s7628_s0 + $0x248] sm:$0xf0] }
 0x269   :  { %v7321_v15 = vadd.f32 %v3352_v18, %v3310_v9 }
 0x26a   :  { %v3354_v60 = vpop.f32.mrf.mxu0 }
 0x26c   :  { %v3268_v5 = vpop.f32.mrf.mxu2 }
 0x26d   :  { %v3311_v52 = vpop.f32.mrf.mxu3  ;;  %v3269_v32 = vadd.f32 %v3268_v5, %v3226_v56 }
 0x26e   :  { %v3228_v14 = vpop.f32.mrf.mxu1 }
 0x26f   :  { %v3312_v57 = vadd.f32 %v3311_v52, %v3269_v32  ;;  %v3229_v36 = vadd.f32 %v3228_v14, %v7100_v19  ;;  %v4075_v19 = vld [vmem:[%s7628_s0 + $0x184] sm:$0xf0] }
 0x270   :  { %v4078_v46 = vor.u32 %v5319_v8, %v4075_v19  ;;  %v4173_v52 = vld [vmem:[%s7628_s0 + $0x1e8] sm:$0xf]  ;;  %v5369_v8 = vld [vmem:[%s7628_s0 + $0x2b4] sm:$0xf]  ;;  %v5368_v19 = vld [vmem:[%s7628_s0 + $0x2ac] sm:$0xf] }
 0x271   :  { %3541 = vmatmul.bf16.vlgmr.msra.gmra.mxu1 %v3970_v37  ;;  %3584 = vmatmul.bf16.vlgmr.msra.gmra.mxu2 %v3974_v29  ;;  %v7339_v30 = vadd.f32 %v3354_v60, %v3312_v57  ;;  %v5344_v60 = vld [vmem:[%s7628_s0 + $0x1ec] sm:$0xf]  ;;  %v4174_v32 = vor.u32 %v5356_v59, %v4173_v52  ;;  %v4373_v59 = vld [vmem:[%s7628_s0 + $0x378] sm:$0xf] }
 0x272   :  { %3627 = vmatmul.bf16.vlgmr.msra.gmra.mxu3 %v3978_v23  ;;  %v3357_v22 = vpop.f32.mrf.mxu0  ;;  %v5357_v23 = vld [vmem:[%s7628_s0 + $0x250] sm:$0xf0] }
 0x273   :  { %v4182_v29 = vor.u32 %v5357_v23, %v4181_v4  ;;  %v4381_v23 = vld [vmem:[%s7628_s0 + $0x380] sm:$0xf] }
 0x274   :  { %v3271_v20 = vpop.f32.mrf.mxu2 }
 0x275   :  { %v3314_v21 = vpop.f32.mrf.mxu3  ;;  %3670 = vmatmul.bf16.vlgmr.msra.gmra.mxu0 %v3982_v10  ;;  %v3272_v41 = vadd.f32 %v3271_v20, %v3229_v36 }
 0x276   :  { %v3230_v25 = vpop.f32.mrf.mxu1 }
 0x277   :  { %v3315_v33 = vadd.f32 %v3314_v21, %v3272_v41 }
 0x279   :  { %v7350_v11 = vadd.f32 %v3357_v22, %v3315_v33 }
 0x27a   :  { %v3359_v35 = vpop.f32.mrf.mxu0 }
 0x27c   :  { %v3273_v45 = vpop.f32.mrf.mxu2 }
 0x27d   :  { %v3316_v34 = vpop.f32.mrf.mxu3 }
 0x27e   :  { %v3370_v27 = vpop.f32.mrf.mxu1 }
 0x27f   :  { %v3371_v48 = vadd.f32 %v3370_v27, %v7143_v13  ;;  %v4175_v13 = vld [vmem:[%s7628_s0 + $0x24c] sm:$0xf0] }
 0x280   :  { %v4178_v1 = vor.u32 %v5344_v60, %v4175_v13 }
 0x281   :  { %3546 = vmatmul.bf16.gmra.mxu1 %v4070_v49  ;;  %3589 = vmatmul.bf16.gmra.mxu2 %v4074_v0  ;;  %v4274_v0 = vor.u32 %v5381_v38, %v4273_v51  ;;  %v4473_v38 = vld [vmem:[%s7628_s0 + $0x440] sm:$0xf] }
 0x282   :  { %3632 = vmatmul.bf16.gmra.mxu3 %v4078_v46  ;;  %v3499_v2 = vpop.f32.mrf.mxu0  ;;  %v4281_v46 = vld [vmem:[%s7628_s0 + $0x2b8] sm:$0xf] }
 0x284   :  { %v3413_v55 = vpop.f32.mrf.mxu2 }
 0x285   :  { %v3456_v18 = vpop.f32.mrf.mxu3  ;;  %3675 = vmatmul.bf16.gmra.mxu0 %v4082_v50  ;;  %v3414_v62 = vadd.f32 %v3413_v55, %v3371_v48  ;;  %v4282_v50 = vor.u32 %v5382_v40, %v4281_v46  ;;  %v4481_v40 = vld [vmem:[%s7628_s0 + $0x448] sm:$0xf] }
 0x286   :  { %v3372_v7 = vpop.f32.mrf.mxu1 }
 0x287   :  { %v3457_v54 = vadd.f32 %v3456_v18, %v3414_v62  ;;  %v3373_v9 = vadd.f32 %v3372_v7, %v7164_v43  ;;  %v4167_v43 = vld [vmem:[%s7628_s0 + $0x244] sm:$0xf0] }
 0x288   :  { %v4170_v5 = vor.u32 %v5343_v63, %v4167_v43  ;;  %v5394_v63 = vld [vmem:[%s7628_s0 + $0x37c] sm:$0xf] }
 0x289   :  { %v7378_v58 = vadd.f32 %v3499_v2, %v3457_v54 }
 0x28a   :  { %v3501_v56 = vpop.f32.mrf.mxu0 }
 0x28c   :  { %v3415_v26 = vpop.f32.mrf.mxu2 }
 0x28d   :  { %v3458_v12 = vpop.f32.mrf.mxu3  ;;  %v3416_v3 = vadd.f32 %v3415_v26, %v3373_v9  ;;  %v5407_v26 = vld [vmem:[%s7628_s0 + $0x3e0] sm:$0xf0] }
 0x28e   :  { %v3375_v37 = vpop.f32.mrf.mxu1 }
 0x28f   :  { %v3459_v14 = vadd.f32 %v3458_v12, %v3416_v3  ;;  %v3376_v10 = vadd.f32 %v3375_v37, %v7188_v53  ;;  %v4275_v53 = vld [vmem:[%s7628_s0 + $0x314] sm:$0xf0]  ;;  %v5393_v12 = vld [vmem:[%s7628_s0 + $0x374] sm:$0xf] }
 0x290   :  { %v4278_v17 = vor.u32 %v5369_v8, %v4275_v53 }
 0x291   :  { %3551 = vmatmul.bf16.gmra.mxu1 %v4170_v5  ;;  %3594 = vmatmul.bf16.gmra.mxu2 %v4174_v32  ;;  %v7396_v36 = vadd.f32 %v3501_v56, %v3459_v14  ;;  %v4382_v14 = vor.u32 %v5407_v26, %v4381_v23 }
 0x292   :  { %3637 = vmatmul.bf16.gmra.mxu3 %v4178_v1  ;;  %v3504_v57 = vpop.f32.mrf.mxu0  ;;  %v5406_v1 = vld [vmem:[%s7628_s0 + $0x3d8] sm:$0xf0] }
 0x293   :  { %v4374_v37 = vor.u32 %v5406_v1, %v4373_v59 }
 0x294   :  { %v3418_v21 = vpop.f32.mrf.mxu2 }
 0x295   :  { %v3461_v22 = vpop.f32.mrf.mxu3  ;;  %3680 = vmatmul.bf16.gmra.mxu0 %v4182_v29  ;;  %v3419_v20 = vadd.f32 %v3418_v21, %v3376_v10 }
 0x296   :  { %v3377_v41 = vpop.f32.mrf.mxu1 }
 0x297   :  { %v3462_v25 = vadd.f32 %v3461_v22, %v3419_v20  ;;  %v3378_v33 = vadd.f32 %v3377_v41, %v7206_v6  ;;  %v4267_v6 = vld [vmem:[%s7628_s0 + $0x30c] sm:$0xf0] }
 0x298   :  { %v4270_v49 = vor.u32 %v5368_v19, %v4267_v6  ;;  %v5419_v19 = vld [vmem:[%s7628_s0 + $0x444] sm:$0xf] }
 0x299   :  { %v7408_v31 = vadd.f32 %v3504_v57, %v3462_v25 }
 0x29a   :  { %v3506_v35 = vpop.f32.mrf.mxu0 }
 0x29c   :  { %v3420_v61 = vpop.f32.mrf.mxu2 }
 0x29d   :  { %v3463_v34 = vpop.f32.mrf.mxu3  ;;  %v3421_v45 = vadd.f32 %v3420_v61, %v3378_v33  ;;  %v5432_v61 = vld [vmem:[%s7628_s0 + $0x4a8] sm:$0xf0] }
 0x29e   :  { %v3380_v27 = vpop.f32.mrf.mxu1 }
 0x29f   :  { %v3464_v48 = vadd.f32 %v3463_v34, %v3421_v45  ;;  %v3381_v2 = vadd.f32 %v3380_v27, %v7230_v28  ;;  %v4375_v28 = vld [vmem:[%s7628_s0 + $0x3dc] sm:$0xf0]  ;;  %v5418_v34 = vld [vmem:[%s7628_s0 + $0x43c] sm:$0xf] }
 0x2a0   :  { %v4378_v4 = vor.u32 %v5394_v63, %v4375_v28 }
 0x2a1   :  { %3556 = vmatmul.bf16.gmra.mxu1 %v4270_v49  ;;  %3599 = vmatmul.bf16.gmra.mxu2 %v4274_v0  ;;  %v7426_v55 = vadd.f32 %v3506_v35, %v3464_v48  ;;  %v4482_v48 = vor.u32 %v5432_v61, %v4481_v40 }
 0x2a2   :  { %3642 = vmatmul.bf16.gmra.mxu3 %v4278_v17  ;;  %v3509_v18 = vpop.f32.mrf.mxu0  ;;  %v5431_v17 = vld [vmem:[%s7628_s0 + $0x4a0] sm:$0xf0] }
 0x2a3   :  { %v4474_v27 = vor.u32 %v5431_v17, %v4473_v38 }
 0x2a4   :  { %v3423_v7 = vpop.f32.mrf.mxu2 }
 0x2a5   :  { %v3466_v62 = vpop.f32.mrf.mxu3  ;;  %3685 = vmatmul.bf16.gmra.mxu0 %v4282_v50  ;;  %v3424_v54 = vadd.f32 %v3423_v7, %v3381_v2 }
 0x2a6   :  { %v3382_v9 = vpop.f32.mrf.mxu1 }
 0x2a7   :  { %v3467_v56 = vadd.f32 %v3466_v62, %v3424_v54  ;;  %v3383_v60 = vadd.f32 %v3382_v9, %v7251_v47  ;;  %v4367_v47 = vld [vmem:[%s7628_s0 + $0x3d4] sm:$0xf0] }
 0x2a8   :  { %v4370_v32 = vor.u32 %v5393_v12, %v4367_v47  ;;  %v1076_v47 = vunpack.c.h.b16 %v7302_v39 }
 0x2a9   :  { %v7438_v43 = vadd.f32 %v3509_v18, %v3467_v56  ;;  %v184_v56 = vld [vmem:[%s7628_s0 + $0x508] sm:$0x11] }
 0x2aa   :  { %v3511_v13 = vpop.f32.mrf.mxu0  ;;  %v1077_v59 = vunpack.c.l.b16 %v184_v56 }
 0x2ac   :  { %v3425_v3 = vpop.f32.mrf.mxu2 }
 0x2ad   :  { %v3468_v52 = vpop.f32.mrf.mxu3  ;;  %v3426_v5 = vadd.f32 %v3425_v3, %v3383_v60 }
 0x2ae   :  { %v3385_v29 = vpop.f32.mrf.mxu1 }
 0x2af   :  { %v3469_v10 = vadd.f32 %v3468_v52, %v3426_v5  ;;  %v3386_v57 = vadd.f32 %v3385_v29, %v7272_v16  ;;  %v4475_v16 = vld [vmem:[%s7628_s0 + $0x4a4] sm:$0xf0]  ;;  %v185_v52 = vld [vmem:[%s7628_s0 + $0x510] sm:$0x1] }
 0x2b0   :  { %v4478_v46 = vor.u32 %v5419_v19, %v4475_v16  ;;  %v1079_v23 = vunpack.c.l.b16 %v185_v52 }
 0x2b1   :  { %3561 = vmatmul.bf16.gmra.mxu1 %v4370_v32  ;;  %3604 = vmatmul.bf16.gmra.mxu2 %v4374_v37  ;;  %v7456_v21 = vadd.f32 %v3511_v13, %v3469_v10  ;;  %v1251_v32 = vpack.c.b16 %v1076_v47, %v1076_v47  ;;  %v1252_v37 = vpack.c.b16 %v1077_v59, %v1077_v59 }
 0x2b2   :  { %3647 = vmatmul.bf16.gmra.mxu3 %v4378_v4  ;;  %v3514_v22 = vpop.f32.mrf.mxu0 }
 0x2b4   :  { %v3428_v41 = vpop.f32.mrf.mxu2 }
 0x2b5   :  { %v3471_v20 = vpop.f32.mrf.mxu3  ;;  %3690 = vmatmul.bf16.gmra.mxu0 %v4382_v14  ;;  %v3429_v25 = vadd.f32 %v3428_v41, %v3386_v57 }
 0x2b6   :  { %v3387_v33 = vpop.f32.mrf.mxu1 }
 0x2b7   :  { %v3472_v35 = vadd.f32 %v3471_v20, %v3429_v25  ;;  %v3388_v8 = vadd.f32 %v3387_v33, %v7293_v24  ;;  %v4467_v24 = vld [vmem:[%s7628_s0 + $0x49c] sm:$0xf0] }
 0x2b8   :  { %v4470_v0 = vor.u32 %v5418_v34, %v4467_v24 }
 0x2b9   :  { %v7468_v6 = vadd.f32 %v3514_v22, %v3472_v35 }
 0x2ba   :  { %v3516_v53 = vpop.f32.mrf.mxu0 }
 0x2bc   :  { %v3430_v45 = vpop.f32.mrf.mxu2 }
 0x2bd   :  { %v3473_v51 = vpop.f32.mrf.mxu3  ;;  %v3431_v49 = vadd.f32 %v3430_v45, %v3388_v8 }
 0x2be   :  { %v3390_v50 = vpop.f32.mrf.mxu1 }
 0x2bf   :  { %v3474_v2 = vadd.f32 %v3473_v51, %v3431_v49  ;;  %v3391_v18 = vadd.f32 %v3390_v50, %v7305_v42  ;;  %v1078_v42 = vunpack.c.h.b16 %v184_v56 }
 0x2c1   :  { %3566 = vmatmul.bf16.gmra.mxu1 %v4470_v0  ;;  %3609 = vmatmul.bf16.gmra.mxu2 %v4474_v27  ;;  %v7486_v7 = vadd.f32 %v3516_v53, %v3474_v2  ;;  %v1253_v26 = vpack.c.b16 %v1078_v42, %v1078_v42 }
 0x2c2   :  { %3652 = vmatmul.bf16.gmra.mxu3 %v4478_v46  ;;  %v3519_v62 = vpop.f32.mrf.mxu0 }
 0x2c4   :  { %v3433_v9 = vpop.f32.mrf.mxu2 }
 0x2c5   :  { %v3476_v54 = vpop.f32.mrf.mxu3  ;;  %3695 = vmatmul.bf16.gmra.mxu0 %v4482_v48  ;;  %v3434_v60 = vadd.f32 %v3433_v9, %v3391_v18 }
 0x2c6   :  { %v3392_v13 = vpop.f32.mrf.mxu1 }
 0x2c7   :  { %v3477_v63 = vadd.f32 %v3476_v54, %v3434_v60  ;;  %v3393_v28 = vadd.f32 %v3392_v13, %v7309_v44  ;;  %v1254_v44 = vpack.c.b16 %v1079_v23, %v1079_v23 }
 0x2c9   :  { %v7496_v1 = vadd.f32 %v3519_v62, %v3477_v63 }
 0x2ca   :  { %v3521_v12 = vpop.f32.mrf.mxu0 }
 0x2cc   :  { %v3435_v3 = vpop.f32.mrf.mxu2 }
 0x2cd   :  { %v3478_v4 = vpop.f32.mrf.mxu3  ;;  %v3436_v5 = vadd.f32 %v3435_v3, %v3393_v28 }
 0x2ce   :  { %v3395_v29 = vpop.f32.mrf.mxu1 }
 0x2cf   :  { %v3479_v14 = vadd.f32 %v3478_v4, %v3436_v5  ;;  %v3396_v10 = vadd.f32 %v3395_v29, %v7321_v15 }
 0x2d1   :  { %3571 = vmatmul.bf16.gmra.mxu1 %v1251_v32  ;;  %3614 = vmatmul.bf16.gmra.mxu2 %v1252_v37  ;;  %v7499_v39 = vadd.f32 %v3521_v12, %v3479_v14 }
 0x2d2   :  { %3657 = vmatmul.bf16.gmra.mxu3 %v1253_v26  ;;  %v3524_v57 = vpop.f32.mrf.mxu0 }
 0x2d4   :  { %v3438_v20 = vpop.f32.mrf.mxu2 }
 0x2d5   :  { %v3481_v22 = vpop.f32.mrf.mxu3  ;;  %3700 = vmatmul.bf16.gmra.mxu0 %v1254_v44  ;;  %v3439_v41 = vadd.f32 %v3438_v20, %v3396_v10 }
 0x2d6   :  { %v3397_v25 = vpop.f32.mrf.mxu1 }
 0x2d7   :  { %v3482_v33 = vadd.f32 %v3481_v22, %v3439_v41  ;;  %v3398_v35 = vadd.f32 %v3397_v25, %v7339_v30 }
 0x2d9   :  { %v7502_v53 = vadd.f32 %v3524_v57, %v3482_v33 }
 0x2da   :  { %v3526_v8 = vpop.f32.mrf.mxu0 }
 0x2dc   :  { %v3440_v16 = vpop.f32.mrf.mxu2 }
 0x2dd   :  { %v3483_v19 = vpop.f32.mrf.mxu3  ;;  %v3441_v15 = vadd.f32 %v3440_v16, %v3398_v35 }
 0x2de   :  { %v3400_v34 = vpop.f32.mrf.mxu1 }
 0x2df   :  { %v3484_v51 = vadd.f32 %v3483_v19, %v3441_v15  ;;  %v3401_v24 = vadd.f32 %v3400_v34, %v7350_v11 }
 0x2e1   :  { %v7505_v17 = vadd.f32 %v3526_v8, %v3484_v51 }
 0x2e2   :  { %v3529_v38 = vpop.f32.mrf.mxu0 }
 0x2e4   :  { %v3443_v40 = vpop.f32.mrf.mxu2 }
 0x2e5   :  { %v3486_v46 = vpop.f32.mrf.mxu3  ;;  %v3444_v61 = vadd.f32 %v3443_v40, %v3401_v24 }
 0x2e6   :  { %v3402_v45 = vpop.f32.mrf.mxu1 }
 0x2e7   :  { %v3487_v49 = vadd.f32 %v3486_v46, %v3444_v61 }
 0x2e9   :  { %v7507_v30 = vadd.f32 %v3529_v38, %v3487_v49 }
 0x2ea   :  { %v3531_v0 = vpop.f32.mrf.mxu0 }
 0x2ec   :  { %v3445_v50 = vpop.f32.mrf.mxu2 }
 0x2ed   :  { %v3488_v27 = vpop.f32.mrf.mxu3 }
 0x2ee   :  { %v3542_v48 = vpop.f32.mrf.mxu1 }
 0x2ef   :  { %v3543_v2 = vadd.f32 %v3542_v48, %v7378_v58 }
 0x2f2   :  { %v3671_v18 = vpop.f32.mrf.mxu0 }
 0x2f4   :  { %v3585_v54 = vpop.f32.mrf.mxu2 }
 0x2f5   :  { %v3628_v62 = vpop.f32.mrf.mxu3  ;;  %v3586_v11 = vadd.f32 %v3585_v54, %v3543_v2 }
 0x2f6   :  { %v3544_v9 = vpop.f32.mrf.mxu1 }
 0x2f7   :  { %v3629_v56 = vadd.f32 %v3628_v62, %v3586_v11  ;;  %v3545_v60 = vadd.f32 %v3544_v9, %v7396_v36 }
 0x2f9   :  { %v7511_v63 = vadd.f32 %v3671_v18, %v3629_v56 }
 0x2fa   :  { %v3673_v13 = vpop.f32.mrf.mxu0 }
 0x2fb   :  { %v3733_v26 = vmul.f32 %v7511_v63, %v7511_v63 }
 0x2fc   :  { %v3587_v12 = vpop.f32.mrf.mxu2 }
 0x2fd   :  { %v3630_v28 = vpop.f32.mrf.mxu3  ;;  %v3588_v42 = vadd.f32 %v3587_v12, %v3545_v60 }
 0x2fe   :  { %v3547_v52 = vpop.f32.mrf.mxu1 }
 0x2ff   :  { %v3631_v47 = vadd.f32 %v3630_v28, %v3588_v42  ;;  %v3548_v59 = vadd.f32 %v3547_v52, %v7408_v31 }
 0x301   :  { %v7514_v58 = vadd.f32 %v3673_v13, %v3631_v47 }
 0x302   :  { %v3676_v4 = vpop.f32.mrf.mxu0 }
 0x303   :  { %v3705_v36 = vadd.f32 %v7514_v58, %v7511_v63  ;;  %v3734_v3 = vmul.f32 %v7514_v58, %v7514_v58 }
 0x304   :  { %v3590_v5 = vpop.f32.mrf.mxu2 }
 0x305   :  { %v3633_v23 = vpop.f32.mrf.mxu3  ;;  %v3746_v32 = vadd.f32 %v3734_v3, %v3733_v26  ;;  %v3591_v37 = vadd.f32 %v3590_v5, %v3548_v59 }
 0x306   :  { %v3549_v29 = vpop.f32.mrf.mxu1 }
 0x307   :  { %v3634_v44 = vadd.f32 %v3633_v23, %v3591_v37  ;;  %v3550_v31 = vadd.f32 %v3549_v29, %v7426_v55 }
 0x309   :  { %v7523_v10 = vadd.f32 %v3676_v4, %v3634_v44 }
 0x30a   :  { %v3678_v14 = vpop.f32.mrf.mxu0 }
 0x30b   :  { %v3706_v22 = vadd.f32 %v3705_v36, %v7523_v10  ;;  %v3735_v20 = vmul.f32 %v7523_v10, %v7523_v10 }
 0x30c   :  { %v3592_v41 = vpop.f32.mrf.mxu2 }
 0x30d   :  { %v3635_v57 = vpop.f32.mrf.mxu3  ;;  %v3747_v25 = vadd.f32 %v3746_v32, %v3735_v20  ;;  %v3593_v33 = vadd.f32 %v3592_v41, %v3550_v31 }
 0x30e   :  { %v3552_v35 = vpop.f32.mrf.mxu1 }
 0x30f   :  { %v3636_v8 = vadd.f32 %v3635_v57, %v3593_v33  ;;  %v3553_v51 = vadd.f32 %v3552_v35, %v7438_v43 }
 0x311   :  { %v7528_v16 = vadd.f32 %v3678_v14, %v3636_v8 }
 0x312   :  { %v3681_v19 = vpop.f32.mrf.mxu0 }
 0x313   :  { %v3707_v55 = vadd.f32 %v3706_v22, %v7528_v16  ;;  %v3736_v34 = vmul.f32 %v7528_v16, %v7528_v16 }
 0x314   :  { %v3595_v24 = vpop.f32.mrf.mxu2 }
 0x315   :  { %v3638_v15 = vpop.f32.mrf.mxu3  ;;  %v3748_v38 = vadd.f32 %v3747_v25, %v3736_v34  ;;  %v3596_v46 = vadd.f32 %v3595_v24, %v3553_v51 }
 0x316   :  { %v3554_v40 = vpop.f32.mrf.mxu1 }
 0x317   :  { %v3639_v61 = vadd.f32 %v3638_v15, %v3596_v46  ;;  %v3555_v48 = vadd.f32 %v3554_v40, %v7456_v21 }
 0x319   :  { %v7534_v49 = vadd.f32 %v3681_v19, %v3639_v61 }
 0x31a   :  { %v3683_v45 = vpop.f32.mrf.mxu0 }
 0x31b   :  { %v3708_v27 = vadd.f32 %v3707_v55, %v7534_v49  ;;  %v3737_v50 = vmul.f32 %v7534_v49, %v7534_v49 }
 0x31c   :  { %v3597_v2 = vpop.f32.mrf.mxu2 }
 0x31d   :  { %v3640_v0 = vpop.f32.mrf.mxu3  ;;  %v3749_v18 = vadd.f32 %v3748_v38, %v3737_v50  ;;  %v3598_v62 = vadd.f32 %v3597_v2, %v3555_v48 }
 0x31e   :  { %v3557_v43 = vpop.f32.mrf.mxu1 }
 0x31f   :  { %v3641_v54 = vadd.f32 %v3640_v0, %v3598_v62  ;;  %v3558_v28 = vadd.f32 %v3557_v43, %v7468_v6 }
 0x321   :  { %v7540_v9 = vadd.f32 %v3683_v45, %v3641_v54 }
 0x322   :  { %v3686_v11 = vpop.f32.mrf.mxu0 }
 0x323   :  { %v3709_v60 = vadd.f32 %v3708_v27, %v7540_v9  ;;  %v3738_v13 = vmul.f32 %v7540_v9, %v7540_v9 }
 0x324   :  { %v3600_v12 = vpop.f32.mrf.mxu2 }
 0x325   :  { %v3643_v56 = vpop.f32.mrf.mxu3  ;;  %v3750_v42 = vadd.f32 %v3749_v18, %v3738_v13  ;;  %v3601_v52 = vadd.f32 %v3600_v12, %v3558_v28 }
 0x326   :  { %v3559_v21 = vpop.f32.mrf.mxu1 }
 0x327   :  { %v3644_v47 = vadd.f32 %v3643_v56, %v3601_v52  ;;  %v3560_v3 = vadd.f32 %v3559_v21, %v7486_v7  ;;  %v5699_v21 = vmov 98.0  }
 0x328   :  { %5695 = vrcp.f32 %v5699_v21 }
 0x329   :  { %v7546_v4 = vadd.f32 %v3686_v11, %v3644_v47 }
 0x32a   :  { %v3688_v59 = vpop.f32.mrf.mxu0 }
 0x32b   :  { %v3710_v26 = vadd.f32 %v3709_v60, %v7546_v4  ;;  %v3739_v36 = vmul.f32 %v7546_v4, %v7546_v4 }
 0x32c   :  { %v3602_v5 = vpop.f32.mrf.mxu2 }
 0x32d   :  { %v3645_v23 = vpop.f32.mrf.mxu3  ;;  %v3751_v32 = vadd.f32 %v3750_v42, %v3739_v36  ;;  %v3603_v37 = vadd.f32 %v3602_v5, %v3560_v3 }
 0x32e   :  { %v3562_v6 = vpop.f32.mrf.mxu1 }
 0x32f   :  { %v3646_v29 = vadd.f32 %v3645_v23, %v3603_v37  ;;  %v3563_v20 = vadd.f32 %v3562_v6, %v7496_v1 }
 0x331   :  { %v7552_v31 = vadd.f32 %v3688_v59, %v3646_v29 }
 0x332   :  { %v3691_v44 = vpop.f32.mrf.mxu0 }
 0x333   :  { %v3711_v57 = vadd.f32 %v3710_v26, %v7552_v31  ;;  %v3740_v22 = vmul.f32 %v7552_v31, %v7552_v31 }
 0x334   :  { %v3605_v41 = vpop.f32.mrf.mxu2 }
 0x335   :  { %v3648_v14 = vpop.f32.mrf.mxu3  ;;  %v3752_v25 = vadd.f32 %v3751_v32, %v3740_v22  ;;  %v3606_v33 = vadd.f32 %v3605_v41, %v3563_v20  ;;  %v5696_v32 = vpop.eup %5695 }
 0x336   :  { %v3564_v7 = vpop.f32.mrf.mxu1  ;;  %vm3730_vm1 = vweird.f32 %v5696_v32 }
 0x337   :  { %v3649_v35 = vadd.f32 %v3648_v14, %v3606_v33  ;;  %v3565_v51 = vadd.f32 %v3564_v7, %v7499_v39  ;;  %v3726_v14 = vmul.f32 98.0, %v5696_v32 }
 0x339   :  { %v7558_v19 = vadd.f32 %v3691_v44, %v3649_v35 }
 0x33a   :  { %v3693_v8 = vpop.f32.mrf.mxu0 }
 0x33b   :  { %v3712_v55 = vadd.f32 %v3711_v57, %v7558_v19  ;;  %v3741_v34 = vmul.f32 %v7558_v19, %v7558_v19 }
 0x33c   :  { %v3607_v24 = vpop.f32.mrf.mxu2 }
 0x33d   :  { %v3650_v15 = vpop.f32.mrf.mxu3  ;;  %v3753_v38 = vadd.f32 %v3752_v25, %v3741_v34  ;;  %v3608_v46 = vadd.f32 %v3607_v24, %v3565_v51  ;;  %v3727_v25 = vsub.f32 1.0, %v3726_v14 }
 0x33e   :  { %v3567_v1 = vpop.f32.mrf.mxu1 }
 0x33f   :  { %v3651_v40 = vadd.f32 %v3650_v15, %v3608_v46  ;;  %v3568_v48 = vadd.f32 %v3567_v1, %v7502_v53 }
 0x341   :  { %v7564_v45 = vadd.f32 %v3693_v8, %v3651_v40 }
 0x342   :  { %v3696_v61 = vpop.f32.mrf.mxu0 }
 0x343   :  { %v3713_v27 = vadd.f32 %v3712_v55, %v7564_v45  ;;  %v3742_v50 = vmul.f32 %v7564_v45, %v7564_v45  ;;  %v3728_v55 = vmul.f32 %v5696_v32, %v3727_v25 }
 0x344   :  { %v3610_v2 = vpop.f32.mrf.mxu2 }
 0x345   :  { %v3653_v0 = vpop.f32.mrf.mxu3  ;;  %v3754_v18 = vadd.f32 %v3753_v38, %v3742_v50  ;;  %v3611_v62 = vadd.f32 %v3610_v2, %v3568_v48  ;;  %v3729_v46 = vadd.f32 %v5696_v32, %v3728_v55 }
 0x346   :  { %v3569_v39 = vpop.f32.mrf.mxu1 }
 0x347   :  { %v3654_v43 = vadd.f32 %v3653_v0, %v3611_v62  ;;  %v3570_v28 = vadd.f32 %v3569_v39, %v7505_v17 }
 0x349   :  { %v7570_v11 = vadd.f32 %v3696_v61, %v3654_v43 }
 0x34a   :  { %v3698_v54 = vpop.f32.mrf.mxu0 }
 0x34b   :  { %v3714_v60 = vadd.f32 %v3713_v27, %v7570_v11  ;;  %v3743_v13 = vmul.f32 %v7570_v11, %v7570_v11  ;;  %v3731_v27 = vsel %vm3730_vm1, %v5696_v32, %v3729_v46 }
 0x34c   :  { %v3612_v12 = vpop.f32.mrf.mxu2 }
 0x34d   :  { %v3655_v56 = vpop.f32.mrf.mxu3  ;;  %v3755_v42 = vadd.f32 %v3754_v18, %v3743_v13  ;;  %v3613_v52 = vadd.f32 %v3612_v12, %v3570_v28 }
 0x34e   :  { %v3572_v53 = vpop.f32.mrf.mxu1 }
 0x34f   :  { %v3656_v47 = vadd.f32 %v3655_v56, %v3613_v52  ;;  %v3573_v5 = vadd.f32 %v3572_v53, %v7507_v30 }
 0x351   :  { %v7576_v23 = vadd.f32 %v3698_v54, %v3656_v47 }
 0x352   :  { %v3701_v59 = vpop.f32.mrf.mxu0 }
 0x353   :  { %v3715_v36 = vadd.f32 %v3714_v60, %v7576_v23  ;;  %v3744_v3 = vmul.f32 %v7576_v23, %v7576_v23 }
 0x354   :  { %v3615_v17 = vpop.f32.mrf.mxu2 }
 0x355   :  { %v3658_v26 = vpop.f32.mrf.mxu3  ;;  %v3756_v37 = vadd.f32 %v3755_v42, %v3744_v3  ;;  %v3616_v6 = vadd.f32 %v3615_v17, %v3573_v5 }
 0x356   :  { %v3574_v29 = vpop.f32.mrf.mxu1 }
 0x357   :  { %v3659_v44 = vadd.f32 %v3658_v26, %v3616_v6 }
 0x359   :  { %v7582_v22 = vadd.f32 %v3701_v59, %v3659_v44 }
 0x35a   :  { %v3703_v57 = vpop.f32.mrf.mxu0 }
 0x35b   :  { %v3717_v41 = vsel %vm3716_vm0, %v7582_v22, 0.0  ;;  %v3745_v33 = vmul.f32 %v7582_v22, %v7582_v22  ;;  %v5694_v57 = vld [vmem:[%s7630_s3] ss:$0 sm:$0xff] }
 0x35c   :  { %v3718_v7 = vadd.f32 %v3717_v41, %v3715_v36  ;;  %v3617_v30 = vpop.f32.mrf.mxu2 }
 0x35d   :  { %v3660_v20 = vpop.f32.mrf.mxu3  ;;  %v3757_v35 = vsel %vm3716_vm0, %v3745_v33, 0.0 }
 0x35e   :  { %v3719_v8 = vrot.slane %v3718_v7, 4  ;;  %v3758_v15 = vadd.f32 %v3757_v35, %v3756_v37 }
 0x360   :  { %v3720_v34 = vadd.f32 %v3719_v8, %v3718_v7  ;;  %v3759_v51 = vrot.slane %v3758_v15, 4 }
 0x362   :  { %v3721_v24 = vrot.slane %v3720_v34, 2  ;;  %v3760_v38 = vadd.f32 %v3759_v51, %v3758_v15 }
 0x364   :  { %v3722_v1 = vadd.f32 %v3721_v24, %v3720_v34  ;;  %v3761_v40 = vrot.slane %v3760_v38, 2 }
 0x366   :  { %v3723_v61 = vrot.slane %v3722_v1, 1  ;;  %v3762_v0 = vadd.f32 %v3761_v40, %v3760_v38 }
 0x368   :  { %v3724_v50 = vadd.f32 %v3723_v61, %v3722_v1  ;;  %v3763_v48 = vrot.slane %v3762_v0, 1 }
 0x36a   :  { %v3732_v2 = vmul.f32 %v3731_v27, %v3724_v50  ;;  %v3764_v18 = vadd.f32 %v3763_v48, %v3762_v0 }
 0x36c   :  { %v3765_v62 = vmul.f32 %v3764_v18, %v3731_v27  ;;  %v3766_v39 = vmul.f32 %v3732_v2, %v3732_v2  ;;  %v3769_v43 = vsub.f32 %v7511_v63, %v3732_v2  ;;  %v3770_v54 = vsub.f32 %v7514_v58, %v3732_v2 }
 0x36d   :  { %v3771_v56 = vsub.f32 %v7523_v10, %v3732_v2  ;;  %v3772_v60 = vsub.f32 %v7528_v16, %v3732_v2  ;;  %v3773_v13 = vsub.f32 %v7534_v49, %v3732_v2  ;;  %v3774_v28 = vsub.f32 %v7540_v9, %v3732_v2 }
 0x36e   :  { %v3767_v12 = vsub.f32 %v3765_v62, %v3766_v39  ;;  %v3775_v42 = vsub.f32 %v7546_v4, %v3732_v2  ;;  %v3776_v52 = vsub.f32 %v7552_v31, %v3732_v2  ;;  %v3777_v53 = vsub.f32 %v7558_v19, %v3732_v2 }
 0x36f   :  { %v3778_v21 = vsub.f32 %v7564_v45, %v3732_v2  ;;  %v3779_v63 = vsub.f32 %v7570_v11, %v3732_v2  ;;  %v3780_v58 = vsub.f32 %v7576_v23, %v3732_v2  ;;  %v3781_v10 = vsub.f32 %v7582_v22, %v3732_v2  ;;  %v5693_v45 = vld [vmem:[%s7629_s2] ss:$0 sm:$0xff] }
 0x370   :  { %v3768_v16 = vmax.f32 %v3767_v12, 0.0 }
 0x372   :  { %v3782_v47 = vadd.f32 1e-05, %v3768_v16 }
 0x374   :  { %5697 = vrsqrt.f32 %v3782_v47  ;;  %vm3789_vm3 = vweird.f32 %v3782_v47 }
 0x37a   :  { %v5698_v49 = vpop.eup %5697 }
 0x37b   :  { %v3784_v9 = vmul.f32 %v5698_v49, %v3782_v47  ;;  %vm3790_vm2 = vweird.f32 %v5698_v49 }
 0x37c   :  { %vm3791_vm4 = vmor %vm3789_vm3, %vm3790_vm2 }
 0x37d   :  { %v3785_v59 = vmul.f32 %v5698_v49, %v3784_v9 }
 0x37f   :  { %v3786_v26 = vmul.f32 0.5, %v3785_v59 }
 0x381   :  { %v3787_v4 = vsub.f32 1.5, %v3786_v26 }
 0x383   :  { %v3788_v31 = vmul.f32 %v5698_v49, %v3787_v4 }
 0x385   :  { %v3792_v19 = vsel %vm3791_vm4, %v5698_v49, %v3788_v31 }
 0x386   :  { %v3793_v11 = vmul.f32 %v3792_v19, %v3769_v43  ;;  %v3794_v23 = vmul.f32 %v3792_v19, %v3770_v54  ;;  %v3795_v36 = vmul.f32 %v3792_v19, %v3771_v56  ;;  %v3796_v3 = vmul.f32 %v3792_v19, %v3772_v60 }
 0x387   :  { %v3797_v5 = vmul.f32 %v3792_v19, %v3773_v13  ;;  %v3798_v32 = vmul.f32 %v3792_v19, %v3774_v28  ;;  %v3799_v17 = vmul.f32 %v3792_v19, %v3775_v42  ;;  %v3800_v37 = vmul.f32 %v3792_v19, %v3776_v52 }
 0x388   :  { %v3801_v6 = vmul.f32 %v3792_v19, %v3777_v53  ;;  %v3802_v29 = vmul.f32 %v3792_v19, %v3778_v21  ;;  %v3803_v44 = vmul.f32 %v3792_v19, %v3779_v63  ;;  %v3804_v14 = vmul.f32 %v3792_v19, %v3780_v58 }
 0x389   :  { %v3805_v22 = vmul.f32 %v3792_v19, %v3781_v10  ;;  %v3810_v20 = vmul.f32 %v5693_v45, %v3793_v11  ;;  %v3811_v41 = vmul.f32 %v5693_v45, %v3794_v23  ;;  %v3812_v25 = vmul.f32 %v5693_v45, %v3795_v36 }
 0x38a   :  { %v3813_v33 = vmul.f32 %v5693_v45, %v3796_v3  ;;  %v3814_v7 = vmul.f32 %v5693_v45, %v3797_v5  ;;  %v3815_v30 = vmul.f32 %v5693_v45, %v3798_v32  ;;  %v3816_v35 = vmul.f32 %v5693_v45, %v3799_v17 }
 0x38b   :  { %v3817_v8 = vmul.f32 %v5693_v45, %v3800_v37  ;;  %v3818_v15 = vmul.f32 %v5693_v45, %v3801_v6  ;;  %v3819_v55 = vmul.f32 %v5693_v45, %v3802_v29  ;;  %v3820_v34 = vmul.f32 %v5693_v45, %v3803_v44 }
 0x38c   :  { %v3821_v51 = vmul.f32 %v5693_v45, %v3804_v14  ;;  %v3822_v24 = vmul.f32 %v5693_v45, %v3805_v22  ;;  %v3827_v38 = vadd.f32 %v5694_v57, %v3810_v20  ;;  %v3828_v46 = vadd.f32 %v5694_v57, %v3811_v41 }
 0x38d   :  { %v3829_v1 = vadd.f32 %v5694_v57, %v3812_v25  ;;  %v3830_v40 = vadd.f32 %v5694_v57, %v3813_v33  ;;  %v3831_v61 = vadd.f32 %v5694_v57, %v3814_v7  ;;  %v3832_v0 = vadd.f32 %v5694_v57, %v3815_v30 }
 0x38e   :  { %v3833_v27 = vadd.f32 %v5694_v57, %v3816_v35  ;;  %v3834_v50 = vadd.f32 %v5694_v57, %v3817_v8  ;;  %v3835_v48 = vadd.f32 %v5694_v57, %v3818_v15  ;;  %v3836_v2 = vadd.f32 %v5694_v57, %v3819_v55 }
 0x38f   :  { %v3837_v18 = vadd.f32 %v5694_v57, %v3820_v34  ;;  %v3838_v62 = vadd.f32 %v5694_v57, %v3821_v51  ;;  %v3839_v39 = vadd.f32 %v5694_v57, %v3822_v24  ;;  %v3840_v43 = vmax.f32 %v3827_v38, 0.0 }
 0x390   :  { %v3841_v54 = vmax.f32 %v3828_v46, 0.0  ;;  %v3842_v56 = vmax.f32 %v3829_v1, 0.0  ;;  %v3843_v60 = vmax.f32 %v3830_v40, 0.0  ;;  %v3844_v13 = vmax.f32 %v3831_v61, 0.0 }
 0x391   :  { %v3845_v28 = vmax.f32 %v3832_v0, 0.0  ;;  %v3846_v12 = vmax.f32 %v3833_v27, 0.0  ;;  %v3847_v42 = vmax.f32 %v3834_v50, 0.0  ;;  %v3848_v52 = vmax.f32 %v3835_v48, 0.0 }
 0x392   :  { %v3849_v53 = vmax.f32 %v3836_v2, 0.0  ;;  %v3850_v21 = vmax.f32 %v3837_v18, 0.0  ;;  %v3851_v63 = vmax.f32 %v3838_v62, 0.0  ;;  %v3852_v58 = vmax.f32 %v3839_v39, 0.0 }
 0x393   :  { %v5636_v10 = vpack.c.bf16 %v3841_v54, %v3840_v43  ;;  %v5641_v16 = vpack.c.bf16 %v3843_v60, %v3842_v56  ;;  %v5646_v47 = vpack.c.bf16 %v3845_v28, %v3844_v13  ;;  %v5651_v49 = vpack.c.bf16 %v3847_v42, %v3846_v12 }
 0x394   :  { %v5656_v9 = vpack.c.bf16 %v3849_v53, %v3848_v52  ;;  %v5661_v59 = vpack.c.bf16 %v3851_v63, %v3850_v21  ;;  %v3865_v26 = vpack.c.bf16 %v3852_v58, %v3852_v58 }
 0x395   :  { %5637 = vst [vmem:[%s7631_s4] sm:$0xff] %v5636_v10  }
 0x396   :  { %5663 = vst [vmem:[%s7631_s4 + $0x8] sm:$0xff] %v5641_v16  }
 0x397   :  { %5664 = vst [vmem:[%s7631_s4 + $0x10] sm:$0xff] %v5646_v47  }
 0x398   :  { %5665 = vst [vmem:[%s7631_s4 + $0x18] sm:$0xff] %v5651_v49  }
 0x399   :  { %5666 = vst [vmem:[%s7631_s4 + $0x20] sm:$0xff] %v5656_v9  }
 0x39a   :  { %5667 = vst [vmem:[%s7631_s4 + $0x28] sm:$0xff] %v5661_v59  }
 0x39b   :  { %3878 = vst [vmem:[%s7631_s4 + $0x30] sm:$0x1] %v3865_v26 }

// kernel: dqn_forward.7
= control target key start
LH: loop header
LB: loop body
LE: loop exit
PB: predicated region body
PF: predicated region fallthrough
CT: control target
= control target key end

     0   :  { %s669_s0 = inlined_call_operand.vmem [shape: bf16[2,512], index: 0, kind: input, shape index: {}]   ;;  %s670_s1 = inlined_call_operand.vmem [shape: bf16[512,128], index: 1, kind: input, shape index: {}]   ;;  %s671_s2 = inlined_call_operand.vmem [shape: f32[1,128], index: 2, kind: input, shape index: {}]   ;;  %s672_s3 = inlined_call_operand.hbm [shape: f32[2,128], index: 3, kind: output, shape index: {}]  }
   0x1   :  { %v490_v0 = vld [vmem:[%s670_s1 + $0x38] sm:$0xff]  ;;  %v489_v4 = vld [vmem:[%s670_s1 + $0x30] sm:$0xff]  ;;  %v488_v8 = vld [vmem:[%s670_s1 + $0x28] sm:$0xff] }
   0x2   :  { %v498_v1 = vld [vmem:[%s670_s1 + $0x78] sm:$0xff]  ;;  %286 = vmatpush.bf16.msra.mxu0 %v490_v0  ;;  %v497_v5 = vld [vmem:[%s670_s1 + $0x70] sm:$0xff]  ;;  %v496_v9 = vld [vmem:[%s670_s1 + $0x68] sm:$0xff] }
   0x3   :  { %v506_v2 = vld [vmem:[%s670_s1 + $0xb8] sm:$0xff]  ;;  %299 = vmatpush.bf16.msra.mxu1 %v498_v1  ;;  %v505_v6 = vld [vmem:[%s670_s1 + $0xb0] sm:$0xff]  ;;  %v504_v10 = vld [vmem:[%s670_s1 + $0xa8] sm:$0xff] }
   0x4   :  { %v514_v3 = vld [vmem:[%s670_s1 + $0xf8] sm:$0xff]  ;;  %312 = vmatpush.bf16.msra.mxu2 %v506_v2  ;;  %v513_v7 = vld [vmem:[%s670_s1 + $0xf0] sm:$0xff]  ;;  %v512_v11 = vld [vmem:[%s670_s1 + $0xe8] sm:$0xff] }
   0x5   :  { %325 = vmatpush.bf16.msra.mxu3 %v514_v3  ;;  %v487_v12 = vld [vmem:[%s670_s1 + $0x20] sm:$0xff] }
   0x6   :  { %287 = vmatpush.bf16.msra.mxu0 %v489_v4  ;;  %v495_v13 = vld [vmem:[%s670_s1 + $0x60] sm:$0xff] }
   0x7   :  { %300 = vmatpush.bf16.msra.mxu1 %v497_v5  ;;  %v15_v14 = vld [vmem:[%s669_s0] sm:$0xf] }
   0x8   :  { %313 = vmatpush.bf16.msra.mxu2 %v505_v6  ;;  %v503_v15 = vld [vmem:[%s670_s1 + $0xa0] sm:$0xff]  ;;  %85 = vst [vmem:[#allocation1] ss:$9 sm:$0xff] %v15_v14 }
   0x9   :  { %326 = vmatpush.bf16.msra.mxu3 %v513_v7  ;;  %v511_v16 = vld [vmem:[%s670_s1 + $0xe0] sm:$0xff] }
   0xa   :  { %288 = vmatpush.bf16.msra.mxu0 %v488_v8 }
   0xb   :  { %301 = vmatpush.bf16.msra.mxu1 %v496_v9 }
   0xc   :  { %314 = vmatpush.bf16.msra.mxu2 %v504_v10 }
   0xd   :  { %327 = vmatpush.bf16.msra.mxu3 %v512_v11 }
   0xe   :  { %8 = vsyncpa [#allocation3], 0  ;;  %289 = vmatpush.bf16.msra.mxu0 %v487_v12  ;;  %v486_v17 = vld [vmem:[%s670_s1 + $0x18] sm:$0xff]  ;;  %v485_v21 = vld [vmem:[%s670_s1 + $0x10] sm:$0xff]  ;;  %s346_s27 = sshll.u32 %s672_s3, 4  ;;  %s347_s27 = int_to_ptr.hbm [resolvable:$true] %s346_s27 }
   0xf   :  { %302 = vmatpush.bf16.msra.mxu1 %v495_v13  ;;  %v494_v18 = vld [vmem:[%s670_s1 + $0x58] sm:$0xff]  ;;  %v493_v22 = vld [vmem:[%s670_s1 + $0x50] sm:$0xff]  ;;  %v484_v25 = vld [vmem:[%s670_s1 + $0x8] sm:$0xff] }
  0x10   :  { %315 = vmatpush.bf16.msra.mxu2 %v503_v15  ;;  %v502_v19 = vld [vmem:[%s670_s1 + $0x98] sm:$0xff]  ;;  %v501_v23 = vld [vmem:[%s670_s1 + $0x90] sm:$0xff]  ;;  %v492_v26 = vld [vmem:[%s670_s1 + $0x48] sm:$0xff] }
  0x11   :  { %328 = vmatpush.bf16.msra.mxu3 %v511_v16  ;;  %v510_v20 = vld [vmem:[%s670_s1 + $0xd8] sm:$0xff]  ;;  %v509_v24 = vld [vmem:[%s670_s1 + $0xd0] sm:$0xff]  ;;  %v500_v27 = vld [vmem:[%s670_s1 + $0x88] sm:$0xff] }
  0x12   :  { %290 = vmatpush.bf16.msra.mxu0 %v486_v17  ;;  %v508_v28 = vld [vmem:[%s670_s1 + $0xc8] sm:$0xff]  ;;  %v483_v29 = vld [vmem:[%s670_s1] sm:$0xff]  ;;  %v88_v35 = vld [vmem:[#allocation1 + $0x12] sm:$0xff] }
  0x13   :  { %303 = vmatpush.bf16.msra.mxu1 %v494_v18  ;;  %v491_v30 = vld [vmem:[%s670_s1 + $0x40] sm:$0xff]  ;;  %v87_v34 = vld [vmem:[#allocation1 + $0x9] sm:$0xff] }
  0x14   :  { %316 = vmatpush.bf16.msra.mxu2 %v502_v19  ;;  %v499_v31 = vld [vmem:[%s670_s1 + $0x80] sm:$0xff] }
  0x15   :  { %329 = vmatpush.bf16.msra.mxu3 %v510_v20  ;;  %v507_v32 = vld [vmem:[%s670_s1 + $0xc0] sm:$0xff]  ;;  %s543_s1 = smov [#allocation2]  }
  0x16   :  { %291 = vmatpush.bf16.msra.mxu0 %v485_v21  ;;  %v86_v33 = vld [vmem:[#allocation1] sm:$0xff]  ;;  %s344_s24 = sshll.u32 %s543_s1, 4  ;;  %s345_s24 = int_to_ptr.vmem [resolvable:$true] %s344_s24 }
  0x17   :  { %304 = vmatpush.bf16.msra.mxu1 %v493_v22  ;;  %v89_v36 = vld [vmem:[#allocation1 + $0x1b] sm:$0xff] }
  0x18   :  { %317 = vmatpush.bf16.msra.mxu2 %v501_v23  ;;  %v516_v37 = vld [vmem:[%s671_s2] ss:$0 sm:$0xff] }
  0x19   :  { %330 = vmatpush.bf16.msra.mxu3 %v509_v24 }
  0x1a   :  { %292 = vmatpush.bf16.msra.mxu0 %v484_v25 }
  0x1b   :  { %305 = vmatpush.bf16.msra.mxu1 %v492_v26 }
  0x1c   :  { %318 = vmatpush.bf16.msra.mxu2 %v500_v27 }
  0x1d   :  { %331 = vmatpush.bf16.msra.mxu3 %v508_v28 }
  0x1e   :  { %293 = vmatpush.bf16.msra.mxu0 %v483_v29 }
  0x1f   :  { %306 = vmatpush.bf16.msra.mxu1 %v491_v30 }
  0x20   :  { %319 = vmatpush.bf16.msra.mxu2 %v499_v31 }
  0x21   :  { %332 = vmatpush.bf16.msra.mxu3 %v507_v32  ;;  %294 = vmatmul.bf16.vlgmr.msra.gmra.mxu0 %v86_v33 }
  0x22   :  { %307 = vmatmul.bf16.vlgmr.msra.gmra.mxu1 %v87_v34 }
  0x23   :  { %320 = vmatmul.bf16.vlgmr.msra.gmra.mxu2 %v88_v35 }
  0x24   :  { %333 = vmatmul.bf16.vlgmr.msra.gmra.mxu3 %v89_v36 }
  0x9e   :  { %v295_v38 = vpop.f32.mrf.mxu0 }
  0x9f   :  { %v308_v39 = vpop.f32.mrf.mxu1  ;;  %v296_v40 = vadd.f32 %v516_v37, %v295_v38 }
  0xa1   :  { %v309_v41 = vadd.f32 %v308_v39, %v296_v40 }
  0xa6   :  { %v321_v42 = vpop.f32.mrf.mxu2  ;;  %v297_v45 = vpop.f32.mrf.mxu0 }
  0xa7   :  { %v334_v43 = vpop.f32.mrf.mxu3  ;;  %v322_v44 = vadd.f32 %v321_v42, %v309_v41  ;;  %v310_v46 = vpop.f32.mrf.mxu1 }
  0xa9   :  { %v335_v47 = vadd.f32 %v334_v43, %v322_v44 }
  0xab   :  { %338 = vst [vmem:[#allocation2] sm:$0x3] %v335_v47 }
  0xac   :  { %349 = dma.vmem_to_hbm [thread:$0]  %s345_s24, 32, %s347_s27, [#allocation3]  }
  0xae   :  { %v323_v48 = vpop.f32.mrf.mxu2 }
  0xaf   :  { %v336_v49 = vpop.f32.mrf.mxu3 }
  0xb0   :  { %541 = dma.done.wait [#allocation3], 32  }
  0xb1   :  { %542 = vsyncadd [#allocation3], 4294967264 }
  0xb2   :  { %354 = vsyncpa [#allocation3], 1 }

// kernel: dqn_forward.6
= control target key start
LH: loop header
LB: loop body
LE: loop exit
PB: predicated region body
PF: predicated region fallthrough
CT: control target
= control target key end

     0   :  { %s3779_s1 = inlined_call_operand.vmem [shape: bf16[3200,128], index: 1, kind: input, shape index: {}]   ;;  %s3780_s0 = inlined_call_operand.vmem [shape: bf16[8,3200], index: 0, kind: input, shape index: {}]   ;;  %s3781_s2 = inlined_call_operand.vmem [shape: f32[1,128], index: 2, kind: input, shape index: {}]   ;;  %s3782_s3 = inlined_call_operand.vmem [shape: f32[1,128], index: 3, kind: input, shape index: {}]   ;;  %s3783_s4 = inlined_call_operand.vmem [shape: bf16[8,128], index: 4, kind: output, shape index: {}]  }
   0x1   :  { %v2905_v0 = vld [vmem:[%s3779_s1 + $0x38] sm:$0xff]  ;;  %v2904_v4 = vld [vmem:[%s3779_s1 + $0x30] sm:$0xff]  ;;  %v2903_v8 = vld [vmem:[%s3779_s1 + $0x28] sm:$0xff] }
   0x2   :  { %v2921_v1 = vld [vmem:[%s3779_s1 + $0xb8] sm:$0xff]  ;;  %1718 = vmatpush.bf16.msra.mxu0 %v2905_v0  ;;  %v2920_v5 = vld [vmem:[%s3779_s1 + $0xb0] sm:$0xff]  ;;  %v2919_v9 = vld [vmem:[%s3779_s1 + $0xa8] sm:$0xff] }
   0x3   :  { %v2913_v2 = vld [vmem:[%s3779_s1 + $0x78] sm:$0xff]  ;;  %1744 = vmatpush.bf16.msra.mxu2 %v2921_v1  ;;  %v2912_v6 = vld [vmem:[%s3779_s1 + $0x70] sm:$0xff]  ;;  %v2911_v10 = vld [vmem:[%s3779_s1 + $0x68] sm:$0xff] }
   0x4   :  { %v2929_v3 = vld [vmem:[%s3779_s1 + $0xf8] sm:$0xff]  ;;  %1731 = vmatpush.bf16.msra.mxu1 %v2913_v2  ;;  %v2928_v7 = vld [vmem:[%s3779_s1 + $0xf0] sm:$0xff]  ;;  %v2927_v11 = vld [vmem:[%s3779_s1 + $0xe8] sm:$0xff] }
   0x5   :  { %1757 = vmatpush.bf16.msra.mxu3 %v2929_v3  ;;  %v2902_v12 = vld [vmem:[%s3779_s1 + $0x20] sm:$0xff]  ;;  %v2901_v16 = vld [vmem:[%s3779_s1 + $0x18] sm:$0xff]  ;;  %v2900_v20 = vld [vmem:[%s3779_s1 + $0x10] sm:$0xff] }
   0x6   :  { %1719 = vmatpush.bf16.msra.mxu0 %v2904_v4  ;;  %v2918_v13 = vld [vmem:[%s3779_s1 + $0xa0] sm:$0xff]  ;;  %v2917_v17 = vld [vmem:[%s3779_s1 + $0x98] sm:$0xff]  ;;  %v2916_v21 = vld [vmem:[%s3779_s1 + $0x90] sm:$0xff] }
   0x7   :  { %1745 = vmatpush.bf16.msra.mxu2 %v2920_v5  ;;  %v2910_v14 = vld [vmem:[%s3779_s1 + $0x60] sm:$0xff]  ;;  %v2909_v18 = vld [vmem:[%s3779_s1 + $0x58] sm:$0xff]  ;;  %v2908_v22 = vld [vmem:[%s3779_s1 + $0x50] sm:$0xff] }
   0x8   :  { %1732 = vmatpush.bf16.msra.mxu1 %v2912_v6  ;;  %v2926_v15 = vld [vmem:[%s3779_s1 + $0xe0] sm:$0xff]  ;;  %v2925_v19 = vld [vmem:[%s3779_s1 + $0xd8] sm:$0xff]  ;;  %v2924_v23 = vld [vmem:[%s3779_s1 + $0xd0] sm:$0xff] }
   0x9   :  { %1758 = vmatpush.bf16.msra.mxu3 %v2928_v7  ;;  %v2899_v24 = vld [vmem:[%s3779_s1 + $0x8] sm:$0xff]  ;;  %v17_v29 = vld [vmem:[%s3780_s0] sm:$0xff]  ;;  %v2937_v34 = vld [vmem:[%s3779_s1 + $0x138] sm:$0xff] }
   0xa   :  { %1720 = vmatpush.bf16.msra.mxu0 %v2903_v8  ;;  %v2915_v25 = vld [vmem:[%s3779_s1 + $0x88] sm:$0xff]  ;;  %v2898_v30 = vld [vmem:[%s3779_s1] sm:$0xff]  ;;  %v443_v33 = vunpack.c.l.b16 %v17_v29  ;;  %v2953_v35 = vld [vmem:[%s3779_s1 + $0x1b8] sm:$0xff]  ;;  %v444_v39 = vunpack.c.h.b16 %v17_v29 }
   0xb   :  { %1746 = vmatpush.bf16.msra.mxu2 %v2919_v9  ;;  %v2907_v26 = vld [vmem:[%s3779_s1 + $0x48] sm:$0xff]  ;;  %v2914_v31 = vld [vmem:[%s3779_s1 + $0x80] sm:$0xff]  ;;  %v2945_v40 = vld [vmem:[%s3779_s1 + $0x178] sm:$0xff] }
   0xc   :  { %1733 = vmatpush.bf16.msra.mxu1 %v2911_v10  ;;  %v2923_v27 = vld [vmem:[%s3779_s1 + $0xc8] sm:$0xff]  ;;  %v2906_v36 = vld [vmem:[%s3779_s1 + $0x40] sm:$0xff]  ;;  %v2961_v41 = vld [vmem:[%s3779_s1 + $0x1f8] sm:$0xff]  ;;  %v468_v43 = vpack.c.b16 %v443_v33, %v443_v33  ;;  %v469_v47 = vpack.c.b16 %v444_v39, %v444_v39 }
   0xd   :  { %1759 = vmatpush.bf16.msra.mxu3 %v2927_v11  ;;  %v18_v28 = vld [vmem:[%s3780_s0 + $0x8] sm:$0xff]  ;;  %v2922_v37 = vld [vmem:[%s3779_s1 + $0xc0] sm:$0xff]  ;;  %v2936_v44 = vld [vmem:[%s3779_s1 + $0x130] sm:$0xff] }
   0xe   :  { %1721 = vmatpush.bf16.msra.mxu0 %v2902_v12  ;;  %v445_v32 = vunpack.c.l.b16 %v18_v28  ;;  %v446_v38 = vunpack.c.h.b16 %v18_v28  ;;  %v2952_v45 = vld [vmem:[%s3779_s1 + $0x1b0] sm:$0xff]  ;;  %v2935_v50 = vld [vmem:[%s3779_s1 + $0x128] sm:$0xff]  ;;  %v2934_v54 = vld [vmem:[%s3779_s1 + $0x120] sm:$0xff] }
   0xf   :  { %1747 = vmatpush.bf16.msra.mxu2 %v2918_v13  ;;  %v2944_v48 = vld [vmem:[%s3779_s1 + $0x170] sm:$0xff]  ;;  %v2951_v51 = vld [vmem:[%s3779_s1 + $0x1a8] sm:$0xff]  ;;  %v2950_v55 = vld [vmem:[%s3779_s1 + $0x1a0] sm:$0xff] }
  0x10   :  { %1734 = vmatpush.bf16.msra.mxu1 %v2910_v14  ;;  %v470_v42 = vpack.c.b16 %v445_v32, %v445_v32  ;;  %v471_v46 = vpack.c.b16 %v446_v38, %v446_v38  ;;  %v2960_v49 = vld [vmem:[%s3779_s1 + $0x1f0] sm:$0xff]  ;;  %v2943_v52 = vld [vmem:[%s3779_s1 + $0x168] sm:$0xff]  ;;  %v2942_v56 = vld [vmem:[%s3779_s1 + $0x160] sm:$0xff] }
  0x11   :  { %1760 = vmatpush.bf16.msra.mxu3 %v2926_v15  ;;  %v2959_v53 = vld [vmem:[%s3779_s1 + $0x1e8] sm:$0xff]  ;;  %v2958_v57 = vld [vmem:[%s3779_s1 + $0x1e0] sm:$0xff]  ;;  %v2933_v58 = vld [vmem:[%s3779_s1 + $0x118] sm:$0xff] }
  0x12   :  { %1722 = vmatpush.bf16.msra.mxu0 %v2901_v16  ;;  %v2949_v59 = vld [vmem:[%s3779_s1 + $0x198] sm:$0xff]  ;;  %v2932_v62 = vld [vmem:[%s3779_s1 + $0x110] sm:$0xff]  ;;  %v2931_v2 = vld [vmem:[%s3779_s1 + $0x108] sm:$0xff] }
  0x13   :  { %1748 = vmatpush.bf16.msra.mxu2 %v2917_v17  ;;  %v2941_v60 = vld [vmem:[%s3779_s1 + $0x158] sm:$0xff]  ;;  %v2948_v63 = vld [vmem:[%s3779_s1 + $0x190] sm:$0xff]  ;;  %v2947_v3 = vld [vmem:[%s3779_s1 + $0x188] sm:$0xff] }
  0x14   :  { %1735 = vmatpush.bf16.msra.mxu1 %v2909_v18  ;;  %v2957_v61 = vld [vmem:[%s3779_s1 + $0x1d8] sm:$0xff]  ;;  %v2940_v0 = vld [vmem:[%s3779_s1 + $0x150] sm:$0xff]  ;;  %v2939_v6 = vld [vmem:[%s3779_s1 + $0x148] sm:$0xff] }
  0x15   :  { %1761 = vmatpush.bf16.msra.mxu3 %v2925_v19  ;;  %v2956_v1 = vld [vmem:[%s3779_s1 + $0x1d0] sm:$0xff]  ;;  %v20_v4 = vld [vmem:[%s3780_s0 + $0x18] sm:$0xff]  ;;  %v2955_v7 = vld [vmem:[%s3779_s1 + $0x1c8] sm:$0xff] }
  0x16   :  { %1723 = vmatpush.bf16.msra.mxu0 %v2900_v20  ;;  %v19_v5 = vld [vmem:[%s3780_s0 + $0x10] sm:$0xff]  ;;  %v2930_v8 = vld [vmem:[%s3779_s1 + $0x100] sm:$0xff]  ;;  %v449_v10 = vunpack.c.l.b16 %v20_v4  ;;  %v2969_v12 = vld [vmem:[%s3779_s1 + $0x238] sm:$0xff]  ;;  %v450_v16 = vunpack.c.h.b16 %v20_v4 }
  0x17   :  { %1749 = vmatpush.bf16.msra.mxu2 %v2916_v21  ;;  %v2946_v9 = vld [vmem:[%s3779_s1 + $0x180] sm:$0xff]  ;;  %v447_v11 = vunpack.c.l.b16 %v19_v5  ;;  %v2985_v13 = vld [vmem:[%s3779_s1 + $0x2b8] sm:$0xff]  ;;  %v448_v17 = vunpack.c.h.b16 %v19_v5  ;;  %v2967_v28 = vld [vmem:[%s3779_s1 + $0x228] sm:$0xff] }
  0x18   :  { %1736 = vmatpush.bf16.msra.mxu1 %v2908_v22  ;;  %v2938_v14 = vld [vmem:[%s3779_s1 + $0x140] sm:$0xff]  ;;  %v2977_v18 = vld [vmem:[%s3779_s1 + $0x278] sm:$0xff]  ;;  %v474_v20 = vpack.c.b16 %v449_v10, %v449_v10  ;;  %v2968_v22 = vld [vmem:[%s3779_s1 + $0x230] sm:$0xff] }
  0x19   :  { %1762 = vmatpush.bf16.msra.mxu3 %v2924_v23  ;;  %v2954_v15 = vld [vmem:[%s3779_s1 + $0x1c0] sm:$0xff]  ;;  %v2993_v19 = vld [vmem:[%s3779_s1 + $0x2f8] sm:$0xff]  ;;  %v472_v21 = vpack.c.b16 %v447_v11, %v447_v11  ;;  %v2984_v23 = vld [vmem:[%s3779_s1 + $0x2b0] sm:$0xff] }
  0x1a   :  { %1724 = vmatpush.bf16.msra.mxu0 %v2899_v24  ;;  %v475_v24 = vpack.c.b16 %v450_v16, %v450_v16  ;;  %v2983_v29 = vld [vmem:[%s3779_s1 + $0x2a8] sm:$0xff]  ;;  %v2966_v32 = vld [vmem:[%s3779_s1 + $0x220] sm:$0xff]  ;;  %v2973_v38 = vld [vmem:[%s3779_s1 + $0x258] sm:$0xff] }
  0x1b   :  { %1750 = vmatpush.bf16.msra.mxu2 %v2915_v25  ;;  %v473_v25 = vpack.c.b16 %v448_v17, %v448_v17  ;;  %v2982_v33 = vld [vmem:[%s3779_s1 + $0x2a0] sm:$0xff]  ;;  %v2989_v39 = vld [vmem:[%s3779_s1 + $0x2d8] sm:$0xff]  ;;  %v3008_v4 = vld [vmem:[%s3779_s1 + $0x370] sm:$0xff] }
  0x1c   :  { %1737 = vmatpush.bf16.msra.mxu1 %v2907_v26  ;;  %v2976_v26 = vld [vmem:[%s3779_s1 + $0x270] sm:$0xff]  ;;  %v2998_v10 = vld [vmem:[%s3779_s1 + $0x320] sm:$0xff]  ;;  %v3005_v16 = vld [vmem:[%s3779_s1 + $0x358] sm:$0xff] }
  0x1d   :  { %1763 = vmatpush.bf16.msra.mxu3 %v2923_v27  ;;  %v2992_v27 = vld [vmem:[%s3779_s1 + $0x2f0] sm:$0xff]  ;;  %v3014_v11 = vld [vmem:[%s3779_s1 + $0x3a0] sm:$0xff]  ;;  %v3021_v17 = vld [vmem:[%s3779_s1 + $0x3d8] sm:$0xff] }
  0x1e   :  { %1725 = vmatpush.bf16.msra.mxu0 %v2898_v30  ;;  %v2975_v30 = vld [vmem:[%s3779_s1 + $0x268] sm:$0xff]  ;;  %v3024_v5 = vld [vmem:[%s3779_s1 + $0x3f0] sm:$0xff] }
  0x1f   :  { %1751 = vmatpush.bf16.msra.mxu2 %v2914_v31  ;;  %v2991_v31 = vld [vmem:[%s3779_s1 + $0x2e8] sm:$0xff] }
  0x20   :  { %1738 = vmatpush.bf16.msra.mxu1 %v2906_v36  ;;  %v2965_v36 = vld [vmem:[%s3779_s1 + $0x218] sm:$0xff] }
  0x21   :  { %1764 = vmatpush.bf16.msra.mxu3 %v2922_v37  ;;  %1726 = vmatmul.bf16.vlgmr.msra.gmra.mxu0 %v468_v43  ;;  %v2981_v37 = vld [vmem:[%s3779_s1 + $0x298] sm:$0xff]  ;;  %v2988_v43 = vld [vmem:[%s3779_s1 + $0x2d0] sm:$0xff] }
  0x22   :  { %1770 = vmatpush.bf16.msrb.mxu0 %v2937_v34  ;;  %1752 = vmatmul.bf16.vlgmr.msra.gmra.mxu2 %v470_v42  ;;  %v2974_v34 = vld [vmem:[%s3779_s1 + $0x260] sm:$0xff]  ;;  %v2972_v42 = vld [vmem:[%s3779_s1 + $0x250] sm:$0xff] }
  0x23   :  { %1796 = vmatpush.bf16.msrb.mxu2 %v2953_v35  ;;  %1739 = vmatmul.bf16.vlgmr.msra.gmra.mxu1 %v469_v47  ;;  %v2990_v35 = vld [vmem:[%s3779_s1 + $0x2e0] sm:$0xff]  ;;  %v22_v47 = vld [vmem:[%s3780_s0 + $0x28] sm:$0xff] }
  0x24   :  { %1783 = vmatpush.bf16.msrb.mxu1 %v2945_v40  ;;  %1765 = vmatmul.bf16.vlgmr.msra.gmra.mxu3 %v471_v46  ;;  %v2964_v40 = vld [vmem:[%s3779_s1 + $0x210] sm:$0xff]  ;;  %v21_v46 = vld [vmem:[%s3780_s0 + $0x20] sm:$0xff] }
  0x25   :  { %1809 = vmatpush.bf16.msrb.mxu3 %v2961_v41  ;;  %v2980_v41 = vld [vmem:[%s3779_s1 + $0x290] sm:$0xff] }
  0x26   :  { %1771 = vmatpush.bf16.msrb.mxu0 %v2936_v44  ;;  %v2963_v44 = vld [vmem:[%s3779_s1 + $0x208] sm:$0xff] }
  0x27   :  { %1797 = vmatpush.bf16.msrb.mxu2 %v2952_v45  ;;  %v2979_v45 = vld [vmem:[%s3779_s1 + $0x288] sm:$0xff] }
  0x28   :  { %1784 = vmatpush.bf16.msrb.mxu1 %v2944_v48  ;;  %v2971_v48 = vld [vmem:[%s3779_s1 + $0x248] sm:$0xff] }
  0x29   :  { %1810 = vmatpush.bf16.msrb.mxu3 %v2960_v49  ;;  %v2987_v49 = vld [vmem:[%s3779_s1 + $0x2c8] sm:$0xff] }
  0x2a   :  { %1772 = vmatpush.bf16.msrb.mxu0 %v2935_v50  ;;  %v451_v50 = vunpack.c.l.b16 %v21_v46 }
  0x2b   :  { %1798 = vmatpush.bf16.msrb.mxu2 %v2951_v51  ;;  %v453_v51 = vunpack.c.l.b16 %v22_v47 }
  0x2c   :  { %1785 = vmatpush.bf16.msrb.mxu1 %v2943_v52  ;;  %v2962_v52 = vld [vmem:[%s3779_s1 + $0x200] sm:$0xff] }
  0x2d   :  { %1811 = vmatpush.bf16.msrb.mxu3 %v2959_v53  ;;  %v2978_v53 = vld [vmem:[%s3779_s1 + $0x280] sm:$0xff] }
  0x2e   :  { %1773 = vmatpush.bf16.msrb.mxu0 %v2934_v54  ;;  %v3001_v54 = vld [vmem:[%s3779_s1 + $0x338] sm:$0xff] }
  0x2f   :  { %1799 = vmatpush.bf16.msrb.mxu2 %v2950_v55  ;;  %v3017_v55 = vld [vmem:[%s3779_s1 + $0x3b8] sm:$0xff] }
  0x30   :  { %1786 = vmatpush.bf16.msrb.mxu1 %v2942_v56  ;;  %v452_v56 = vunpack.c.h.b16 %v21_v46  ;;  %v3040_v46 = vld [vmem:[%s3779_s1 + $0x470] sm:$0xff] }
  0x31   :  { %1812 = vmatpush.bf16.msrb.mxu3 %v2958_v57  ;;  %v454_v57 = vunpack.c.h.b16 %v22_v47  ;;  %v3056_v47 = vld [vmem:[%s3779_s1 + $0x4f0] sm:$0xff] }
  0x32   :  { %1774 = vmatpush.bf16.msrb.mxu0 %v2933_v58  ;;  %v2970_v58 = vld [vmem:[%s3779_s1 + $0x240] sm:$0xff] }
  0x33   :  { %1800 = vmatpush.bf16.msrb.mxu2 %v2949_v59  ;;  %v2986_v59 = vld [vmem:[%s3779_s1 + $0x2c0] sm:$0xff] }
  0x34   :  { %1787 = vmatpush.bf16.msrb.mxu1 %v2941_v60  ;;  %v476_v60 = vpack.c.b16 %v451_v50, %v451_v50  ;;  %v3039_v50 = vld [vmem:[%s3779_s1 + $0x468] sm:$0xff] }
  0x35   :  { %1813 = vmatpush.bf16.msrb.mxu3 %v2957_v61  ;;  %v478_v61 = vpack.c.b16 %v453_v51, %v453_v51  ;;  %v3055_v51 = vld [vmem:[%s3779_s1 + $0x4e8] sm:$0xff] }
  0x36   :  { %1775 = vmatpush.bf16.msrb.mxu0 %v2932_v62  ;;  %v3009_v62 = vld [vmem:[%s3779_s1 + $0x378] sm:$0xff] }
  0x37   :  { %1801 = vmatpush.bf16.msrb.mxu2 %v2948_v63  ;;  %v3025_v63 = vld [vmem:[%s3779_s1 + $0x3f8] sm:$0xff] }
  0x38   :  { %1788 = vmatpush.bf16.msrb.mxu1 %v2940_v0  ;;  %v477_v0 = vpack.c.b16 %v452_v56, %v452_v56  ;;  %v3029_v56 = vld [vmem:[%s3779_s1 + $0x418] sm:$0xff] }
  0x39   :  { %1814 = vmatpush.bf16.msrb.mxu3 %v2956_v1  ;;  %v479_v1 = vpack.c.b16 %v454_v57, %v454_v57  ;;  %v3045_v57 = vld [vmem:[%s3779_s1 + $0x498] sm:$0xff] }
  0x3a   :  { %1776 = vmatpush.bf16.msrb.mxu0 %v2931_v2  ;;  %v3000_v2 = vld [vmem:[%s3779_s1 + $0x330] sm:$0xff] }
  0x3b   :  { %1802 = vmatpush.bf16.msrb.mxu2 %v2947_v3  ;;  %v3016_v3 = vld [vmem:[%s3779_s1 + $0x3b0] sm:$0xff] }
  0x3c   :  { %1789 = vmatpush.bf16.msrb.mxu1 %v2939_v6  ;;  %v2999_v6 = vld [vmem:[%s3779_s1 + $0x328] sm:$0xff] }
  0x3d   :  { %1815 = vmatpush.bf16.msrb.mxu3 %v2955_v7  ;;  %v3015_v7 = vld [vmem:[%s3779_s1 + $0x3a8] sm:$0xff] }
  0x3e   :  { %1777 = vmatpush.bf16.msrb.mxu0 %v2930_v8  ;;  %v3007_v8 = vld [vmem:[%s3779_s1 + $0x368] sm:$0xff] }
  0x3f   :  { %1803 = vmatpush.bf16.msrb.mxu2 %v2946_v9  ;;  %v3023_v9 = vld [vmem:[%s3779_s1 + $0x3e8] sm:$0xff] }
  0x40   :  { %1790 = vmatpush.bf16.msrb.mxu1 %v2938_v14  ;;  %v2997_v14 = vld [vmem:[%s3779_s1 + $0x318] sm:$0xff] }
  0x41   :  { %1816 = vmatpush.bf16.msrb.mxu3 %v2954_v15  ;;  %1778 = vmatmul.bf16.vlgmr.msrb.gmra.mxu0 %v472_v21  ;;  %v3013_v15 = vld [vmem:[%s3779_s1 + $0x398] sm:$0xff]  ;;  %v3020_v21 = vld [vmem:[%s3779_s1 + $0x3d0] sm:$0xff] }
  0x42   :  { %1822 = vmatpush.bf16.msra.mxu0 %v2969_v12  ;;  %1804 = vmatmul.bf16.vlgmr.msrb.gmra.mxu2 %v474_v20  ;;  %v3006_v12 = vld [vmem:[%s3779_s1 + $0x360] sm:$0xff]  ;;  %v3004_v20 = vld [vmem:[%s3779_s1 + $0x350] sm:$0xff] }
  0x43   :  { %1848 = vmatpush.bf16.msra.mxu2 %v2985_v13  ;;  %1791 = vmatmul.bf16.vlgmr.msrb.gmra.mxu1 %v473_v25  ;;  %v3022_v13 = vld [vmem:[%s3779_s1 + $0x3e0] sm:$0xff]  ;;  %v24_v25 = vld [vmem:[%s3780_s0 + $0x38] sm:$0xff] }
  0x44   :  { %1835 = vmatpush.bf16.msra.mxu1 %v2977_v18  ;;  %1817 = vmatmul.bf16.vlgmr.msrb.gmra.mxu3 %v475_v24  ;;  %v2996_v18 = vld [vmem:[%s3779_s1 + $0x310] sm:$0xff] }
  0x45   :  { %1861 = vmatpush.bf16.msra.mxu3 %v2993_v19  ;;  %v3012_v19 = vld [vmem:[%s3779_s1 + $0x390] sm:$0xff] }
  0x46   :  { %1823 = vmatpush.bf16.msra.mxu0 %v2968_v22  ;;  %v2995_v22 = vld [vmem:[%s3779_s1 + $0x308] sm:$0xff]  ;;  %v23_v24 = vld [vmem:[%s3780_s0 + $0x30] sm:$0xff] }
  0x47   :  { %1849 = vmatpush.bf16.msra.mxu2 %v2984_v23  ;;  %v3011_v23 = vld [vmem:[%s3779_s1 + $0x388] sm:$0xff] }
  0x48   :  { %1836 = vmatpush.bf16.msra.mxu1 %v2976_v26  ;;  %v3003_v26 = vld [vmem:[%s3779_s1 + $0x348] sm:$0xff] }
  0x49   :  { %1862 = vmatpush.bf16.msra.mxu3 %v2992_v27  ;;  %v3019_v27 = vld [vmem:[%s3779_s1 + $0x3c8] sm:$0xff] }
  0x4a   :  { %1824 = vmatpush.bf16.msra.mxu0 %v2967_v28  ;;  %v455_v28 = vunpack.c.l.b16 %v23_v24 }
  0x4b   :  { %1850 = vmatpush.bf16.msra.mxu2 %v2983_v29  ;;  %v457_v29 = vunpack.c.l.b16 %v24_v25 }
  0x4c   :  { %1837 = vmatpush.bf16.msra.mxu1 %v2975_v30  ;;  %v2994_v30 = vld [vmem:[%s3779_s1 + $0x300] sm:$0xff] }
  0x4d   :  { %1863 = vmatpush.bf16.msra.mxu3 %v2991_v31  ;;  %v3010_v31 = vld [vmem:[%s3779_s1 + $0x380] sm:$0xff] }
  0x4e   :  { %1825 = vmatpush.bf16.msra.mxu0 %v2966_v32  ;;  %v3033_v32 = vld [vmem:[%s3779_s1 + $0x438] sm:$0xff] }
  0x4f   :  { %1851 = vmatpush.bf16.msra.mxu2 %v2982_v33  ;;  %v3049_v33 = vld [vmem:[%s3779_s1 + $0x4b8] sm:$0xff] }
  0x50   :  { %1838 = vmatpush.bf16.msra.mxu1 %v2974_v34  ;;  %v456_v34 = vunpack.c.h.b16 %v23_v24  ;;  %v3072_v24 = vld [vmem:[%s3779_s1 + $0x570] sm:$0xff] }
  0x51   :  { %1864 = vmatpush.bf16.msra.mxu3 %v2990_v35  ;;  %v458_v35 = vunpack.c.h.b16 %v24_v25  ;;  %v3088_v25 = vld [vmem:[%s3779_s1 + $0x5f0] sm:$0xff] }
  0x52   :  { %1826 = vmatpush.bf16.msra.mxu0 %v2965_v36  ;;  %v3002_v36 = vld [vmem:[%s3779_s1 + $0x340] sm:$0xff] }
  0x53   :  { %1852 = vmatpush.bf16.msra.mxu2 %v2981_v37  ;;  %v3018_v37 = vld [vmem:[%s3779_s1 + $0x3c0] sm:$0xff] }
  0x54   :  { %1839 = vmatpush.bf16.msra.mxu1 %v2973_v38  ;;  %v480_v38 = vpack.c.b16 %v455_v28, %v455_v28  ;;  %v3071_v28 = vld [vmem:[%s3779_s1 + $0x568] sm:$0xff] }
  0x55   :  { %1865 = vmatpush.bf16.msra.mxu3 %v2989_v39  ;;  %v482_v39 = vpack.c.b16 %v457_v29, %v457_v29  ;;  %v3087_v29 = vld [vmem:[%s3779_s1 + $0x5e8] sm:$0xff] }
  0x56   :  { %1827 = vmatpush.bf16.msra.mxu0 %v2964_v40  ;;  %v3041_v40 = vld [vmem:[%s3779_s1 + $0x478] sm:$0xff] }
  0x57   :  { %1853 = vmatpush.bf16.msra.mxu2 %v2980_v41  ;;  %v3057_v41 = vld [vmem:[%s3779_s1 + $0x4f8] sm:$0xff] }
  0x58   :  { %1840 = vmatpush.bf16.msra.mxu1 %v2972_v42  ;;  %v481_v42 = vpack.c.b16 %v456_v34, %v456_v34  ;;  %v3086_v34 = vld [vmem:[%s3779_s1 + $0x5e0] sm:$0xff] }
  0x59   :  { %1866 = vmatpush.bf16.msra.mxu3 %v2988_v43  ;;  %v483_v43 = vpack.c.b16 %v458_v35, %v458_v35 }
  0x5a   :  { %1828 = vmatpush.bf16.msra.mxu0 %v2963_v44  ;;  %v3032_v44 = vld [vmem:[%s3779_s1 + $0x430] sm:$0xff] }
  0x5b   :  { %1854 = vmatpush.bf16.msra.mxu2 %v2979_v45  ;;  %v3048_v45 = vld [vmem:[%s3779_s1 + $0x4b0] sm:$0xff] }
  0x5c   :  { %1841 = vmatpush.bf16.msra.mxu1 %v2971_v48  ;;  %v3031_v48 = vld [vmem:[%s3779_s1 + $0x428] sm:$0xff] }
  0x5d   :  { %1867 = vmatpush.bf16.msra.mxu3 %v2987_v49  ;;  %v3047_v49 = vld [vmem:[%s3779_s1 + $0x4a8] sm:$0xff] }
  0x5e   :  { %1829 = vmatpush.bf16.msra.mxu0 %v2962_v52  ;;  %v3030_v52 = vld [vmem:[%s3779_s1 + $0x420] sm:$0xff] }
  0x5f   :  { %1855 = vmatpush.bf16.msra.mxu2 %v2978_v53  ;;  %v3046_v53 = vld [vmem:[%s3779_s1 + $0x4a0] sm:$0xff] }
  0x60   :  { %1842 = vmatpush.bf16.msra.mxu1 %v2970_v58  ;;  %v3037_v58 = vld [vmem:[%s3779_s1 + $0x458] sm:$0xff] }
  0x61   :  { %1868 = vmatpush.bf16.msra.mxu3 %v2986_v59  ;;  %1830 = vmatmul.bf16.vlgmr.msra.gmra.mxu0 %v476_v60  ;;  %v3053_v59 = vld [vmem:[%s3779_s1 + $0x4d8] sm:$0xff]  ;;  %v3028_v60 = vld [vmem:[%s3779_s1 + $0x410] sm:$0xff] }
  0x62   :  { %1874 = vmatpush.bf16.msrb.mxu0 %v3001_v54  ;;  %1856 = vmatmul.bf16.vlgmr.msra.gmra.mxu2 %v478_v61  ;;  %v3038_v54 = vld [vmem:[%s3779_s1 + $0x460] sm:$0xff]  ;;  %v3044_v61 = vld [vmem:[%s3779_s1 + $0x490] sm:$0xff] }
  0x63   :  { %1900 = vmatpush.bf16.msrb.mxu2 %v3017_v55  ;;  %1843 = vmatmul.bf16.vlgmr.msra.gmra.mxu1 %v477_v0  ;;  %v3054_v55 = vld [vmem:[%s3779_s1 + $0x4e0] sm:$0xff]  ;;  %v3027_v0 = vld [vmem:[%s3779_s1 + $0x408] sm:$0xff] }
  0x64   :  { %1887 = vmatpush.bf16.msrb.mxu1 %v3009_v62  ;;  %1869 = vmatmul.bf16.vlgmr.msra.gmra.mxu3 %v479_v1  ;;  %v3036_v62 = vld [vmem:[%s3779_s1 + $0x450] sm:$0xff]  ;;  %v3043_v1 = vld [vmem:[%s3779_s1 + $0x488] sm:$0xff] }
  0x65   :  { %1913 = vmatpush.bf16.msrb.mxu3 %v3025_v63  ;;  %v3052_v63 = vld [vmem:[%s3779_s1 + $0x4d0] sm:$0xff] }
  0x66   :  { %1875 = vmatpush.bf16.msrb.mxu0 %v3000_v2  ;;  %v25_v2 = vld [vmem:[%s3780_s0 + $0x40] sm:$0xff] }
  0x67   :  { %1901 = vmatpush.bf16.msrb.mxu2 %v3016_v3  ;;  %v26_v3 = vld [vmem:[%s3780_s0 + $0x48] sm:$0xff] }
  0x68   :  { %1888 = vmatpush.bf16.msrb.mxu1 %v3008_v4  ;;  %v3035_v4 = vld [vmem:[%s3779_s1 + $0x448] sm:$0xff] }
  0x69   :  { %1914 = vmatpush.bf16.msrb.mxu3 %v3024_v5  ;;  %v3051_v5 = vld [vmem:[%s3779_s1 + $0x4c8] sm:$0xff] }
  0x6a   :  { %1876 = vmatpush.bf16.msrb.mxu0 %v2999_v6  ;;  %v459_v6 = vunpack.c.l.b16 %v25_v2 }
  0x6b   :  { %1902 = vmatpush.bf16.msrb.mxu2 %v3015_v7  ;;  %v461_v7 = vunpack.c.l.b16 %v26_v3 }
  0x6c   :  { %1889 = vmatpush.bf16.msrb.mxu1 %v3007_v8  ;;  %v3026_v8 = vld [vmem:[%s3779_s1 + $0x400] sm:$0xff] }
  0x6d   :  { %1915 = vmatpush.bf16.msrb.mxu3 %v3023_v9  ;;  %v3042_v9 = vld [vmem:[%s3779_s1 + $0x480] sm:$0xff] }
  0x6e   :  { %1877 = vmatpush.bf16.msrb.mxu0 %v2998_v10  ;;  %v3065_v10 = vld [vmem:[%s3779_s1 + $0x538] sm:$0xff] }
  0x6f   :  { %1903 = vmatpush.bf16.msrb.mxu2 %v3014_v11  ;;  %v3081_v11 = vld [vmem:[%s3779_s1 + $0x5b8] sm:$0xff] }
  0x70   :  { %1890 = vmatpush.bf16.msrb.mxu1 %v3006_v12  ;;  %v460_v12 = vunpack.c.h.b16 %v25_v2  ;;  %v3066_v2 = vld [vmem:[%s3779_s1 + $0x540] sm:$0xff] }
  0x71   :  { %1916 = vmatpush.bf16.msrb.mxu3 %v3022_v13  ;;  %v462_v13 = vunpack.c.h.b16 %v26_v3  ;;  %v3082_v3 = vld [vmem:[%s3779_s1 + $0x5c0] sm:$0xff] }
  0x72   :  { %1878 = vmatpush.bf16.msrb.mxu0 %v2997_v14  ;;  %v3034_v14 = vld [vmem:[%s3779_s1 + $0x440] sm:$0xff] }
  0x73   :  { %1904 = vmatpush.bf16.msrb.mxu2 %v3013_v15  ;;  %v3050_v15 = vld [vmem:[%s3779_s1 + $0x4c0] sm:$0xff] }
  0x74   :  { %1891 = vmatpush.bf16.msrb.mxu1 %v3005_v16  ;;  %v484_v16 = vpack.c.b16 %v459_v6, %v459_v6 }
  0x75   :  { %1917 = vmatpush.bf16.msrb.mxu3 %v3021_v17  ;;  %v486_v17 = vpack.c.b16 %v461_v7, %v461_v7 }
  0x76   :  { %1879 = vmatpush.bf16.msrb.mxu0 %v2996_v18  ;;  %v3073_v18 = vld [vmem:[%s3779_s1 + $0x578] sm:$0xff] }
  0x77   :  { %1905 = vmatpush.bf16.msrb.mxu2 %v3012_v19  ;;  %v3089_v19 = vld [vmem:[%s3779_s1 + $0x5f8] sm:$0xff] }
  0x78   :  { %1892 = vmatpush.bf16.msrb.mxu1 %v3004_v20  ;;  %v485_v20 = vpack.c.b16 %v460_v12, %v460_v12 }
  0x79   :  { %1918 = vmatpush.bf16.msrb.mxu3 %v3020_v21  ;;  %v487_v21 = vpack.c.b16 %v462_v13, %v462_v13 }
  0x7a   :  { %1880 = vmatpush.bf16.msrb.mxu0 %v2995_v22  ;;  %v3064_v22 = vld [vmem:[%s3779_s1 + $0x530] sm:$0xff] }
  0x7b   :  { %1906 = vmatpush.bf16.msrb.mxu2 %v3011_v23  ;;  %v3080_v23 = vld [vmem:[%s3779_s1 + $0x5b0] sm:$0xff] }
  0x7c   :  { %1893 = vmatpush.bf16.msrb.mxu1 %v3003_v26  ;;  %v3063_v26 = vld [vmem:[%s3779_s1 + $0x528] sm:$0xff] }
  0x7d   :  { %1919 = vmatpush.bf16.msrb.mxu3 %v3019_v27  ;;  %v3079_v27 = vld [vmem:[%s3779_s1 + $0x5a8] sm:$0xff] }
  0x7e   :  { %1881 = vmatpush.bf16.msrb.mxu0 %v2994_v30  ;;  %v3062_v30 = vld [vmem:[%s3779_s1 + $0x520] sm:$0xff] }
  0x7f   :  { %1907 = vmatpush.bf16.msrb.mxu2 %v3010_v31  ;;  %v3078_v31 = vld [vmem:[%s3779_s1 + $0x5a0] sm:$0xff] }
  0x80   :  { %1894 = vmatpush.bf16.msrb.mxu1 %v3002_v36  ;;  %v3061_v36 = vld [vmem:[%s3779_s1 + $0x518] sm:$0xff] }
  0x81   :  { %1920 = vmatpush.bf16.msrb.mxu3 %v3018_v37  ;;  %1882 = vmatmul.bf16.vlgmr.msrb.gmra.mxu0 %v480_v38  ;;  %v3077_v37 = vld [vmem:[%s3779_s1 + $0x598] sm:$0xff] }
  0x82   :  { %1926 = vmatpush.bf16.msra.mxu0 %v3033_v32  ;;  %1908 = vmatmul.bf16.vlgmr.msrb.gmra.mxu2 %v482_v39  ;;  %v3069_v39 = vld [vmem:[%s3779_s1 + $0x558] sm:$0xff] }
  0x83   :  { %1952 = vmatpush.bf16.msra.mxu2 %v3049_v33  ;;  %1895 = vmatmul.bf16.vlgmr.msrb.gmra.mxu1 %v481_v42  ;;  %v3070_v33 = vld [vmem:[%s3779_s1 + $0x560] sm:$0xff]  ;;  %v3060_v42 = vld [vmem:[%s3779_s1 + $0x510] sm:$0xff] }
  0x84   :  { %1939 = vmatpush.bf16.msra.mxu1 %v3041_v40  ;;  %1921 = vmatmul.bf16.vlgmr.msrb.gmra.mxu3 %v483_v43  ;;  %v3085_v40 = vld [vmem:[%s3779_s1 + $0x5d8] sm:$0xff]  ;;  %v3076_v43 = vld [vmem:[%s3779_s1 + $0x590] sm:$0xff] }
  0x85   :  { %1965 = vmatpush.bf16.msra.mxu3 %v3057_v41 }
  0x86   :  { %1927 = vmatpush.bf16.msra.mxu0 %v3032_v44 }
  0x87   :  { %1953 = vmatpush.bf16.msra.mxu2 %v3048_v45 }
  0x88   :  { %1940 = vmatpush.bf16.msra.mxu1 %v3040_v46 }
  0x89   :  { %1966 = vmatpush.bf16.msra.mxu3 %v3056_v47  ;;  %v3068_v47 = vld [vmem:[%s3779_s1 + $0x550] sm:$0xff] }
  0x8a   :  { %1928 = vmatpush.bf16.msra.mxu0 %v3031_v48  ;;  %v3084_v48 = vld [vmem:[%s3779_s1 + $0x5d0] sm:$0xff] }
  0x8b   :  { %1954 = vmatpush.bf16.msra.mxu2 %v3047_v49 }
  0x8c   :  { %1941 = vmatpush.bf16.msra.mxu1 %v3039_v50  ;;  %v3059_v50 = vld [vmem:[%s3779_s1 + $0x508] sm:$0xff] }
  0x8d   :  { %1967 = vmatpush.bf16.msra.mxu3 %v3055_v51 }
  0x8e   :  { %1929 = vmatpush.bf16.msra.mxu0 %v3030_v52  ;;  %v3075_v52 = vld [vmem:[%s3779_s1 + $0x588] sm:$0xff] }
  0x8f   :  { %1955 = vmatpush.bf16.msra.mxu2 %v3046_v53  ;;  %v27_v53 = vld [vmem:[%s3780_s0 + $0x50] sm:$0xff] }
  0x90   :  { %1942 = vmatpush.bf16.msra.mxu1 %v3038_v54  ;;  %v28_v54 = vld [vmem:[%s3780_s0 + $0x58] sm:$0xff] }
  0x91   :  { %1968 = vmatpush.bf16.msra.mxu3 %v3054_v55  ;;  %v3067_v55 = vld [vmem:[%s3779_s1 + $0x548] sm:$0xff] }
  0x92   :  { %1930 = vmatpush.bf16.msra.mxu0 %v3029_v56  ;;  %v3083_v56 = vld [vmem:[%s3779_s1 + $0x5c8] sm:$0xff] }
  0x93   :  { %1956 = vmatpush.bf16.msra.mxu2 %v3045_v57  ;;  %v463_v57 = vunpack.c.l.b16 %v27_v53 }
  0x94   :  { %1943 = vmatpush.bf16.msra.mxu1 %v3037_v58  ;;  %v465_v58 = vunpack.c.l.b16 %v28_v54 }
  0x95   :  { %1969 = vmatpush.bf16.msra.mxu3 %v3053_v59 }
  0x96   :  { %1931 = vmatpush.bf16.msra.mxu0 %v3028_v60  ;;  %v3058_v60 = vld [vmem:[%s3779_s1 + $0x500] sm:$0xff] }
  0x97   :  { %1957 = vmatpush.bf16.msra.mxu2 %v3044_v61  ;;  %v3074_v61 = vld [vmem:[%s3779_s1 + $0x580] sm:$0xff] }
  0x98   :  { %1944 = vmatpush.bf16.msra.mxu1 %v3036_v62  ;;  %v3097_v62 = vld [vmem:[%s3779_s1 + $0x638] sm:$0xff] }
  0x99   :  { %1970 = vmatpush.bf16.msra.mxu3 %v3052_v63  ;;  %v464_v63 = vunpack.c.h.b16 %v27_v53 }
  0x9a   :  { %1932 = vmatpush.bf16.msra.mxu0 %v3027_v0  ;;  %v466_v0 = vunpack.c.h.b16 %v28_v54 }
  0x9b   :  { %1958 = vmatpush.bf16.msra.mxu2 %v3043_v1  ;;  %v489_v6 = vpack.c.b16 %v464_v63, %v464_v63 }
  0x9c   :  { %1945 = vmatpush.bf16.msra.mxu1 %v3035_v4  ;;  %v488_v4 = vpack.c.b16 %v463_v57, %v463_v57  ;;  %v491_v7 = vpack.c.b16 %v466_v0, %v466_v0 }
  0x9d   :  { %1971 = vmatpush.bf16.msra.mxu3 %v3051_v5  ;;  %v490_v5 = vpack.c.b16 %v465_v58, %v465_v58 }
  0x9e   :  { %1933 = vmatpush.bf16.msra.mxu0 %v3026_v8  ;;  %v1727_v32 = vpop.f32.mrf.mxu0  ;;  %v3096_v8 = vld [vmem:[%s3779_s1 + $0x630] sm:$0xff] }
  0x9f   :  { %1959 = vmatpush.bf16.msra.mxu2 %v3042_v9  ;;  %v3095_v9 = vld [vmem:[%s3779_s1 + $0x628] sm:$0xff] }
  0xa0   :  { %1946 = vmatpush.bf16.msra.mxu1 %v3034_v14  ;;  %v1740_v35 = vpop.f32.mrf.mxu1 }
  0xa1   :  { %1972 = vmatpush.bf16.msra.mxu3 %v3050_v15  ;;  %1934 = vmatmul.bf16.vlgmr.msra.gmra.mxu0 %v484_v16  ;;  %v1741_v38 = vadd.f32 %v1740_v35, %v1727_v32  ;;  %v3093_v15 = vld [vmem:[%s3779_s1 + $0x618] sm:$0xff] }
  0xa2   :  { %1978 = vmatpush.bf16.msrb.mxu0 %v3065_v10  ;;  %1960 = vmatmul.bf16.vlgmr.msra.gmra.mxu2 %v486_v17  ;;  %v3094_v10 = vld [vmem:[%s3779_s1 + $0x620] sm:$0xff] }
  0xa3   :  { %2004 = vmatpush.bf16.msrb.mxu2 %v3081_v11  ;;  %1947 = vmatmul.bf16.vlgmr.msra.gmra.mxu1 %v485_v20 }
  0xa4   :  { %1991 = vmatpush.bf16.msrb.mxu1 %v3073_v18  ;;  %1973 = vmatmul.bf16.vlgmr.msra.gmra.mxu3 %v487_v21  ;;  %v3092_v18 = vld [vmem:[%s3779_s1 + $0x610] sm:$0xff] }
  0xa5   :  { %2017 = vmatpush.bf16.msrb.mxu3 %v3089_v19  ;;  %v1753_v41 = vpop.f32.mrf.mxu2 }
  0xa6   :  { %1979 = vmatpush.bf16.msrb.mxu0 %v3064_v22  ;;  %v1754_v44 = vadd.f32 %v1753_v41, %v1741_v38  ;;  %v1729_v46 = vpop.f32.mrf.mxu0 }
  0xa7   :  { %2005 = vmatpush.bf16.msrb.mxu2 %v3080_v23  ;;  %v1766_v45 = vpop.f32.mrf.mxu3  ;;  %v3091_v23 = vld [vmem:[%s3779_s1 + $0x608] sm:$0xff] }
  0xa8   :  { %1992 = vmatpush.bf16.msrb.mxu1 %v3072_v24  ;;  %v1767_v49 = vadd.f32 %v1766_v45, %v1754_v44  ;;  %v1742_v51 = vpop.f32.mrf.mxu1  ;;  %v29_v24 = vld [vmem:[%s3780_s0 + $0x60] sm:$0xf] }
  0xa9   :  { %2018 = vmatpush.bf16.msrb.mxu3 %v3088_v25 }
  0xaa   :  { %1980 = vmatpush.bf16.msrb.mxu0 %v3063_v26  ;;  %v467_v26 = vunpack.c.l.b16 %v29_v24 }
  0xab   :  { %2006 = vmatpush.bf16.msrb.mxu2 %v3079_v27  ;;  %v3090_v27 = vld [vmem:[%s3779_s1 + $0x600] sm:$0xff] }
  0xac   :  { %1993 = vmatpush.bf16.msrb.mxu1 %v3071_v28 }
  0xad   :  { %2019 = vmatpush.bf16.msrb.mxu3 %v3087_v29  ;;  %v1755_v59 = vpop.f32.mrf.mxu2  ;;  %v492_v29 = vpack.c.b16 %v467_v26, %v467_v26 }
  0xae   :  { %1981 = vmatpush.bf16.msrb.mxu0 %v3062_v30 }
  0xaf   :  { %2007 = vmatpush.bf16.msrb.mxu2 %v3078_v31  ;;  %v1768_v1 = vpop.f32.mrf.mxu3 }
  0xb0   :  { %1994 = vmatpush.bf16.msrb.mxu1 %v3070_v33 }
  0xb1   :  { %2020 = vmatpush.bf16.msrb.mxu3 %v3086_v34 }
  0xb2   :  { %1982 = vmatpush.bf16.msrb.mxu0 %v3061_v36 }
  0xb3   :  { %2008 = vmatpush.bf16.msrb.mxu2 %v3077_v37 }
  0xb4   :  { %1995 = vmatpush.bf16.msrb.mxu1 %v3069_v39 }
  0xb5   :  { %2021 = vmatpush.bf16.msrb.mxu3 %v3085_v40 }
  0xb6   :  { %1983 = vmatpush.bf16.msrb.mxu0 %v3060_v42 }
  0xb7   :  { %2009 = vmatpush.bf16.msrb.mxu2 %v3076_v43 }
  0xb8   :  { %1996 = vmatpush.bf16.msrb.mxu1 %v3068_v47 }
  0xb9   :  { %2022 = vmatpush.bf16.msrb.mxu3 %v3084_v48 }
  0xba   :  { %1984 = vmatpush.bf16.msrb.mxu0 %v3059_v50 }
  0xbb   :  { %2010 = vmatpush.bf16.msrb.mxu2 %v3075_v52 }
  0xbc   :  { %1997 = vmatpush.bf16.msrb.mxu1 %v3067_v55 }
  0xbd   :  { %2023 = vmatpush.bf16.msrb.mxu3 %v3083_v56 }
  0xbe   :  { %1985 = vmatpush.bf16.msrb.mxu0 %v3058_v60  ;;  %v1779_v11 = vpop.f32.mrf.mxu0 }
  0xbf   :  { %2011 = vmatpush.bf16.msrb.mxu2 %v3074_v61  ;;  %v1780_v12 = vadd.f32 %v1779_v11, %v1767_v49 }
  0xc0   :  { %1998 = vmatpush.bf16.msrb.mxu1 %v3066_v2  ;;  %v1792_v13 = vpop.f32.mrf.mxu1 }
  0xc1   :  { %2024 = vmatpush.bf16.msrb.mxu3 %v3082_v3  ;;  %1986 = vmatmul.bf16.vlgmr.msrb.gmra.mxu0 %v488_v4  ;;  %v1793_v14 = vadd.f32 %v1792_v13, %v1780_v12 }
  0xc2   :  { %2030 = vmatpush.bf16.msra.mxu0 %v3097_v62  ;;  %2012 = vmatmul.bf16.vlgmr.msrb.gmra.mxu2 %v490_v5 }
  0xc3   :  { %1999 = vmatmul.bf16.vlgmr.msrb.gmra.mxu1 %v489_v6 }
  0xc4   :  { %2025 = vmatmul.bf16.vlgmr.msrb.gmra.mxu3 %v491_v7 }
  0xc5   :  { %v1805_v16 = vpop.f32.mrf.mxu2 }
  0xc6   :  { %2031 = vmatpush.bf16.msra.mxu0 %v3096_v8  ;;  %v1806_v17 = vadd.f32 %v1805_v16, %v1793_v14  ;;  %v1781_v20 = vpop.f32.mrf.mxu0 }
  0xc7   :  { %v1818_v19 = vpop.f32.mrf.mxu3 }
  0xc8   :  { %v1819_v21 = vadd.f32 %v1818_v19, %v1806_v17  ;;  %v1794_v22 = vpop.f32.mrf.mxu1 }
  0xca   :  { %2032 = vmatpush.bf16.msra.mxu0 %v3095_v9 }
  0xcd   :  { %v1807_v25 = vpop.f32.mrf.mxu2 }
  0xce   :  { %2033 = vmatpush.bf16.msra.mxu0 %v3094_v10  ;;  %v3105_v10 = vmov 8.0  }
  0xcf   :  { %v1820_v28 = vpop.f32.mrf.mxu3  ;;  %3101 = vrcp.f32 %v3105_v10 }
  0xd2   :  { %2034 = vmatpush.bf16.msra.mxu0 %v3093_v15 }
  0xd5   :  { %v3102_v12 = vpop.eup %3101 }
  0xd6   :  { %2035 = vmatpush.bf16.msra.mxu0 %v3092_v18  ;;  %v2050_v15 = vmul.f32 8.0, %v3102_v12  ;;  %vm2054_vm0 = vweird.f32 %v3102_v12 }
  0xd8   :  { %v2051_v18 = vsub.f32 1.0, %v2050_v15 }
  0xda   :  { %2036 = vmatpush.bf16.msra.mxu0 %v3091_v23  ;;  %v2052_v22 = vmul.f32 %v3102_v12, %v2051_v18 }
  0xde   :  { %2037 = vmatpush.bf16.msra.mxu0 %v3090_v27  ;;  %v1831_v30 = vpop.f32.mrf.mxu0  ;;  %v2053_v27 = vadd.f32 %v3102_v12, %v2052_v22 }
  0xdf   :  { %v1832_v31 = vadd.f32 %v1831_v30, %v1819_v21 }
  0xe0   :  { %v1844_v32 = vpop.f32.mrf.mxu1 }
  0xe1   :  { %2038 = vmatmul.bf16.vlgmr.msra.gmra.mxu0 %v492_v29  ;;  %v1845_v33 = vadd.f32 %v1844_v32, %v1832_v31 }
  0xe5   :  { %v1857_v34 = vpop.f32.mrf.mxu2 }
  0xe6   :  { %v1858_v35 = vadd.f32 %v1857_v34, %v1845_v33  ;;  %v1833_v37 = vpop.f32.mrf.mxu0  ;;  %v2055_v33 = vsel %vm2054_vm0, %v3102_v12, %v2053_v27 }
  0xe7   :  { %v1870_v36 = vpop.f32.mrf.mxu3 }
  0xe8   :  { %v1871_v38 = vadd.f32 %v1870_v36, %v1858_v35  ;;  %v1846_v39 = vpop.f32.mrf.mxu1 }
  0xed   :  { %v1859_v40 = vpop.f32.mrf.mxu2 }
  0xef   :  { %v1872_v41 = vpop.f32.mrf.mxu3 }
  0xfe   :  { %v1883_v42 = vpop.f32.mrf.mxu0 }
  0xff   :  { %v1884_v43 = vadd.f32 %v1883_v42, %v1871_v38 }
 0x100   :  { %v1896_v44 = vpop.f32.mrf.mxu1 }
 0x101   :  { %v1897_v45 = vadd.f32 %v1896_v44, %v1884_v43 }
 0x105   :  { %v1909_v46 = vpop.f32.mrf.mxu2 }
 0x106   :  { %v1910_v47 = vadd.f32 %v1909_v46, %v1897_v45  ;;  %v1885_v49 = vpop.f32.mrf.mxu0 }
 0x107   :  { %v1922_v48 = vpop.f32.mrf.mxu3 }
 0x108   :  { %v1923_v50 = vadd.f32 %v1922_v48, %v1910_v47  ;;  %v1898_v51 = vpop.f32.mrf.mxu1 }
 0x10d   :  { %v1911_v52 = vpop.f32.mrf.mxu2 }
 0x10f   :  { %v1924_v53 = vpop.f32.mrf.mxu3 }
 0x110   :  { %v3100_v53 = vld [vmem:[%s3782_s3] ss:$0 sm:$0xff] }
 0x11e   :  { %v1935_v54 = vpop.f32.mrf.mxu0 }
 0x11f   :  { %v1936_v1 = vadd.f32 %v1935_v54, %v1923_v50  ;;  %v3099_v50 = vld [vmem:[%s3781_s2] ss:$0 sm:$0xff] }
 0x120   :  { %v1948_v55 = vpop.f32.mrf.mxu1 }
 0x121   :  { %v1949_v5 = vadd.f32 %v1948_v55, %v1936_v1 }
 0x125   :  { %v1961_v56 = vpop.f32.mrf.mxu2 }
 0x126   :  { %v1937_v58 = vpop.f32.mrf.mxu0  ;;  %v1962_v6 = vadd.f32 %v1961_v56, %v1949_v5 }
 0x127   :  { %v1974_v57 = vpop.f32.mrf.mxu3 }
 0x128   :  { %v1950_v59 = vpop.f32.mrf.mxu1  ;;  %v1975_v9 = vadd.f32 %v1974_v57, %v1962_v6 }
 0x12d   :  { %v1963_v60 = vpop.f32.mrf.mxu2 }
 0x12f   :  { %v1976_v61 = vpop.f32.mrf.mxu3 }
 0x13e   :  { %v1987_v62 = vpop.f32.mrf.mxu0 }
 0x13f   :  { %v1988_v11 = vadd.f32 %v1987_v62, %v1975_v9 }
 0x140   :  { %v2000_v63 = vpop.f32.mrf.mxu1 }
 0x141   :  { %v2001_v13 = vadd.f32 %v2000_v63, %v1988_v11 }
 0x145   :  { %v2013_v0 = vpop.f32.mrf.mxu2 }
 0x146   :  { %v1989_v3 = vpop.f32.mrf.mxu0  ;;  %v2014_v14 = vadd.f32 %v2013_v0, %v2001_v13 }
 0x147   :  { %v2026_v2 = vpop.f32.mrf.mxu3 }
 0x148   :  { %v2002_v4 = vpop.f32.mrf.mxu1  ;;  %v2027_v16 = vadd.f32 %v2026_v2, %v2014_v14 }
 0x14d   :  { %v2015_v7 = vpop.f32.mrf.mxu2 }
 0x14f   :  { %v2028_v8 = vpop.f32.mrf.mxu3 }
 0x15e   :  { %v2039_v17 = vpop.f32.mrf.mxu0 }
 0x15f   :  { %v2040_v19 = vadd.f32 %v2039_v17, %v2027_v16 }
 0x161   :  { %v2043_v20 = vrot.slane %v2040_v19, 4  ;;  %v2057_v21 = vmul.f32 %v2040_v19, %v2040_v19 }
 0x163   :  { %v2044_v23 = vadd.f32 %v2043_v20, %v2040_v19  ;;  %v2058_v24 = vrot.slane %v2057_v21, 4 }
 0x165   :  { %v2045_v25 = vrot.slane %v2044_v23, 2  ;;  %v2059_v26 = vadd.f32 %v2058_v24, %v2057_v21 }
 0x166   :  { %v2041_v28 = vpop.f32.mrf.mxu0 }
 0x167   :  { %v2046_v29 = vadd.f32 %v2045_v25, %v2044_v23  ;;  %v2060_v30 = vrot.slane %v2059_v26, 2 }
 0x169   :  { %v2047_v31 = vrot.slane %v2046_v29, 1  ;;  %v2061_v32 = vadd.f32 %v2060_v30, %v2059_v26 }
 0x16b   :  { %v2048_v34 = vadd.f32 %v2047_v31, %v2046_v29  ;;  %v2062_v35 = vrot.slane %v2061_v32, 1 }
 0x16d   :  { %v2056_v36 = vmul.f32 %v2055_v33, %v2048_v34  ;;  %v2063_v37 = vadd.f32 %v2062_v35, %v2061_v32 }
 0x16f   :  { %v2064_v38 = vmul.f32 %v2063_v37, %v2055_v33  ;;  %v2065_v39 = vmul.f32 %v2056_v36, %v2056_v36  ;;  %v2068_v49 = vsub.f32 %v2040_v19, %v2056_v36 }
 0x171   :  { %v2066_v40 = vsub.f32 %v2064_v38, %v2065_v39 }
 0x173   :  { %v2067_v41 = vmax.f32 %v2066_v40, 0.0 }
 0x175   :  { %v2069_v42 = vadd.f32 1e-05, %v2067_v41 }
 0x177   :  { %3103 = vrsqrt.f32 %v2069_v42  ;;  %vm2076_vm2 = vweird.f32 %v2069_v42 }
 0x17d   :  { %v3104_v43 = vpop.eup %3103 }
 0x17e   :  { %v2071_v44 = vmul.f32 %v3104_v43, %v2069_v42  ;;  %vm2077_vm1 = vweird.f32 %v3104_v43 }
 0x17f   :  { %vm2078_vm3 = vmor %vm2076_vm2, %vm2077_vm1 }
 0x180   :  { %v2072_v45 = vmul.f32 %v3104_v43, %v2071_v44 }
 0x182   :  { %v2073_v46 = vmul.f32 0.5, %v2072_v45 }
 0x184   :  { %v2074_v47 = vsub.f32 1.5, %v2073_v46 }
 0x186   :  { %v2075_v48 = vmul.f32 %v3104_v43, %v2074_v47 }
 0x188   :  { %v2079_v51 = vsel %vm2078_vm3, %v3104_v43, %v2075_v48 }
 0x189   :  { %v2080_v52 = vmul.f32 %v2079_v51, %v2068_v49 }
 0x18b   :  { %v2085_v54 = vmul.f32 %v3099_v50, %v2080_v52 }
 0x18d   :  { %v2090_v55 = vadd.f32 %v3100_v53, %v2085_v54 }
 0x18f   :  { %v2091_v56 = vmax.f32 %v2090_v55, 0.0 }
 0x191   :  { %v2092_v57 = vpack.c.bf16 %v2091_v56, %v2091_v56 }
 0x193   :  { %2093 = vst [vmem:[%s3783_s4] sm:$0xf] %v2092_v57 }

</bundles_post_ra>
